<compile_context>
chip_gen: v7x
topology: tpu7x:2x2x1
jax: 0.10.0
libtpu: 0.0.40
codegen_flags: <defaults>
</compile_context>

<pallas_src>
import functools
import numpy as np

import jax
import jax.numpy as jnp
from jax.experimental import pallas as pl
from jax.experimental.pallas import tpu as pltpu


def _erf_f32(x):
    # float32-accurate rational approximation of erf (same form as XLA's ErfImpl32);
    # denominator reciprocal rides the EUP slot instead of the VALU divide.
    alpha = (0.00022905065861350646, 0.0034082910107109506, 0.050955695062380861,
             0.18520832239976145, 1.128379143519084)
    beta = (-1.1791602954361697e-7, 2.3547966471313185e-5, 0.0010179625278914885,
            0.014070470171167667, 0.11098505178285362, 0.49746925110067538, 1.0)
    x = jnp.clip(x, -4.0, 4.0)
    x2 = x * x
    p = alpha[0]
    for c in alpha[1:]:
        p = p * x2 + c
    q = beta[0]
    for c in beta[1:]:
        q = q * x2 + c
    return x * p * pl.reciprocal(q, approx=True)


def _block_kernel(x_ref, posg_ref, omg_ref,
                  ln1g_ref, ln1b_ref,
                  qkv_ref, pw_ref, pb_ref,
                  ln2g_ref, ln2b_ref,
                  w1_ref, b1_ref, w2_ref, b2_ref,
                  o_ref, *, num_heads, head_dim, block_b, tokens, mlp_chunk):
    C = num_heads * head_dim
    BN = block_b * tokens
    BH = block_b * num_heads

    x = x_ref[...].reshape(BN, C)                       # flatten rows: (Bblk*N, C) f32

    def layernorm(v, g, b):
        # one-pass: var = E[x^2] - mu^2 ; rsqrt on the (free) EUP slot
        mu = jnp.mean(v, axis=-1, keepdims=True)
        ms = jnp.mean(v * v, axis=-1, keepdims=True)
        r = jax.lax.rsqrt(ms - mu * mu + 1e-5)
        return (v - mu) * (r * g) + b

    # ---- norm1 + GPSA attention ----
    xn = layernorm(x, ln1g_ref[...], ln1b_ref[...])

    # fused QKV: one (BN, C) x (C, 3C) bf16 MXU matmul, f32 accumulation.
    # (attention scale is pre-folded into the q columns of qkv_ref.)
    qkv = jnp.dot(xn.astype(jnp.bfloat16), qkv_ref[...],
                  preferred_element_type=jnp.float32)            # (BN, 3C) f32

    def split_heads(slab):                               # (BN, C) -> (Bblk*H, N, hd) bf16
        t = slab.reshape(block_b, tokens, num_heads, head_dim)
        t = t.transpose(0, 2, 1, 3)                      # single relayout per tensor
        return t.reshape(BH, tokens, head_dim).astype(jnp.bfloat16)

    q = split_heads(qkv[:, :C])
    k = split_heads(qkv[:, C:2 * C])
    v = split_heads(qkv[:, 2 * C:])

    # batched scores over the merged (batch*head) axis
    s = jnp.einsum('bnd,bmd->bnm', q, k, preferred_element_type=jnp.float32)   # (BH, N, N)
    s = s - jnp.max(s, axis=-1, keepdims=True)
    e = jnp.exp(s)
    # fold (1 - sigmoid(gate)) into the softmax reciprocal (one NxN multiply saved);
    # gated positional part sigmoid(g)*softmax(pos) is precomputed outside the kernel.
    inv = pl.reciprocal(jnp.sum(e, axis=-1, keepdims=True), approx=True)       # (BH, N, 1)
    inv = inv.reshape(block_b, num_heads, tokens, 1) * omg_ref[...]            # (Bblk,H,N,1)
    attn = e.reshape(block_b, num_heads, tokens, tokens) * inv + posg_ref[...][None]
    # NOTE: rows of attn sum to 1 analytically ((1-g)+g), so the PyTorch renorm is an identity.
    attn = attn.reshape(BH, tokens, tokens)

    out = jnp.einsum('bnm,bmd->bnd', attn.astype(jnp.bfloat16), v,
                     preferred_element_type=jnp.float32)                       # (BH, N, hd)
    attn_out = out.reshape(block_b, num_heads, tokens, head_dim)
    attn_out = attn_out.transpose(0, 2, 1, 3).reshape(BN, C)                   # heads -> channels

    y = jnp.dot(attn_out.astype(jnp.bfloat16), pw_ref[...],
                preferred_element_type=jnp.float32) + pb_ref[...]
    x1 = x + y                                          # residual 1

    # ---- norm2 + MLP (hidden dim chunked; bf16 MXU operands, f32 elementwise) ----
    xn2 = layernorm(x1, ln2g_ref[...], ln2b_ref[...]).astype(jnp.bfloat16)
    mlp_hidden = w1_ref.shape[1]
    acc = jnp.zeros((BN, C), jnp.float32)
    for j in range(mlp_hidden // mlp_chunk):             # 1 chunk at test size
        lo = j * mlp_chunk
        hid = jnp.dot(xn2, w1_ref[:, lo:lo + mlp_chunk],
                      preferred_element_type=jnp.float32) + b1_ref[:, lo:lo + mlp_chunk]
        hid = 0.5 * hid * (1.0 + _erf_f32(hid * 0.7071067811865476))   # exact (erf) GELU
        acc = acc + jnp.dot(hid.astype(jnp.bfloat16), w2_ref[lo:lo + mlp_chunk, :],
                            preferred_element_type=jnp.float32)
    y2 = acc + b2_ref[...]

    o_ref[...] = (x1 + y2).reshape(block_b, tokens, C).astype(o_ref.dtype)     # residual 2


def block_forward(x, params, num_heads, block_b=None):
    B, N, C = x.shape
    head_dim = C // num_heads
    mlp_hidden = params['fc1_w'].shape[1]
    scale = float(head_dim) ** -0.5

    if block_b is None:
        # aim for ~512 rows per grid step, but keep >= 2 grid steps so v7x's second
        # TensorCore / the DMA pipeline engage.
        target = max(1, 512 // N)
        if B >= 2:
            target = min(target, B // 2)
        block_b = 1
        for d in range(1, B + 1):
            if B % d == 0 and d <= target:
                block_b = d
    assert B % block_b == 0
    grid = (B // block_b,)

    # ---- input-independent glue (computed once, outside the kernel) ----
    gate = params['gate']                                             # sigmoid(gating), (H,)
    pos_gated = (gate[:, None, None] *
                 jax.nn.softmax(params['pos_score'], axis=-1)).astype(jnp.float32)   # (H,N,N)
    one_minus_gate = (1.0 - gate).astype(jnp.float32).reshape(1, num_heads, 1, 1)

    # fold the attention scale into the q-half of the fused QKV weight; bf16 weights in HBM
    qkv_w = params['qkv_w'].at[:, :C].multiply(scale).astype(jnp.bfloat16)
    proj_w = params['proj_w'].astype(jnp.bfloat16)
    fc1_w = params['fc1_w'].astype(jnp.bfloat16)
    fc2_w = params['fc2_w'].astype(jnp.bfloat16)

    mlp_chunk = min(mlp_hidden, 512)
    assert mlp_hidden % mlp_chunk == 0  # TODO(synk): pick a divisor chunk for odd hidden sizes

    kernel = functools.partial(_block_kernel, num_heads=num_heads, head_dim=head_dim,
                               block_b=block_b, tokens=N, mlp_chunk=mlp_chunk)

    def _call(single_buffer_consts):
        def const_spec(shape):
            idx = lambda b, _s=shape: (0,) * len(_s)
            if single_buffer_consts:
                # constant block index -> double buffering only wastes VMEM (v7x: 64 MiB)
                return pl.BlockSpec(shape, idx, pipeline_mode=pl.Buffered(1))
            return pl.BlockSpec(shape, idx)

        in_specs = [
            pl.BlockSpec((block_b, N, C), lambda b: (b, 0, 0)),       # x
            const_spec((num_heads, N, N)),                            # sigmoid(g)*softmax(pos)
            const_spec((1, num_heads, 1, 1)),                         # (1 - sigmoid(g))
            const_spec((1, C)), const_spec((1, C)),                   # ln1 gamma / beta
            const_spec((C, 3 * C)),                                   # fused qkv weight (bf16)
            const_spec((C, C)), const_spec((1, C)),                   # proj weight / bias
            const_spec((1, C)), const_spec((1, C)),                   # ln2 gamma / beta
            const_spec((C, mlp_hidden)), const_spec((1, mlp_hidden)), # fc1 weight / bias
            const_spec((mlp_hidden, C)), const_spec((1, C)),          # fc2 weight / bias
        ]
        out_spec = pl.BlockSpec((block_b, N, C), lambda b: (b, 0, 0))

        return pl.pallas_call(
            kernel,
            out_shape=jax.ShapeDtypeStruct((B, N, C), x.dtype),
            grid=grid,
            in_specs=in_specs,
            out_specs=out_spec,
            compiler_params=pltpu.CompilerParams(
                dimension_semantics=("parallel",),        # independent batch blocks
                vmem_limit_bytes=56 * 1024 * 1024),       # fits v7x's 64 MiB; raise on v5e/v6e
        )(x, pos_gated, one_minus_gate,
          params['ln1_g'], params['ln1_b'],
          qkv_w, proj_w, params['proj_b'],
          params['ln2_g'], params['ln2_b'],
          fc1_w, params['fc1_b'], fc2_w, params['fc2_b'])

    try:
        return _call(True)
    except Exception:
        # pipeline_mode=pl.Buffered(1) not supported by this JAX build -> default buffering
        return _call(False)


def init_params(key, dim, num_heads, mlp_ratio, N):
    """Deterministic synthetic parameters matching the PyTorch module's shapes."""
    mlp_hidden = int(dim * mlp_ratio)
    keys = jax.random.split(key, 6)
    s = 0.02

    # Linear weights in (in, out) layout (transposed vs. torch (out, in)).
    qk_w = jax.random.normal(keys[0], (dim, 2 * dim), jnp.float32) * s   # qk, no bias
    v_w = jax.random.normal(keys[1], (dim, dim), jnp.float32) * s        # v, no bias
    proj_w = jax.random.normal(keys[2], (dim, dim), jnp.float32) * s
    proj_b = jnp.zeros((1, dim), jnp.float32)
    pos_w = jax.random.normal(keys[3], (num_heads, 3), jnp.float32) * s  # torch layout (out, in)
    pos_b = jnp.zeros((num_heads,), jnp.float32)
    gating = jnp.ones((num_heads,), jnp.float32)                         # nn.Parameter(torch.ones)
    fc1_w = jax.random.normal(keys[4], (dim, mlp_hidden), jnp.float32) * s
    fc1_b = jnp.zeros((1, mlp_hidden), jnp.float32)
    fc2_w = jax.random.normal(keys[5], (mlp_hidden, dim), jnp.float32) * s
    fc2_b = jnp.zeros((1, dim), jnp.float32)

    # Fused lane-dense (C, 3C) layout: [q | k | v]; within each, column = h*head_dim + d,
    # matching the torch reshape(B, N, ., H, C//H) channel ordering.
    qkv_w = jnp.concatenate([qk_w[:, :dim], qk_w[:, dim:], v_w], axis=1)

    # rel_indices exactly as GPSA.get_rel_indices (input independent)
    img = int(round(N ** 0.5))
    ind = jnp.arange(img)[None, :] - jnp.arange(img)[:, None]
    indx = jnp.tile(ind, (img, img)).astype(jnp.float32)
    indy = jnp.repeat(jnp.repeat(ind, img, axis=0), img, axis=1).astype(jnp.float32)
    indd = indx ** 2 + indy ** 2
    rel = jnp.stack([indx, indy, indd], axis=-1)                         # (N, N, 3)
    # pos_proj(rel_indices).permute(0, 3, 1, 2) -> (H, N, N)
    pos_score = jnp.einsum('nmk,hk->hnm', rel, pos_w) + pos_b[:, None, None]
    gate = jax.nn.sigmoid(gating)

    return dict(pos_score=pos_score, gate=gate, qkv_w=qkv_w,
                ln1_g=jnp.ones((1, dim), jnp.float32), ln1_b=jnp.zeros((1, dim), jnp.float32),
                ln2_g=jnp.ones((1, dim), jnp.float32), ln2_b=jnp.zeros((1, dim), jnp.float32),
                proj_w=proj_w, proj_b=proj_b,
                fc1_w=fc1_w, fc1_b=fc1_b, fc2_w=fc2_w, fc2_b=fc2_b)


def reference_block(x, p, num_heads):
    """Pure-JAX f32 reference mirroring the PyTorch Block.forward."""
    B, N, C = x.shape
    hd = C // num_heads
    scale = hd ** -0.5

    def ln(v, g, b):
        mu = v.mean(-1, keepdims=True)
        var = ((v - mu) ** 2).mean(-1, keepdims=True)
        return (v - mu) / jnp.sqrt(var + 1e-5) * g + b

    xn = ln(x, p['ln1_g'][0], p['ln1_b'][0])
    qkv = xn @ p['qkv_w']                                                # (B, N, 3C)
    q = qkv[..., :C].reshape(B, N, num_heads, hd).transpose(0, 2, 1, 3)
    k = qkv[..., C:2 * C].reshape(B, N, num_heads, hd).transpose(0, 2, 1, 3)
    v = qkv[..., 2 * C:].reshape(B, N, num_heads, hd).transpose(0, 2, 1, 3)
    patch = jax.nn.softmax(jnp.einsum('bhnd,bhmd->bhnm', q, k) * scale, axis=-1)
    pos = jax.nn.softmax(p['pos_score'], axis=-1)[None]
    g = p['gate'][None, :, None, None]
    attn = (1.0 - g) * patch + g * pos
    attn = attn / attn.sum(-1, keepdims=True)
    out = jnp.einsum('bhnm,bhmd->bhnd', attn, v)
    out = out.transpose(0, 2, 1, 3).reshape(B, N, C)
    x1 = x + out @ p['proj_w'] + p['proj_b'][0]
    xn2 = ln(x1, p['ln2_g'][0], p['ln2_b'][0])
    h1 = xn2 @ p['fc1_w'] + p['fc1_b'][0]
    h1 = 0.5 * h1 * (1.0 + jax.scipy.special.erf(h1 / jnp.sqrt(2.0)))
    return x1 + h1 @ p['fc2_w'] + p['fc2_b'][0]


if __name__ == "__main__":
    B, dim, num_heads = 2, 128, 8        # head_dim = 16, mlp_hidden = 512 (lane-dense C)
    img = 4
    N = img * img                        # num_patches (square, as GPSA assumes)

    key = jax.random.PRNGKey(0)
    kx, kp = jax.random.split(key)
    x = jax.random.normal(kx, (B, N, dim), jnp.float32)
    params = init_params(kp, dim, num_heads, mlp_ratio=4.0, N=N)

    out = jax.block_until_ready(block_forward(x, params, num_heads))

    ref = reference_block(x, params, num_heads)
    # slightly looser tolerance than before: MXU operands are bf16 (accumulation in f32)
    np.testing.assert_allclose(np.asarray(out), np.asarray(ref), atol=5e-3, rtol=2e-2)

    print("KERNEL_OK")
</pallas_src>

<mosaic_0001>
module attributes {stable_mosaic.version = 11 : i64} {
  func.func @_block_kernel(%arg0: i32, %arg1: memref<1x16x128xf32, #tpu.memory_space<vmem>>, %arg2: memref<8x16x16xf32, #tpu.memory_space<vmem>>, %arg3: memref<1x8x1x1xf32, #tpu.memory_space<vmem>>, %arg4: memref<1x128xf32, #tpu.memory_space<vmem>>, %arg5: memref<1x128xf32, #tpu.memory_space<vmem>>, %arg6: memref<128x384xbf16, #tpu.memory_space<vmem>>, %arg7: memref<128x128xbf16, #tpu.memory_space<vmem>>, %arg8: memref<1x128xf32, #tpu.memory_space<vmem>>, %arg9: memref<1x128xf32, #tpu.memory_space<vmem>>, %arg10: memref<1x128xf32, #tpu.memory_space<vmem>>, %arg11: memref<128x512xbf16, #tpu.memory_space<vmem>>, %arg12: memref<1x512xf32, #tpu.memory_space<vmem>>, %arg13: memref<512x128xbf16, #tpu.memory_space<vmem>>, %arg14: memref<1x128xf32, #tpu.memory_space<vmem>>, %arg15: memref<1x16x128xf32, #tpu.memory_space<vmem>>) attributes {dimension_semantics = [#tpu.dimension_semantics<parallel>], iteration_bounds = array<i64: 2>, scalar_prefetch = 0 : i64, scratch_operands = 0 : i64, tpu.core_type = #tpu.core_type<tc>, window_params = [{transform_indices = @transform_0, window_bounds = array<i64: 1, 16, 128>}, {pipeline_mode = #tpu.pipeline_mode<synchronous>, transform_indices = @transform_1, window_bounds = array<i64: 8, 16, 16>}, {pipeline_mode = #tpu.pipeline_mode<synchronous>, transform_indices = @transform_2, window_bounds = array<i64: 1, 8, 1, 1>}, {pipeline_mode = #tpu.pipeline_mode<synchronous>, transform_indices = @transform_3, window_bounds = array<i64: 1, 128>}, {pipeline_mode = #tpu.pipeline_mode<synchronous>, transform_indices = @transform_4, window_bounds = array<i64: 1, 128>}, {pipeline_mode = #tpu.pipeline_mode<synchronous>, transform_indices = @transform_5, window_bounds = array<i64: 128, 384>}, {pipeline_mode = #tpu.pipeline_mode<synchronous>, transform_indices = @transform_6, window_bounds = array<i64: 128, 128>}, {pipeline_mode = #tpu.pipeline_mode<synchronous>, transform_indices = @transform_7, window_bounds = array<i64: 1, 128>}, {pipeline_mode = #tpu.pipeline_mode<synchronous>, transform_indices = @transform_8, window_bounds = array<i64: 1, 128>}, {pipeline_mode = #tpu.pipeline_mode<synchronous>, transform_indices = @transform_9, window_bounds = array<i64: 1, 128>}, {pipeline_mode = #tpu.pipeline_mode<synchronous>, transform_indices = @transform_10, window_bounds = array<i64: 128, 512>}, {pipeline_mode = #tpu.pipeline_mode<synchronous>, transform_indices = @transform_11, window_bounds = array<i64: 1, 512>}, {pipeline_mode = #tpu.pipeline_mode<synchronous>, transform_indices = @transform_12, window_bounds = array<i64: 512, 128>}, {pipeline_mode = #tpu.pipeline_mode<synchronous>, transform_indices = @transform_13, window_bounds = array<i64: 1, 128>}, {transform_indices = @transform_14, window_bounds = array<i64: 1, 16, 128>}]} {
    %c0 = arith.constant 0 : index
    %c0_0 = arith.constant 0 : index
    %c0_1 = arith.constant 0 : index
    %0 = vector.load %arg1[%c0, %c0_0, %c0_1] : memref<1x16x128xf32, #tpu.memory_space<vmem>>, vector<1x16x128xf32>
    %1 = vector.shape_cast %0 : vector<1x16x128xf32> to vector<16x128xf32>
    %c0_2 = arith.constant 0 : index
    %c0_3 = arith.constant 0 : index
    %2 = vector.load %arg4[%c0_2, %c0_3] : memref<1x128xf32, #tpu.memory_space<vmem>>, vector<1x128xf32>
    %c0_4 = arith.constant 0 : index
    %c0_5 = arith.constant 0 : index
    %3 = vector.load %arg5[%c0_4, %c0_5] : memref<1x128xf32, #tpu.memory_space<vmem>>, vector<1x128xf32>
    %cst = arith.constant dense<0.000000e+00> : vector<16xf32>
    %4 = vector.multi_reduction <add>, %1, %cst [1] : vector<16x128xf32> to vector<16xf32>
    %5 = vector.shape_cast %4 : vector<16xf32> to vector<16x1xf32>
    %cst_6 = arith.constant 1.280000e+02 : f32
    %6 = vector.broadcast %cst_6 : f32 to vector<16x1xf32>
    %7 = arith.divf %5, %6 : vector<16x1xf32>
    %8 = arith.mulf %1, %1 : vector<16x128xf32>
    %cst_7 = arith.constant dense<0.000000e+00> : vector<16xf32>
    %9 = vector.multi_reduction <add>, %8, %cst_7 [1] : vector<16x128xf32> to vector<16xf32>
    %10 = vector.shape_cast %9 : vector<16xf32> to vector<16x1xf32>
    %cst_8 = arith.constant 1.280000e+02 : f32
    %11 = vector.broadcast %cst_8 : f32 to vector<16x1xf32>
    %12 = arith.divf %10, %11 : vector<16x1xf32>
    %13 = arith.mulf %7, %7 : vector<16x1xf32>
    %14 = arith.subf %12, %13 : vector<16x1xf32>
    %cst_9 = arith.constant 9.99999974E-6 : f32
    %15 = vector.broadcast %cst_9 : f32 to vector<16x1xf32>
    %16 = arith.addf %14, %15 : vector<16x1xf32>
    %17 = math.rsqrt %16 : vector<16x1xf32>
    %18 = vector.broadcast %7 : vector<16x1xf32> to vector<16x128xf32>
    %19 = arith.subf %1, %18 : vector<16x128xf32>
    %20 = vector.broadcast %17 : vector<16x1xf32> to vector<16x128xf32>
    %21 = vector.broadcast %2 : vector<1x128xf32> to vector<16x128xf32>
    %22 = arith.mulf %20, %21 : vector<16x128xf32>
    %23 = arith.mulf %19, %22 : vector<16x128xf32>
    %24 = vector.broadcast %3 : vector<1x128xf32> to vector<16x128xf32>
    %25 = arith.addf %23, %24 : vector<16x128xf32>
    %26 = arith.truncf %25 : vector<16x128xf32> to vector<16x128xbf16>
    %c0_10 = arith.constant 0 : index
    %c0_11 = arith.constant 0 : index
    %27 = vector.load %arg6[%c0_10, %c0_11] : memref<128x384xbf16, #tpu.memory_space<vmem>>, vector<128x384xbf16>
    %cst_12 = arith.constant dense<0.000000e+00> : vector<16x384xf32>
    %28 = tpu.matmul %26, %27, %cst_12 {dimension_numbers = #tpu.dot_dimension_numbers<[1], [0], [0], [1], [0, 0, 1, 1], [], []>} : vector<16x128xbf16>, vector<128x384xbf16>, vector<16x384xf32> -> vector<16x384xf32>
    %29 = vector.extract_strided_slice %28 {offsets = [0, 0], sizes = [16, 128], strides = [1, 1]} : vector<16x384xf32> to vector<16x128xf32>
    %30 = vector.shape_cast %29 : vector<16x128xf32> to vector<1x16x8x16xf32>
    %31 = tpu.transpose %30, [0, 2, 1, 3] : vector<1x16x8x16xf32> -> vector<1x8x16x16xf32>
    %32 = vector.shape_cast %31 : vector<1x8x16x16xf32> to vector<8x16x16xf32>
    %33 = arith.truncf %32 : vector<8x16x16xf32> to vector<8x16x16xbf16>
    %34 = vector.extract_strided_slice %28 {offsets = [0, 128], sizes = [16, 128], strides = [1, 1]} : vector<16x384xf32> to vector<16x128xf32>
    %35 = vector.shape_cast %34 : vector<16x128xf32> to vector<1x16x8x16xf32>
    %36 = tpu.transpose %35, [0, 2, 1, 3] : vector<1x16x8x16xf32> -> vector<1x8x16x16xf32>
    %37 = vector.shape_cast %36 : vector<1x8x16x16xf32> to vector<8x16x16xf32>
    %38 = arith.truncf %37 : vector<8x16x16xf32> to vector<8x16x16xbf16>
    %39 = vector.extract_strided_slice %28 {offsets = [0, 256], sizes = [16, 128], strides = [1, 1]} : vector<16x384xf32> to vector<16x128xf32>
    %40 = vector.shape_cast %39 : vector<16x128xf32> to vector<1x16x8x16xf32>
    %41 = tpu.transpose %40, [0, 2, 1, 3] : vector<1x16x8x16xf32> -> vector<1x8x16x16xf32>
    %42 = vector.shape_cast %41 : vector<1x8x16x16xf32> to vector<8x16x16xf32>
    %43 = arith.truncf %42 : vector<8x16x16xf32> to vector<8x16x16xbf16>
    "tpu.trace_start"() <{level = 10 : i32, message = "bnd,bmd->bnm"}> : () -> ()
    %cst_13 = arith.constant dense<0.000000e+00> : vector<8x16x16xf32>
    %44 = tpu.matmul %33, %38, %cst_13 {dimension_numbers = #tpu.dot_dimension_numbers<[2], [2], [1], [1], [0, 0, 0, 1, 1, 1], [0], [0]>} : vector<8x16x16xbf16>, vector<8x16x16xbf16>, vector<8x16x16xf32> -> vector<8x16x16xf32>
    "tpu.trace_stop"() : () -> ()
    %cst_14 = arith.constant dense<0xFF800000> : vector<8x16xf32>
    %45 = vector.multi_reduction <maximumf>, %44, %cst_14 [2] : vector<8x16x16xf32> to vector<8x16xf32>
    %46 = vector.shape_cast %45 : vector<8x16xf32> to vector<8x16x1xf32>
    %47 = vector.broadcast %46 : vector<8x16x1xf32> to vector<8x16x16xf32>
    %48 = arith.subf %44, %47 : vector<8x16x16xf32>
    %49 = math.exp %48 : vector<8x16x16xf32>
    %cst_15 = arith.constant dense<0.000000e+00> : vector<8x16xf32>
    %50 = vector.multi_reduction <add>, %49, %cst_15 [2] : vector<8x16x16xf32> to vector<8x16xf32>
    %51 = vector.shape_cast %50 : vector<8x16xf32> to vector<8x16x1xf32>
    %52 = tpu.reciprocal %51 {approx = true} : vector<8x16x1xf32> -> vector<8x16x1xf32>
    %53 = vector.shape_cast %52 : vector<8x16x1xf32> to vector<1x8x16x1xf32>
    %c0_16 = arith.constant 0 : index
    %c0_17 = arith.constant 0 : index
    %c0_18 = arith.constant 0 : index
    %c0_19 = arith.constant 0 : index
    %54 = vector.load %arg3[%c0_16, %c0_17, %c0_18, %c0_19] : memref<1x8x1x1xf32, #tpu.memory_space<vmem>>, vector<1x8x1x1xf32>
    %55 = vector.broadcast %54 : vector<1x8x1x1xf32> to vector<1x8x16x1xf32>
    %56 = arith.mulf %53, %55 : vector<1x8x16x1xf32>
    %57 = vector.shape_cast %49 : vector<8x16x16xf32> to vector<1x8x16x16xf32>
    %58 = vector.broadcast %56 : vector<1x8x16x1xf32> to vector<1x8x16x16xf32>
    %59 = arith.mulf %57, %58 : vector<1x8x16x16xf32>
    %c0_20 = arith.constant 0 : index
    %c0_21 = arith.constant 0 : index
    %c0_22 = arith.constant 0 : index
    %60 = vector.load %arg2[%c0_20, %c0_21, %c0_22] : memref<8x16x16xf32, #tpu.memory_space<vmem>>, vector<8x16x16xf32>
    %61 = vector.shape_cast %60 : vector<8x16x16xf32> to vector<1x8x16x16xf32>
    %62 = arith.addf %59, %61 : vector<1x8x16x16xf32>
    %63 = vector.shape_cast %62 : vector<1x8x16x16xf32> to vector<8x16x16xf32>
    %64 = arith.truncf %63 : vector<8x16x16xf32> to vector<8x16x16xbf16>
    "tpu.trace_start"() <{level = 10 : i32, message = "bnm,bmd->bnd"}> : () -> ()
    %cst_23 = arith.constant dense<0.000000e+00> : vector<8x16x16xf32>
    %65 = tpu.matmul %64, %43, %cst_23 {dimension_numbers = #tpu.dot_dimension_numbers<[2], [1], [1], [2], [0, 0, 0, 1, 1, 2], [0], [0]>} : vector<8x16x16xbf16>, vector<8x16x16xbf16>, vector<8x16x16xf32> -> vector<8x16x16xf32>
    "tpu.trace_stop"() : () -> ()
    %66 = vector.shape_cast %65 : vector<8x16x16xf32> to vector<1x8x16x16xf32>
    %67 = tpu.transpose %66, [0, 2, 1, 3] : vector<1x8x16x16xf32> -> vector<1x16x8x16xf32>
    %68 = vector.shape_cast %67 : vector<1x16x8x16xf32> to vector<16x128xf32>
    %69 = arith.truncf %68 : vector<16x128xf32> to vector<16x128xbf16>
    %c0_24 = arith.constant 0 : index
    %c0_25 = arith.constant 0 : index
    %70 = vector.load %arg7[%c0_24, %c0_25] : memref<128x128xbf16, #tpu.memory_space<vmem>>, vector<128x128xbf16>
    %cst_26 = arith.constant dense<0.000000e+00> : vector<16x128xf32>
    %71 = tpu.matmul %69, %70, %cst_26 {dimension_numbers = #tpu.dot_dimension_numbers<[1], [0], [0], [1], [0, 0, 1, 1], [], []>} : vector<16x128xbf16>, vector<128x128xbf16>, vector<16x128xf32> -> vector<16x128xf32>
    %c0_27 = arith.constant 0 : index
    %c0_28 = arith.constant 0 : index
    %72 = vector.load %arg8[%c0_27, %c0_28] : memref<1x128xf32, #tpu.memory_space<vmem>>, vector<1x128xf32>
    %73 = vector.broadcast %72 : vector<1x128xf32> to vector<16x128xf32>
    %74 = arith.addf %71, %73 : vector<16x128xf32>
    %75 = arith.addf %1, %74 : vector<16x128xf32>
    %c0_29 = arith.constant 0 : index
    %c0_30 = arith.constant 0 : index
    %76 = vector.load %arg9[%c0_29, %c0_30] : memref<1x128xf32, #tpu.memory_space<vmem>>, vector<1x128xf32>
    %c0_31 = arith.constant 0 : index
    %c0_32 = arith.constant 0 : index
    %77 = vector.load %arg10[%c0_31, %c0_32] : memref<1x128xf32, #tpu.memory_space<vmem>>, vector<1x128xf32>
    %cst_33 = arith.constant dense<0.000000e+00> : vector<16xf32>
    %78 = vector.multi_reduction <add>, %75, %cst_33 [1] : vector<16x128xf32> to vector<16xf32>
    %79 = vector.shape_cast %78 : vector<16xf32> to vector<16x1xf32>
    %cst_34 = arith.constant 1.280000e+02 : f32
    %80 = vector.broadcast %cst_34 : f32 to vector<16x1xf32>
    %81 = arith.divf %79, %80 : vector<16x1xf32>
    %82 = arith.mulf %75, %75 : vector<16x128xf32>
    %cst_35 = arith.constant dense<0.000000e+00> : vector<16xf32>
    %83 = vector.multi_reduction <add>, %82, %cst_35 [1] : vector<16x128xf32> to vector<16xf32>
    %84 = vector.shape_cast %83 : vector<16xf32> to vector<16x1xf32>
    %cst_36 = arith.constant 1.280000e+02 : f32
    %85 = vector.broadcast %cst_36 : f32 to vector<16x1xf32>
    %86 = arith.divf %84, %85 : vector<16x1xf32>
    %87 = arith.mulf %81, %81 : vector<16x1xf32>
    %88 = arith.subf %86, %87 : vector<16x1xf32>
    %cst_37 = arith.constant 9.99999974E-6 : f32
    %89 = vector.broadcast %cst_37 : f32 to vector<16x1xf32>
    %90 = arith.addf %88, %89 : vector<16x1xf32>
    %91 = math.rsqrt %90 : vector<16x1xf32>
    %92 = vector.broadcast %81 : vector<16x1xf32> to vector<16x128xf32>
    %93 = arith.subf %75, %92 : vector<16x128xf32>
    %94 = vector.broadcast %91 : vector<16x1xf32> to vector<16x128xf32>
    %95 = vector.broadcast %76 : vector<1x128xf32> to vector<16x128xf32>
    %96 = arith.mulf %94, %95 : vector<16x128xf32>
    %97 = arith.mulf %93, %96 : vector<16x128xf32>
    %98 = vector.broadcast %77 : vector<1x128xf32> to vector<16x128xf32>
    %99 = arith.addf %97, %98 : vector<16x128xf32>
    %100 = arith.truncf %99 : vector<16x128xf32> to vector<16x128xbf16>
    %cst_38 = arith.constant 0.000000e+00 : f32
    %101 = vector.broadcast %cst_38 : f32 to vector<16x128xf32>
    %c0_39 = arith.constant 0 : index
    %c0_40 = arith.constant 0 : index
    %102 = vector.load %arg11[%c0_39, %c0_40] : memref<128x512xbf16, #tpu.memory_space<vmem>>, vector<128x512xbf16>
    %cst_41 = arith.constant dense<0.000000e+00> : vector<16x512xf32>
    %103 = tpu.matmul %100, %102, %cst_41 {dimension_numbers = #tpu.dot_dimension_numbers<[1], [0], [0], [1], [0, 0, 1, 1], [], []>} : vector<16x128xbf16>, vector<128x512xbf16>, vector<16x512xf32> -> vector<16x512xf32>
    %c0_42 = arith.constant 0 : index
    %c0_43 = arith.constant 0 : index
    %104 = vector.load %arg12[%c0_42, %c0_43] : memref<1x512xf32, #tpu.memory_space<vmem>>, vector<1x512xf32>
    %105 = vector.broadcast %104 : vector<1x512xf32> to vector<16x512xf32>
    %106 = arith.addf %103, %105 : vector<16x512xf32>
    %cst_44 = arith.constant 5.000000e-01 : f32
    %107 = vector.broadcast %cst_44 : f32 to vector<16x512xf32>
    %108 = arith.mulf %107, %106 : vector<16x512xf32>
    %cst_45 = arith.constant 0.707106769 : f32
    %109 = vector.broadcast %cst_45 : f32 to vector<16x512xf32>
    %110 = arith.mulf %106, %109 : vector<16x512xf32>
    %cst_46 = arith.constant -4.000000e+00 : f32
    %cst_47 = arith.constant 4.000000e+00 : f32
    %111 = vector.broadcast %cst_46 : f32 to vector<16x512xf32>
    %112 = arith.maximumf %111, %110 : vector<16x512xf32>
    %113 = vector.broadcast %cst_47 : f32 to vector<16x512xf32>
    %114 = arith.minimumf %113, %112 : vector<16x512xf32>
    %115 = arith.mulf %114, %114 : vector<16x512xf32>
    %cst_48 = arith.constant 2.29050653E-4 : f32
    %116 = vector.broadcast %cst_48 : f32 to vector<16x512xf32>
    %117 = arith.mulf %116, %115 : vector<16x512xf32>
    %cst_49 = arith.constant 0.00340829091 : f32
    %118 = vector.broadcast %cst_49 : f32 to vector<16x512xf32>
    %119 = arith.addf %117, %118 : vector<16x512xf32>
    %120 = arith.mulf %119, %115 : vector<16x512xf32>
    %cst_50 = arith.constant 0.0509556942 : f32
    %121 = vector.broadcast %cst_50 : f32 to vector<16x512xf32>
    %122 = arith.addf %120, %121 : vector<16x512xf32>
    %123 = arith.mulf %122, %115 : vector<16x512xf32>
    %cst_51 = arith.constant 0.185208321 : f32
    %124 = vector.broadcast %cst_51 : f32 to vector<16x512xf32>
    %125 = arith.addf %123, %124 : vector<16x512xf32>
    %126 = arith.mulf %125, %115 : vector<16x512xf32>
    %cst_52 = arith.constant 1.12837911 : f32
    %127 = vector.broadcast %cst_52 : f32 to vector<16x512xf32>
    %128 = arith.addf %126, %127 : vector<16x512xf32>
    %cst_53 = arith.constant -1.17916031E-7 : f32
    %129 = vector.broadcast %cst_53 : f32 to vector<16x512xf32>
    %130 = arith.mulf %129, %115 : vector<16x512xf32>
    %cst_54 = arith.constant 2.35479656E-5 : f32
    %131 = vector.broadcast %cst_54 : f32 to vector<16x512xf32>
    %132 = arith.addf %130, %131 : vector<16x512xf32>
    %133 = arith.mulf %132, %115 : vector<16x512xf32>
    %cst_55 = arith.constant 0.00101796258 : f32
    %134 = vector.broadcast %cst_55 : f32 to vector<16x512xf32>
    %135 = arith.addf %133, %134 : vector<16x512xf32>
    %136 = arith.mulf %135, %115 : vector<16x512xf32>
    %cst_56 = arith.constant 0.0140704699 : f32
    %137 = vector.broadcast %cst_56 : f32 to vector<16x512xf32>
    %138 = arith.addf %136, %137 : vector<16x512xf32>
    %139 = arith.mulf %138, %115 : vector<16x512xf32>
    %cst_57 = arith.constant 0.110985048 : f32
    %140 = vector.broadcast %cst_57 : f32 to vector<16x512xf32>
    %141 = arith.addf %139, %140 : vector<16x512xf32>
    %142 = arith.mulf %141, %115 : vector<16x512xf32>
    %cst_58 = arith.constant 0.497469246 : f32
    %143 = vector.broadcast %cst_58 : f32 to vector<16x512xf32>
    %144 = arith.addf %142, %143 : vector<16x512xf32>
    %145 = arith.mulf %144, %115 : vector<16x512xf32>
    %cst_59 = arith.constant 1.000000e+00 : f32
    %146 = vector.broadcast %cst_59 : f32 to vector<16x512xf32>
    %147 = arith.addf %145, %146 : vector<16x512xf32>
    %148 = arith.mulf %114, %128 : vector<16x512xf32>
    %149 = tpu.reciprocal %147 {approx = true} : vector<16x512xf32> -> vector<16x512xf32>
    %150 = arith.mulf %148, %149 : vector<16x512xf32>
    %cst_60 = arith.constant 1.000000e+00 : f32
    %151 = vector.broadcast %cst_60 : f32 to vector<16x512xf32>
    %152 = arith.addf %151, %150 : vector<16x512xf32>
    %153 = arith.mulf %108, %152 : vector<16x512xf32>
    %154 = arith.truncf %153 : vector<16x512xf32> to vector<16x512xbf16>
    %c0_61 = arith.constant 0 : index
    %c0_62 = arith.constant 0 : index
    %155 = vector.load %arg13[%c0_61, %c0_62] : memref<512x128xbf16, #tpu.memory_space<vmem>>, vector<512x128xbf16>
    %cst_63 = arith.constant dense<0.000000e+00> : vector<16x128xf32>
    %156 = tpu.matmul %154, %155, %cst_63 {dimension_numbers = #tpu.dot_dimension_numbers<[1], [0], [0], [1], [0, 0, 1, 1], [], []>} : vector<16x512xbf16>, vector<512x128xbf16>, vector<16x128xf32> -> vector<16x128xf32>
    %157 = arith.addf %101, %156 : vector<16x128xf32>
    %c0_64 = arith.constant 0 : index
    %c0_65 = arith.constant 0 : index
    %158 = vector.load %arg14[%c0_64, %c0_65] : memref<1x128xf32, #tpu.memory_space<vmem>>, vector<1x128xf32>
    %159 = vector.broadcast %158 : vector<1x128xf32> to vector<16x128xf32>
    %160 = arith.addf %157, %159 : vector<16x128xf32>
    %161 = arith.addf %75, %160 : vector<16x128xf32>
    %162 = vector.shape_cast %161 : vector<16x128xf32> to vector<1x16x128xf32>
    %c0_66 = arith.constant 0 : index
    %c0_67 = arith.constant 0 : index
    %c0_68 = arith.constant 0 : index
    %163 = vector.load %arg15[%c0_66, %c0_67, %c0_68] : memref<1x16x128xf32, #tpu.memory_space<vmem>>, vector<1x16x128xf32>
    tpu.vector_store %arg15[%c0_66, %c0_67, %c0_68], %162 {strides = array<i32>} : memref<1x16x128xf32, #tpu.memory_space<vmem>>, vector<1x16x128xf32>,
    return
  }
  func.func @transform_0(%arg0: i32) -> (i32, i32, i32) {
    %c0_i32 = arith.constant 0 : i32
    %c0_i32_0 = arith.constant 0 : i32
    %c0_i32_1 = arith.constant 0 : i32
    return %arg0, %c0_i32, %c0_i32_0 : i32, i32, i32
  }
  func.func @transform_1(%arg0: i32) -> (i32, i32, i32) {
    %c0_i32 = arith.constant 0 : i32
    %c0_i32_0 = arith.constant 0 : i32
    %c0_i32_1 = arith.constant 0 : i32
    %c0_i32_2 = arith.constant 0 : i32
    return %c0_i32, %c0_i32_0, %c0_i32_1 : i32, i32, i32
  }
  func.func @transform_2(%arg0: i32) -> (i32, i32, i32, i32) {
    %c0_i32 = arith.constant 0 : i32
    %c0_i32_0 = arith.constant 0 : i32
    %c0_i32_1 = arith.constant 0 : i32
    %c0_i32_2 = arith.constant 0 : i32
    %c0_i32_3 = arith.constant 0 : i32
    return %c0_i32, %c0_i32_0, %c0_i32_1, %c0_i32_2 : i32, i32, i32, i32
  }
  func.func @transform_3(%arg0: i32) -> (i32, i32) {
    %c0_i32 = arith.constant 0 : i32
    %c0_i32_0 = arith.constant 0 : i32
    %c0_i32_1 = arith.constant 0 : i32
    return %c0_i32, %c0_i32_0 : i32, i32
  }
  func.func @transform_4(%arg0: i32) -> (i32, i32) {
    %c0_i32 = arith.constant 0 : i32
    %c0_i32_0 = arith.constant 0 : i32
    %c0_i32_1 = arith.constant 0 : i32
    return %c0_i32, %c0_i32_0 : i32, i32
  }
  func.func @transform_5(%arg0: i32) -> (i32, i32) {
    %c0_i32 = arith.constant 0 : i32
    %c0_i32_0 = arith.constant 0 : i32
    %c0_i32_1 = arith.constant 0 : i32
    return %c0_i32, %c0_i32_0 : i32, i32
  }
  func.func @transform_6(%arg0: i32) -> (i32, i32) {
    %c0_i32 = arith.constant 0 : i32
    %c0_i32_0 = arith.constant 0 : i32
    %c0_i32_1 = arith.constant 0 : i32
    return %c0_i32, %c0_i32_0 : i32, i32
  }
  func.func @transform_7(%arg0: i32) -> (i32, i32) {
    %c0_i32 = arith.constant 0 : i32
    %c0_i32_0 = arith.constant 0 : i32
    %c0_i32_1 = arith.constant 0 : i32
    return %c0_i32, %c0_i32_0 : i32, i32
  }
  func.func @transform_8(%arg0: i32) -> (i32, i32) {
    %c0_i32 = arith.constant 0 : i32
    %c0_i32_0 = arith.constant 0 : i32
    %c0_i32_1 = arith.constant 0 : i32
    return %c0_i32, %c0_i32_0 : i32, i32
  }
  func.func @transform_9(%arg0: i32) -> (i32, i32) {
    %c0_i32 = arith.constant 0 : i32
    %c0_i32_0 = arith.constant 0 : i32
    %c0_i32_1 = arith.constant 0 : i32
    return %c0_i32, %c0_i32_0 : i32, i32
  }
  func.func @transform_10(%arg0: i32) -> (i32, i32) {
    %c0_i32 = arith.constant 0 : i32
    %c0_i32_0 = arith.constant 0 : i32
    %c0_i32_1 = arith.constant 0 : i32
    return %c0_i32, %c0_i32_0 : i32, i32
  }
  func.func @transform_11(%arg0: i32) -> (i32, i32) {
    %c0_i32 = arith.constant 0 : i32
    %c0_i32_0 = arith.constant 0 : i32
    %c0_i32_1 = arith.constant 0 : i32
    return %c0_i32, %c0_i32_0 : i32, i32
  }
  func.func @transform_12(%arg0: i32) -> (i32, i32) {
    %c0_i32 = arith.constant 0 : i32
    %c0_i32_0 = arith.constant 0 : i32
    %c0_i32_1 = arith.constant 0 : i32
    return %c0_i32, %c0_i32_0 : i32, i32
  }
  func.func @transform_13(%arg0: i32) -> (i32, i32) {
    %c0_i32 = arith.constant 0 : i32
    %c0_i32_0 = arith.constant 0 : i32
    %c0_i32_1 = arith.constant 0 : i32
    return %c0_i32, %c0_i32_0 : i32, i32
  }
  func.func @transform_14(%arg0: i32) -> (i32, i32, i32) {
    %c0_i32 = arith.constant 0 : i32
    %c0_i32_0 = arith.constant 0 : i32
    %c0_i32_1 = arith.constant 0 : i32
    return %arg0, %c0_i32, %c0_i32_0 : i32, i32, i32
  }
}

module attributes {stable_mosaic.version = 11 : i64} {
  func.func @_block_kernel(%arg0: i32, %arg1: memref<1x16x128xf32, #tpu.memory_space<vmem>>, %arg2: memref<8x16x16xf32, #tpu.memory_space<vmem>>, %arg3: memref<1x8x1x1xf32, #tpu.memory_space<vmem>>, %arg4: memref<1x128xf32, #tpu.memory_space<vmem>>, %arg5: memref<1x128xf32, #tpu.memory_space<vmem>>, %arg6: memref<128x384xbf16, #tpu.memory_space<vmem>>, %arg7: memref<128x128xbf16, #tpu.memory_space<vmem>>, %arg8: memref<1x128xf32, #tpu.memory_space<vmem>>, %arg9: memref<1x128xf32, #tpu.memory_space<vmem>>, %arg10: memref<1x128xf32, #tpu.memory_space<vmem>>, %arg11: memref<128x512xbf16, #tpu.memory_space<vmem>>, %arg12: memref<1x512xf32, #tpu.memory_space<vmem>>, %arg13: memref<512x128xbf16, #tpu.memory_space<vmem>>, %arg14: memref<1x128xf32, #tpu.memory_space<vmem>>, %arg15: memref<1x16x128xf32, #tpu.memory_space<vmem>>) attributes {dimension_semantics = [#tpu.dimension_semantics<parallel>], iteration_bounds = array<i64: 2>, scalar_prefetch = 0 : i64, scratch_operands = 0 : i64, tpu.core_type = #tpu.core_type<tc>, window_params = [{transform_indices = @transform_0, window_bounds = array<i64: 1, 16, 128>}, {pipeline_mode = #tpu.pipeline_mode<synchronous>, transform_indices = @transform_1, window_bounds = array<i64: 8, 16, 16>}, {pipeline_mode = #tpu.pipeline_mode<synchronous>, transform_indices = @transform_2, window_bounds = array<i64: 1, 8, 1, 1>}, {pipeline_mode = #tpu.pipeline_mode<synchronous>, transform_indices = @transform_3, window_bounds = array<i64: 1, 128>}, {pipeline_mode = #tpu.pipeline_mode<synchronous>, transform_indices = @transform_4, window_bounds = array<i64: 1, 128>}, {pipeline_mode = #tpu.pipeline_mode<synchronous>, transform_indices = @transform_5, window_bounds = array<i64: 128, 384>}, {pipeline_mode = #tpu.pipeline_mode<synchronous>, transform_indices = @transform_6, window_bounds = array<i64: 128, 128>}, {pipeline_mode = #tpu.pipeline_mode<synchronous>, transform_indices = @transform_7, window_bounds = array<i64: 1, 128>}, {pipeline_mode = #tpu.pipeline_mode<synchronous>, transform_indices = @transform_8, window_bounds = array<i64: 1, 128>}, {pipeline_mode = #tpu.pipeline_mode<synchronous>, transform_indices = @transform_9, window_bounds = array<i64: 1, 128>}, {pipeline_mode = #tpu.pipeline_mode<synchronous>, transform_indices = @transform_10, window_bounds = array<i64: 128, 512>}, {pipeline_mode = #tpu.pipeline_mode<synchronous>, transform_indices = @transform_11, window_bounds = array<i64: 1, 512>}, {pipeline_mode = #tpu.pipeline_mode<synchronous>, transform_indices = @transform_12, window_bounds = array<i64: 512, 128>}, {pipeline_mode = #tpu.pipeline_mode<synchronous>, transform_indices = @transform_13, window_bounds = array<i64: 1, 128>}, {transform_indices = @transform_14, window_bounds = array<i64: 1, 16, 128>}]} {
    %c0 = arith.constant 0 : index
    %c0_0 = arith.constant 0 : index
    %c0_1 = arith.constant 0 : index
    %0 = vector.load %arg1[%c0, %c0_0, %c0_1] : memref<1x16x128xf32, #tpu.memory_space<vmem>>, vector<1x16x128xf32>
    %1 = vector.shape_cast %0 : vector<1x16x128xf32> to vector<16x128xf32>
    %c0_2 = arith.constant 0 : index
    %c0_3 = arith.constant 0 : index
    %2 = vector.load %arg4[%c0_2, %c0_3] : memref<1x128xf32, #tpu.memory_space<vmem>>, vector<1x128xf32>
    %c0_4 = arith.constant 0 : index
    %c0_5 = arith.constant 0 : index
    %3 = vector.load %arg5[%c0_4, %c0_5] : memref<1x128xf32, #tpu.memory_space<vmem>>, vector<1x128xf32>
    %cst = arith.constant dense<0.000000e+00> : vector<16xf32>
    %4 = vector.multi_reduction <add>, %1, %cst [1] : vector<16x128xf32> to vector<16xf32>
    %5 = vector.shape_cast %4 : vector<16xf32> to vector<16x1xf32>
    %cst_6 = arith.constant 1.280000e+02 : f32
    %6 = vector.broadcast %cst_6 : f32 to vector<16x1xf32>
    %7 = arith.divf %5, %6 : vector<16x1xf32>
    %8 = arith.mulf %1, %1 : vector<16x128xf32>
    %cst_7 = arith.constant dense<0.000000e+00> : vector<16xf32>
    %9 = vector.multi_reduction <add>, %8, %cst_7 [1] : vector<16x128xf32> to vector<16xf32>
    %10 = vector.shape_cast %9 : vector<16xf32> to vector<16x1xf32>
    %cst_8 = arith.constant 1.280000e+02 : f32
    %11 = vector.broadcast %cst_8 : f32 to vector<16x1xf32>
    %12 = arith.divf %10, %11 : vector<16x1xf32>
    %13 = arith.mulf %7, %7 : vector<16x1xf32>
    %14 = arith.subf %12, %13 : vector<16x1xf32>
    %cst_9 = arith.constant 9.99999974E-6 : f32
    %15 = vector.broadcast %cst_9 : f32 to vector<16x1xf32>
    %16 = arith.addf %14, %15 : vector<16x1xf32>
    %17 = math.rsqrt %16 : vector<16x1xf32>
    %18 = vector.broadcast %7 : vector<16x1xf32> to vector<16x128xf32>
    %19 = arith.subf %1, %18 : vector<16x128xf32>
    %20 = vector.broadcast %17 : vector<16x1xf32> to vector<16x128xf32>
    %21 = vector.broadcast %2 : vector<1x128xf32> to vector<16x128xf32>
    %22 = arith.mulf %20, %21 : vector<16x128xf32>
    %23 = arith.mulf %19, %22 : vector<16x128xf32>
    %24 = vector.broadcast %3 : vector<1x128xf32> to vector<16x128xf32>
    %25 = arith.addf %23, %24 : vector<16x128xf32>
    %26 = arith.truncf %25 : vector<16x128xf32> to vector<16x128xbf16>
    %c0_10 = arith.constant 0 : index
    %c0_11 = arith.constant 0 : index
    %27 = vector.load %arg6[%c0_10, %c0_11] : memref<128x384xbf16, #tpu.memory_space<vmem>>, vector<128x384xbf16>
    %cst_12 = arith.constant dense<0.000000e+00> : vector<16x384xf32>
    %28 = tpu.matmul %26, %27, %cst_12 {dimension_numbers = #tpu.dot_dimension_numbers<[1], [0], [0], [1], [0, 0, 1, 1], [], []>} : vector<16x128xbf16>, vector<128x384xbf16>, vector<16x384xf32> -> vector<16x384xf32>
    %29 = vector.extract_strided_slice %28 {offsets = [0, 0], sizes = [16, 128], strides = [1, 1]} : vector<16x384xf32> to vector<16x128xf32>
    %30 = vector.shape_cast %29 : vector<16x128xf32> to vector<1x16x8x16xf32>
    %31 = tpu.transpose %30, [0, 2, 1, 3] : vector<1x16x8x16xf32> -> vector<1x8x16x16xf32>
    %32 = vector.shape_cast %31 : vector<1x8x16x16xf32> to vector<8x16x16xf32>
    %33 = arith.truncf %32 : vector<8x16x16xf32> to vector<8x16x16xbf16>
    %34 = vector.extract_strided_slice %28 {offsets = [0, 128], sizes = [16, 128], strides = [1, 1]} : vector<16x384xf32> to vector<16x128xf32>
    %35 = vector.shape_cast %34 : vector<16x128xf32> to vector<1x16x8x16xf32>
    %36 = tpu.transpose %35, [0, 2, 1, 3] : vector<1x16x8x16xf32> -> vector<1x8x16x16xf32>
    %37 = vector.shape_cast %36 : vector<1x8x16x16xf32> to vector<8x16x16xf32>
    %38 = arith.truncf %37 : vector<8x16x16xf32> to vector<8x16x16xbf16>
    %39 = vector.extract_strided_slice %28 {offsets = [0, 256], sizes = [16, 128], strides = [1, 1]} : vector<16x384xf32> to vector<16x128xf32>
    %40 = vector.shape_cast %39 : vector<16x128xf32> to vector<1x16x8x16xf32>
    %41 = tpu.transpose %40, [0, 2, 1, 3] : vector<1x16x8x16xf32> -> vector<1x8x16x16xf32>
    %42 = vector.shape_cast %41 : vector<1x8x16x16xf32> to vector<8x16x16xf32>
    %43 = arith.truncf %42 : vector<8x16x16xf32> to vector<8x16x16xbf16>
    "tpu.trace_start"() <{level = 10 : i32, message = "bnd,bmd->bnm"}> : () -> ()
    %cst_13 = arith.constant dense<0.000000e+00> : vector<8x16x16xf32>
    %44 = tpu.matmul %33, %38, %cst_13 {dimension_numbers = #tpu.dot_dimension_numbers<[2], [2], [1], [1], [0, 0, 0, 1, 1, 1], [0], [0]>} : vector<8x16x16xbf16>, vector<8x16x16xbf16>, vector<8x16x16xf32> -> vector<8x16x16xf32>
    "tpu.trace_stop"() : () -> ()
    %cst_14 = arith.constant dense<0xFF800000> : vector<8x16xf32>
    %45 = vector.multi_reduction <maximumf>, %44, %cst_14 [2] : vector<8x16x16xf32> to vector<8x16xf32>
    %46 = vector.shape_cast %45 : vector<8x16xf32> to vector<8x16x1xf32>
    %47 = vector.broadcast %46 : vector<8x16x1xf32> to vector<8x16x16xf32>
    %48 = arith.subf %44, %47 : vector<8x16x16xf32>
    %49 = math.exp %48 : vector<8x16x16xf32>
    %cst_15 = arith.constant dense<0.000000e+00> : vector<8x16xf32>
    %50 = vector.multi_reduction <add>, %49, %cst_15 [2] : vector<8x16x16xf32> to vector<8x16xf32>
    %51 = vector.shape_cast %50 : vector<8x16xf32> to vector<8x16x1xf32>
    %52 = tpu.reciprocal %51 {approx = true} : vector<8x16x1xf32> -> vector<8x16x1xf32>
    %53 = vector.shape_cast %52 : vector<8x16x1xf32> to vector<1x8x16x1xf32>
    %c0_16 = arith.constant 0 : index
    %c0_17 = arith.constant 0 : index
    %c0_18 = arith.constant 0 : index
    %c0_19 = arith.constant 0 : index
    %54 = vector.load %arg3[%c0_16, %c0_17, %c0_18, %c0_19] : memref<1x8x1x1xf32, #tpu.memory_space<vmem>>, vector<1x8x1x1xf32>
    %55 = vector.broadcast %54 : vector<1x8x1x1xf32> to vector<1x8x16x1xf32>
    %56 = arith.mulf %53, %55 : vector<1x8x16x1xf32>
    %57 = vector.shape_cast %49 : vector<8x16x16xf32> to vector<1x8x16x16xf32>
    %58 = vector.broadcast %56 : vector<1x8x16x1xf32> to vector<1x8x16x16xf32>
    %59 = arith.mulf %57, %58 : vector<1x8x16x16xf32>
    %c0_20 = arith.constant 0 : index
    %c0_21 = arith.constant 0 : index
    %c0_22 = arith.constant 0 : index
    %60 = vector.load %arg2[%c0_20, %c0_21, %c0_22] : memref<8x16x16xf32, #tpu.memory_space<vmem>>, vector<8x16x16xf32>
    %61 = vector.shape_cast %60 : vector<8x16x16xf32> to vector<1x8x16x16xf32>
    %62 = arith.addf %59, %61 : vector<1x8x16x16xf32>
    %63 = vector.shape_cast %62 : vector<1x8x16x16xf32> to vector<8x16x16xf32>
    %64 = arith.truncf %63 : vector<8x16x16xf32> to vector<8x16x16xbf16>
    "tpu.trace_start"() <{level = 10 : i32, message = "bnm,bmd->bnd"}> : () -> ()
    %cst_23 = arith.constant dense<0.000000e+00> : vector<8x16x16xf32>
    %65 = tpu.matmul %64, %43, %cst_23 {dimension_numbers = #tpu.dot_dimension_numbers<[2], [1], [1], [2], [0, 0, 0, 1, 1, 2], [0], [0]>} : vector<8x16x16xbf16>, vector<8x16x16xbf16>, vector<8x16x16xf32> -> vector<8x16x16xf32>
    "tpu.trace_stop"() : () -> ()
    %66 = vector.shape_cast %65 : vector<8x16x16xf32> to vector<1x8x16x16xf32>
    %67 = tpu.transpose %66, [0, 2, 1, 3] : vector<1x8x16x16xf32> -> vector<1x16x8x16xf32>
    %68 = vector.shape_cast %67 : vector<1x16x8x16xf32> to vector<16x128xf32>
    %69 = arith.truncf %68 : vector<16x128xf32> to vector<16x128xbf16>
    %c0_24 = arith.constant 0 : index
    %c0_25 = arith.constant 0 : index
    %70 = vector.load %arg7[%c0_24, %c0_25] : memref<128x128xbf16, #tpu.memory_space<vmem>>, vector<128x128xbf16>
    %cst_26 = arith.constant dense<0.000000e+00> : vector<16x128xf32>
    %71 = tpu.matmul %69, %70, %cst_26 {dimension_numbers = #tpu.dot_dimension_numbers<[1], [0], [0], [1], [0, 0, 1, 1], [], []>} : vector<16x128xbf16>, vector<128x128xbf16>, vector<16x128xf32> -> vector<16x128xf32>
    %c0_27 = arith.constant 0 : index
    %c0_28 = arith.constant 0 : index
    %72 = vector.load %arg8[%c0_27, %c0_28] : memref<1x128xf32, #tpu.memory_space<vmem>>, vector<1x128xf32>
    %73 = vector.broadcast %72 : vector<1x128xf32> to vector<16x128xf32>
    %74 = arith.addf %71, %73 : vector<16x128xf32>
    %75 = arith.addf %1, %74 : vector<16x128xf32>
    %c0_29 = arith.constant 0 : index
    %c0_30 = arith.constant 0 : index
    %76 = vector.load %arg9[%c0_29, %c0_30] : memref<1x128xf32, #tpu.memory_space<vmem>>, vector<1x128xf32>
    %c0_31 = arith.constant 0 : index
    %c0_32 = arith.constant 0 : index
    %77 = vector.load %arg10[%c0_31, %c0_32] : memref<1x128xf32, #tpu.memory_space<vmem>>, vector<1x128xf32>
    %cst_33 = arith.constant dense<0.000000e+00> : vector<16xf32>
    %78 = vector.multi_reduction <add>, %75, %cst_33 [1] : vector<16x128xf32> to vector<16xf32>
    %79 = vector.shape_cast %78 : vector<16xf32> to vector<16x1xf32>
    %cst_34 = arith.constant 1.280000e+02 : f32
    %80 = vector.broadcast %cst_34 : f32 to vector<16x1xf32>
    %81 = arith.divf %79, %80 : vector<16x1xf32>
    %82 = arith.mulf %75, %75 : vector<16x128xf32>
    %cst_35 = arith.constant dense<0.000000e+00> : vector<16xf32>
    %83 = vector.multi_reduction <add>, %82, %cst_35 [1] : vector<16x128xf32> to vector<16xf32>
    %84 = vector.shape_cast %83 : vector<16xf32> to vector<16x1xf32>
    %cst_36 = arith.constant 1.280000e+02 : f32
    %85 = vector.broadcast %cst_36 : f32 to vector<16x1xf32>
    %86 = arith.divf %84, %85 : vector<16x1xf32>
    %87 = arith.mulf %81, %81 : vector<16x1xf32>
    %88 = arith.subf %86, %87 : vector<16x1xf32>
    %cst_37 = arith.constant 9.99999974E-6 : f32
    %89 = vector.broadcast %cst_37 : f32 to vector<16x1xf32>
    %90 = arith.addf %88, %89 : vector<16x1xf32>
    %91 = math.rsqrt %90 : vector<16x1xf32>
    %92 = vector.broadcast %81 : vector<16x1xf32> to vector<16x128xf32>
    %93 = arith.subf %75, %92 : vector<16x128xf32>
    %94 = vector.broadcast %91 : vector<16x1xf32> to vector<16x128xf32>
    %95 = vector.broadcast %76 : vector<1x128xf32> to vector<16x128xf32>
    %96 = arith.mulf %94, %95 : vector<16x128xf32>
    %97 = arith.mulf %93, %96 : vector<16x128xf32>
    %98 = vector.broadcast %77 : vector<1x128xf32> to vector<16x128xf32>
    %99 = arith.addf %97, %98 : vector<16x128xf32>
    %100 = arith.truncf %99 : vector<16x128xf32> to vector<16x128xbf16>
    %cst_38 = arith.constant 0.000000e+00 : f32
    %101 = vector.broadcast %cst_38 : f32 to vector<16x128xf32>
    %c0_39 = arith.constant 0 : index
    %c0_40 = arith.constant 0 : index
    %102 = vector.load %arg11[%c0_39, %c0_40] : memref<128x512xbf16, #tpu.memory_space<vmem>>, vector<128x512xbf16>
    %cst_41 = arith.constant dense<0.000000e+00> : vector<16x512xf32>
    %103 = tpu.matmul %100, %102, %cst_41 {dimension_numbers = #tpu.dot_dimension_numbers<[1], [0], [0], [1], [0, 0, 1, 1], [], []>} : vector<16x128xbf16>, vector<128x512xbf16>, vector<16x512xf32> -> vector<16x512xf32>
    %c0_42 = arith.constant 0 : index
    %c0_43 = arith.constant 0 : index
    %104 = vector.load %arg12[%c0_42, %c0_43] : memref<1x512xf32, #tpu.memory_space<vmem>>, vector<1x512xf32>
    %105 = vector.broadcast %104 : vector<1x512xf32> to vector<16x512xf32>
    %106 = arith.addf %103, %105 : vector<16x512xf32>
    %cst_44 = arith.constant 5.000000e-01 : f32
    %107 = vector.broadcast %cst_44 : f32 to vector<16x512xf32>
    %108 = arith.mulf %107, %106 : vector<16x512xf32>
    %cst_45 = arith.constant 0.707106769 : f32
    %109 = vector.broadcast %cst_45 : f32 to vector<16x512xf32>
    %110 = arith.mulf %106, %109 : vector<16x512xf32>
    %cst_46 = arith.constant -4.000000e+00 : f32
    %cst_47 = arith.constant 4.000000e+00 : f32
    %111 = vector.broadcast %cst_46 : f32 to vector<16x512xf32>
    %112 = arith.maximumf %111, %110 : vector<16x512xf32>
    %113 = vector.broadcast %cst_47 : f32 to vector<16x512xf32>
    %114 = arith.minimumf %113, %112 : vector<16x512xf32>
    %115 = arith.mulf %114, %114 : vector<16x512xf32>
    %cst_48 = arith.constant 2.29050653E-4 : f32
    %116 = vector.broadcast %cst_48 : f32 to vector<16x512xf32>
    %117 = arith.mulf %116, %115 : vector<16x512xf32>
    %cst_49 = arith.constant 0.00340829091 : f32
    %118 = vector.broadcast %cst_49 : f32 to vector<16x512xf32>
    %119 = arith.addf %117, %118 : vector<16x512xf32>
    %120 = arith.mulf %119, %115 : vector<16x512xf32>
    %cst_50 = arith.constant 0.0509556942 : f32
    %121 = vector.broadcast %cst_50 : f32 to vector<16x512xf32>
    %122 = arith.addf %120, %121 : vector<16x512xf32>
    %123 = arith.mulf %122, %115 : vector<16x512xf32>
    %cst_51 = arith.constant 0.185208321 : f32
    %124 = vector.broadcast %cst_51 : f32 to vector<16x512xf32>
    %125 = arith.addf %123, %124 : vector<16x512xf32>
    %126 = arith.mulf %125, %115 : vector<16x512xf32>
    %cst_52 = arith.constant 1.12837911 : f32
    %127 = vector.broadcast %cst_52 : f32 to vector<16x512xf32>
    %128 = arith.addf %126, %127 : vector<16x512xf32>
    %cst_53 = arith.constant -1.17916031E-7 : f32
    %129 = vector.broadcast %cst_53 : f32 to vector<16x512xf32>
    %130 = arith.mulf %129, %115 : vector<16x512xf32>
    %cst_54 = arith.constant 2.35479656E-5 : f32
    %131 = vector.broadcast %cst_54 : f32 to vector<16x512xf32>
    %132 = arith.addf %130, %131 : vector<16x512xf32>
    %133 = arith.mulf %132, %115 : vector<16x512xf32>
    %cst_55 = arith.constant 0.00101796258 : f32
    %134 = vector.broadcast %cst_55 : f32 to vector<16x512xf32>
    %135 = arith.addf %133, %134 : vector<16x512xf32>
    %136 = arith.mulf %135, %115 : vector<16x512xf32>
    %cst_56 = arith.constant 0.0140704699 : f32
    %137 = vector.broadcast %cst_56 : f32 to vector<16x512xf32>
    %138 = arith.addf %136, %137 : vector<16x512xf32>
    %139 = arith.mulf %138, %115 : vector<16x512xf32>
    %cst_57 = arith.constant 0.110985048 : f32
    %140 = vector.broadcast %cst_57 : f32 to vector<16x512xf32>
    %141 = arith.addf %139, %140 : vector<16x512xf32>
    %142 = arith.mulf %141, %115 : vector<16x512xf32>
    %cst_58 = arith.constant 0.497469246 : f32
    %143 = vector.broadcast %cst_58 : f32 to vector<16x512xf32>
    %144 = arith.addf %142, %143 : vector<16x512xf32>
    %145 = arith.mulf %144, %115 : vector<16x512xf32>
    %cst_59 = arith.constant 1.000000e+00 : f32
    %146 = vector.broadcast %cst_59 : f32 to vector<16x512xf32>
    %147 = arith.addf %145, %146 : vector<16x512xf32>
    %148 = arith.mulf %114, %128 : vector<16x512xf32>
    %149 = tpu.reciprocal %147 {approx = true} : vector<16x512xf32> -> vector<16x512xf32>
    %150 = arith.mulf %148, %149 : vector<16x512xf32>
    %cst_60 = arith.constant 1.000000e+00 : f32
    %151 = vector.broadcast %cst_60 : f32 to vector<16x512xf32>
    %152 = arith.addf %151, %150 : vector<16x512xf32>
    %153 = arith.mulf %108, %152 : vector<16x512xf32>
    %154 = arith.truncf %153 : vector<16x512xf32> to vector<16x512xbf16>
    %c0_61 = arith.constant 0 : index
    %c0_62 = arith.constant 0 : index
    %155 = vector.load %arg13[%c0_61, %c0_62] : memref<512x128xbf16, #tpu.memory_space<vmem>>, vector<512x128xbf16>
    %cst_63 = arith.constant dense<0.000000e+00> : vector<16x128xf32>
    %156 = tpu.matmul %154, %155, %cst_63 {dimension_numbers = #tpu.dot_dimension_numbers<[1], [0], [0], [1], [0, 0, 1, 1], [], []>} : vector<16x512xbf16>, vector<512x128xbf16>, vector<16x128xf32> -> vector<16x128xf32>
    %157 = arith.addf %101, %156 : vector<16x128xf32>
    %c0_64 = arith.constant 0 : index
    %c0_65 = arith.constant 0 : index
    %158 = vector.load %arg14[%c0_64, %c0_65] : memref<1x128xf32, #tpu.memory_space<vmem>>, vector<1x128xf32>
    %159 = vector.broadcast %158 : vector<1x128xf32> to vector<16x128xf32>
    %160 = arith.addf %157, %159 : vector<16x128xf32>
    %161 = arith.addf %75, %160 : vector<16x128xf32>
    %162 = vector.shape_cast %161 : vector<16x128xf32> to vector<1x16x128xf32>
    %c0_66 = arith.constant 0 : index
    %c0_67 = arith.constant 0 : index
    %c0_68 = arith.constant 0 : index
    %163 = vector.load %arg15[%c0_66, %c0_67, %c0_68] : memref<1x16x128xf32, #tpu.memory_space<vmem>>, vector<1x16x128xf32>
    tpu.vector_store %arg15[%c0_66, %c0_67, %c0_68], %162 {strides = array<i32>} : memref<1x16x128xf32, #tpu.memory_space<vmem>>, vector<1x16x128xf32>,
    return
  }
  func.func @transform_0(%arg0: i32) -> (i32, i32, i32) {
    %c0_i32 = arith.constant 0 : i32
    %c0_i32_0 = arith.constant 0 : i32
    %c0_i32_1 = arith.constant 0 : i32
    return %arg0, %c0_i32, %c0_i32_0 : i32, i32, i32
  }
  func.func @transform_1(%arg0: i32) -> (i32, i32, i32) {
    %c0_i32 = arith.constant 0 : i32
    %c0_i32_0 = arith.constant 0 : i32
    %c0_i32_1 = arith.constant 0 : i32
    %c0_i32_2 = arith.constant 0 : i32
    return %c0_i32, %c0_i32_0, %c0_i32_1 : i32, i32, i32
  }
  func.func @transform_2(%arg0: i32) -> (i32, i32, i32, i32) {
    %c0_i32 = arith.constant 0 : i32
    %c0_i32_0 = arith.constant 0 : i32
    %c0_i32_1 = arith.constant 0 : i32
    %c0_i32_2 = arith.constant 0 : i32
    %c0_i32_3 = arith.constant 0 : i32
    return %c0_i32, %c0_i32_0, %c0_i32_1, %c0_i32_2 : i32, i32, i32, i32
  }
  func.func @transform_3(%arg0: i32) -> (i32, i32) {
    %c0_i32 = arith.constant 0 : i32
    %c0_i32_0 = arith.constant 0 : i32
    %c0_i32_1 = arith.constant 0 : i32
    return %c0_i32, %c0_i32_0 : i32, i32
  }
  func.func @transform_4(%arg0: i32) -> (i32, i32) {
    %c0_i32 = arith.constant 0 : i32
    %c0_i32_0 = arith.constant 0 : i32
    %c0_i32_1 = arith.constant 0 : i32
    return %c0_i32, %c0_i32_0 : i32, i32
  }
  func.func @transform_5(%arg0: i32) -> (i32, i32) {
    %c0_i32 = arith.constant 0 : i32
    %c0_i32_0 = arith.constant 0 : i32
    %c0_i32_1 = arith.constant 0 : i32
    return %c0_i32, %c0_i32_0 : i32, i32
  }
  func.func @transform_6(%arg0: i32) -> (i32, i32) {
    %c0_i32 = arith.constant 0 : i32
    %c0_i32_0 = arith.constant 0 : i32
    %c0_i32_1 = arith.constant 0 : i32
    return %c0_i32, %c0_i32_0 : i32, i32
  }
  func.func @transform_7(%arg0: i32) -> (i32, i32) {
    %c0_i32 = arith.constant 0 : i32
    %c0_i32_0 = arith.constant 0 : i32
    %c0_i32_1 = arith.constant 0 : i32
    return %c0_i32, %c0_i32_0 : i32, i32
  }
  func.func @transform_8(%arg0: i32) -> (i32, i32) {
    %c0_i32 = arith.constant 0 : i32
    %c0_i32_0 = arith.constant 0 : i32
    %c0_i32_1 = arith.constant 0 : i32
    return %c0_i32, %c0_i32_0 : i32, i32
  }
  func.func @transform_9(%arg0: i32) -> (i32, i32) {
    %c0_i32 = arith.constant 0 : i32
    %c0_i32_0 = arith.constant 0 : i32
    %c0_i32_1 = arith.constant 0 : i32
    return %c0_i32, %c0_i32_0 : i32, i32
  }
  func.func @transform_10(%arg0: i32) -> (i32, i32) {
    %c0_i32 = arith.constant 0 : i32
    %c0_i32_0 = arith.constant 0 : i32
    %c0_i32_1 = arith.constant 0 : i32
    return %c0_i32, %c0_i32_0 : i32, i32
  }
  func.func @transform_11(%arg0: i32) -> (i32, i32) {
    %c0_i32 = arith.constant 0 : i32
    %c0_i32_0 = arith.constant 0 : i32
    %c0_i32_1 = arith.constant 0 : i32
    return %c0_i32, %c0_i32_0 : i32, i32
  }
  func.func @transform_12(%arg0: i32) -> (i32, i32) {
    %c0_i32 = arith.constant 0 : i32
    %c0_i32_0 = arith.constant 0 : i32
    %c0_i32_1 = arith.constant 0 : i32
    return %c0_i32, %c0_i32_0 : i32, i32
  }
  func.func @transform_13(%arg0: i32) -> (i32, i32) {
    %c0_i32 = arith.constant 0 : i32
    %c0_i32_0 = arith.constant 0 : i32
    %c0_i32_1 = arith.constant 0 : i32
    return %c0_i32, %c0_i32_0 : i32, i32
  }
  func.func @transform_14(%arg0: i32) -> (i32, i32, i32) {
    %c0_i32 = arith.constant 0 : i32
    %c0_i32_0 = arith.constant 0 : i32
    %c0_i32_1 = arith.constant 0 : i32
    return %arg0, %c0_i32, %c0_i32_0 : i32, i32, i32
  }
}

</mosaic_0001>

<bundles_post_ra>
// kernel: tpu_custom_call.1
= control target key start
LH: loop header
LB: loop body
LE: loop exit
PB: predicated region body
PF: predicated region fallthrough
CT: control target
= control target key end

     0   :  { %s8200_s0 = inlined_call_operand.hbm [shape: f32[2,16,128], index: 0, kind: input, shape index: {}]   ;;  %s8201_s1 = inlined_call_operand.hbm [shape: f32[8,16,16], index: 1, kind: input, shape index: {}]   ;;  %s8202_s2 = inlined_call_operand.vmem [shape: f32[1,8,1,1], index: 2, kind: input, shape index: {}]   ;;  %s8203_s3 = inlined_call_operand.vmem [shape: f32[1,128], index: 3, kind: input, shape index: {}]   ;;  %s8204_s4 = inlined_call_operand.vmem [shape: f32[1,128], index: 4, kind: input, shape index: {}]   ;;  %s8205_s5 = inlined_call_operand.hbm [shape: bf16[128,384], index: 5, kind: input, shape index: {}]   ;;  %s8206_s6 = inlined_call_operand.hbm [shape: bf16[128,128], index: 6, kind: input, shape index: {}]   ;;  %s8207_s7 = inlined_call_operand.vmem [shape: f32[1,128], index: 7, kind: input, shape index: {}]   ;;  %s8208_s8 = inlined_call_operand.vmem [shape: f32[1,128], index: 8, kind: input, shape index: {}]   ;;  %s8209_s9 = inlined_call_operand.vmem [shape: f32[1,128], index: 9, kind: input, shape index: {}]   ;;  %s8210_s10 = inlined_call_operand.hbm [shape: bf16[128,512], index: 10, kind: input, shape index: {}]   ;;  %s8211_s11 = inlined_call_operand.vmem [shape: f32[1,512], index: 11, kind: input, shape index: {}]   ;;  %s8212_s12 = inlined_call_operand.hbm [shape: bf16[512,128], index: 12, kind: input, shape index: {}]   ;;  %s8213_s13 = inlined_call_operand.vmem [shape: f32[1,128], index: 13, kind: input, shape index: {}]   ;;  %s8214_s14 = inlined_call_operand.hbm [shape: f32[2,16,128], index: 14, kind: output, shape index: {}]  }
   0x1   :  { %8227 = sst [smem:[#allocation19_spill]] %s8207_s7 }
   0x2   :  { %8228 = sst [smem:[#allocation20_spill]] %s8208_s8 }
   0x3   :  { %8229 = sst [smem:[#allocation21_spill]] %s8209_s9 }
   0x4   :  { %8230 = sst [smem:[#allocation22_spill]] %s8211_s11 }
   0x5   :  { %8231 = sst [smem:[#allocation23_spill]] %s8213_s13 }
   0x6   :  { %8232 = sst [smem:[#allocation24_spill]] %s8214_s14 }
   0x7   :  { %19 = vsyncpa [#allocation3], 0 }
   0x8   :  { %21 = vsyncpa [#allocation3 + $0x1], 0 }
   0x9   :  { %22 = vsyncpa [#allocation6], 0 }
   0xa   :  { %23 = vsyncpa [#allocation9], 0 }
   0xb   :  { %24 = vsyncpa [#allocation12], 0 }
   0xc   :  { %25 = vsyncpa [#allocation4], 0 }
   0xd   :  { %27 = vsyncpa [#allocation4 + $0x1], 0  ;;  %s6719_s29 = smov 0   ;;  %s6721_s30 = smov 0  }
   0xe   :  { %s6723_s15 = smov 0   ;;  %s6725_s16 = smov 0  }
   0xf LB: > { %s6615_s17 = smov [#allocation5]   ;;  %s6740_s19 = sadd.s32 4294967295, %s6613_s16   ;;  %s6613_s16 = sphi %s6725_s16, %s8269_s16   ;;  %s6609_s15 = sphi %s6723_s15, %s8268_s15   ;;  %s6605_s30 = sphi %s6721_s30, %s8267_s30   ;;  %s6601_s29 = sphi %s6719_s29, %s8266_s29  }
  0x10   : > { %s375_s18 = sshll.u32 %s6615_s17, 4  ;;  %p5546_p0 = scmp.ge.s32.totalorder %s6613_s16, 1  ;;  %s6745_s18 = int_to_ptr.vmem [resolvable:$true] %s375_s18 }
  0x11   : > { %p8217_p1 = scmp.eq.s32.totalorder %s6740_s19, 0  ;;  %p363_p2 = scmp.lt.s32.totalorder %s6613_s16, 3 }
  0x12   : > { %s6616_s21 = smov [#allocation8]   ;;  %s6617_s24 = smov [#allocation7]  }
  0x13   : > { %p6747_p3 = pnand %p5546_p0, %p363_p2  ;;  %s410_s22 = sshll.u32 %s6616_s21, 4  ;;  %s6760_s22 = int_to_ptr.vmem [resolvable:$true] %s410_s22 }
  0x14   : > { %s6762_s25 = sshll.u32 %s6617_s24, 4  ;;  %s6365_s28 = scalar_lea.hbm %s8201_s1, 2048  ;;  %s398_s25 = int_to_ptr.vmem [resolvable:$true] %s6762_s25 }
  0x15   : > { %s8233_s20 = scalar_select %p6747_p3, 1, 0 }
  0x16   : > { %p6023_p5 = pneg %p6747_p3  ;;  %p6366_p7 = scmp.ne.s32.totalorder %s8201_s1, %s6365_s28 }
  0x17   : > { %p6372_p11 = scmp.lt.u32.totalorder %s6365_s28, %s8201_s1 }
  0x18   : > { %p6756_p6 = pnand %p6023_p5, %p8217_p1 }
  0x1a   : > { %p6772_p8 = pneg %p6756_p6 }
  0x1c   : > { %p6368_p9 = pnand %p6772_p8, %p6366_p7 }
  0x1e   : > { %p6369_p10 = pneg %p6368_p9 }
  0x20   : > { %p6374_p12 = pnand %p6372_p11, %p6369_p10 }
  0x22   : > { %6377 = shalt.err (!%p6374_p12)
}
  0x23   : > { %s6378_s14 = scalar_lea.vmem %s6745_s18, 2048  ;;  %p6386_p5 = scmp.lt.s32.totalorder %s6745_s18, %s6745_s18 }
  0x24   : > { %p6379_p13 = scmp.ne.s32.totalorder %s6745_s18, %s6378_s14  ;;  %p6387_p4 = scmp.lt.s32.totalorder %s6378_s14, %s6378_s14 }
  0x26   : > { %p6381_p0 = pnand %p6379_p13, %p6772_p8  ;;  %p6388_p7 = por %p6387_p4, %p6386_p5 }
  0x28   : > { %p6382_p2 = pneg %p6381_p0 }
  0x2a   : > { %p6389_p9 = pnand %p6388_p7, %p6382_p2 }
  0x2c   : > { %6392 = shalt.err (!%p6389_p9)
}
  0x2d   : > { %s8216_s26 = smov 128   ;;  %s8219_s13 = smov 8  }
  0x2e   : > { %6026 = dma.hbm_to_vmem [thread:$0]  (!%p6756_p6), %s8201_s1, 2048, %s6745_s18, [#allocation6], %s8216_s26, %s8216_s26, %s8219_s13  }
  0x2f   : > { %s6393_s14 = scalar_lea.hbm %s8206_s6, 1024 }
  0x30   : > { %p6394_p4 = scmp.ne.s32.totalorder %s8206_s6, %s6393_s14  ;;  %p6400_p12 = scmp.lt.u32.totalorder %s6393_s14, %s8206_s6 }
  0x32   : > { %p6396_p10 = pnand %p6394_p4, %p6772_p8 }
  0x34   : > { %p6397_p11 = pneg %p6396_p10 }
  0x36   : > { %p6402_p13 = pnand %p6400_p12, %p6397_p11 }
  0x38   : > { %6405 = shalt.err (!%p6402_p13)
}
  0x39   : > { %s6406_s18 = scalar_lea.vmem %s6760_s22, 1024  ;;  %p6414_p7 = scmp.lt.s32.totalorder %s6760_s22, %s6760_s22 }
  0x3a   : > { %p6407_p0 = scmp.ne.s32.totalorder %s6760_s22, %s6406_s18  ;;  %p6415_p9 = scmp.lt.s32.totalorder %s6406_s18, %s6406_s18 }
  0x3c   : > { %p6409_p2 = pnand %p6407_p0, %p6772_p8  ;;  %p6416_p4 = por %p6415_p9, %p6414_p7 }
  0x3e   : > { %p6410_p5 = pneg %p6409_p2 }
  0x40   : > { %p6417_p10 = pnand %p6416_p4, %p6410_p5 }
  0x42   : > { %6420 = shalt.err (!%p6417_p10)
}
  0x43   : > { %s8220_s9 = smov 64   ;;  %s8221_s7 = smov 4  }
  0x44   : > { %6032 = dma.hbm_to_vmem [thread:$0]  (!%p6756_p6), %s8206_s6, 1024, %s6760_s22, [#allocation9], %s8220_s9, %s8220_s9, %s8221_s7  }
  0x45   : > { %s6421_s17 = scalar_lea.hbm %s8205_s5, 3072 }
  0x46   : > { %p6422_p11 = scmp.ne.s32.totalorder %s8205_s5, %s6421_s17  ;;  %p6428_p0 = scmp.lt.u32.totalorder %s6421_s17, %s8205_s5 }
  0x48   : > { %p6424_p12 = pnand %p6422_p11, %p6772_p8 }
  0x4a   : > { %p6425_p13 = pneg %p6424_p12 }
  0x4c   : > { %p6430_p2 = pnand %p6428_p0, %p6425_p13 }
  0x4e   : > { %6433 = shalt.err (!%p6430_p2)
}
  0x4f   : > { %s6434_s8 = scalar_lea.vmem %s398_s25, 3072  ;;  %p6442_p4 = scmp.lt.s32.totalorder %s398_s25, %s398_s25 }
  0x50   : > { %p6435_p5 = scmp.ne.s32.totalorder %s398_s25, %s6434_s8  ;;  %p6443_p10 = scmp.lt.s32.totalorder %s6434_s8, %s6434_s8 }
  0x52   : > { %p6437_p7 = pnand %p6435_p5, %p6772_p8  ;;  %p6444_p1 = por %p6443_p10, %p6442_p4 }
  0x54   : > { %p6438_p9 = pneg %p6437_p7 }
  0x56   : > { %p6445_p3 = pnand %p6444_p1, %p6438_p9 }
  0x58   : > { %6448 = shalt.err (!%p6445_p3)
}
  0x59   : > { %s6622_s22 = smov 192   ;;  %s6623_s11 = smov 12  }
  0x5a   : > { %6029 = dma.hbm_to_vmem [thread:$0]  (!%p6756_p6), %s8205_s5, 3072, %s398_s25, [#allocation6], %s6622_s22, %s6622_s22, %s6623_s11  }
  0x5b   : > { %s6624_s28 = smov [#allocation10]   ;;  %s6449_s18 = scalar_lea.hbm %s8210_s10, 4096 }
  0x5c   : > { %s432_s17 = sshll.u32 %s6624_s28, 4  ;;  %p6450_p1 = scmp.ne.s32.totalorder %s8210_s10, %s6449_s18  ;;  %s433_s17 = int_to_ptr.vmem [resolvable:$true] %s432_s17 }
  0x5d   : > { %p6456_p12 = scmp.lt.u32.totalorder %s6449_s18, %s8210_s10 }
  0x5e   : > { %p6452_p3 = pnand %p6450_p1, %p6772_p8 }
  0x60   : > { %p6453_p11 = pneg %p6452_p3 }
  0x62   : > { %p6458_p13 = pnand %p6456_p12, %p6453_p11 }
  0x64   : > { %6461 = shalt.err (!%p6458_p13)
}
  0x65   : > { %s6462_s25 = scalar_lea.vmem %s433_s17, 4096  ;;  %p6470_p7 = scmp.lt.s32.totalorder %s433_s17, %s433_s17 }
  0x66   : > { %p6463_p0 = scmp.ne.s32.totalorder %s433_s17, %s6462_s25  ;;  %p6471_p9 = scmp.lt.s32.totalorder %s6462_s25, %s6462_s25 }
  0x68   : > { %p6465_p2 = pnand %p6463_p0, %p6772_p8  ;;  %p6472_p4 = por %p6471_p9, %p6470_p7 }
  0x6a   : > { %p6466_p5 = pneg %p6465_p2 }
  0x6c   : > { %p6473_p10 = pnand %p6472_p4, %p6466_p5 }
  0x6e   : > { %6476 = shalt.err (!%p6473_p10)
}
  0x6f   : > { %s6625_s13 = smov 256   ;;  %s6626_s22 = smov 16  }
  0x70   : > { %6035 = dma.hbm_to_vmem [thread:$0]  (!%p6756_p6), %s8210_s10, 4096, %s433_s17, [#allocation9], %s6625_s13, %s6625_s13, %s6626_s22  }
  0x71   : > { %s6627_s11 = smov [#allocation11]   ;;  %s6477_s24 = scalar_lea.hbm %s8212_s12, 4096 }
  0x72   : > { %s448_s26 = sshll.u32 %s6627_s11, 4  ;;  %p6478_p1 = scmp.ne.s32.totalorder %s8212_s12, %s6477_s24  ;;  %s449_s26 = int_to_ptr.vmem [resolvable:$true] %s448_s26 }
  0x73   : > { %p6484_p12 = scmp.lt.u32.totalorder %s6477_s24, %s8212_s12 }
  0x74   : > { %p6480_p3 = pnand %p6478_p1, %p6772_p8 }
  0x76   : > { %p6481_p11 = pneg %p6480_p3 }
  0x78   : > { %p6486_p13 = pnand %p6484_p12, %p6481_p11 }
  0x7a   : > { %6489 = shalt.err (!%p6486_p13)
}
  0x7b   : > { %s6490_s17 = scalar_lea.vmem %s449_s26, 4096  ;;  %p6498_p7 = scmp.lt.s32.totalorder %s449_s26, %s449_s26 }
  0x7c   : > { %p6491_p0 = scmp.ne.s32.totalorder %s449_s26, %s6490_s17  ;;  %p6499_p9 = scmp.lt.s32.totalorder %s6490_s17, %s6490_s17 }
  0x7e   : > { %p6493_p2 = pnand %p6491_p0, %p6772_p8  ;;  %p6500_p4 = por %p6499_p9, %p6498_p7 }
  0x80   : > { %p6494_p5 = pneg %p6493_p2 }
  0x82   : > { %p6501_p10 = pnand %p6500_p4, %p6494_p5 }
  0x84   : > { %6504 = shalt.err (!%p6501_p10)
}
  0x85   : > { %s8236_s13 = smov 4   ;;  %s8237_s22 = smov 64  }
  0x86   : > { %6038 = dma.hbm_to_vmem [thread:$0]  (!%p6756_p6), %s8212_s12, 4096, %s449_s26, [#allocation12], %s8237_s22, %s8237_s22, %s8236_s13  }
  0x87   : > { %s5545_s23 = sadd.s32 4294967294, %s6613_s16   ;;  %s6882_s21 = sadd.s32 1, %s6613_s16  }
  0x88   : > { %s40_s11 = sadd.s32 1, %s6609_s15  ;;  %s37_s27 = ssub.s32 %s6613_s16, %s6882_s21 }
  0x89   : > { %p47_p8 = scmp.ne.s32.totalorder %s6609_s15, %s6605_s30  ;;  %p38_p1 = scmp.eq.s32.totalorder %s37_s27, 0 }
  0x8a   : > { %p48_p3 = scmp.eq.s32.totalorder %s6613_s16, 0  ;;  %p53_p11 = scmp.ne.s32.totalorder %s6605_s30, %s6601_s29 }
  0x8b   : > { %p350_p12 = scmp.eq.s32.totalorder %s6740_s19, 1  ;;  %p8238_p0 = scmp.eq.s32.totalorder %s6740_s19, 0 }
  0x8c   : > { %s6894_s28 = scalar_select %p38_p1, %s6609_s15, %s40_s11  }
  0x8d   : > { %p49_p13 = por %p48_p3, %p47_p8  ;;  %p6898_p2 = por %p8238_p0, %p53_p11 }
  0x8e   : > { %p6902_p6 = por %p350_p12, %p47_p8  ;;  %p356_p5 = scmp.eq.s32.totalorder %s5545_s23, 1 }
  0x8f   : > { %p6052_p7 = scmp.lt.s32.totalorder %s6613_s16, 2  ;;  %s465_s14 = sand.u32 1, %s6609_s15  }
  0x90   : > { %s8240_s26 = scalar_select %p6902_p6, 1, 0 }
  0x91   : > { %p6908_p9 = por %p356_p5, %p53_p11  ;;  %s5553_s8 = sshll.u32 %s465_s14, 4 }
  0x92   : > { %s5767_s25 = sshll.u32 %s6613_s16, 8  ;;  %s469_s9 = scalar_lea.vmem [#allocation2], %s5553_s8 }
  0x93   : > { %s8241_s18 = scalar_select %p6908_p9, 1, 0 }
  0x94   : > { %s6916_s22 = scalar_lea.hbm %s8200_s0, %s5767_s25  ;;  %s476_s7 = sshll.u32 %s469_s9, 4  ;;  %s6922_s7 = int_to_ptr.vmem [resolvable:$true] %s476_s7 }
  0x95   : > { %p6918_p4 = pnand %p6052_p7, %p49_p13  ;;  %s6924_s11 = scalar_lea.sflag [#allocation3], %s465_s14 }
  0x96   : > { %s6505_s27 = scalar_lea.hbm %s6916_s22, 256  ;;  %s6510_s17 = scalar_lea.hbm %s8200_s0, 512 }
  0x97   : > { %p6506_p10 = scmp.ne.s32.totalorder %s6916_s22, %s6505_s27  ;;  %p6507_p8 = pneg %p6918_p4 }
  0x98   : > { %p6511_p11 = scmp.lt.u32.totalorder %s6916_s22, %s8200_s0  ;;  %p6512_p12 = scmp.lt.u32.totalorder %s6510_s17, %s6505_s27 }
  0x99   : > { %p6508_p1 = pnand %p6507_p8, %p6506_p10  ;;  %p6514_p0 = scmp.lt.u32.totalorder %s6505_s27, %s6916_s22 }
  0x9a   : > { %p6513_p13 = por %p6512_p12, %p6511_p11 }
  0x9b   : > { %p6509_p3 = pneg %p6508_p1 }
  0x9c   : > { %p6515_p5 = por %p6514_p0, %p6513_p13 }
  0x9e   : > { %p6516_p7 = pnand %p6515_p5, %p6509_p3 }
  0xa0   : > { %6519 = shalt.err (!%p6516_p7)
}
  0xa1   : > { %s6520_s14 = scalar_lea.vmem %s6922_s7, 256  ;;  %s6628_s8 = smov [#allocation2]  }
  0xa2   : > { %p6521_p10 = scmp.ne.s32.totalorder %s6922_s7, %s6520_s14  ;;  %s6525_s25 = sshll.u32 %s6628_s8, 4  ;;  %s6526_s25 = int_to_ptr.vmem [resolvable:$false] %s6525_s25 }
  0xa3   : > { %s6527_s13 = scalar_lea.vmem %s6526_s25, 512  ;;  %p6528_p6 = scmp.lt.s32.totalorder %s6922_s7, %s6526_s25 }
  0xa4   : > { %p6523_p1 = pnand %p6521_p10, %p6507_p8  ;;  %p6529_p11 = scmp.lt.s32.totalorder %s6527_s13, %s6520_s14 }
  0xa6   : > { %p6524_p9 = pneg %p6523_p1  ;;  %p6530_p12 = por %p6529_p11, %p6528_p6 }
  0xa8   : > { %p6531_p13 = pnand %p6530_p12, %p6524_p9 }
  0xaa   : > { %6534 = shalt.err (!%p6531_p13)
}
  0xab   : > { %s8243_s27 = smov 8   ;;  %s8244_s17 = smov 128  }
  0xac   : > { %6042 = dma.hbm_to_vmem [thread:$0]  (!%p6918_p4), %s6916_s22, 256, %s6922_s7, %s6924_s11, %s8244_s17, %s8244_s17, %s8243_s27  }
  0xad   : > { %p8245_p8 = scmp.ne.s32.totalorder %s8233_s20, 0 }
  0xae   : > { %s6958_s9 = sand.u32 (!%p8245_p8), 1, %s6605_s30  }
  0xaf   : > { %488 = sbr.rel (%p8245_p8) target bundleno = 2796 (0xaec), region = 76  ;;  %s8225_s14 = sshll.u32 (!%p8245_p8), %s6958_s9, 4 }
  0xb0   : > { %s491_s8 = scalar_lea.sflag (!%p8245_p8), [#allocation3], %s6958_s9  ;;  %s6964_s23 = scalar_lea.vmem (!%p8245_p8), [#allocation2], %s8225_s14 }
  0xb6   : > { %6580 = dma.done.wait (%p6898_p2), %s491_s8, 256  }
  0xb7   : > { %6582 = vsyncadd (%p6898_p2), %s491_s8, 4294967040  ;;  %p8246_p6 = scmp.eq.s32.totalorder %s6740_s19, 0 }
  0xb9   : > { %6584 = dma.done.wait (%p8246_p6), [#allocation6], 5120   ;;  %p8247_p9 = pmov %p8246_p6 }
  0xba   : > { %p8248_p4 = pmov %p8246_p6 }
  0xbb   : > { %6586 = vsyncadd (%p8247_p9), [#allocation6], 4294962176 }
  0xbc   : > { %6588 = dma.done.wait (%p8248_p4), [#allocation9], 5120   ;;  %p8249_p3 = pmov %p8248_p4 }
  0xbe   : > { %6590 = vsyncadd (%p8249_p3), [#allocation9], 4294962176  ;;  %p8250_p0 = pmov %p8249_p3 }
  0xc0   : > { %6592 = dma.done.wait (%p8250_p0), [#allocation12], 4096   ;;  %p8251_p5 = pmov %p8250_p0 }
  0xc1   : > { %v6629_v0 = vmov 0.0   ;;  %v6984_v1 = vld [vmem:[%s6964_s23] sm:$0xff]  ;;  %v6987_v2 = vld [vmem:[%s6964_s23 + $0x8] sm:$0xff]  ;;  %v8223_v26 = vmov 0   ;;  %vm6631_vm0 = vmmov 0   ;;  %s6632_s11 = smov 112  }
  0xc2   : > { %6594 = vsyncadd (%p8251_p5), [#allocation12], 4294963200  ;;  %5863 = vmatprep.subr.bf16.mxu1 %v6629_v0  ;;  %564 = vadd.xlane.f32.xlu0 %v6984_v1  ;;  %v571_v3 = vmul.f32 %v6984_v1, %v6984_v1  ;;  %v6155_v4 = vld [vmem:[#allocation7 + $0x4] ss:$12 sps:$4 sm:$0xff]   ;;  %v572_v5 = vmul.f32 %v6987_v2, %v6987_v2  ;;  %v6157_v6 = vld [vmem:[#allocation7] ss:$12 sps:$4 sm:$0xff]  }
  0xc3   : > { %768 = vmatprep.subr.bf16.mxu0 %v6155_v4  ;;  %v6158_v7 = vld [vmem:[#allocation7 + $0x8] ss:$12 sps:$4 sm:$0xff]   ;;  %v6161_v9 = vld [vmem:[#allocation7 + $0x18] ss:$12 sps:$4 sm:$0xff]   ;;  %v6162_v10 = vld [vmem:[#allocation7 + $0x20] ss:$12 sps:$4 sm:$0xff]   ;;  %800 = vmatprep.mubr.bf16.mxu0 %v8223_v26  ;;  %v901_v4 = vlaneseq }
  0xc4   : > { %573 = vadd.xlane.f32.xlu1 %v571_v3  ;;  %769 = vmatpush1.bf16.msra.mxu0 %v6157_v6  ;;  %v6159_v8 = vld [vmem:[#allocation7 + $0x1c] ss:$12 sps:$4 sm:$0xff]   ;;  %v6163_v11 = vld [vmem:[#allocation7 + $0x34] ss:$12 sps:$4 sm:$0xff]   ;;  %v6166_v13 = vld [vmem:[#allocation7 + $0x38] ss:$12 sps:$4 sm:$0xff]  }
  0xc5   : > { %5864 = vmatpush3.bf16.msra.mxu1 %v6158_v7  ;;  %770 = vmatprep.subr.bf16.mxu0 %v6159_v8  ;;  %v6165_v12 = vld [vmem:[#allocation7 + $0x30] ss:$12 sps:$4 sm:$0xff]   ;;  %v6167_v14 = vld [vmem:[#allocation7 + $0x4c] ss:$12 sps:$4 sm:$0xff]   ;;  %v6169_v15 = vld [vmem:[#allocation7 + $0x48] ss:$12 sps:$4 sm:$0xff]  }
  0xc6   : > { %566 = vadd.xlane.f32.xlu0 %v6987_v2  ;;  %5865 = vmatprep.subr.bf16.mxu1 %v6629_v0  ;;  %v6170_v16 = vld [vmem:[#allocation7 + $0x50] ss:$12 sps:$4 sm:$0xff]   ;;  %v6173_v18 = vld [vmem:[#allocation7 + $0x60] ss:$12 sps:$4 sm:$0xff]   ;;  %v6174_v19 = vld [vmem:[#allocation7 + $0x68] ss:$12 sps:$4 sm:$0xff]  }
  0xc7   : > { %v6171_v17 = vld [vmem:[#allocation7 + $0x64] ss:$12 sps:$4 sm:$0xff]   ;;  %v6175_v20 = vld [vmem:[#allocation7 + $0x7c] ss:$12 sps:$4 sm:$0xff]   ;;  %v6178_v22 = vld [vmem:[#allocation7 + $0x80] ss:$12 sps:$4 sm:$0xff]   ;;  %5879 = vmatprep.mubr.msk.bf16.mxu1 %vm6631_vm0, %v6629_v0  ;;  %6118 = vset.pattern.permute.xlu0 %v8223_v26 }
  0xc8   : > { %575 = vadd.xlane.f32.xlu1 %v572_v5  ;;  %771 = vmatpush1.bf16.msra.mxu0 %v6161_v9  ;;  %v6177_v21 = vld [vmem:[#allocation7 + $0x78] ss:$12 sps:$4 sm:$0xff]   ;;  %v6179_v23 = vld [vmem:[#allocation7 + $0x94] ss:$12 sps:$4 sm:$0xff]   ;;  %v6181_v24 = vld [vmem:[#allocation7 + $0x90] ss:$12 sps:$4 sm:$0xff]  }
  0xc9   : > { %5866 = vmatpush3.bf16.msra.mxu1 %v6162_v10  ;;  %772 = vmatprep.subr.bf16.mxu0 %v6163_v11  ;;  %v6182_v25 = vld [vmem:[#allocation7 + $0x98] ss:$12 sps:$4 sm:$0xff]   ;;  %v6185_v28 = vld [vmem:[#allocation7 + $0xa8] ss:$12 sps:$4 sm:$0xff]   ;;  %v6186_v29 = vld [vmem:[#allocation7 + $0xb0] ss:$12 sps:$4 sm:$0xff]  }
  0xca   : > { %5867 = vmatprep.subr.bf16.mxu1 %v6629_v0  ;;  %v6183_v27 = vld [vmem:[#allocation7 + $0xac] ss:$12 sps:$4 sm:$0xff]   ;;  %6119 = vset.pattern.permute.xlu1 %v8223_v26  ;;  %v5564_v44 = vld [vmem:[%s8203_s3] ss:$0 sm:$0xff]  ;;  %s8226_s25 = smov 96   ;;  %s6634_s13 = smov 80  }
  0xcb   : > { %v5565_v52 = vld [vmem:[%s8204_s4] ss:$0 sm:$0xff]  ;;  %s6635_s27 = smov 64   ;;  %s6636_s17 = smov 48   ;;  %v6640_v7 = vmov 1934713408  }
  0xcc   : > { %773 = vmatpush1.bf16.msra.mxu0 %v6165_v12  ;;  %s6637_s8 = smov 32   ;;  %s6638_s20 = smov 16   ;;  %v963_v8 = vunpack.c.l.s4 %v6640_v7  ;;  %v7080_v10 = vshrl.u32 %v901_v4, 7  ;;  %vm2640_vm1 = vcmask 130048   ;;  %vm4339_vm2 = vcmask 261120  }
  0xcd   : > { %5868 = vmatpush3.bf16.msra.mxu1 %v6166_v13  ;;  %774 = vmatprep.subr.bf16.mxu0 %v6167_v14  ;;  %vm4342_vm3 = vcmask 392192   ;;  %vm4345_vm4 = vcmask 523264   ;;  %vm4348_vm5 = vcmask 654336   ;;  %vm4351_vm6 = vcmask 785408   ;;  %s8258_s24 = sld [smem:[#allocation21_spill]]  ;;  %s5768_s14 = sshll.u32 %s6740_s19, 8 }
  0xce   : > { %5869 = vmatprep.subr.bf16.mxu1 %v6629_v0  ;;  %v964_v13 = vunpack.c.0.s8 %v963_v8  ;;  %vm4354_vm7 = vcmask 916480   ;;  %s8262_s22 = sld [smem:[#allocation24_spill]]  ;;  %p8263_p7 = scmp.ne.s32.totalorder %s8240_s26, 0 }
  0xcf   : > { %s6641_s19 = smov [#allocation13]  }
  0xd0   : > { %775 = vmatpush1.bf16.msra.mxu0 %v6169_v15 }
  0xd1   : > { %5870 = vmatpush3.bf16.msra.mxu1 %v6170_v16  ;;  %776 = vmatprep.subr.bf16.mxu0 %v6171_v17 }
  0xd2   : > { %5871 = vmatprep.subr.bf16.mxu1 %v6629_v0 }
  0xd4   : > { %777 = vmatpush1.bf16.msra.mxu0 %v6173_v18 }
  0xd5   : > { %5872 = vmatpush3.bf16.msra.mxu1 %v6174_v19  ;;  %778 = vmatprep.subr.bf16.mxu0 %v6175_v20 }
  0xd6   : > { %5873 = vmatprep.subr.bf16.mxu1 %v6629_v0 }
  0xd8   : > { %779 = vmatpush1.bf16.msra.mxu0 %v6177_v21  ;;  %v7088_v21 = vsub.s32 %v964_v13, %v7080_v10 }
  0xd9   : > { %5874 = vmatpush3.bf16.msra.mxu1 %v6178_v22  ;;  %780 = vmatprep.subr.bf16.mxu0 %v6179_v23 }
  0xda   : > { %5875 = vmatprep.subr.bf16.mxu1 %v6629_v0 }
  0xdc   : > { %781 = vmatpush1.bf16.msra.mxu0 %v6181_v24 }
  0xdd   : > { %5876 = vmatpush3.bf16.msra.mxu1 %v6182_v25  ;;  %782 = vmatprep.subr.bf16.mxu0 %v6183_v27 }
  0xde   : > { %5877 = vmatprep.subr.bf16.mxu1 %v6629_v0 }
  0xe0   : > { %783 = vmatpush1.bf16.msra.mxu0 %v6185_v28 }
  0xe1   : > { %5878 = vmatpush3.bf16.msra.mxu1 %v6186_v29  ;;  %5907 = vmatprep.subr.bf16.mxu0 %v6629_v0 }
  0xe2   : > { %5883 = vmatprep.subr.bf16.mxu1 %v6629_v0 }
 0x14f   : > { %v565_v30 = vpop.xlane.xlu0 %564 }
 0x150   : > { %v569_v31 = vmul.f32 0.0078125, %v565_v30 }
 0x151   : > { %v574_v32 = vpop.xlane.xlu1 %573 }
 0x152   : > { %v579_v33 = vmul.f32 %v569_v31, %v569_v31  ;;  %v577_v34 = vmul.f32 0.0078125, %v574_v32  ;;  %v587_v47 = vsub.f32 %v6984_v1, %v569_v31 }
 0x153   : > { %v567_v35 = vpop.xlane.xlu0 %566 }
 0x154   : > { %v581_v36 = vsub.f32 %v577_v34, %v579_v33  ;;  %v570_v37 = vmul.f32 0.0078125, %v567_v35 }
 0x155   : > { %v576_v38 = vpop.xlane.xlu1 %575 }
 0x156   : > { %v583_v39 = vadd.f32 1e-05, %v581_v36  ;;  %v580_v40 = vmul.f32 %v570_v37, %v570_v37  ;;  %v578_v41 = vmul.f32 0.0078125, %v576_v38  ;;  %v588_v49 = vsub.f32 %v6987_v2, %v570_v37 }
 0x157   : > { %v6639_v2 = vmov 1983009808  }
 0x158   : > { %6275 = vrsqrt.f32 %v583_v39  ;;  %v582_v42 = vsub.f32 %v578_v41, %v580_v40  ;;  %v899_v3 = vunpack.c.l.s4 %v6639_v2 }
 0x15a   : > { %v584_v43 = vadd.f32 1e-05, %v582_v42  ;;  %v900_v9 = vunpack.c.0.s8 %v899_v3 }
 0x15c   : > { %6277 = vrsqrt.f32 %v584_v43  ;;  %v7085_v14 = vsub.s32 %v900_v9, %v7080_v10 }
 0x162   : > { %v6276_v45 = vpop.eup %6275 }
 0x163   : > { %v595_v46 = vmul.f32 %v6276_v45, %v5564_v44 }
 0x165   : > { %v597_v51 = vmul.f32 %v595_v46, %v587_v47 }
 0x166   : > { %v6278_v48 = vpop.eup %6277 }
 0x167   : > { %v596_v50 = vmul.f32 %v6278_v48, %v5564_v44  ;;  %v605_v54 = vadd.f32 %v5565_v52, %v597_v51 }
 0x169   : > { %v598_v53 = vmul.f32 %v596_v50, %v588_v49 }
 0x16b   : > { %v606_v55 = vadd.f32 %v5565_v52, %v598_v53 }
 0x16d   : > { %v607_v56 = vpack.c.bf16 %v606_v55, %v605_v54 }
 0x16f   : > { %801 = vmatmul.mubr.bf16.vlgmr.msra.gmra.mrb[0].mxu0 %v607_v56  ;;  %5880 = vmatmul.mubr.bf16.vlgmr.msra.gmra.mrb[0].mxu1 %v607_v56 }
 0x170   : > { %5885 = vmatprep.mubr.msk.bf16.mxu1 %vm6631_vm0, %v6629_v0  ;;  %5909 = vmatprep.mubr.msk.bf16.mxu0 %vm6631_vm0, %v6629_v0 }
 0x242   : > { %v7021_v57 = vpop.f32.mrb[0].mxu0  ;;  %v7023_v58 = vpop.f32.mrb[0].mxu1 }
 0x243   : > { %v5881_v59 = vpop.f32.mrb[1].mxu1  ;;  %854 = vrot.lane.b32.xlu0 %v7021_v57, %s6632_s11  ;;  %v804_v60 = vpop.f32.mrb[1].mxu0 }
 0x244   : > { %v7027_v61 = vpop.f32.mrb[2].mxu1  ;;  %1456 = vrot.lane.b32.xlu1 %v804_v60, %s8226_s25  ;;  %v7030_v62 = vpop.f32.mrb[2].mxu0 }
 0x245   : > { %v7032_v63 = vpop.f32.mrb[3].mxu0  ;;  %v5882_v1 = vpop.f32.mrb[3].mxu1 }
 0x247   : > { %1450 = vrot.lane.b32.xlu0 %v804_v60, %s6632_s11 }
 0x248   : > { %856 = vrot.lane.b32.xlu1 %v7030_v62, %s6632_s11 }
 0x24b   : > { %1462 = vrot.lane.b32.xlu0 %v804_v60, %s6634_s13 }
 0x24c   : > { %1452 = vrot.lane.b32.xlu1 %v7032_v63, %s6632_s11 }
 0x24f   : > { %860 = vrot.lane.b32.xlu0 %v7021_v57, %s8226_s25 }
 0x250   : > { %1458 = vrot.lane.b32.xlu1 %v7032_v63, %s8226_s25 }
 0x253   : > { %866 = vrot.lane.b32.xlu0 %v7021_v57, %s6634_s13 }
 0x254   : > { %1464 = vrot.lane.b32.xlu1 %v7032_v63, %s6634_s13 }
 0x257   : > { %1468 = vrot.lane.b32.xlu0 %v804_v60, %s6635_s27 }
 0x258   : > { %862 = vrot.lane.b32.xlu1 %v7030_v62, %s8226_s25 }
 0x25b   : > { %1474 = vrot.lane.b32.xlu0 %v804_v60, %s6636_s17 }
 0x25c   : > { %868 = vrot.lane.b32.xlu1 %v7030_v62, %s6634_s13 }
 0x25f   : > { %1480 = vrot.lane.b32.xlu0 %v804_v60, %s6637_s8 }
 0x260   : > { %874 = vrot.lane.b32.xlu1 %v7030_v62, %s6635_s27 }
 0x263   : > { %1486 = vrot.lane.b32.xlu0 %v804_v60, %s6638_s20 }
 0x264   : > { %880 = vrot.lane.b32.xlu1 %v7030_v62, %s6636_s17 }
 0x267   : > { %872 = vrot.lane.b32.xlu0 %v7021_v57, %s6635_s27 }
 0x268   : > { %1470 = vrot.lane.b32.xlu1 %v7032_v63, %s6635_s27 }
 0x26b   : > { %878 = vrot.lane.b32.xlu0 %v7021_v57, %s6636_s17 }
 0x26c   : > { %1476 = vrot.lane.b32.xlu1 %v7032_v63, %s6636_s17 }
 0x26f   : > { %884 = vrot.lane.b32.xlu0 %v7021_v57, %s6637_s8 }
 0x270   : > { %1482 = vrot.lane.b32.xlu1 %v7032_v63, %s6637_s8 }
 0x273   : > { %890 = vrot.lane.b32.xlu0 %v7021_v57, %s6638_s20 }
 0x274   : > { %1488 = vrot.lane.b32.xlu1 %v7032_v63, %s6638_s20 }
 0x278   : > { %886 = vrot.lane.b32.xlu1 %v7030_v62, %s6637_s8 }
 0x27c   : > { %892 = vrot.lane.b32.xlu1 %v7030_v62, %s6638_s20 }
 0x2b5   : > { %v855_v5 = vpop.permute.xlu0 %854 }
 0x2b6   : > { %v1457_v6 = vpop.permute.xlu1 %1456 }
 0x2b7   : > { %v1492_v15 = vcombine.low %v804_v60, %v1457_v6  ;;  %v1493_v16 = vcombine.high %v804_v60, %v1457_v6 }
 0x2b9   : > { %v1451_v11 = vpop.permute.xlu0 %1450  ;;  %v1500_v22 = vrot.slane %v1492_v15, %v7085_v14  ;;  %v1507_v23 = vrot.slane %v1493_v16, %v7085_v14 }
 0x2ba   : > { %v7082_v12 = vpop.permute.xlu1 %856 }
 0x2bd   : > { %v1463_v17 = vpop.permute.xlu0 %1462 }
 0x2be   : > { %v1508_v18 = vcombine.low %v1451_v11, %v1463_v17  ;;  %v1509_v19 = vcombine.high %v1451_v11, %v1463_v17  ;;  %v1453_v20 = vpop.permute.xlu1 %1452 }
 0x2c0   : > { %v1516_v24 = vrot.slane %v1508_v18, %v7085_v14  ;;  %v1523_v25 = vrot.slane %v1509_v19, %v7085_v14 }
 0x2c1   : > { %v861_v27 = vpop.permute.xlu0 %860 }
 0x2c2   : > { %v1556_v28 = vcombine.low %v1500_v22, %v1516_v24  ;;  %v1557_v29 = vcombine.high %v1500_v22, %v1516_v24  ;;  %v1572_v30 = vcombine.low %v1507_v23, %v1523_v25  ;;  %v1573_v31 = vcombine.high %v1507_v23, %v1523_v25  ;;  %v1459_v32 = vpop.permute.xlu1 %1458 }
 0x2c3   : > { %v896_v33 = vcombine.low %v7021_v57, %v861_v27  ;;  %v897_v34 = vcombine.high %v7021_v57, %v861_v27  ;;  %v1628_v35 = vcombine.low %v7032_v63, %v1459_v32  ;;  %v1629_v36 = vcombine.high %v7032_v63, %v1459_v32 }
 0x2c4   : > { %v1564_v37 = vrot.slane %v1556_v28, %v7088_v21  ;;  %v1571_v38 = vrot.slane %v1557_v29, %v7088_v21  ;;  %v1580_v39 = vrot.slane %v1572_v30, %v7088_v21  ;;  %v1587_v40 = vrot.slane %v1573_v31, %v7088_v21 }
 0x2c5   : > { %v867_v41 = vpop.permute.xlu0 %866  ;;  %v904_v51 = vrot.slane %v896_v33, %v7085_v14  ;;  %v911_v52 = vrot.slane %v897_v34, %v7085_v14  ;;  %v1636_v53 = vrot.slane %v1628_v35, %v7085_v14  ;;  %v1643_v54 = vrot.slane %v1629_v36, %v7085_v14 }
 0x2c6   : > { %v5606_v42 = vcombine.low %v1564_v37, %v1571_v38  ;;  %v5608_v43 = vcombine.high %v1564_v37, %v1571_v38  ;;  %v5610_v44 = vcombine.low %v1580_v39, %v1587_v40  ;;  %v5612_v45 = vcombine.high %v1580_v39, %v1587_v40  ;;  %v1465_v46 = vpop.permute.xlu1 %1464 }
 0x2c7   : > { %v912_v47 = vcombine.low %v855_v5, %v867_v41  ;;  %v913_v48 = vcombine.high %v855_v5, %v867_v41  ;;  %v1644_v49 = vcombine.low %v1453_v20, %v1465_v46  ;;  %v1645_v50 = vcombine.high %v1453_v20, %v1465_v46 }
 0x2c8   : > { %v7113_v63 = vrot.slane %v5606_v42, %v7085_v14  ;;  %v7116_v1 = vrot.slane %v5608_v43, %v7085_v14  ;;  %v7119_v2 = vrot.slane %v5610_v44, %v7085_v14  ;;  %v7122_v3 = vrot.slane %v5612_v45, %v7085_v14 }
 0x2c9   : > { %v920_v55 = vrot.slane %v912_v47, %v7085_v14  ;;  %v927_v56 = vrot.slane %v913_v48, %v7085_v14  ;;  %v1652_v57 = vrot.slane %v1644_v49, %v7085_v14  ;;  %v1659_v59 = vrot.slane %v1645_v50, %v7085_v14  ;;  %v7110_v60 = vpop.permute.xlu0 %1468 }
 0x2ca   : > { %v863_v4 = vpop.permute.xlu1 %862  ;;  %v1828_v38 = vcombine.low %v7113_v63, %v7116_v1  ;;  %v1860_v39 = vcombine.low %v7119_v2, %v7122_v3 }
 0x2cb   : > { %v960_v5 = vcombine.low %v904_v51, %v920_v55  ;;  %v961_v6 = vcombine.high %v904_v51, %v920_v55  ;;  %v976_v7 = vcombine.low %v911_v52, %v927_v56  ;;  %v977_v8 = vcombine.high %v911_v52, %v927_v56 }
 0x2cc   : > { %v1692_v9 = vcombine.low %v1636_v53, %v1652_v57  ;;  %v1693_v11 = vcombine.high %v1636_v53, %v1652_v57  ;;  %v1708_v13 = vcombine.low %v1643_v54, %v1659_v59  ;;  %v1709_v15 = vcombine.high %v1643_v54, %v1659_v59 }
 0x2cd   : > { %v968_v16 = vrot.slane %v960_v5, %v7088_v21  ;;  %v975_v17 = vrot.slane %v961_v6, %v7088_v21  ;;  %v984_v18 = vrot.slane %v976_v7, %v7088_v21  ;;  %v991_v19 = vrot.slane %v977_v8, %v7088_v21  ;;  %v1475_v20 = vpop.permute.xlu0 %1474 }
 0x2ce   : > { %v7129_v22 = vrot.slane %v1692_v9, %v7088_v21  ;;  %v7132_v23 = vrot.slane %v1693_v11, %v7088_v21  ;;  %v7135_v24 = vrot.slane %v1708_v13, %v7088_v21  ;;  %v7138_v25 = vrot.slane %v1709_v15, %v7088_v21  ;;  %v869_v27 = vpop.permute.xlu1 %868 }
 0x2cf   : > { %v5590_v28 = vcombine.low %v968_v16, %v975_v17  ;;  %v5592_v29 = vcombine.high %v968_v16, %v975_v17  ;;  %v5594_v30 = vcombine.low %v984_v18, %v991_v19  ;;  %v5596_v31 = vcombine.high %v984_v18, %v991_v19 }
 0x2d0   : > { %v5614_v42 = vcombine.low %v7129_v22, %v7132_v23  ;;  %v5616_v43 = vcombine.high %v7129_v22, %v7132_v23  ;;  %v5618_v44 = vcombine.low %v7135_v24, %v7138_v25  ;;  %v5620_v45 = vcombine.high %v7135_v24, %v7138_v25 }
 0x2d1   : > { %v7141_v32 = vrot.slane %v5590_v28, %v7085_v14  ;;  %v7144_v33 = vrot.slane %v5592_v29, %v7085_v14  ;;  %v7147_v34 = vrot.slane %v5594_v30, %v7085_v14  ;;  %v7150_v35 = vrot.slane %v5596_v31, %v7085_v14  ;;  %v1481_v36 = vpop.permute.xlu0 %1480 }
 0x2d2   : > { %v7152_v37 = vpop.permute.xlu1 %874  ;;  %v1032_v46 = vcombine.low %v7030_v62, %v863_v4  ;;  %v1033_v47 = vcombine.high %v7030_v62, %v863_v4  ;;  %v1048_v48 = vcombine.low %v7082_v12, %v869_v27  ;;  %v1049_v49 = vcombine.high %v7082_v12, %v869_v27 }
 0x2d3   : > { %v1232_v50 = vcombine.low %v7141_v32, %v7144_v33  ;;  %v1233_v51 = vcombine.high %v7141_v32, %v7144_v33  ;;  %v1264_v52 = vcombine.low %v7147_v34, %v7150_v35  ;;  %v1265_v53 = vcombine.high %v7147_v34, %v7150_v35 }
 0x2d4   : > { %v1040_v55 = vrot.slane %v1032_v46, %v7085_v14  ;;  %v1047_v62 = vrot.slane %v1033_v47, %v7085_v14  ;;  %v1056_v56 = vrot.slane %v1048_v48, %v7085_v14  ;;  %v1063_v12 = vrot.slane %v1049_v49, %v7085_v14 }
 0x2d5   : > { %v1487_v54 = vpop.permute.xlu0 %1486  ;;  %v1524_v59 = vcombine.low %v7110_v60, %v1481_v36  ;;  %v1525_v4 = vcombine.high %v7110_v60, %v1481_v36 }
 0x2d6   : > { %v7186_v57 = vpop.permute.xlu1 %880  ;;  %v1540_v5 = vcombine.low %v1475_v20, %v1487_v54  ;;  %v1541_v6 = vcombine.high %v1475_v20, %v1487_v54  ;;  %v1096_v7 = vcombine.low %v1040_v55, %v1056_v56  ;;  %v1097_v8 = vcombine.high %v1040_v55, %v1056_v56 }
 0x2d7   : > { %v1112_v9 = vcombine.low %v1047_v62, %v1063_v12  ;;  %v1113_v11 = vcombine.high %v1047_v62, %v1063_v12  ;;  %v1532_v13 = vrot.slane %v1524_v59, %v7085_v14  ;;  %v1539_v15 = vrot.slane %v1525_v4, %v7085_v14 }
 0x2d8   : > { %v1548_v16 = vrot.slane %v1540_v5, %v7085_v14  ;;  %v1555_v17 = vrot.slane %v1541_v6, %v7085_v14  ;;  %v1104_v19 = vrot.slane %v1096_v7, %v7088_v21  ;;  %v1111_v60 = vrot.slane %v1097_v8, %v7088_v21 }
 0x2d9   : > { %v7194_v18 = vpop.permute.xlu0 %872  ;;  %v1120_v20 = vrot.slane %v1112_v9, %v7088_v21  ;;  %v1127_v22 = vrot.slane %v1113_v11, %v7088_v21  ;;  %v7227_v62 = vrot.slane %v5614_v42, %v7085_v14  ;;  %v7230_v56 = vrot.slane %v5616_v43, %v7085_v14 }
 0x2da   : > { %v7200_v23 = vpop.permute.xlu1 %1470  ;;  %v1588_v24 = vcombine.low %v1532_v13, %v1548_v16  ;;  %v1589_v25 = vcombine.high %v1532_v13, %v1548_v16  ;;  %v1604_v27 = vcombine.low %v1539_v15, %v1555_v17  ;;  %v1605_v28 = vcombine.high %v1539_v15, %v1555_v17 }
 0x2db   : > { %v5598_v29 = vcombine.low %v1104_v19, %v1111_v60  ;;  %v5600_v30 = vcombine.high %v1104_v19, %v1111_v60  ;;  %v5602_v31 = vcombine.low %v1120_v20, %v1127_v22  ;;  %v5604_v32 = vcombine.high %v1120_v20, %v1127_v22 }
 0x2dc   : > { %v7203_v33 = vrot.slane %v1588_v24, %v7088_v21  ;;  %v7206_v34 = vrot.slane %v1589_v25, %v7088_v21  ;;  %v7209_v35 = vrot.slane %v1604_v27, %v7088_v21  ;;  %v7212_v36 = vrot.slane %v1605_v28, %v7088_v21 }
 0x2dd   : > { %v879_v46 = vpop.permute.xlu0 %878  ;;  %v7215_v47 = vrot.slane %v5598_v29, %v7085_v14  ;;  %v7218_v48 = vrot.slane %v5600_v30, %v7085_v14  ;;  %v7221_v49 = vrot.slane %v5602_v31, %v7085_v14  ;;  %v7224_v54 = vrot.slane %v5604_v32, %v7085_v14 }
 0x2de   : > { %v1477_v55 = vpop.permute.xlu1 %1476  ;;  %v7233_v12 = vrot.slane %v5618_v44, %v7085_v14  ;;  %v7236_v59 = vrot.slane %v5620_v45, %v7085_v14  ;;  %v7239_v4 = vrot.slane %v1232_v50, %v7088_v21  ;;  %v5607_v42 = vcombine.low %v7203_v33, %v7206_v34 }
 0x2df   : > { %v1368_v5 = vcombine.low %v7215_v47, %v7218_v48  ;;  %v1400_v6 = vcombine.low %v7221_v49, %v7224_v54  ;;  %v7248_v43 = vrot.slane %v1233_v51, %v7088_v21  ;;  %v7251_v44 = vrot.slane %v1264_v52, %v7088_v21 }
 0x2e0   : > { %v7254_v45 = vrot.slane %v1265_v53, %v7088_v21  ;;  %v5609_v50 = vcombine.high %v7203_v33, %v7206_v34  ;;  %v5611_v51 = vcombine.low %v7209_v35, %v7212_v36  ;;  %v5613_v52 = vcombine.high %v7209_v35, %v7212_v36 }
 0x2e1   : > { %v885_v7 = vpop.permute.xlu0 %884  ;;  %v7259_v8 = vrot.slane %v1368_v5, %v7088_v21  ;;  %v7262_v9 = vrot.slane %v1400_v6, %v7088_v21  ;;  %v1836_v53 = vrot.slane %v1828_v38, %v7088_v21  ;;  %v1868_v13 = vrot.slane %v1860_v39, %v7088_v21 }
 0x2e2   : > { %v1483_v11 = vpop.permute.xlu1 %1482  ;;  %v1964_v15 = vcombine.low %v7227_v62, %v7230_v56  ;;  %v1996_v16 = vcombine.low %v7233_v12, %v7236_v59  ;;  %v1369_v17 = vcombine.high %v7215_v47, %v7218_v48  ;;  %v1401_v19 = vcombine.high %v7221_v49, %v7224_v54 }
 0x2e3   : > { %v7285_v60 = vrot.slane %v5607_v42, %v7085_v14  ;;  %v928_v38 = vcombine.low %v7194_v18, %v885_v7  ;;  %v929_v22 = vcombine.high %v7194_v18, %v885_v7  ;;  %v1660_v24 = vcombine.low %v7200_v23, %v1483_v11 }
 0x2e4   : > { %v1972_v20 = vrot.slane %v1964_v15, %v7088_v21  ;;  %v2004_v39 = vrot.slane %v1996_v16, %v7088_v21  ;;  %v1892_v27 = vcombine.low %v1836_v53, %v1868_v13  ;;  %v1661_v29 = vcombine.high %v7200_v23, %v1483_v11 }
 0x2e5   : > { %v891_v25 = vpop.permute.xlu0 %890  ;;  %v936_v28 = vrot.slane %v928_v38, %v7085_v14  ;;  %v1296_v30 = vcombine.low %v7239_v4, %v7251_v44  ;;  %v1432_v33 = vcombine.low %v7259_v8, %v7262_v9  ;;  %v1893_v34 = vcombine.high %v1836_v53, %v1868_v13 }
 0x2e6   : > { %v1489_v31 = vpop.permute.xlu1 %1488  ;;  %v2028_v32 = vcombine.low %v1972_v20, %v2004_v39  ;;  %v2029_v5 = vcombine.high %v1972_v20, %v2004_v39  ;;  %v944_v6 = vcombine.low %v879_v46, %v891_v25  ;;  %v945_v18 = vcombine.high %v879_v46, %v891_v25 }
 0x2e7   : > { %v1676_v42 = vcombine.low %v1477_v55, %v1489_v31  ;;  %v1677_v7 = vcombine.high %v1477_v55, %v1489_v31  ;;  %v943_v16 = vrot.slane %v929_v22, %v7085_v14  ;;  %v1440_v38 = vpack.c.bf16 %v1432_v33, %v1296_v30 }
 0x2e8   : > { %v2036_v15 = vpack.c.bf16 %v2028_v32, %v1892_v27  ;;  %v2037_v26 = vpack.c.bf16 %v2029_v5, %v1893_v34  ;;  %v952_v23 = vrot.slane %v944_v6, %v7085_v14  ;;  %v959_v11 = vrot.slane %v945_v18, %v7085_v14 }
 0x2e9   : > { %v1684_v41 = vrot.slane %v1676_v42, %v7085_v14  ;;  %v1691_v40 = vrot.slane %v1677_v7, %v7085_v14  ;;  %v7304_v53 = vrot.slane %v5609_v50, %v7085_v14  ;;  %v1668_v55 = vrot.slane %v1660_v24, %v7085_v14 }
 0x2ea   : > { %v2645_v46 = vsel %vm2640_vm1, %v2036_v15, 0  ;;  %v1675_v13 = vrot.slane %v1661_v29, %v7085_v14  ;;  %v992_v20 = vcombine.low %v936_v28, %v952_v23  ;;  %v993_v39 = vcombine.high %v936_v28, %v952_v23  ;;  %v887_v18 = vpop.permute.xlu1 %886 }
 0x2eb   : > { %5884 = vmatpush3.bf16.xpose.msra.mxu1 %v2645_v46  ;;  %v1008_v22 = vcombine.low %v943_v16, %v959_v11  ;;  %v1009_v25 = vcombine.high %v943_v16, %v959_v11  ;;  %v1724_v27 = vcombine.low %v1668_v55, %v1684_v41  ;;  %v1725_v30 = vcombine.high %v1668_v55, %v1684_v41 }
 0x2ec   : > { %5889 = vmatprep.subr.bf16.mxu1 %v6629_v0  ;;  %v1740_v31 = vcombine.low %v1675_v13, %v1691_v40  ;;  %v1741_v32 = vcombine.high %v1675_v13, %v1691_v40  ;;  %v1000_v50 = vrot.slane %v992_v20, %v7088_v21  ;;  %v1007_v33 = vrot.slane %v993_v39, %v7088_v21 }
 0x2ed   : > { %v1016_v34 = vrot.slane %v1008_v22, %v7088_v21  ;;  %v1023_v24 = vrot.slane %v1009_v25, %v7088_v21  ;;  %v1732_v29 = vrot.slane %v1724_v27, %v7088_v21  ;;  %v1739_v28 = vrot.slane %v1725_v30, %v7088_v21 }
 0x2ee   : > { %v1748_v5 = vrot.slane %v1740_v31, %v7088_v21  ;;  %v1755_v6 = vrot.slane %v1741_v32, %v7088_v21  ;;  %v5591_v41 = vcombine.low %v1000_v50, %v1007_v33  ;;  %v5593_v42 = vcombine.high %v1000_v50, %v1007_v33 }
 0x2ef   : > { %v5595_v40 = vcombine.low %v1016_v34, %v1023_v24  ;;  %v5597_v7 = vcombine.high %v1016_v34, %v1023_v24  ;;  %v7322_v15 = vrot.slane %v5611_v51, %v7085_v14  ;;  %v7328_v16 = vrot.slane %v5613_v52, %v7085_v14 }
 0x2f0   : > { %v5615_v23 = vcombine.low %v1732_v29, %v1739_v28  ;;  %v5617_v11 = vcombine.high %v1732_v29, %v1739_v28  ;;  %v5619_v46 = vcombine.low %v1748_v5, %v1755_v6  ;;  %v5621_v55 = vcombine.high %v1748_v5, %v1755_v6 }
 0x2f1   : > { %v1064_v13 = vcombine.low %v7152_v37, %v887_v18  ;;  %v1065_v20 = vcombine.high %v7152_v37, %v887_v18  ;;  %v1383_v51 = vrot.slane %v1369_v17, %v7088_v21  ;;  %v1415_v35 = vrot.slane %v1401_v19, %v7088_v21 }
 0x2f2   : > { %5886 = vmatmul.mubr.msk.bf16.vlgmr.msra.gmra.mrb[4].mxu1 %vm2640_vm1, %v1440_v38  ;;  %v2692_v36 = vsel %vm2640_vm1, %v2037_v26, 0  ;;  %v1297_v52 = vcombine.high %v7239_v4, %v7251_v44  ;;  %v7345_v37 = vrot.slane %v5591_v41, %v7085_v14  ;;  %v7348_v39 = vrot.slane %v5593_v42, %v7085_v14  ;;  %v893_v4 = vpop.permute.xlu1 %892 }
 0x2f3   : > { %5890 = vmatpush3.bf16.xpose.msra.mxu1 %v2692_v36  ;;  %v7351_v47 = vrot.slane %v5595_v40, %v7085_v14  ;;  %v7354_v48 = vrot.slane %v5597_v7, %v7085_v14  ;;  %v7357_v49 = vrot.slane %v5615_v23, %v7085_v14  ;;  %v7360_v26 = vrot.slane %v5617_v11, %v7085_v14 }
 0x2f4   : > { %5891 = vmatprep.mubr.msk.bf16.mxu1 %vm6631_vm0, %v6629_v0  ;;  %v1433_v54 = vcombine.high %v7259_v8, %v7262_v9  ;;  %5895 = vmatprep.subr.bf16.mxu1 %v6629_v0  ;;  %v7368_v44 = vrot.slane %v5619_v46, %v7085_v14  ;;  %v7371_v17 = vrot.slane %v5621_v55, %v7085_v14 }
 0x2f5   : > { %v1072_v19 = vrot.slane %v1064_v13, %v7085_v14  ;;  %v1079_v38 = vrot.slane %v1065_v20, %v7085_v14  ;;  %v8252_v25 = vcombine.high %v7113_v63, %v7116_v1  ;;  %v8253_v8 = vcombine.high %v7119_v2, %v7122_v3 }
 0x2f6   : > { %v1441_v22 = vpack.c.bf16 %v1433_v54, %v1297_v52  ;;  %v1965_v30 = vcombine.high %v7227_v62, %v7230_v56  ;;  %v1997_v31 = vcombine.high %v7233_v12, %v7236_v59  ;;  %v1080_v32 = vcombine.low %v7186_v57, %v893_v4 }
 0x2f7   : > { %v1843_v27 = vrot.slane %v8252_v25, %v7088_v21  ;;  %v1875_v9 = vrot.slane %v8253_v8, %v7088_v21  ;;  %v1081_v50 = vcombine.high %v7186_v57, %v893_v4  ;;  %v1298_v33 = vcombine.low %v7248_v43, %v7254_v45 }
 0x2f8   : > { %v1979_v1 = vrot.slane %v1965_v30, %v7088_v21  ;;  %v1434_v34 = vcombine.low %v1383_v51, %v1415_v35  ;;  %v2011_v2 = vrot.slane %v1997_v31, %v7088_v21  ;;  %v1088_v3 = vrot.slane %v1080_v32, %v7085_v14 }
 0x2f9   : > { %v1894_v63 = vcombine.low %v1843_v27, %v1875_v9  ;;  %v1895_v24 = vcombine.high %v1843_v27, %v1875_v9  ;;  %v1095_v62 = vrot.slane %v1081_v50, %v7085_v14  ;;  %v1299_v56 = vcombine.high %v7248_v43, %v7254_v45 }
 0x2fa   : > { %5892 = vmatmul.mubr.msk.bf16.vlgmr.msra.gmra.mrb[8].mxu1 %vm2640_vm1, %v1441_v22  ;;  %v1442_v57 = vpack.c.bf16 %v1434_v34, %v1298_v33  ;;  %v1435_v12 = vcombine.high %v1383_v51, %v1415_v35  ;;  %v1844_v59 = vcombine.low %v7285_v60, %v7304_v53  ;;  %v1876_v29 = vcombine.low %v7322_v15, %v7328_v16 }
 0x2fb   : > { %v2030_v28 = vcombine.low %v1979_v1, %v2011_v2  ;;  %v1128_v5 = vcombine.low %v1072_v19, %v1088_v3  ;;  %v1129_v6 = vcombine.high %v1072_v19, %v1088_v3  ;;  %v1144_v18 = vcombine.low %v1079_v38, %v1095_v62  ;;  %5897 = vmatprep.mubr.msk.bf16.mxu1 %vm6631_vm0, %v6629_v0 }
 0x2fc   : > { %v1145_v41 = vcombine.high %v1079_v38, %v1095_v62  ;;  %v2031_v42 = vcombine.high %v1979_v1, %v2011_v2  ;;  %v7404_v43 = vpack.c.bf16 %v1435_v12, %v1299_v56  ;;  %v1852_v45 = vrot.slane %v1844_v59, %v7088_v21 }
 0x2fd   : > { %v2038_v40 = vpack.c.bf16 %v2030_v28, %v1894_v63  ;;  %v1136_v7 = vrot.slane %v1128_v5, %v7088_v21  ;;  %v1143_v23 = vrot.slane %v1129_v6, %v7088_v21  ;;  %v1152_v11 = vrot.slane %v1144_v18, %v7088_v21 }
 0x2fe   : > { %v1159_v46 = vrot.slane %v1145_v41, %v7088_v21  ;;  %v2039_v55 = vpack.c.bf16 %v2031_v42, %v1895_v24  ;;  %v1884_v13 = vrot.slane %v1876_v29, %v7088_v21  ;;  %v1980_v20 = vcombine.low %v7357_v49, %v7360_v26 }
 0x2ff   : > { %v2739_v51 = vsel %vm2640_vm1, %v2038_v40, 0  ;;  %v5599_v35 = vcombine.low %v1136_v7, %v1143_v23  ;;  %v5601_v36 = vcombine.high %v1136_v7, %v1143_v23  ;;  %v2012_v52 = vcombine.low %v7368_v44, %v7371_v17 }
 0x300   : > { %v1248_v54 = vcombine.low %v7345_v37, %v7348_v39  ;;  %v1280_v4 = vcombine.low %v7351_v47, %v7354_v48  ;;  %5896 = vmatpush3.bf16.xpose.msra.mxu1 %v2739_v51  ;;  %v5603_v19 = vcombine.low %v1152_v11, %v1159_v46  ;;  %v5605_v38 = vcombine.high %v1152_v11, %v1159_v46 }
 0x301   : > { %v1319_v22 = vrot.slane %v5599_v35, %v7085_v14  ;;  %v1335_v25 = vrot.slane %v5601_v36, %v7085_v14  ;;  %5901 = vmatprep.subr.bf16.mxu1 %v6629_v0  ;;  %v1988_v27 = vrot.slane %v1980_v20, %v7088_v21  ;;  %v2020_v8 = vrot.slane %v2012_v52, %v7088_v21 }
 0x302   : > { %v1351_v9 = vrot.slane %v5603_v19, %v7085_v14  ;;  %v1367_v30 = vrot.slane %v5605_v38, %v7085_v14  ;;  %v1896_v32 = vcombine.low %v1852_v45, %v1884_v13  ;;  %v1845_v1 = vcombine.high %v7285_v60, %v7304_v53 }
 0x303   : > { %v1384_v31 = vcombine.low %v1319_v22, %v1335_v25  ;;  %v2032_v50 = vcombine.low %v1988_v27, %v2020_v8  ;;  %v2033_v63 = vcombine.high %v1988_v27, %v2020_v8  ;;  %v1256_v34 = vrot.slane %v1248_v54, %v7088_v21 }
 0x304   : > { %v1416_v33 = vcombine.low %v1351_v9, %v1367_v30  ;;  %v1288_v24 = vrot.slane %v1280_v4, %v7088_v21  ;;  %v2786_v56 = vsel %vm2640_vm1, %v2039_v55, 0  ;;  %v1897_v12 = vcombine.high %v1852_v45, %v1884_v13 }
 0x305   : > { %v1392_v2 = vrot.slane %v1384_v31, %v7088_v21  ;;  %v2040_v3 = vpack.c.bf16 %v2032_v50, %v1896_v32  ;;  %v1877_v59 = vcombine.high %v7322_v15, %v7328_v16  ;;  %v1859_v60 = vrot.slane %v1845_v1, %v7088_v21 }
 0x306   : > { %v1424_v62 = vrot.slane %v1416_v33, %v7088_v21  ;;  %v1981_v53 = vcombine.high %v7357_v49, %v7360_v26  ;;  %v2013_v28 = vcombine.high %v7368_v44, %v7371_v17  ;;  %v2041_v5 = vpack.c.bf16 %v2033_v63, %v1897_v12 }
 0x307   : > { %5898 = vmatmul.mubr.msk.bf16.vlgmr.msra.gmra.mrb[12].mxu1 %vm2640_vm1, %v1442_v57  ;;  %v2833_v29 = vsel %vm2640_vm1, %v2040_v3, 0  ;;  %v1891_v6 = vrot.slane %v1877_v59, %v7088_v21  ;;  %v1300_v18 = vcombine.low %v1256_v34, %v1288_v24  ;;  %v1385_v49 = vcombine.high %v1319_v22, %v1335_v25 }
 0x308   : > { %5902 = vmatpush3.bf16.xpose.msra.mxu1 %v2786_v56  ;;  %5903 = vmatprep.mubr.msk.bf16.mxu1 %vm6631_vm0, %v6629_v0  ;;  %v1436_v15 = vcombine.low %v1392_v2, %v1424_v62  ;;  %v1995_v16 = vrot.slane %v1981_v53, %v7088_v21  ;;  %v2027_v57 = vrot.slane %v2013_v28, %v7088_v21  ;;  %v2880_v45 = vsel %vm2640_vm1, %v2041_v5, 0 }
 0x309   : > { %5913 = vmatprep.subr.bf16.mxu1 %v6629_v0  ;;  %5908 = vmatpush3.bf16.xpose.msra.mxu0 %v2833_v29  ;;  %v1417_v26 = vcombine.high %v1351_v9, %v1367_v30  ;;  %v1898_v44 = vcombine.low %v1859_v60, %v1891_v6  ;;  %v1249_v41 = vcombine.high %v7345_v37, %v7348_v39 }
 0x30a   : > { %5919 = vmatprep.subr.bf16.mxu0 %v6629_v0  ;;  %v2034_v17 = vcombine.low %v1995_v16, %v2027_v57  ;;  %v1281_v42 = vcombine.high %v7351_v47, %v7354_v48  ;;  %v1444_v40 = vpack.c.bf16 %v1436_v15, %v1300_v18  ;;  %v1399_v23 = vrot.slane %v1385_v49, %v7088_v21 }
 0x30b   : > { %v1431_v11 = vrot.slane %v1417_v26, %v7088_v21  ;;  %v1437_v46 = vcombine.high %v1392_v2, %v1424_v62  ;;  %v2035_v55 = vcombine.high %v1995_v16, %v2027_v57  ;;  %v1263_v13 = vrot.slane %v1249_v41, %v7088_v21 }
 0x30c   : > { %v2042_v7 = vpack.c.bf16 %v2034_v17, %v1898_v44  ;;  %v1295_v37 = vrot.slane %v1281_v42, %v7088_v21  ;;  %v1301_v39 = vcombine.high %v1256_v34, %v1288_v24  ;;  %v1899_v48 = vcombine.high %v1859_v60, %v1891_v6 }
 0x30d   : > { %v1438_v51 = vcombine.low %v1399_v23, %v1431_v11  ;;  %v1439_v54 = vcombine.high %v1399_v23, %v1431_v11 }
 0x30e   : > { %v2927_v47 = vsel %vm2640_vm1, %v2042_v7, 0  ;;  %v2043_v20 = vpack.c.bf16 %v2035_v55, %v1899_v48  ;;  %v1302_v35 = vcombine.low %v1263_v13, %v1295_v37  ;;  %v1303_v4 = vcombine.high %v1263_v13, %v1295_v37 }
 0x30f   : > { %5904 = vmatmul.mubr.msk.bf16.vlgmr.msra.gmra.mrb[16].mxu1 %vm2640_vm1, %v7404_v43  ;;  %v1445_v43 = vpack.c.bf16 %v1437_v46, %v1301_v39 }
 0x310   : > { %5914 = vmatpush3.bf16.xpose.msra.mxu1 %v2880_v45  ;;  %5915 = vmatprep.mubr.msk.bf16.mxu1 %vm6631_vm0, %v6629_v0  ;;  %v2974_v36 = vsel %vm2640_vm1, %v2043_v20, 0  ;;  %v1446_v52 = vpack.c.bf16 %v1438_v51, %v1302_v35  ;;  %v1447_v19 = vpack.c.bf16 %v1439_v54, %v1303_v4 }
 0x311   : > { %5910 = vmatmul.mubr.msk.bf16.vlgmr.msra.gmra.mrb[4].mxu0 %vm2640_vm1, %v1444_v40  ;;  %5925 = vmatprep.subr.bf16.mxu1 %v6629_v0 }
 0x312   : > { %5920 = vmatpush3.bf16.xpose.msra.mxu0 %v2927_v47  ;;  %5921 = vmatprep.mubr.msk.bf16.mxu0 %vm6631_vm0, %v6629_v0 }
 0x313   : > { %5931 = vmatprep.subr.bf16.mxu0 %v6629_v0 }
 0x317   : > { %5916 = vmatmul.mubr.msk.bf16.vlgmr.msra.gmra.mrb[20].mxu1 %vm2640_vm1, %v1445_v43 }
 0x318   : > { %5926 = vmatpush3.bf16.xpose.msra.mxu1 %v2974_v36  ;;  %5927 = vmatprep.mubr.msk.bf16.mxu1 %vm6631_vm0, %v6629_v0 }
 0x319   : > { %5922 = vmatmul.mubr.msk.bf16.vlgmr.msra.gmra.mrb[8].mxu0 %vm2640_vm1, %v1446_v52  ;;  %5937 = vmatprep.subr.bf16.mxu1 %v6629_v0 }
 0x31a   : > { %5933 = vmatprep.mubr.msk.bf16.mxu0 %vm6631_vm0, %v6629_v0 }
 0x31f   : > { %5928 = vmatmul.mubr.msk.bf16.vlgmr.msra.gmra.mrb[24].mxu1 %vm2640_vm1, %v1447_v19 }
 0x320   : > { %5939 = vmatprep.mubr.msk.bf16.mxu1 %vm6631_vm0, %v6629_v0 }
 0x3c5   : > { %v7481_v38 = vpop.f32.mrb[4].mxu1 }
 0x3c6   : > { %v5887_v22 = vpop.f32.mrb[5].mxu1  ;;  %v3017_v25 = vsel %vm2640_vm1, %v7481_v38, -inf }
 0x3c7   : > { %3018 = vmax.xlane.f32.xlu0 %v3017_v25  ;;  %v7485_v27 = vpop.f32.mrb[6].mxu1 }
 0x3c8   : > { %v5888_v8 = vpop.f32.mrb[7].mxu1  ;;  %v3020_v9 = vsel %vm2640_vm1, %v7485_v27, -inf }
 0x3c9   : > { %3021 = vmax.xlane.f32.xlu1 %v3020_v9 }
 0x3cd   : > { %v7489_v30 = vpop.f32.mrb[8].mxu1 }
 0x3ce   : > { %v5893_v31 = vpop.f32.mrb[9].mxu1  ;;  %v3023_v32 = vsel %vm2640_vm1, %v7489_v30, -inf }
 0x3cf   : > { %3024 = vmax.xlane.f32.xlu0 %v3023_v32  ;;  %v7493_v50 = vpop.f32.mrb[10].mxu1 }
 0x3d0   : > { %v5894_v33 = vpop.f32.mrb[11].mxu1  ;;  %v3026_v63 = vsel %vm2640_vm1, %v7493_v50, -inf }
 0x3d3   : > { %3027 = vmax.xlane.f32.xlu0 %v3026_v63 }
 0x3da   : > { %v7497_v1 = vpop.f32.mrb[12].mxu1 }
 0x3db   : > { %v5899_v34 = vpop.f32.mrb[13].mxu1  ;;  %v3029_v24 = vsel %vm2640_vm1, %v7497_v1, -inf }
 0x3dc   : > { %3030 = vmax.xlane.f32.xlu0 %v3029_v24  ;;  %v7501_v2 = vpop.f32.mrb[14].mxu1 }
 0x3dd   : > { %v5900_v3 = vpop.f32.mrb[15].mxu1  ;;  %v3032_v62 = vsel %vm2640_vm1, %v7501_v2, -inf }
 0x3de   : > { %3033 = vmax.xlane.f32.xlu1 %v3032_v62 }
 0x3e2   : > { %v7505_v56 = vpop.f32.mrb[16].mxu1 }
 0x3e3   : > { %v5905_v12 = vpop.f32.mrb[17].mxu1  ;;  %v3035_v59 = vsel %vm2640_vm1, %v7505_v56, -inf }
 0x3e4   : > { %3036 = vmax.xlane.f32.xlu0 %v3035_v59  ;;  %v7509_v29 = vpop.f32.mrb[18].mxu1  ;;  %v7511_v60 = vpop.f32.mrb[4].mxu0 }
 0x3e5   : > { %v5906_v53 = vpop.f32.mrb[19].mxu1  ;;  %v3038_v28 = vsel %vm2640_vm1, %v7509_v29, -inf  ;;  %v5911_v5 = vpop.f32.mrb[5].mxu0  ;;  %v3041_v6 = vsel %vm2640_vm1, %v7511_v60, -inf }
 0x3e6   : > { %3039 = vmax.xlane.f32.xlu1 %v3038_v28  ;;  %v7517_v15 = vpop.f32.mrb[6].mxu0 }
 0x3e7   : > { %v5912_v16 = vpop.f32.mrb[7].mxu0  ;;  %v3044_v57 = vsel %vm2640_vm1, %v7517_v15, -inf }
 0x3e8   : > { %3042 = vmax.xlane.f32.xlu0 %v3041_v6 }
 0x3ea   : > { %v7521_v18 = vpop.f32.mrb[20].mxu1  ;;  %3045 = vmax.xlane.f32.xlu1 %v3044_v57 }
 0x3eb   : > { %v5917_v49 = vpop.f32.mrb[21].mxu1  ;;  %v3047_v26 = vsel %vm2640_vm1, %v7521_v18, -inf }
 0x3ec   : > { %v7525_v44 = vpop.f32.mrb[22].mxu1  ;;  %3048 = vmax.xlane.f32.xlu0 %v3047_v26  ;;  %v7527_v17 = vpop.f32.mrb[8].mxu0 }
 0x3ed   : > { %v5918_v41 = vpop.f32.mrb[23].mxu1  ;;  %v3050_v42 = vsel %vm2640_vm1, %v7525_v44, -inf  ;;  %v5923_v45 = vpop.f32.mrb[9].mxu0  ;;  %v3053_v40 = vsel %vm2640_vm1, %v7527_v17, -inf }
 0x3ee   : > { %3051 = vmax.xlane.f32.xlu1 %v3050_v42  ;;  %v7533_v7 = vpop.f32.mrb[10].mxu0 }
 0x3ef   : > { %v5924_v23 = vpop.f32.mrb[11].mxu0  ;;  %v3056_v11 = vsel %vm2640_vm1, %v7533_v7, -inf }
 0x3f0   : > { %3054 = vmax.xlane.f32.xlu0 %v3053_v40 }
 0x3f2   : > { %v7537_v46 = vpop.f32.mrb[24].mxu1  ;;  %3057 = vmax.xlane.f32.xlu1 %v3056_v11 }
 0x3f3   : > { %v5929_v55 = vpop.f32.mrb[25].mxu1  ;;  %v3059_v13 = vsel %vm2640_vm1, %v7537_v46, -inf }
 0x3f4   : > { %v7541_v37 = vpop.f32.mrb[26].mxu1  ;;  %3060 = vmax.xlane.f32.xlu0 %v3059_v13 }
 0x3f5   : > { %v5930_v39 = vpop.f32.mrb[27].mxu1  ;;  %v3062_v47 = vsel %vm2640_vm1, %v7541_v37, -inf }
 0x3f6   : > { %3063 = vmax.xlane.f32.xlu1 %v3062_v47 }
 0x454   : > { %v3019_v48 = vpop.xlane.xlu0 %3018 }
 0x455   : > { %v3065_v43 = vsub.f32 %v7481_v38, %v3019_v48 }
 0x456   : > { %v3022_v20 = vpop.xlane.xlu1 %3021 }
 0x457   : > { %v3081_v51 = vmul.f32 1.442695, %v3065_v43  ;;  %v3066_v35 = vsub.f32 %v7485_v27, %v3022_v20 }
 0x459   : > { %6279 = vpow2.f32 %v3081_v51  ;;  %v3083_v36 = vmul.f32 1.442695, %v3066_v35 }
 0x45b   : > { %6281 = vpow2.f32 %v3083_v36 }
 0x45c   : > { %v3025_v52 = vpop.xlane.xlu0 %3024 }
 0x45d   : > { %v3067_v54 = vsub.f32 %v7489_v30, %v3025_v52 }
 0x45f   : > { %v3085_v4 = vmul.f32 1.442695, %v3067_v54 }
 0x460   : > { %v3028_v19 = vpop.xlane.xlu0 %3027 }
 0x461   : > { %6283 = vpow2.f32 %v3085_v4  ;;  %v3068_v22 = vsub.f32 %v7493_v50, %v3028_v19 }
 0x463   : > { %v7549_v25 = vpop.eup %6279  ;;  %v3087_v8 = vmul.f32 1.442695, %v3068_v22 }
 0x464   : > { %v3113_v38 = vsel %vm2640_vm1, %v7549_v25, 0.0 }
 0x465   : > { %v7553_v9 = vpop.eup %6281  ;;  %6285 = vpow2.f32 %v3087_v8  ;;  %3114 = vadd.xlane.f32.xlu0 %v3113_v38 }
 0x466   : > { %v3116_v27 = vsel %vm2640_vm1, %v7553_v9, 0.0 }
 0x467   : > { %3117 = vadd.xlane.f32.xlu1 %v3116_v27 }
 0x469   : > { %v3031_v30 = vpop.xlane.xlu0 %3030 }
 0x46a   : > { %v3069_v31 = vsub.f32 %v7497_v1, %v3031_v30 }
 0x46b   : > { %v7558_v32 = vpop.eup %6283  ;;  %v3034_v50 = vpop.xlane.xlu1 %3033 }
 0x46c   : > { %v3089_v33 = vmul.f32 1.442695, %v3069_v31  ;;  %v3070_v63 = vsub.f32 %v7501_v2, %v3034_v50  ;;  %v3119_v34 = vsel %vm2640_vm1, %v7558_v32, 0.0 }
 0x46d   : > { %3120 = vadd.xlane.f32.xlu0 %v3119_v34 }
 0x46e   : > { %6287 = vpow2.f32 %v3089_v33  ;;  %v3091_v24 = vmul.f32 1.442695, %v3070_v63 }
 0x46f   : > { %v7563_v3 = vpop.eup %6285 }
 0x470   : > { %6289 = vpow2.f32 %v3091_v24  ;;  %v3122_v62 = vsel %vm2640_vm1, %v7563_v3, 0.0 }
 0x471   : > { %v3037_v12 = vpop.xlane.xlu0 %3036  ;;  %3123 = vadd.xlane.f32.xlu1 %v3122_v62 }
 0x472   : > { %v3071_v1 = vsub.f32 %v7505_v56, %v3037_v12 }
 0x473   : > { %v3040_v59 = vpop.xlane.xlu1 %3039 }
 0x474   : > { %v3093_v53 = vmul.f32 1.442695, %v3071_v1  ;;  %v3072_v2 = vsub.f32 %v7509_v29, %v3040_v59 }
 0x475   : > { %v3043_v28 = vpop.xlane.xlu0 %3042 }
 0x476   : > { %6291 = vpow2.f32 %v3093_v53  ;;  %v3073_v5 = vsub.f32 %v7511_v60, %v3043_v28  ;;  %v3095_v26 = vmul.f32 1.442695, %v3072_v2  ;;  %v5646_v53 = vld [vmem:[%s8202_s2] ss:$0 sm:$0xff] }
 0x477   : > { %v3046_v6 = vpop.xlane.xlu1 %3045 }
 0x478   : > { %v7570_v16 = vpop.eup %6287  ;;  %v3097_v57 = vmul.f32 1.442695, %v3073_v5  ;;  %v3074_v49 = vsub.f32 %v7517_v15, %v3046_v6 }
 0x479   : > { %v3125_v41 = vsel %vm2640_vm1, %v7570_v16, 0.0  ;;  %v3049_v42 = vpop.xlane.xlu0 %3048 }
 0x47a   : > { %v7575_v56 = vpop.eup %6289  ;;  %6293 = vpow2.f32 %v3097_v57  ;;  %3126 = vadd.xlane.f32.xlu0 %v3125_v41  ;;  %v3099_v29 = vmul.f32 1.442695, %v3074_v49  ;;  %v3075_v45 = vsub.f32 %v7521_v18, %v3049_v42  ;;  %v5647_v49 = vld [vmem:[%s8202_s2 + $0x1] ss:$0 sm:$0xff] }
 0x47b   : > { %v3128_v60 = vsel %vm2640_vm1, %v7575_v56, 0.0  ;;  %v3052_v40 = vpop.xlane.xlu1 %3051 }
 0x47c   : > { %6295 = vpow2.f32 %v3099_v29  ;;  %3129 = vadd.xlane.f32.xlu1 %v3128_v60  ;;  %v3101_v23 = vmul.f32 1.442695, %v3075_v45  ;;  %v3076_v15 = vsub.f32 %v7525_v44, %v3052_v40 }
 0x47d   : > { %6297 = vpow2.f32 %v3095_v26  ;;  %v3055_v11 = vpop.xlane.xlu0 %3054 }
 0x47e   : > { %6299 = vpow2.f32 %v3101_v23  ;;  %v3077_v55 = vsub.f32 %v7527_v17, %v3055_v11  ;;  %v3103_v48 = vmul.f32 1.442695, %v3076_v15  ;;  %v5648_v23 = vld [vmem:[%s8202_s2 + $0x2] ss:$0 sm:$0xff] }
 0x47f   : > { %v3058_v13 = vpop.xlane.xlu1 %3057 }
 0x480   : > { %v7582_v39 = vpop.eup %6291  ;;  %v3105_v47 = vmul.f32 1.442695, %v3077_v55  ;;  %v3078_v18 = vsub.f32 %v7533_v7, %v3058_v13 }
 0x481   : > { %v3131_v43 = vsel %vm2640_vm1, %v7582_v39, 0.0  ;;  %v3061_v20 = vpop.xlane.xlu0 %3060 }
 0x482   : > { %6301 = vpow2.f32 %v3105_v47  ;;  %3132 = vadd.xlane.f32.xlu0 %v3131_v43  ;;  %v3107_v51 = vmul.f32 1.442695, %v3078_v18  ;;  %v3079_v44 = vsub.f32 %v7537_v46, %v3061_v20  ;;  %v5649_v43 = vld [vmem:[%s8202_s2 + $0x3] ss:$0 sm:$0xff] }
 0x483   : > { %v3064_v63 = vpop.xlane.xlu1 %3063 }
 0x484   : > { %v7588_v35 = vpop.eup %6293  ;;  %6303 = vpow2.f32 %v3107_v51  ;;  %v3109_v17 = vmul.f32 1.442695, %v3079_v44  ;;  %v3080_v34 = vsub.f32 %v7541_v37, %v3064_v63 }
 0x485   : > { %6305 = vpow2.f32 %v3103_v48  ;;  %v3137_v36 = vsel %vm2640_vm1, %v7588_v35, 0.0 }
 0x486   : > { %v7592_v52 = vpop.eup %6295  ;;  %6307 = vpow2.f32 %v3109_v17  ;;  %3138 = vadd.xlane.f32.xlu0 %v3137_v36  ;;  %v3111_v24 = vmul.f32 1.442695, %v3080_v34  ;;  %v5650_v36 = vld [vmem:[%s8202_s2 + $0x4] ss:$0 sm:$0xff] }
 0x487   : > { %v7594_v7 = vpop.eup %6297  ;;  %v3140_v54 = vsel %vm2640_vm1, %v7592_v52, 0.0 }
 0x488   : > { %v7598_v4 = vpop.eup %6299  ;;  %3141 = vadd.xlane.f32.xlu1 %v3140_v54  ;;  %v3134_v19 = vsel %vm2640_vm1, %v7594_v7, 0.0  ;;  %6309 = vpow2.f32 %v3111_v24  ;;  %v5652_v24 = vld [vmem:[%s8202_s2 + $0x6] ss:$0 sm:$0xff] }
 0x489   : > { %v3143_v46 = vsel %vm2640_vm1, %v7598_v4, 0.0 }
 0x48a   : > { %3144 = vadd.xlane.f32.xlu0 %v3143_v46 }
 0x48c   : > { %v7604_v22 = vpop.eup %6301  ;;  %3135 = vadd.xlane.f32.xlu1 %v3134_v19 }
 0x48d   : > { %v3149_v8 = vsel %vm2640_vm1, %v7604_v22, 0.0 }
 0x48e   : > { %v7608_v38 = vpop.eup %6303  ;;  %3150 = vadd.xlane.f32.xlu0 %v3149_v8 }
 0x48f   : > { %v7610_v27 = vpop.eup %6305  ;;  %v3152_v30 = vsel %vm2640_vm1, %v7608_v38, 0.0 }
 0x490   : > { %v7614_v31 = vpop.eup %6307  ;;  %3153 = vadd.xlane.f32.xlu1 %v3152_v30  ;;  %v3146_v33 = vsel %vm2640_vm1, %v7610_v27, 0.0  ;;  %v5651_v30 = vld [vmem:[%s8202_s2 + $0x5] ss:$0 sm:$0xff] }
 0x491   : > { %v3155_v50 = vsel %vm2640_vm1, %v7614_v31, 0.0 }
 0x492   : > { %3156 = vadd.xlane.f32.xlu0 %v3155_v50  ;;  %v7637_v62 = vpop.eup %6309 }
 0x493   : > { %v3158_v12 = vsel %vm2640_vm1, %v7637_v62, 0.0 }
 0x494   : > { %3147 = vadd.xlane.f32.xlu1 %v3146_v33 }
 0x4a5   : > { %2048 = vrot.lane.b32.xlu1 %v7027_v61, %s6632_s11 }
 0x4a8   : > { %2046 = vrot.lane.b32.xlu0 %v7023_v58, %s6632_s11 }
 0x4a9   : > { %2052 = vrot.lane.b32.xlu1 %v7023_v58, %s8226_s25 }
 0x4ac   : > { %2058 = vrot.lane.b32.xlu0 %v7023_v58, %s6634_s13 }
 0x4b0   : > { %2066 = vrot.lane.b32.xlu0 %v7027_v61, %s6635_s27 }
 0x4b4   : > { %2072 = vrot.lane.b32.xlu0 %v7027_v61, %s6636_s17 }
 0x4b8   : > { %2078 = vrot.lane.b32.xlu0 %v7027_v61, %s6637_s8 }
 0x4bc   : > { %2084 = vrot.lane.b32.xlu0 %v7027_v61, %s6638_s20 }
 0x4cd   : > { %3159 = vadd.xlane.f32.xlu1 %v3158_v12 }
 0x4de   : > { %2054 = vrot.lane.b32.xlu1 %v7027_v61, %s8226_s25  ;;  %s8155_s25 = scalar_lea.hbm %s8262_s22, %s5768_s14 }
 0x4e2   : > { %2060 = vrot.lane.b32.xlu1 %v7027_v61, %s6634_s13 }
 0x4e6   : > { %2064 = vrot.lane.b32.xlu1 %v7023_v58, %s6635_s27 }
 0x4ea   : > { %2070 = vrot.lane.b32.xlu1 %v7023_v58, %s6636_s17 }
 0x4ee   : > { %2076 = vrot.lane.b32.xlu1 %v7023_v58, %s6637_s8 }
 0x4f2   : > { %2082 = vrot.lane.b32.xlu1 %v7023_v58, %s6638_s20  ;;  %v3115_v37 = vpop.xlane.xlu0 %3114 }
 0x4f3   : > { %6311 = vrcp.f32 %v3115_v37 }
 0x4f4   : > { %v3118_v1 = vpop.xlane.xlu1 %3117 }
 0x4f5   : > { %6313 = vrcp.f32 %v3118_v1 }
 0x4fa   : > { %v3121_v59 = vpop.xlane.xlu0 %3120 }
 0x4fb   : > { %6315 = vrcp.f32 %v3121_v59 }
 0x4fd   : > { %v6312_v2 = vpop.eup %6311 }
 0x4fe   : > { %v3124_v28 = vpop.xlane.xlu1 %3123  ;;  %v3233_v5 = vmul.f32 %v6312_v2, %v5646_v53 }
 0x4ff   : > { %v6314_v6 = vpop.eup %6313  ;;  %6317 = vrcp.f32 %v3124_v28 }
 0x500   : > { %3251 = vperm.xlu0 %6118, %v3233_v5   ;;  %v3234_v57 = vmul.f32 %v6314_v6, %v5646_v53  ;;  %v5653_v53 = vld [vmem:[%s8202_s2 + $0x7] ss:$0 sm:$0xff] }
 0x502   : > { %3256 = vperm.xlu1 %6119, %v3234_v57  }
 0x505   : > { %v6316_v26 = vpop.eup %6315 }
 0x506   : > { %v3235_v41 = vmul.f32 %v6316_v26, %v5647_v49 }
 0x507   : > { %v3127_v42 = vpop.xlane.xlu0 %3126 }
 0x508   : > { %6319 = vrcp.f32 %v3127_v42  ;;  %3261 = vperm.xlu1 %6119, %v3235_v41  }
 0x509   : > { %v6318_v29 = vpop.eup %6317  ;;  %v3130_v45 = vpop.xlane.xlu1 %3129 }
 0x50a   : > { %6321 = vrcp.f32 %v3130_v45  ;;  %v3236_v60 = vmul.f32 %v6318_v29, %v5647_v49 }
 0x50c   : > { %3266 = vperm.xlu0 %6118, %v3236_v60  }
 0x50f   : > { %v3133_v40 = vpop.xlane.xlu0 %3132 }
 0x510   : > { %6323 = vrcp.f32 %v3133_v40 }
 0x512   : > { %v6320_v15 = vpop.eup %6319 }
 0x513   : > { %v3237_v11 = vmul.f32 %v6320_v15, %v5648_v23  ;;  %v3139_v55 = vpop.xlane.xlu0 %3138 }
 0x514   : > { %v6322_v13 = vpop.eup %6321  ;;  %6325 = vrcp.f32 %v3139_v55 }
 0x515   : > { %3271 = vperm.xlu1 %6119, %v3237_v11   ;;  %v3238_v47 = vmul.f32 %v6322_v13, %v5648_v23  ;;  %v3142_v18 = vpop.xlane.xlu1 %3141 }
 0x517   : > { %3276 = vperm.xlu0 %6118, %v3238_v47   ;;  %v3145_v48 = vpop.xlane.xlu0 %3144 }
 0x518   : > { %6327 = vrcp.f32 %v3145_v48 }
 0x519   : > { %v3136_v20 = vpop.xlane.xlu1 %3135 }
 0x51a   : > { %v6324_v51 = vpop.eup %6323  ;;  %6329 = vrcp.f32 %v3136_v20 }
 0x51b   : > { %6331 = vrcp.f32 %v3142_v18  ;;  %v3239_v44 = vmul.f32 %v6324_v51, %v5649_v43  ;;  %v3151_v17 = vpop.xlane.xlu0 %3150 }
 0x51c   : > { %6333 = vrcp.f32 %v3151_v17 }
 0x51d   : > { %3281 = vperm.xlu1 %6119, %v3239_v44   ;;  %v3154_v54 = vpop.xlane.xlu1 %3153 }
 0x51e   : > { %v6326_v46 = vpop.eup %6325 }
 0x51f   : > { %v3157_v19 = vpop.xlane.xlu0 %3156  ;;  %v3241_v8 = vmul.f32 %v6326_v46, %v5650_v36 }
 0x520   : > { %6335 = vrcp.f32 %v3157_v19 }
 0x521   : > { %3291 = vperm.xlu1 %6119, %v3241_v8   ;;  %v3148_v50 = vpop.xlane.xlu1 %3147 }
 0x522   : > { %v6328_v33 = vpop.eup %6327  ;;  %6337 = vrcp.f32 %v3148_v50 }
 0x523   : > { %v3243_v63 = vmul.f32 %v6328_v33, %v5651_v30  ;;  %6339 = vrcp.f32 %v3154_v54  ;;  %v2047_v42 = vpop.permute.xlu0 %2046 }
 0x524   : > { %v6330_v34 = vpop.eup %6329 }
 0x525   : > { %v6332_v12 = vpop.eup %6331  ;;  %3301 = vperm.xlu1 %6119, %v3243_v63   ;;  %v3240_v37 = vmul.f32 %v6330_v34, %v5649_v43  ;;  %v2049_v41 = vpop.permute.xlu1 %2048 }
 0x526   : > { %v6334_v1 = vpop.eup %6333  ;;  %v3242_v2 = vmul.f32 %v6332_v12, %v5650_v36 }
 0x527   : > { %3286 = vperm.xlu0 %6118, %v3240_v37   ;;  %v3245_v59 = vmul.f32 %v6334_v1, %v5652_v24  ;;  %v2059_v45 = vpop.permute.xlu0 %2058 }
 0x528   : > { %v2104_v40 = vcombine.low %v2047_v42, %v2059_v45  ;;  %v2105_v15 = vcombine.high %v2047_v42, %v2059_v45 }
 0x529   : > { %3311 = vperm.xlu1 %6119, %v3245_v59   ;;  %v2053_v29 = vpop.permute.xlu1 %2052 }
 0x52a   : > { %v6336_v28 = vpop.eup %6335  ;;  %v2088_v60 = vcombine.low %v7023_v58, %v2053_v29  ;;  %v2089_v23 = vcombine.high %v7023_v58, %v2053_v29  ;;  %v2112_v55 = vrot.slane %v2104_v40, %v7085_v14  ;;  %v2119_v47 = vrot.slane %v2105_v15, %v7085_v14 }
 0x52b   : > { %3296 = vperm.xlu0 %6118, %v3242_v2   ;;  %v3247_v5 = vmul.f32 %v6336_v28, %v5653_v53  ;;  %v7690_v37 = vpop.permute.xlu0 %2066 }
 0x52c   : > { %v6338_v6 = vpop.eup %6337  ;;  %v2096_v11 = vrot.slane %v2088_v60, %v7085_v14  ;;  %v2103_v13 = vrot.slane %v2089_v23, %v7085_v14 }
 0x52d   : > { %3321 = vperm.xlu1 %6119, %v3247_v5   ;;  %v3244_v57 = vmul.f32 %v6338_v6, %v5651_v30  ;;  %v6340_v49 = vpop.eup %6339 }
 0x52e   : > { %v3246_v26 = vmul.f32 %v6340_v49, %v5652_v24  ;;  %v2152_v18 = vcombine.low %v2096_v11, %v2112_v55  ;;  %v2153_v48 = vcombine.high %v2096_v11, %v2112_v55  ;;  %v2168_v43 = vcombine.low %v2103_v13, %v2119_v47 }
 0x52f   : > { %3306 = vperm.xlu0 %6118, %v3244_v57   ;;  %v2169_v20 = vcombine.high %v2103_v13, %v2119_v47  ;;  %v2073_v11 = vpop.permute.xlu0 %2072 }
 0x530   : > { %v2160_v44 = vrot.slane %v2152_v18, %v7088_v21  ;;  %v2167_v17 = vrot.slane %v2153_v48, %v7088_v21  ;;  %v2176_v58 = vrot.slane %v2168_v43, %v7088_v21 }
 0x531   : > { %v2183_v36 = vrot.slane %v2169_v20, %v7088_v21 }
 0x532   : > { %v5622_v46 = vcombine.low %v2160_v44, %v2167_v17  ;;  %v5624_v30 = vcombine.high %v2160_v44, %v2167_v17 }
 0x533   : > { %3316 = vperm.xlu0 %6118, %v3246_v26   ;;  %v5626_v50 = vcombine.low %v2176_v58, %v2183_v36  ;;  %v5628_v33 = vcombine.high %v2176_v58, %v2183_v36 }
 0x534   : > { %v2368_v12 = vrot.slane %v5622_v46, %v7085_v14 }
 0x535   : > { %v2400_v6 = vrot.slane %v5626_v50, %v7085_v14  ;;  %v2416_v57 = vrot.slane %v5628_v33, %v7085_v14  ;;  %v2079_v50 = vpop.permute.xlu0 %2078 }
 0x537   : > { %v2456_v47 = vcombine.low %v2400_v6, %v2416_v57 }
 0x55a   : > { %v3160_v51 = vpop.xlane.xlu1 %3159 }
 0x55b   : > { %6341 = vrcp.f32 %v3160_v51  ;;  %v2457_v51 = vcombine.high %v2400_v6, %v2416_v57 }
 0x55e   : > { %v2055_v54 = vpop.permute.xlu1 %2054 }
 0x55f   : > { %v2224_v19 = vcombine.low %v7027_v61, %v2055_v54  ;;  %v2225_v8 = vcombine.high %v7027_v61, %v2055_v54  ;;  %v2384_v61 = vrot.slane %v5624_v30, %v7085_v14 }
 0x561   : > { %v2232_v59 = vrot.slane %v2224_v19, %v7085_v14  ;;  %v2239_v2 = vrot.slane %v2225_v8, %v7085_v14  ;;  %v2424_v13 = vcombine.low %v2368_v12, %v2384_v61  ;;  %v2425_v20 = vcombine.high %v2368_v12, %v2384_v61 }
 0x562   : > { %v2061_v63 = vpop.permute.xlu1 %2060  ;;  %v2464_v19 = vrot.slane %v2456_v47, %v7088_v21 }
 0x563   : > { %v2240_v34 = vcombine.low %v2049_v41, %v2061_v63  ;;  %v2241_v24 = vcombine.high %v2049_v41, %v2061_v63  ;;  %v2432_v46 = vrot.slane %v2424_v13, %v7088_v21  ;;  %v2439_v33 = vrot.slane %v2425_v20, %v7088_v21 }
 0x564   : > { %v2471_v63 = vrot.slane %v2457_v51, %v7088_v21  ;;  %v2256_v20 = vcombine.low %v7690_v37, %v2079_v50 }
 0x565   : > { %v6342_v1 = vpop.eup %6341  ;;  %v2248_v28 = vrot.slane %v2240_v34, %v7085_v14  ;;  %v2255_v5 = vrot.slane %v2241_v24, %v7085_v14  ;;  %v2489_v61 = vcombine.high %v2432_v46, %v2464_v19 }
 0x566   : > { %v7699_v49 = vpop.permute.xlu1 %2064  ;;  %v3248_v26 = vmul.f32 %v6342_v1, %v5653_v53 }
 0x567   : > { %v2288_v41 = vcombine.low %v2232_v59, %v2248_v28  ;;  %v2289_v42 = vcombine.high %v2232_v59, %v2248_v28  ;;  %v2304_v29 = vcombine.low %v2239_v2, %v2255_v5  ;;  %v2305_v45 = vcombine.high %v2239_v2, %v2255_v5 }
 0x568   : > { %3326 = vperm.xlu0 %6118, %v3248_v26   ;;  %v2488_v28 = vcombine.low %v2432_v46, %v2464_v19  ;;  %v2490_v26 = vcombine.low %v2439_v33, %v2471_v63 }
 0x569   : > { %v2296_v60 = vrot.slane %v2288_v41, %v7088_v21  ;;  %v2303_v40 = vrot.slane %v2289_v42, %v7088_v21  ;;  %v2312_v23 = vrot.slane %v2304_v29, %v7088_v21  ;;  %v2319_v15 = vrot.slane %v2305_v45, %v7088_v21 }
 0x56a   : > { %v2071_v55 = vpop.permute.xlu1 %2070  ;;  %v2491_v42 = vcombine.high %v2439_v33, %v2471_v63 }
 0x56b   : > { %v5630_v18 = vcombine.low %v2296_v60, %v2303_v40  ;;  %v5632_v48 = vcombine.high %v2296_v60, %v2303_v40  ;;  %v5634_v53 = vcombine.low %v2312_v23, %v2319_v15  ;;  %v5636_v43 = vcombine.high %v2312_v23, %v2319_v15  ;;  %v2085_v40 = vpop.permute.xlu0 %2084 }
 0x56d   : > { %v2504_v44 = vrot.slane %v5630_v18, %v7085_v14  ;;  %v2520_v17 = vrot.slane %v5632_v48, %v7085_v14  ;;  %v2536_v58 = vrot.slane %v5634_v53, %v7085_v14  ;;  %v2552_v36 = vrot.slane %v5636_v43, %v7085_v14 }
 0x56e   : > { %v2077_v54 = vpop.permute.xlu1 %2076  ;;  %v2272_v18 = vcombine.low %v2073_v11, %v2085_v40  ;;  %v2273_v53 = vcombine.high %v2073_v11, %v2085_v40  ;;  %v2264_v11 = vrot.slane %v2256_v20, %v7085_v14 }
 0x56f   : > { %v2560_v8 = vcombine.low %v2504_v44, %v2520_v17  ;;  %v2592_v30 = vcombine.low %v2536_v58, %v2552_v36  ;;  %v2561_v34 = vcombine.high %v2504_v44, %v2520_v17  ;;  %v2593_v24 = vcombine.high %v2536_v58, %v2552_v36 }
 0x570   : > { %v2120_v48 = vcombine.low %v7699_v49, %v2077_v54  ;;  %v2121_v43 = vcombine.high %v7699_v49, %v2077_v54  ;;  %v2257_v44 = vcombine.high %v7690_v37, %v2079_v50  ;;  %v2287_v36 = vrot.slane %v2273_v53, %v7085_v14 }
 0x571   : > { %v2568_v12 = vrot.slane %v2560_v8, %v7088_v21  ;;  %v2600_v1 = vrot.slane %v2592_v30, %v7088_v21  ;;  %v2575_v59 = vrot.slane %v2561_v34, %v7088_v21  ;;  %v2607_v2 = vrot.slane %v2593_v24, %v7088_v21  ;;  %v3345_v34 = vld [vmem:[#allocation5] sm:$0xff]  ;;  %v3346_v24 = vld [vmem:[#allocation5 + $0x8] sm:$0xff] }
 0x572   : > { %v2083_v57 = vpop.permute.xlu1 %2082  ;;  %v2128_v58 = vrot.slane %v2120_v48, %v7085_v14  ;;  %v2135_v46 = vrot.slane %v2121_v43, %v7085_v14  ;;  %v2271_v8 = vrot.slane %v2257_v44, %v7085_v14  ;;  %v3347_v44 = vld [vmem:[#allocation5 + $0x10] sm:$0xff] }
 0x573   : > { %v2624_v5 = vcombine.low %v2568_v12, %v2600_v1  ;;  %v2625_v6 = vcombine.high %v2568_v12, %v2600_v1  ;;  %v2626_v41 = vcombine.low %v2575_v59, %v2607_v2  ;;  %v2627_v29 = vcombine.high %v2575_v59, %v2607_v2 }
 0x574   : > { %v2136_v13 = vcombine.low %v2071_v55, %v2083_v57  ;;  %v2137_v47 = vcombine.high %v2071_v55, %v2083_v57  ;;  %v2280_v55 = vrot.slane %v2272_v18, %v7085_v14  ;;  %v2336_v1 = vcombine.low %v2271_v8, %v2287_v36 }
 0x575   : > { %v2632_v45 = vpack.c.bf16 %v2624_v5, %v2488_v28  ;;  %v2633_v60 = vpack.c.bf16 %v2625_v6, %v2489_v61  ;;  %v2634_v23 = vpack.c.bf16 %v2626_v41, %v2490_v26  ;;  %v7717_v15 = vpack.c.bf16 %v2627_v29, %v2491_v42 }
 0x576   : > { %v2144_v51 = vrot.slane %v2136_v13, %v7085_v14  ;;  %v2151_v17 = vrot.slane %v2137_v47, %v7085_v14  ;;  %v2320_v50 = vcombine.low %v2264_v11, %v2280_v55  ;;  %v2321_v63 = vcombine.high %v2264_v11, %v2280_v55 }
 0x577   : > { %5932 = vmatpush3.bf16.msra.mxu0 %v2632_v45  ;;  %5938 = vmatpush3.bf16.msra.mxu1 %v2633_v60  ;;  %v2337_v59 = vcombine.high %v2271_v8, %v2287_v36  ;;  %v2344_v42 = vrot.slane %v2336_v1, %v7088_v21  ;;  %v3349_v1 = vld [vmem:[#allocation5 + $0x20] sm:$0xff] }
 0x578   : > { %5943 = vmatprep.subr.bf16.mxu0 %v6629_v0  ;;  %5949 = vmatprep.subr.bf16.mxu1 %v6629_v0  ;;  %v2184_v19 = vcombine.low %v2128_v58, %v2144_v51  ;;  %v2185_v49 = vcombine.high %v2128_v58, %v2144_v51  ;;  %v2200_v30 = vcombine.low %v2135_v46, %v2151_v17 }
 0x579   : > { %v2201_v33 = vcombine.high %v2135_v46, %v2151_v17  ;;  %v2335_v41 = vrot.slane %v2321_v63, %v7088_v21  ;;  %v2351_v29 = vrot.slane %v2337_v59, %v7088_v21  ;;  %v3348_v17 = vld [vmem:[#allocation5 + $0x18] sm:$0xff]  ;;  %v3350_v59 = vld [vmem:[#allocation5 + $0x28] sm:$0xff] }
 0x57a   : > { %v2192_v28 = vrot.slane %v2184_v19, %v7088_v21  ;;  %v2199_v5 = vrot.slane %v2185_v49, %v7088_v21  ;;  %v2208_v61 = vrot.slane %v2200_v30, %v7088_v21 }
 0x57b   : > { %v2215_v6 = vrot.slane %v2201_v33, %v7088_v21  ;;  %v5635_v53 = vcombine.low %v2344_v42, %v2351_v29  ;;  %v5637_v43 = vcombine.high %v2344_v42, %v2351_v29 }
 0x57c   : > { %v5625_v40 = vcombine.high %v2192_v28, %v2199_v5 }
 0x57d   : > { %v5627_v13 = vcombine.low %v2208_v61, %v2215_v6  ;;  %v5629_v47 = vcombine.high %v2208_v61, %v2215_v6  ;;  %v2559_v49 = vrot.slane %v5637_v43, %v7085_v14 }
 0x57e   : > { %v2391_v58 = vrot.slane %v5625_v40, %v7085_v14 }
 0x57f   : > { %v3252_v54 = vpop.permute.xlu0 %3251  ;;  %v2407_v36 = vrot.slane %v5627_v13, %v7085_v14 }
 0x580   : > { %v3329_v37 = vmul.f32 %v7549_v25, %v3252_v54  ;;  %v2328_v25 = vrot.slane %v2320_v50, %v7088_v21 }
 0x581   : > { %v3257_v12 = vpop.permute.xlu1 %3256 }
 0x582   : > { %v3330_v2 = vmul.f32 %v7553_v9, %v3257_v12  ;;  %v3361_v57 = vadd.f32 %v3345_v34, %v3329_v37  ;;  %v5623_v9 = vcombine.low %v2192_v28, %v2199_v5  ;;  %v5631_v18 = vcombine.low %v2328_v25, %v2335_v41 }
 0x583   : > { %v5633_v48 = vcombine.high %v2328_v25, %v2335_v41 }
 0x584   : > { %v3362_v26 = vadd.f32 %v3346_v24, %v3330_v2  ;;  %v2375_v51 = vrot.slane %v5623_v9, %v7085_v14  ;;  %v2511_v11 = vrot.slane %v5631_v18, %v7085_v14  ;;  %v3351_v9 = vld [vmem:[#allocation5 + $0x30] sm:$0xff] }
 0x585   : > { %v2527_v19 = vrot.slane %v5633_v48, %v7085_v14 }
 0x586   : > { %v3377_v45 = vpack.c.bf16 %v3362_v26, %v3361_v57  ;;  %v2440_v33 = vcombine.low %v2375_v51, %v2391_v58  ;;  %v2441_v29 = vcombine.high %v2375_v51, %v2391_v58  ;;  %v3354_v58 = vld [vmem:[#allocation5 + $0x48] sm:$0xff] }
 0x587   : > { %v3262_v60 = vpop.permute.xlu1 %3261  ;;  %v2576_v50 = vcombine.low %v2511_v11, %v2527_v19  ;;  %v2577_v13 = vcombine.high %v2511_v11, %v2527_v19 }
 0x588   : > { %5934 = vmatmul.mubr.msk.bf16.vlgmr.msra.gmra.mrb[12].mxu0 %vm2640_vm1, %v3377_v45  ;;  %v3331_v20 = vmul.f32 %v7558_v32, %v3262_v60  ;;  %v2543_v32 = vrot.slane %v5635_v53, %v7085_v14  ;;  %v2448_v34 = vrot.slane %v2440_v33, %v7088_v21  ;;  %v3352_v60 = vld [vmem:[#allocation5 + $0x38] sm:$0xff]  ;;  %v2455_v43 = vrot.slane %v2441_v29, %v7088_v21 }
 0x589   : > { %5944 = vmatpush3.bf16.msra.mxu0 %v2634_v23  ;;  %5945 = vmatprep.mubr.msk.bf16.mxu0 %vm6631_vm0, %v6629_v0  ;;  %v2423_v23 = vrot.slane %v5629_v47, %v7085_v14  ;;  %v2584_v28 = vrot.slane %v2576_v50, %v7088_v21  ;;  %v3356_v33 = vld [vmem:[#allocation5 + $0x58] sm:$0xff] }
 0x58a   : > { %5955 = vmatprep.subr.bf16.mxu0 %v6629_v0  ;;  %v3363_v54 = vadd.f32 %v3347_v44, %v3331_v20  ;;  %v2608_v63 = vcombine.low %v2543_v32, %v2559_v49  ;;  %v2609_v47 = vcombine.high %v2543_v32, %v2559_v49 }
 0x58b   : > { %v3267_v55 = vpop.permute.xlu0 %3266  ;;  %v2472_v37 = vcombine.low %v2407_v36, %v2423_v23  ;;  %v2473_v45 = vcombine.high %v2407_v36, %v2423_v23  ;;  %v2591_v23 = vrot.slane %v2577_v13, %v7088_v21 }
 0x58c   : > { %v3332_v46 = vmul.f32 %v7563_v3, %v3267_v55  ;;  %v2616_v5 = vrot.slane %v2608_v63, %v7088_v21  ;;  %v3353_v55 = vld [vmem:[#allocation5 + $0x40] sm:$0xff] }
 0x58d   : > { %v2480_v24 = vrot.slane %v2472_v37, %v7088_v21  ;;  %v2487_v20 = vrot.slane %v2473_v45, %v7088_v21 }
 0x58e   : > { %v3364_v8 = vadd.f32 %v3348_v17, %v3332_v46  ;;  %v2628_v26 = vcombine.low %v2584_v28, %v2616_v5  ;;  %v2629_v36 = vcombine.high %v2584_v28, %v2616_v5  ;;  %v2623_v46 = vrot.slane %v2609_v47, %v7088_v21 }
 0x58f   : > { %v2492_v61 = vcombine.low %v2448_v34, %v2480_v24  ;;  %v2493_v53 = vcombine.high %v2448_v34, %v2480_v24  ;;  %v2494_v32 = vcombine.low %v2455_v43, %v2487_v20  ;;  %v2495_v34 = vcombine.high %v2455_v43, %v2487_v20 }
 0x590   : > { %v3378_v30 = vpack.c.bf16 %v3364_v8, %v3363_v54  ;;  %v2630_v50 = vcombine.low %v2591_v23, %v2623_v46  ;;  %v2631_v28 = vcombine.high %v2591_v23, %v2623_v46 }
 0x591   : > { %v2636_v41 = vpack.c.bf16 %v2628_v26, %v2492_v61  ;;  %v2637_v19 = vpack.c.bf16 %v2629_v36, %v2493_v53  ;;  %v3359_v26 = vld [vmem:[#allocation5 + $0x70] sm:$0xff] }
 0x592   : > { %5940 = vmatmul.mubr.msk.bf16.vlgmr.msra.gmra.mrb[28].mxu1 %vm2640_vm1, %v3378_v30 }
 0x593   : > { %5950 = vmatpush3.bf16.msra.mxu1 %v7717_v15  ;;  %5951 = vmatprep.mubr.msk.bf16.mxu1 %vm6631_vm0, %v6629_v0 }
 0x594   : > { %v3272_v3 = vpop.permute.xlu1 %3271  ;;  %5961 = vmatprep.subr.bf16.mxu1 %v6629_v0 }
 0x595   : > { %v3333_v12 = vmul.f32 %v7570_v16, %v3272_v3  ;;  %v2638_v3 = vpack.c.bf16 %v2630_v50, %v2494_v32 }
 0x596   : > { %v3277_v2 = vpop.permute.xlu0 %3276 }
 0x597   : > { %v3334_v15 = vmul.f32 %v7575_v56, %v3277_v2  ;;  %v3365_v6 = vadd.f32 %v3349_v1, %v3333_v12  ;;  %v3357_v1 = vld [vmem:[#allocation5 + $0x60] sm:$0xff] }
 0x599   : > { %v3366_v57 = vadd.f32 %v3350_v59, %v3334_v15  ;;  %v3358_v59 = vld [vmem:[#allocation5 + $0x68] sm:$0xff]  ;;  %v2639_v15 = vpack.c.bf16 %v2631_v28, %v2495_v34 }
 0x59b   : > { %v3379_v25 = vpack.c.bf16 %v3366_v57, %v3365_v6 }
 0x59c   : > { %v3282_v42 = vpop.permute.xlu1 %3281 }
 0x59d   : > { %5946 = vmatmul.mubr.msk.bf16.vlgmr.msra.gmra.mrb[16].mxu0 %vm2640_vm1, %v3379_v25  ;;  %v3335_v56 = vmul.f32 %v7582_v39, %v3282_v42  ;;  %v3360_v25 = vld [vmem:[#allocation5 + $0x78] sm:$0xff] }
 0x59e   : > { %5956 = vmatpush3.bf16.msra.mxu0 %v2636_v41  ;;  %5957 = vmatprep.mubr.msk.bf16.mxu0 %vm6631_vm0, %v6629_v0 }
 0x59f   : > { %5967 = vmatprep.subr.bf16.mxu0 %v6629_v0  ;;  %v3367_v44 = vadd.f32 %v3351_v9, %v3335_v56  ;;  %v8254_v56 = vmov 0  }
 0x5a0   : > { %v3292_v16 = vpop.permute.xlu1 %3291 }
 0x5a1   : > { %v3337_v17 = vmul.f32 %v7588_v35, %v3292_v16  ;;  %v3355_v35 = vld [vmem:[#allocation5 + $0x50] sm:$0xff] }
 0x5a3   : > { %v3369_v49 = vadd.f32 %v3353_v55, %v3337_v17 }
 0x5a4   : > { %v3302_v48 = vpop.permute.xlu1 %3301 }
 0x5a5   : > { %v3339_v54 = vmul.f32 %v7598_v4, %v3302_v48 }
 0x5a6   : > { %v3287_v40 = vpop.permute.xlu0 %3286 }
 0x5a7   : > { %v3336_v18 = vmul.f32 %v7594_v7, %v3287_v40  ;;  %v3371_v4 = vadd.f32 %v3355_v35, %v3339_v54 }
 0x5a8   : > { %v3312_v30 = vpop.permute.xlu1 %3311 }
 0x5a9   : > { %v3368_v51 = vadd.f32 %v3352_v60, %v3336_v18  ;;  %v3341_v24 = vmul.f32 %v7604_v22, %v3312_v30 }
 0x5aa   : > { %v3297_v39 = vpop.permute.xlu0 %3296 }
 0x5ab   : > { %v3380_v11 = vpack.c.bf16 %v3368_v51, %v3367_v44  ;;  %v3338_v7 = vmul.f32 %v7592_v52, %v3297_v39  ;;  %v3373_v61 = vadd.f32 %v3357_v1, %v3341_v24 }
 0x5ac   : > { %v3322_v57 = vpop.permute.xlu1 %3321 }
 0x5ad   : > { %v3370_v8 = vadd.f32 %v3354_v58, %v3338_v7  ;;  %5952 = vmatmul.mubr.msk.bf16.vlgmr.msra.gmra.mrb[32].mxu1 %vm2640_vm1, %v3380_v11 }
 0x5ae   : > { %5962 = vmatpush3.bf16.msra.mxu1 %v2637_v19  ;;  %v3307_v37 = vpop.permute.xlu0 %3306  ;;  %5963 = vmatprep.mubr.msk.bf16.mxu1 %vm6631_vm0, %v6629_v0 }
 0x5af   : > { %v3381_v63 = vpack.c.bf16 %v3370_v8, %v3369_v49  ;;  %v3340_v52 = vmul.f32 %v7610_v27, %v3307_v37  ;;  %5973 = vmatprep.subr.bf16.mxu1 %v6629_v0 }
 0x5b1   : > { %v3372_v12 = vadd.f32 %v3356_v33, %v3340_v52  ;;  %5958 = vmatmul.mubr.msk.bf16.vlgmr.msra.gmra.mrb[20].mxu0 %vm2640_vm1, %v3381_v63 }
 0x5b2   : > { %5968 = vmatpush3.bf16.msra.mxu0 %v2638_v3  ;;  %v3317_v2 = vpop.permute.xlu0 %3316  ;;  %5969 = vmatprep.mubr.msk.bf16.mxu0 %vm6631_vm0, %v6629_v0 }
 0x5b3   : > { %v3382_v5 = vpack.c.bf16 %v3372_v12, %v3371_v4  ;;  %v3342_v27 = vmul.f32 %v7608_v38, %v3317_v2  ;;  %5979 = vmatprep.subr.bf16.mxu0 %v6629_v0  ;;  %v3343_v38 = vmul.f32 %v7614_v31, %v3322_v57 }
 0x5b5   : > { %v3374_v6 = vadd.f32 %v3358_v59, %v3342_v27  ;;  %5964 = vmatmul.mubr.msk.bf16.vlgmr.msra.gmra.mrb[36].mxu1 %vm2640_vm1, %v3382_v5  ;;  %v3375_v16 = vadd.f32 %v3359_v26, %v3343_v38 }
 0x5b6   : > { %5974 = vmatpush3.bf16.msra.mxu1 %v2639_v15  ;;  %5975 = vmatprep.mubr.msk.bf16.mxu1 %vm6631_vm0, %v6629_v0 }
 0x5b7   : > { %v3383_v22 = vpack.c.bf16 %v3374_v6, %v3373_v61 }
 0x5b9   : > { %5970 = vmatmul.mubr.msk.bf16.vlgmr.msra.gmra.mrb[24].mxu0 %vm2640_vm1, %v3383_v22 }
 0x5ba   : > { %5995 = vmatprep.mubr.msk.bf16.mxu0 %vm6631_vm0, %v6629_v0 }
 0x5e7   : > { %v3327_v41 = vpop.permute.xlu0 %3326 }
 0x5e8   : > { %v3344_v42 = vmul.f32 %v7637_v62, %v3327_v41 }
 0x5ea   : > { %v3376_v29 = vadd.f32 %v3360_v25, %v3344_v42 }
 0x5ec   : > { %v3384_v45 = vpack.c.bf16 %v3376_v29, %v3375_v16 }
 0x5ee   : > { %5976 = vmatmul.mubr.msk.bf16.vlgmr.msra.gmra.mrb[40].mxu1 %vm2640_vm1, %v3384_v45 }
 0x5ef   : > { %4763 = vmatprep.mubr.bf16.mxu1 %v8254_v56 }
 0x65b   : > { %v3422_v9 = vpop.f32.mrb[12].mxu0 }
 0x65c   : > { %v5935_v60 = vpop.f32.mrb[13].mxu0 }
 0x65d   : > { %v3425_v40 = vpop.f32.mrb[14].mxu0 }
 0x65e   : > { %v5936_v13 = vpop.f32.mrb[15].mxu0 }
 0x665   : > { %v3466_v47 = vpop.f32.mrb[28].mxu1 }
 0x666   : > { %v5941_v18 = vpop.f32.mrb[29].mxu1 }
 0x667   : > { %v3469_v48 = vpop.f32.mrb[30].mxu1 }
 0x668   : > { %v5942_v31 = vpop.f32.mrb[31].mxu1 }
 0x670   : > { %v3510_v53 = vpop.f32.mrb[16].mxu0 }
 0x671   : > { %v3737_v43 = vcombine.low %v3422_v9, %v3510_v53  ;;  %v3738_v20 = vcombine.high %v3422_v9, %v3510_v53  ;;  %v5947_v44 = vpop.f32.mrb[17].mxu0 }
 0x672   : > { %v3513_v62 = vpop.f32.mrb[18].mxu0 }
 0x673   : > { %v3873_v17 = vcombine.low %v3425_v40, %v3513_v62  ;;  %v3874_v51 = vcombine.high %v3425_v40, %v3513_v62  ;;  %v5948_v55 = vpop.f32.mrb[19].mxu0  ;;  %v3745_v46 = vrot.slane %v3737_v43, %v7085_v14  ;;  %v3752_v11 = vrot.slane %v3738_v20, %v7085_v14 }
 0x675   : > { %v3881_v52 = vrot.slane %v3873_v17, %v7085_v14  ;;  %v3888_v3 = vrot.slane %v3874_v51, %v7085_v14 }
 0x680   : > { %v3554_v58 = vpop.f32.mrb[32].mxu1 }
 0x681   : > { %v3753_v39 = vcombine.low %v3466_v47, %v3554_v58  ;;  %v3754_v36 = vcombine.high %v3466_v47, %v3554_v58  ;;  %v5953_v23 = vpop.f32.mrb[33].mxu1 }
 0x682   : > { %v3557_v7 = vpop.f32.mrb[34].mxu1 }
 0x683   : > { %v3761_v19 = vrot.slane %v3753_v39, %v7085_v14  ;;  %v3768_v32 = vrot.slane %v3754_v36, %v7085_v14  ;;  %v3889_v49 = vcombine.low %v3469_v48, %v3557_v7  ;;  %v3890_v54 = vcombine.high %v3469_v48, %v3557_v7  ;;  %v5954_v8 = vpop.f32.mrb[35].mxu1 }
 0x684   : > { %v7806_v35 = vpop.f32.mrb[20].mxu0 }
 0x685   : > { %v3801_v30 = vcombine.low %v3745_v46, %v3761_v19  ;;  %v3802_v33 = vcombine.high %v3745_v46, %v3761_v19  ;;  %v3817_v37 = vcombine.low %v3752_v11, %v3768_v32  ;;  %v3818_v50 = vcombine.high %v3752_v11, %v3768_v32  ;;  %v5959_v63 = vpop.f32.mrb[21].mxu0 }
 0x686   : > { %v3897_v34 = vrot.slane %v3889_v49, %v7085_v14  ;;  %v3904_v4 = vrot.slane %v3890_v54, %v7085_v14  ;;  %v7812_v24 = vpop.f32.mrb[22].mxu0 }
 0x687   : > { %v3809_v12 = vrot.slane %v3801_v30, %v7088_v21  ;;  %v3816_v1 = vrot.slane %v3802_v33, %v7088_v21  ;;  %v3825_v59 = vrot.slane %v3817_v37, %v7088_v21  ;;  %v3832_v2 = vrot.slane %v3818_v50, %v7088_v21  ;;  %v5960_v28 = vpop.f32.mrb[23].mxu0 }
 0x688   : > { %v3937_v5 = vcombine.low %v3881_v52, %v3897_v34  ;;  %v3938_v27 = vcombine.high %v3881_v52, %v3897_v34  ;;  %v3953_v15 = vcombine.low %v3888_v3, %v3904_v4  ;;  %v3954_v61 = vcombine.high %v3888_v3, %v3904_v4  ;;  %v7818_v6 = vpop.f32.mrb[36].mxu1 }
 0x689   : > { %v5662_v22 = vcombine.low %v3809_v12, %v3816_v1  ;;  %v5664_v57 = vcombine.high %v3809_v12, %v3816_v1  ;;  %v5666_v38 = vcombine.low %v3825_v59, %v3832_v2  ;;  %v5668_v26 = vcombine.high %v3825_v59, %v3832_v2  ;;  %v5965_v25 = vpop.f32.mrb[37].mxu1  ;;  %v6187_v2 = vld [vmem:[#allocation8] sm:$0xff]  }
 0x68a   : > { %v3945_v41 = vrot.slane %v3937_v5, %v7088_v21  ;;  %v3952_v42 = vrot.slane %v3938_v27, %v7088_v21  ;;  %v3961_v16 = vrot.slane %v3953_v15, %v7088_v21  ;;  %v3968_v29 = vrot.slane %v3954_v61, %v7088_v21  ;;  %v7824_v45 = vpop.f32.mrb[38].mxu1  ;;  %5980 = vmatpush3.bf16.msra.mxu0 %v6187_v2  ;;  %v6189_v25 = vld [vmem:[#allocation8 + $0x10] sm:$0xff]  }
 0x68b   : > { %v4017_v9 = vrot.slane %v5662_v22, %v7085_v14  ;;  %v4033_v60 = vrot.slane %v5664_v57, %v7085_v14  ;;  %v4049_v40 = vrot.slane %v5666_v38, %v7085_v14  ;;  %v4065_v13 = vrot.slane %v5668_v26, %v7085_v14  ;;  %v5966_v47 = vpop.f32.mrb[39].mxu1  ;;  %v6188_v22 = vld [vmem:[#allocation8 + $0x8] sm:$0xff]   ;;  %5981 = vmatprep.subr.bf16.mxu0 %v6629_v0 }
 0x68c   : > { %v5670_v18 = vcombine.low %v3945_v41, %v3952_v42  ;;  %v5672_v48 = vcombine.high %v3945_v41, %v3952_v42  ;;  %v5674_v31 = vcombine.low %v3961_v16, %v3968_v29  ;;  %v5676_v53 = vcombine.high %v3961_v16, %v3968_v29  ;;  %v7830_v43 = vpop.f32.mrb[24].mxu0  ;;  %v6190_v41 = vld [vmem:[#allocation8 + $0x18] sm:$0xff]   ;;  %v6191_v42 = vld [vmem:[#allocation8 + $0x20] sm:$0xff]   ;;  %v6192_v16 = vld [vmem:[#allocation8 + $0x28] sm:$0xff]  }
 0x68d   : > { %v3769_v20 = vcombine.low %v7806_v35, %v7830_v43  ;;  %v3770_v44 = vcombine.high %v7806_v35, %v7830_v43  ;;  %v5971_v62 = vpop.f32.mrb[25].mxu0  ;;  %v4074_v17 = vcombine.high %v4017_v9, %v4033_v60  ;;  %v4106_v51 = vcombine.high %v4049_v40, %v4065_v13 }
 0x68e   : > { %v4153_v55 = vrot.slane %v5670_v18, %v7085_v14  ;;  %v4169_v58 = vrot.slane %v5672_v48, %v7085_v14  ;;  %v4185_v39 = vrot.slane %v5674_v31, %v7085_v14  ;;  %v4201_v36 = vrot.slane %v5676_v53, %v7085_v14  ;;  %v7840_v23 = vpop.f32.mrb[26].mxu0  ;;  %5982 = vmatpush3.bf16.msra.mxu0 %v6188_v22 }
 0x68f   : > { %v3905_v46 = vcombine.low %v7812_v24, %v7840_v23  ;;  %v3906_v11 = vcombine.high %v7812_v24, %v7840_v23  ;;  %v5972_v7 = vpop.f32.mrb[27].mxu0  ;;  %v4088_v19 = vrot.slane %v4074_v17, %v7088_v21  ;;  %v4120_v32 = vrot.slane %v4106_v51, %v7088_v21  ;;  %5983 = vmatprep.subr.bf16.mxu0 %v6629_v0 }
 0x690   : > { %v4210_v49 = vcombine.high %v4153_v55, %v4169_v58  ;;  %v4242_v54 = vcombine.high %v4185_v39, %v4201_v36  ;;  %v4073_v8 = vcombine.low %v4017_v9, %v4033_v60  ;;  %v4105_v30 = vcombine.low %v4049_v40, %v4065_v13 }
 0x691   : > { %v4139_v33 = vcombine.low %v4088_v19, %v4120_v32  ;;  %v4209_v63 = vcombine.low %v4153_v55, %v4169_v58  ;;  %v4241_v34 = vcombine.low %v4185_v39, %v4201_v36  ;;  %v4140_v4 = vcombine.high %v4088_v19, %v4120_v32 }
 0x692   : > { %v4224_v37 = vrot.slane %v4210_v49, %v7088_v21  ;;  %v4256_v50 = vrot.slane %v4242_v54, %v7088_v21  ;;  %v7851_v52 = vrot.slane %v4073_v8, %v7088_v21  ;;  %v7854_v3 = vrot.slane %v4105_v30, %v7088_v21  ;;  %5984 = vmatpush3.bf16.msra.mxu0 %v6189_v25 }
 0x693   : > { %v7857_v1 = vrot.slane %v4209_v63, %v7088_v21  ;;  %v7864_v27 = vrot.slane %v4241_v34, %v7088_v21  ;;  %5985 = vmatprep.subr.bf16.mxu0 %v6629_v0  ;;  %v3777_v13 = vrot.slane %v3769_v20, %v7085_v14  ;;  %v3784_v47 = vrot.slane %v3770_v44, %v7085_v14 }
 0x694   : > { %v4275_v12 = vcombine.low %v4224_v37, %v4256_v50  ;;  %v4276_v59 = vcombine.high %v4224_v37, %v4256_v50  ;;  %v4137_v28 = vcombine.low %v7851_v52, %v7854_v3  ;;  %v4138_v5 = vcombine.high %v7851_v52, %v7854_v3 }
 0x695   : > { %v4274_v57 = vcombine.high %v7857_v1, %v7864_v27  ;;  %v4273_v38 = vcombine.low %v7857_v1, %v7864_v27  ;;  %v3913_v35 = vrot.slane %v3905_v46, %v7085_v14  ;;  %v3920_v43 = vrot.slane %v3906_v11, %v7085_v14 }
 0x696   : > { %v6125_v15 = vpack.i.bf16 %v4275_v12, %v4139_v33  ;;  %v6130_v61 = vpack.i.bf16 %v4276_v59, %v4140_v4  ;;  %5986 = vmatpush3.bf16.msra.mxu0 %v6190_v41 }
 0x697   : > { %v6120_v26 = vpack.i.bf16 %v4274_v57, %v4138_v5  ;;  %5987 = vmatprep.subr.bf16.mxu0 %v6629_v0 }
 0x698   : > { %6126 = vrot.lane.b32.xlu0 %v6125_v15, %s6637_s8 }
 0x699   : > { %6121 = vrot.lane.b32.xlu1 %v6120_v26, %s6638_s20  ;;  %s8257_s20 = sld [smem:[#allocation20_spill]] }
 0x69a   : > { %5988 = vmatpush3.bf16.msra.mxu0 %v6191_v42 }
 0x69b   : > { %5989 = vmatprep.subr.bf16.mxu0 %v6629_v0 }
 0x69d   : > { %6131 = vrot.lane.b32.xlu1 %v6130_v61, %s6636_s17  ;;  %s8255_s17 = smov 96  }
 0x69e   : > { %5990 = vmatpush3.bf16.msra.mxu0 %v6192_v16  ;;  %v6193_v16 = vld [vmem:[#allocation8 + $0x30] sm:$0xff]  }
 0x69f   : > { %5991 = vmatprep.subr.bf16.mxu0 %v6629_v0 }
 0x6a2   : > { %5992 = vmatpush3.bf16.msra.mxu0 %v6193_v16 }
 0x6a3   : > { %5993 = vmatprep.subr.bf16.mxu0 %v6629_v0 }
 0x6c1   : > { %v3730_v29 = vpop.f32.mrb[40].mxu1 }
 0x6c2   : > { %v3785_v9 = vcombine.low %v7818_v6, %v3730_v29  ;;  %v3786_v60 = vcombine.high %v7818_v6, %v3730_v29  ;;  %v5977_v40 = vpop.f32.mrb[41].mxu1 }
 0x6c3   : > { %v3733_v18 = vpop.f32.mrb[42].mxu1 }
 0x6c4   : > { %v3793_v48 = vrot.slane %v3785_v9, %v7085_v14  ;;  %v3800_v31 = vrot.slane %v3786_v60, %v7085_v14  ;;  %v3921_v53 = vcombine.low %v7824_v45, %v3733_v18  ;;  %v3922_v6 = vcombine.high %v7824_v45, %v3733_v18  ;;  %v5978_v62 = vpop.f32.mrb[43].mxu1 }
 0x6c6   : > { %v3833_v17 = vcombine.low %v3777_v13, %v3793_v48  ;;  %v3834_v51 = vcombine.high %v3777_v13, %v3793_v48  ;;  %v3849_v55 = vcombine.low %v3784_v47, %v3800_v31  ;;  %v3850_v58 = vcombine.high %v3784_v47, %v3800_v31 }
 0x6c7   : > { %v3929_v20 = vrot.slane %v3921_v53, %v7085_v14  ;;  %v3936_v44 = vrot.slane %v3922_v6, %v7085_v14 }
 0x6c8   : > { %v3841_v45 = vrot.slane %v3833_v17, %v7088_v21  ;;  %v3848_v39 = vrot.slane %v3834_v51, %v7088_v21  ;;  %v3857_v36 = vrot.slane %v3849_v55, %v7088_v21  ;;  %v3864_v7 = vrot.slane %v3850_v58, %v7088_v21  ;;  %v6194_v58 = vld [vmem:[#allocation8 + $0x38] sm:$0xff]  }
 0x6c9   : > { %v3969_v19 = vcombine.low %v3913_v35, %v3929_v20  ;;  %v3970_v32 = vcombine.high %v3913_v35, %v3929_v20  ;;  %v3985_v46 = vcombine.low %v3920_v43, %v3936_v44  ;;  %v3986_v49 = vcombine.high %v3920_v43, %v3936_v44  ;;  %5994 = vmatpush3.bf16.msra.mxu0 %v6194_v58  ;;  %v6203_v58 = vld [vmem:[#allocation10 + $0x24] ss:$16 sps:$4 sm:$0xff]  }
 0x6ca   : > { %v5663_v54 = vcombine.low %v3841_v45, %v3848_v39  ;;  %v5665_v8 = vcombine.high %v3841_v45, %v3848_v39  ;;  %v5667_v24 = vcombine.low %v3857_v36, %v3864_v7  ;;  %v5669_v23 = vcombine.high %v3857_v36, %v3864_v7 }
 0x6cb   : > { %v3977_v11 = vrot.slane %v3969_v19, %v7088_v21  ;;  %v3984_v30 = vrot.slane %v3970_v32, %v7088_v21  ;;  %v3993_v33 = vrot.slane %v3985_v46, %v7088_v21  ;;  %v4000_v37 = vrot.slane %v3986_v49, %v7088_v21 }
 0x6cc   : > { %v4024_v50 = vrot.slane %v5663_v54, %v7085_v14  ;;  %v4040_v63 = vrot.slane %v5665_v8, %v7085_v14  ;;  %v4056_v34 = vrot.slane %v5667_v24, %v7085_v14  ;;  %v4072_v4 = vrot.slane %v5669_v23, %v7085_v14 }
 0x6cd   : > { %v5671_v12 = vcombine.low %v3977_v11, %v3984_v30  ;;  %v5673_v59 = vcombine.high %v3977_v11, %v3984_v30  ;;  %v5675_v2 = vcombine.low %v3993_v33, %v4000_v37  ;;  %v5677_v5 = vcombine.high %v3993_v33, %v4000_v37 }
 0x6ce   : > { %v4089_v15 = vcombine.low %v4024_v50, %v4040_v63  ;;  %v4121_v61 = vcombine.low %v4056_v34, %v4072_v4  ;;  %v4090_v22 = vcombine.high %v4024_v50, %v4040_v63  ;;  %v4122_v57 = vcombine.high %v4056_v34, %v4072_v4 }
 0x6cf   : > { %v4160_v26 = vrot.slane %v5671_v12, %v7085_v14  ;;  %v4176_v25 = vrot.slane %v5673_v59, %v7085_v14  ;;  %v4192_v41 = vrot.slane %v5675_v2, %v7085_v14  ;;  %v4208_v42 = vrot.slane %v5677_v5, %v7085_v14 }
 0x6d0   : > { %v4097_v29 = vrot.slane %v4089_v15, %v7088_v21  ;;  %v4129_v9 = vrot.slane %v4121_v61, %v7088_v21  ;;  %v4104_v60 = vrot.slane %v4090_v22, %v7088_v21  ;;  %v4136_v40 = vrot.slane %v4122_v57, %v7088_v21 }
 0x6d1   : > { %v4225_v13 = vcombine.low %v4160_v26, %v4176_v25  ;;  %v4257_v47 = vcombine.low %v4192_v41, %v4208_v42  ;;  %v4226_v18 = vcombine.high %v4160_v26, %v4176_v25  ;;  %v4258_v48 = vcombine.high %v4192_v41, %v4208_v42 }
 0x6d2   : > { %v4142_v31 = vcombine.high %v4097_v29, %v4129_v9  ;;  %v4141_v53 = vcombine.low %v4097_v29, %v4129_v9  ;;  %v4144_v6 = vcombine.high %v4104_v60, %v4136_v40  ;;  %v4143_v62 = vcombine.low %v4104_v60, %v4136_v40 }
 0x6d3   : > { %v4233_v14 = vrot.slane %v4225_v13, %v7088_v21  ;;  %v4265_v17 = vrot.slane %v4257_v47, %v7088_v21  ;;  %v4240_v51 = vrot.slane %v4226_v18, %v7088_v21  ;;  %v4272_v55 = vrot.slane %v4258_v48, %v7088_v21  ;;  %v6363_v13 = vld [vmem:[%s6964_s23] sm:$0xff] }
 0x6d5   : > { %v4278_v35 = vcombine.high %v4233_v14, %v4265_v17  ;;  %v4277_v43 = vcombine.low %v4233_v14, %v4265_v17  ;;  %v4280_v20 = vcombine.high %v4240_v51, %v4272_v55  ;;  %v4279_v44 = vcombine.low %v4240_v51, %v4272_v55  ;;  %v6197_v14 = vld [vmem:[#allocation10 + $0x4] ss:$16 sps:$4 sm:$0xff]   ;;  %v6198_v17 = vld [vmem:[#allocation10 + $0x8] ss:$16 sps:$4 sm:$0xff]   ;;  %v6200_v51 = vld [vmem:[#allocation10 + $0xc] ss:$16 sps:$4 sm:$0xff]  }
 0x6d6   : > { %4731 = vmatprep.subr.bf16.mxu1 %v6197_v14  ;;  %4774 = vmatprep.subr.bf16.mxu0 %v6200_v51  ;;  %v6201_v55 = vld [vmem:[#allocation10 + $0x20] ss:$16 sps:$4 sm:$0xff]   ;;  %v6248_v51 = vld [vmem:[#allocation11 + $0xc8] sm:$0xff]  }
 0x6d7   : > { %v6140_v45 = vpack.i.bf16 %v4278_v35, %v4142_v31  ;;  %v6135_v39 = vpack.i.bf16 %v4277_v43, %v4141_v53  ;;  %v6150_v36 = vpack.i.bf16 %v4280_v20, %v4144_v6  ;;  %v6145_v7 = vpack.i.bf16 %v4279_v44, %v4143_v62  ;;  %v6364_v31 = vld [vmem:[%s6964_s23 + $0x8] sm:$0xff]  ;;  %v6195_v62 = vld [vmem:[#allocation10] ss:$16 sps:$4 sm:$0xff]   ;;  %v6209_v44 = vld [vmem:[#allocation10 + $0x44] ss:$16 sps:$4 sm:$0xff]   ;;  %s8261_s23 = sshll.u32 %s6958_s9, 4 }
 0x6d8   : > { %4732 = vmatpush1.bf16.msra.mxu1 %v6195_v62  ;;  %v6204_v35 = vld [vmem:[#allocation10 + $0x28] ss:$16 sps:$4 sm:$0xff]   ;;  %v6206_v43 = vld [vmem:[#allocation10 + $0x2c] ss:$16 sps:$4 sm:$0xff]   ;;  %v6207_v20 = vld [vmem:[#allocation10 + $0x40] ss:$16 sps:$4 sm:$0xff]  }
 0x6d9   : > { %6141 = vrot.lane.b32.xlu1 %v6140_v45, %s6634_s13  ;;  %6136 = vrot.lane.b32.xlu0 %v6135_v39, %s6635_s27  ;;  %s8256_s27 = sld [smem:[#allocation19_spill]]  ;;  %v6210_v45 = vld [vmem:[#allocation10 + $0x48] ss:$16 sps:$4 sm:$0xff]   ;;  %v6212_v39 = vld [vmem:[#allocation10 + $0x4c] ss:$16 sps:$4 sm:$0xff]   ;;  %v6245_v62 = vld [vmem:[#allocation11] sm:$0xff]  }
 0x6da   : > { %4733 = vmatprep.subr.bf16.mxu1 %v6203_v58  ;;  %v6246_v14 = vld [vmem:[#allocation11 + $0x80] sm:$0xff]   ;;  %v6250_v58 = vld [vmem:[#allocation11 + $0x88] sm:$0xff]   ;;  %s558_s8 = scalar_lea.vmem [#allocation13], %s8261_s23  ;;  %s6539_s13 = sshll.u32 %s6641_s19, 4  ;;  %s6540_s13 = int_to_ptr.vmem [resolvable:$false] %s6539_s13 }
 0x6dc   : > { %4734 = vmatpush1.bf16.msra.mxu1 %v6201_v55  ;;  %v6249_v55 = vld [vmem:[#allocation11 + $0x8] sm:$0xff]  }
 0x6dd   : > { %6151 = vrot.lane.b32.xlu1 %v6150_v36, %s6632_s11  ;;  %6146 = vrot.lane.b32.xlu0 %v6145_v7, %s8255_s17  ;;  %v6215_v36 = vld [vmem:[#allocation10 + $0x64] ss:$16 sps:$4 sm:$0xff]   ;;  %v6218_v7 = vld [vmem:[#allocation10 + $0x6c] ss:$16 sps:$4 sm:$0xff]   ;;  %s8259_s17 = sld [smem:[#allocation22_spill]] }
 0x6de   : > { %4735 = vmatprep.subr.bf16.mxu1 %v6209_v44  ;;  %v6254_v44 = vld [vmem:[#allocation11 + $0x90] sm:$0xff]  }
 0x6df   : > { %v5678_v16 = vld [vmem:[%s8256_s27] ss:$0 sm:$0xff]  ;;  %s8260_s27 = sld [smem:[#allocation23_spill]] }
 0x6e0   : > { %4736 = vmatpush1.bf16.msra.mxu1 %v6207_v20  ;;  %v6253_v20 = vld [vmem:[#allocation11 + $0x10] sm:$0xff]  }
 0x6e1   : > { %4737 = vmatprep.subr.bf16.mxu1 %v6215_v36  ;;  %v6257_v36 = vld [vmem:[#allocation11 + $0x18] sm:$0xff]  }
 0x70a   : > { %v6127_v21 = vpop.permute.xlu0 %6126 }
 0x70b   : > { %v6122_v0 = vpop.permute.xlu1 %6121  ;;  %v6129_v49 = vunpack.i.h.bf16 %v6127_v21  ;;  %v6128_v54 = vunpack.i.l.bf16 %v6127_v21  ;;  %v6216_v21 = vld [vmem:[#allocation10 + $0x68] ss:$16 sps:$4 sm:$0xff]  }
 0x70c   : > { %v6124_v19 = vunpack.i.h.bf16 %v6122_v0  ;;  %v6123_v32 = vunpack.i.l.bf16 %v6122_v0  ;;  %v6213_v0 = vld [vmem:[#allocation10 + $0x60] ss:$16 sps:$4 sm:$0xff]  }
 0x70d   : > { %4738 = vmatpush1.bf16.msra.mxu1 %v6213_v0  ;;  %v6259_v0 = vld [vmem:[#allocation11 + $0x60] sm:$0xff]  }
 0x70e   : > { %v4338_v8 = vsel %vm2640_vm1, %v4273_v38, %v6124_v19  ;;  %v4337_v24 = vsel %vm2640_vm1, %v4137_v28, %v6123_v32  ;;  %v6221_v19 = vld [vmem:[#allocation10 + $0x84] ss:$16 sps:$4 sm:$0xff]   ;;  %v6224_v32 = vld [vmem:[#allocation10 + $0x8c] ss:$16 sps:$4 sm:$0xff]  }
 0x70f   : > { %v6132_v46 = vpop.permute.xlu1 %6131  ;;  %v4340_v37 = vsel %vm4339_vm2, %v4337_v24, %v6128_v54  ;;  %v4341_v50 = vsel %vm4339_vm2, %v4338_v8, %v6129_v49  ;;  %4739 = vmatprep.subr.bf16.mxu1 %v6221_v19  ;;  %v6222_v49 = vld [vmem:[#allocation10 + $0x88] ss:$16 sps:$4 sm:$0xff]   ;;  %v6227_v54 = vld [vmem:[#allocation10 + $0xa4] ss:$16 sps:$4 sm:$0xff]   ;;  %v6230_v8 = vld [vmem:[#allocation10 + $0xac] ss:$16 sps:$4 sm:$0xff]  }
 0x710   : > { %v6134_v23 = vunpack.i.h.bf16 %v6132_v46  ;;  %v6133_v11 = vunpack.i.l.bf16 %v6132_v46  ;;  %v6219_v46 = vld [vmem:[#allocation10 + $0x80] ss:$16 sps:$4 sm:$0xff]  }
 0x711   : > { %4740 = vmatpush1.bf16.msra.mxu1 %v6219_v46  ;;  %v6225_v24 = vld [vmem:[#allocation10 + $0xa0] ss:$16 sps:$4 sm:$0xff]   ;;  %v6263_v46 = vld [vmem:[#allocation11 + $0x68] sm:$0xff]  }
 0x712   : > { %v4343_v4 = vsel %vm4342_vm3, %v4340_v37, %v6133_v11  ;;  %v4344_v12 = vsel %vm4342_vm3, %v4341_v50, %v6134_v23  ;;  %4741 = vmatprep.subr.bf16.mxu1 %v6227_v54  ;;  %v6228_v23 = vld [vmem:[#allocation10 + $0xa8] ss:$16 sps:$4 sm:$0xff]   ;;  %v6233_v11 = vld [vmem:[#allocation10 + $0xc4] ss:$16 sps:$4 sm:$0xff]  }
 0x713   : > { %v6234_v37 = vld [vmem:[#allocation10 + $0xc8] ss:$16 sps:$4 sm:$0xff]   ;;  %v6239_v50 = vld [vmem:[#allocation10 + $0xe4] ss:$16 sps:$4 sm:$0xff]  }
 0x714   : > { %v6261_v19 = vld [vmem:[#allocation11 + $0x20] sm:$0xff]   ;;  %v6265_v54 = vld [vmem:[#allocation11 + $0x28] sm:$0xff]  }
 0x715   : > { %4742 = vmatpush1.bf16.msra.mxu1 %v6225_v24  ;;  %v6267_v24 = vld [vmem:[#allocation11 + $0x70] sm:$0xff]  }
 0x716   : > { %4743 = vmatprep.subr.bf16.mxu1 %v6233_v11  ;;  %v6269_v11 = vld [vmem:[#allocation11 + $0x30] sm:$0xff]  }
 0x74b   : > { %v6137_v30 = vpop.permute.xlu0 %6136  ;;  %v6142_v33 = vpop.permute.xlu1 %6141 }
 0x74c   : > { %v6139_v63 = vunpack.i.h.bf16 %v6137_v30  ;;  %v6138_v34 = vunpack.i.l.bf16 %v6137_v30  ;;  %v6144_v1 = vunpack.i.h.bf16 %v6142_v33  ;;  %v6143_v27 = vunpack.i.l.bf16 %v6142_v33  ;;  %v6236_v30 = vld [vmem:[#allocation10 + $0xcc] ss:$16 sps:$4 sm:$0xff]   ;;  %v6231_v33 = vld [vmem:[#allocation10 + $0xc0] ss:$16 sps:$4 sm:$0xff]  }
 0x74d   : > { %4744 = vmatpush1.bf16.msra.mxu1 %v6231_v33  ;;  %v6271_v33 = vld [vmem:[#allocation11 + $0x78] sm:$0xff]  }
 0x74e   : > { %v4346_v38 = vsel %vm4345_vm4, %v4343_v4, %v6138_v34  ;;  %v4347_v59 = vsel %vm4345_vm4, %v4344_v12, %v6139_v63  ;;  %v6242_v63 = vld [vmem:[#allocation10 + $0xec] ss:$16 sps:$4 sm:$0xff]   ;;  %v6237_v34 = vld [vmem:[#allocation10 + $0xe0] ss:$16 sps:$4 sm:$0xff]   ;;  %4745 = vmatprep.subr.bf16.mxu1 %v6239_v50  ;;  %v6240_v4 = vld [vmem:[#allocation10 + $0xe8] ss:$16 sps:$4 sm:$0xff]  }
 0x74f   : > { %v6147_v52 = vpop.permute.xlu0 %6146  ;;  %v6152_v3 = vpop.permute.xlu1 %6151  ;;  %v4349_v61 = vsel %vm4348_vm5, %v4346_v38, %v6143_v27  ;;  %v4350_v22 = vsel %vm4348_vm5, %v4347_v59, %v6144_v1  ;;  %v6273_v50 = vld [vmem:[#allocation11 + $0x38] sm:$0xff]  }
 0x750   : > { %v6149_v28 = vunpack.i.h.bf16 %v6147_v52  ;;  %v6148_v2 = vunpack.i.l.bf16 %v6147_v52  ;;  %v6154_v5 = vunpack.i.h.bf16 %v6152_v3  ;;  %v6153_v15 = vunpack.i.l.bf16 %v6152_v3 }
 0x751   : > { %4746 = vmatpush1.bf16.msra.mxu1 %v6237_v34  ;;  %v4553_v34 = vsub.s32 0, %v7080_v10 }
 0x752   : > { %v4352_v57 = vsel %vm4351_vm6, %v4349_v61, %v6148_v2  ;;  %v4353_v26 = vsel %vm4351_vm6, %v4350_v22, %v6149_v28 }
 0x753   : > { %v4355_v25 = vsel %vm4354_vm7, %v4352_v57, %v6153_v15  ;;  %v4356_v41 = vsel %vm4354_vm7, %v4353_v26, %v6154_v5  ;;  %v5687_v26 = vld [vmem:[%s8257_s20] ss:$0 sm:$0xff]  ;;  %s5424_s20 = sshll.u32 %s558_s8, 4  ;;  %s8150_s20 = int_to_ptr.vmem [resolvable:$true] %s5424_s20 }
 0x754   : > { %v4357_v42 = vpack.c.bf16 %v4356_v41, %v4355_v25  ;;  %s6535_s11 = scalar_lea.vmem %s8150_s20, 256  ;;  %p6542_p11 = scmp.lt.s32.totalorder %s8150_s20, %s6540_s13 }
 0x755   : > { %p6536_p2 = scmp.ne.s32.totalorder %s8150_s20, %s6535_s11 }
 0x756   : > { %5996 = vmatmul.mubr.bf16.vlgmr.msra.gmra.mrb[28].mxu0 %v4357_v42 }
 0x757   : > { %4806 = vmatprep.mubr.bf16.mxu0 %v8254_v56  ;;  %4775 = vmatpush1.bf16.msra.mxu0 %v6198_v17  ;;  %v6247_v17 = vld [vmem:[#allocation11 + $0x48] sm:$0xff]   ;;  %p6537_p10 = pnand %p6536_p2, %p8263_p7 }
 0x758   : > { %4776 = vmatprep.subr.bf16.mxu0 %v6206_v43  ;;  %v6252_v43 = vld [vmem:[#allocation11 + $0xd0] sm:$0xff]  }
 0x759   : > { %p6538_p1 = pneg %p6537_p10 }
 0x75b   : > { %4777 = vmatpush1.bf16.msra.mxu0 %v6204_v35  ;;  %v6251_v35 = vld [vmem:[#allocation11 + $0x50] sm:$0xff]  }
 0x75c   : > { %4778 = vmatprep.subr.bf16.mxu0 %v6212_v39  ;;  %v6256_v39 = vld [vmem:[#allocation11 + $0xd8] sm:$0xff]  }
 0x75f   : > { %4779 = vmatpush1.bf16.msra.mxu0 %v6210_v45  ;;  %v6255_v45 = vld [vmem:[#allocation11 + $0x58] sm:$0xff]  }
 0x760   : > { %4780 = vmatprep.subr.bf16.mxu0 %v6218_v7  ;;  %v6258_v7 = vld [vmem:[#allocation11 + $0x98] sm:$0xff]  }
 0x763   : > { %4781 = vmatpush1.bf16.msra.mxu0 %v6216_v21  ;;  %v6260_v21 = vld [vmem:[#allocation11 + $0xe0] sm:$0xff]  }
 0x764   : > { %4782 = vmatprep.subr.bf16.mxu0 %v6224_v32  ;;  %v6262_v32 = vld [vmem:[#allocation11 + $0xa0] sm:$0xff]  }
 0x767   : > { %4783 = vmatpush1.bf16.msra.mxu0 %v6222_v49  ;;  %v6264_v49 = vld [vmem:[#allocation11 + $0xe8] sm:$0xff]  }
 0x768   : > { %4784 = vmatprep.subr.bf16.mxu0 %v6230_v8  ;;  %v6266_v8 = vld [vmem:[#allocation11 + $0xa8] sm:$0xff]  }
 0x76b   : > { %4785 = vmatpush1.bf16.msra.mxu0 %v6228_v23  ;;  %v6268_v23 = vld [vmem:[#allocation11 + $0xf0] sm:$0xff]  }
 0x76c   : > { %4786 = vmatprep.subr.bf16.mxu0 %v6236_v30  ;;  %v6270_v30 = vld [vmem:[#allocation11 + $0xb0] sm:$0xff]  }
 0x76f   : > { %4787 = vmatpush1.bf16.msra.mxu0 %v6234_v37  ;;  %v6272_v37 = vld [vmem:[#allocation11 + $0xf8] sm:$0xff]  }
 0x770   : > { %4788 = vmatprep.subr.bf16.mxu0 %v6242_v63  ;;  %v6274_v63 = vld [vmem:[#allocation11 + $0xb8] sm:$0xff]  }
 0x773   : > { %4789 = vmatpush1.bf16.msra.mxu0 %v6240_v4  ;;  %v4561_v4 = vsub.s32 2, %v7080_v10 }
 0x829   : > { %v4463_v29 = vpop.f32.mrb[28].mxu0 }
 0x82a   : > { %v4464_v9 = vadd.f32 %v5678_v16, %v4463_v29  ;;  %v5997_v60 = vpop.f32.mrb[29].mxu0 }
 0x82b   : > { %v4466_v40 = vpop.f32.mrb[30].mxu0 }
 0x82c   : > { %v7945_v47 = vadd.f32 %v6363_v13, %v4464_v9  ;;  %v4467_v18 = vadd.f32 %v5678_v16, %v4466_v40  ;;  %v5998_v48 = vpop.f32.mrb[31].mxu0  ;;  %v5688_v40 = vld [vmem:[%s8258_s24] ss:$0 sm:$0xff] }
 0x82e   : > { %v7948_v53 = vadd.f32 %v6364_v31, %v4467_v18  ;;  %4474 = vadd.xlane.f32.xlu0 %v7945_v47  ;;  %v4480_v56 = vmul.f32 %v7945_v47, %v7945_v47 }
 0x830   : > { %4476 = vadd.xlane.f32.xlu1 %v7948_v53  ;;  %v4481_v6 = vmul.f32 %v7948_v53, %v7948_v53 }
 0x832   : > { %4482 = vadd.xlane.f32.xlu0 %v4480_v56  ;;  %v6243_v56 = vld [vmem:[#allocation11 + $0x40] sm:$0xff]  }
 0x833   : > { %5819 = vmatprep.subr.bf16.mxu1 %v6243_v56 }
 0x836   : > { %4484 = vadd.xlane.f32.xlu0 %v4481_v6  ;;  %v6244_v6 = vld [vmem:[#allocation11 + $0xc0] sm:$0xff]  }
 0x837   : > { %5841 = vmatprep.subr.bf16.mxu0 %v6244_v6 }
 0x8bb   : > { %v4475_v12 = vpop.xlane.xlu0 %4474 }
 0x8bc   : > { %v4478_v1 = vmul.f32 0.0078125, %v4475_v12  ;;  %v4549_v12 = vld [vmem:[%s8259_s17] sm:$0xf]  ;;  %s5411_s17 = scalar_lea.sflag [#allocation4], %s6958_s9 }
 0x8bd   : > { %v4477_v27 = vpop.xlane.xlu1 %4476 }
 0x8be   : > { %v4488_v59 = vmul.f32 %v4478_v1, %v4478_v1  ;;  %v4479_v52 = vmul.f32 0.0078125, %v4477_v27  ;;  %v4496_v42 = vsub.f32 %v7945_v47, %v4478_v1  ;;  %v4557_v1 = vsub.s32 1, %v7080_v10 }
 0x8bf   : > { %v4483_v38 = vpop.xlane.xlu0 %4482  ;;  %v4565_v27 = vsub.s32 3, %v7080_v10 }
 0x8c0   : > { %v4486_v3 = vmul.f32 0.0078125, %v4483_v38  ;;  %v4489_v5 = vmul.f32 %v4479_v52, %v4479_v52  ;;  %v4497_v29 = vsub.f32 %v7948_v53, %v4479_v52  ;;  %v4554_v38 = vrot.slane %v4549_v12, %v4553_v34 }
 0x8c1   : > { %v4558_v52 = vrot.slane %v4549_v12, %v4557_v1 }
 0x8c2   : > { %v4490_v28 = vsub.f32 %v4486_v3, %v4488_v59  ;;  %v4562_v59 = vrot.slane %v4549_v12, %v4561_v4  ;;  %v7971_v3 = vrot.slane %v4549_v12, %v4565_v27 }
 0x8c3   : > { %v4485_v2 = vpop.xlane.xlu0 %4484 }
 0x8c4   : > { %v4492_v15 = vadd.f32 1e-05, %v4490_v28  ;;  %v4487_v61 = vmul.f32 0.0078125, %v4485_v2 }
 0x8c6   : > { %6343 = vrsqrt.f32 %v4492_v15  ;;  %v4491_v22 = vsub.f32 %v4487_v61, %v4489_v5 }
 0x8c8   : > { %v4493_v57 = vadd.f32 1e-05, %v4491_v22 }
 0x8ca   : > { %6345 = vrsqrt.f32 %v4493_v57 }
 0x8d0   : > { %v6344_v25 = vpop.eup %6343 }
 0x8d1   : > { %v4504_v41 = vmul.f32 %v6344_v25, %v5687_v26 }
 0x8d3   : > { %v4506_v60 = vmul.f32 %v4504_v41, %v4496_v42 }
 0x8d4   : > { %v6346_v16 = vpop.eup %6345 }
 0x8d5   : > { %v4505_v9 = vmul.f32 %v6346_v16, %v5687_v26  ;;  %v4514_v18 = vadd.f32 %v5688_v40, %v4506_v60 }
 0x8d7   : > { %v4507_v13 = vmul.f32 %v4505_v9, %v4497_v29 }
 0x8d9   : > { %v4515_v48 = vadd.f32 %v5688_v40, %v4507_v13 }
 0x8db   : > { %v4516_v31 = vpack.c.bf16 %v4515_v48, %v4514_v18 }
 0x8dd   : > { %4764 = vmatmul.mubr.bf16.vlgmr.msra.gmra.mrb[44].mxu1 %v4516_v31  ;;  %4807 = vmatmul.mubr.bf16.vlgmr.msra.gmra.mrb[32].mxu0 %v4516_v31 }
 0x8de   : > { %5820 = vmatpush3.bf16.msra.mxu1 %v6245_v62  ;;  %5842 = vmatpush3.bf16.msra.mxu0 %v6246_v14 }
 0x8df   : > { %5821 = vmatprep.subr.bf16.mxu1 %v6247_v17  ;;  %5843 = vmatprep.subr.bf16.mxu0 %v6248_v51 }
 0x8e2   : > { %5822 = vmatpush3.bf16.msra.mxu1 %v6249_v55  ;;  %5844 = vmatpush3.bf16.msra.mxu0 %v6250_v58 }
 0x8e3   : > { %5823 = vmatprep.subr.bf16.mxu1 %v6251_v35  ;;  %5845 = vmatprep.subr.bf16.mxu0 %v6252_v43 }
 0x8e6   : > { %5824 = vmatpush3.bf16.msra.mxu1 %v6253_v20  ;;  %5846 = vmatpush3.bf16.msra.mxu0 %v6254_v44 }
 0x8e7   : > { %5825 = vmatprep.subr.bf16.mxu1 %v6255_v45  ;;  %5847 = vmatprep.subr.bf16.mxu0 %v6256_v39 }
 0x8ea   : > { %5826 = vmatpush3.bf16.msra.mxu1 %v6257_v36  ;;  %5848 = vmatpush3.bf16.msra.mxu0 %v6258_v7 }
 0x8eb   : > { %5827 = vmatprep.subr.bf16.mxu1 %v6259_v0  ;;  %5849 = vmatprep.subr.bf16.mxu0 %v6260_v21 }
 0x8ee   : > { %5828 = vmatpush3.bf16.msra.mxu1 %v6261_v19  ;;  %5850 = vmatpush3.bf16.msra.mxu0 %v6262_v32 }
 0x8ef   : > { %5829 = vmatprep.subr.bf16.mxu1 %v6263_v46  ;;  %5851 = vmatprep.subr.bf16.mxu0 %v6264_v49 }
 0x8f2   : > { %5830 = vmatpush3.bf16.msra.mxu1 %v6265_v54  ;;  %5852 = vmatpush3.bf16.msra.mxu0 %v6266_v8 }
 0x8f3   : > { %5831 = vmatprep.subr.bf16.mxu1 %v6267_v24  ;;  %5853 = vmatprep.subr.bf16.mxu0 %v6268_v23 }
 0x8f6   : > { %5832 = vmatpush3.bf16.msra.mxu1 %v6269_v11  ;;  %5854 = vmatpush3.bf16.msra.mxu0 %v6270_v30 }
 0x8f7   : > { %5833 = vmatprep.subr.bf16.mxu1 %v6271_v33  ;;  %5855 = vmatprep.subr.bf16.mxu0 %v6272_v37 }
 0x8fa   : > { %5834 = vmatpush3.bf16.msra.mxu1 %v6273_v50  ;;  %5856 = vmatpush3.bf16.msra.mxu0 %v6274_v63 }
 0x9b0   : > { %v4765_v28 = vpop.f32.mrb[44].mxu1  ;;  %v4808_v2 = vpop.f32.mrb[32].mxu0 }
 0x9b1   : > { %v7973_v5 = vadd.f32 %v4765_v28, %v4554_v38  ;;  %v7975_v15 = vadd.f32 %v4808_v2, %v4562_v59  ;;  %v4767_v61 = vpop.f32.mrb[45].mxu1  ;;  %v4810_v22 = vpop.f32.mrb[33].mxu0 }
 0x9b2   : > { %v7977_v57 = vadd.f32 %v4767_v61, %v4558_v52  ;;  %v7980_v26 = vadd.f32 %v4810_v22, %v7971_v3  ;;  %v4769_v25 = vpop.f32.mrb[46].mxu1  ;;  %v4812_v10 = vpop.f32.mrb[34].mxu0 }
 0x9b3   : > { %v4825_v41 = vmul.f32 0.70710677, %v7973_v5  ;;  %v4827_v42 = vmul.f32 0.70710677, %v7975_v15  ;;  %v4771_v40 = vpop.f32.mrb[47].mxu1  ;;  %v4814_v13 = vpop.f32.mrb[35].mxu0  ;;  %v8018_v0 = vadd.f32 %v4769_v25, %v4554_v38  ;;  %v8020_v21 = vadd.f32 %v4812_v10, %v4562_v59 }
 0x9b4   : > { %v4826_v16 = vmul.f32 0.70710677, %v7977_v57  ;;  %v4828_v29 = vmul.f32 0.70710677, %v7980_v26  ;;  %v8031_v63 = vadd.f32 %v4771_v40, %v4558_v52  ;;  %v8053_v40 = vadd.f32 %v4814_v13, %v7971_v3 }
 0x9b5   : > { %v7986_v9 = vclamps-f32 %v4825_v41, 4.0  ;;  %v7988_v60 = vclamps-f32 %v4827_v42, 4.0  ;;  %v4829_v54 = vmul.f32 0.70710677, %v8018_v0  ;;  %v4831_v23 = vmul.f32 0.70710677, %v8020_v21 }
 0x9b6   : > { %v7990_v18 = vclamps-f32 %v4826_v16, 4.0  ;;  %v8004_v6 = vclamps-f32 %v4828_v29, 4.0  ;;  %v4830_v22 = vmul.f32 0.70710677, %v8031_v63 }
 0x9b7   : > { %v7994_v48 = vmul.f32 %v7986_v9, %v7986_v9  ;;  %v7998_v31 = vmul.f32 %v7988_v60, %v7988_v60  ;;  %v8033_v12 = vclamps-f32 %v4829_v54, 4.0  ;;  %v8035_v1 = vclamps-f32 %v4831_v23, 4.0 }
 0x9b8   : > { %v8002_v56 = vmul.f32 %v7990_v18, %v7990_v18  ;;  %v8011_v58 = vmul.f32 %v8004_v6, %v8004_v6  ;;  %v4832_v23 = vmul.f32 0.70710677, %v8053_v40 }
 0x9b9   : > { %v4921_v62 = vmul.f32 -1.1791603e-07, %v7994_v48  ;;  %v4923_v14 = vmul.f32 -1.1791603e-07, %v7998_v31  ;;  %v4857_v8 = vmul.f32 0.00022905065, %v7994_v48  ;;  %v8040_v2 = vmul.f32 %v8033_v12, %v8033_v12 }
 0x9ba   : > { %v4922_v55 = vmul.f32 -1.1791603e-07, %v8002_v56  ;;  %v4924_v39 = vmul.f32 -1.1791603e-07, %v8011_v58  ;;  %v4859_v24 = vmul.f32 0.00022905065, %v7998_v31  ;;  %v8044_v61 = vmul.f32 %v8035_v1, %v8035_v1 }
 0x9bb   : > { %v4929_v17 = vadd.f32 2.3547966e-05, %v4921_v62  ;;  %v4931_v51 = vadd.f32 2.3547966e-05, %v4923_v14  ;;  %v4858_v37 = vmul.f32 0.00022905065, %v8002_v56 }
 0x9bc   : > { %v4930_v45 = vadd.f32 2.3547966e-05, %v4922_v55  ;;  %v4932_v32 = vadd.f32 2.3547966e-05, %v4924_v39  ;;  %v4865_v34 = vadd.f32 0.003408291, %v4857_v8 }
 0x9bd   : > { %v4937_v35 = vmul.f32 %v4929_v17, %v7994_v48  ;;  %v4939_v43 = vmul.f32 %v4931_v51, %v7998_v31  ;;  %v4867_v4 = vadd.f32 0.003408291, %v4859_v24  ;;  %v4866_v28 = vadd.f32 0.003408291, %v4858_v37 }
 0x9be   : > { %v4938_v19 = vmul.f32 %v4930_v45, %v8002_v56  ;;  %v4940_v30 = vmul.f32 %v4932_v32, %v8011_v58  ;;  %v4873_v25 = vmul.f32 %v4865_v34, %v7994_v48  ;;  %v4925_v41 = vmul.f32 -1.1791603e-07, %v8040_v2 }
 0x9bf   : > { %v4945_v20 = vadd.f32 0.0010179626, %v4937_v35  ;;  %v4947_v44 = vadd.f32 0.0010179626, %v4939_v43  ;;  %v4875_v10 = vmul.f32 %v4867_v4, %v7998_v31  ;;  %v4861_v29 = vmul.f32 0.00022905065, %v8040_v2 }
 0x9c0   : > { %v4946_v11 = vadd.f32 0.0010179626, %v4938_v19  ;;  %v4948_v38 = vadd.f32 0.0010179626, %v4940_v30  ;;  %v4874_v14 = vmul.f32 %v4866_v28, %v8002_v56  ;;  %v4933_v17 = vadd.f32 2.3547966e-05, %v4925_v41 }
 0x9c1   : > { %v4953_v36 = vmul.f32 %v4945_v20, %v7994_v48  ;;  %v4955_v7 = vmul.f32 %v4947_v44, %v7998_v31  ;;  %v4927_v51 = vmul.f32 -1.1791603e-07, %v8044_v61  ;;  %v4860_v35 = vmul.f32 0.00022905065, %v8011_v58 }
 0x9c2   : > { %v4954_v27 = vmul.f32 %v4946_v11, %v8002_v56  ;;  %v4956_v16 = vmul.f32 %v4948_v38, %v8011_v58  ;;  %v4863_v43 = vmul.f32 0.00022905065, %v8044_v61  ;;  %v8061_v20 = vclamps-f32 %v4830_v22, 4.0 }
 0x9c3   : > { %v4961_v46 = vadd.f32 0.01407047, %v4953_v36  ;;  %v4963_v49 = vadd.f32 0.01407047, %v4955_v7  ;;  %v4881_v44 = vadd.f32 0.050955694, %v4873_v25  ;;  %v4941_v3 = vmul.f32 %v4933_v17, %v8040_v2 }
 0x9c4   : > { %v4962_v42 = vadd.f32 0.01407047, %v4954_v27  ;;  %v4883_v45 = vadd.f32 0.050955694, %v4875_v10  ;;  %v4935_v13 = vadd.f32 2.3547966e-05, %v4927_v51  ;;  %v8067_v19 = vmul.f32 %v8061_v20, %v8061_v20 }
 0x9c5   : > { %v4969_v33 = vmul.f32 %v4961_v46, %v7994_v48  ;;  %v4971_v50 = vmul.f32 %v4963_v49, %v7998_v31  ;;  %v4964_v36 = vadd.f32 0.01407047, %v4956_v16  ;;  %v4869_v7 = vadd.f32 0.003408291, %v4861_v29 }
 0x9c6   : > { %v4970_v39 = vmul.f32 %v4962_v42, %v8002_v56  ;;  %v4882_v46 = vadd.f32 0.050955694, %v4874_v14  ;;  %v4949_v49 = vadd.f32 0.0010179626, %v4941_v3  ;;  %v4943_v54 = vmul.f32 %v4935_v13, %v8044_v61 }
 0x9c7   : > { %v4977_v59 = vadd.f32 0.11098505, %v4969_v33  ;;  %v4979_v52 = vadd.f32 0.11098505, %v4971_v50  ;;  %v4871_v24 = vadd.f32 0.003408291, %v4863_v43  ;;  %v4889_v11 = vmul.f32 %v4881_v44, %v7994_v48 }
 0x9c8   : > { %v4957_v30 = vmul.f32 %v4949_v49, %v8040_v2  ;;  %v4951_v33 = vadd.f32 0.0010179626, %v4943_v54  ;;  %v4926_v37 = vmul.f32 -1.1791603e-07, %v8067_v19  ;;  %v4891_v50 = vmul.f32 %v4883_v45, %v7998_v31 }
 0x9c9   : > { %v4985_v62 = vmul.f32 %v4977_v59, %v7994_v48  ;;  %v4987_v55 = vmul.f32 %v4979_v52, %v7998_v31  ;;  %v4978_v34 = vadd.f32 0.11098505, %v4970_v39  ;;  %v4972_v4 = vmul.f32 %v4964_v36, %v8011_v58 }
 0x9ca   : > { %v4877_v27 = vmul.f32 %v4869_v7, %v8040_v2  ;;  %v4965_v59 = vadd.f32 0.01407047, %v4957_v30  ;;  %v4959_v28 = vmul.f32 %v4951_v33, %v8044_v61  ;;  %v4934_v52 = vadd.f32 2.3547966e-05, %v4926_v37 }
 0x9cb   : > { %v4993_v32 = vadd.f32 0.49746925, %v4985_v62  ;;  %v4995_v8 = vadd.f32 0.49746925, %v4987_v55  ;;  %v4868_v25 = vadd.f32 0.003408291, %v4860_v35  ;;  %v4879_v10 = vmul.f32 %v4871_v24, %v8044_v61 }
 0x9cc   : > { %v8081_v41 = vclamps-f32 %v4832_v23, 4.0  ;;  %v4897_v42 = vadd.f32 0.18520832, %v4889_v11  ;;  %v4890_v16 = vmul.f32 %v4882_v46, %v8002_v56  ;;  %v4973_v29 = vmul.f32 %v4965_v59, %v8040_v2 }
 0x9cd   : > { %v5001_v38 = vmul.f32 %v4993_v32, %v7994_v48  ;;  %v5003_v22 = vmul.f32 %v4995_v8, %v7998_v31  ;;  %v4967_v62 = vadd.f32 0.01407047, %v4959_v28  ;;  %v4986_v14 = vmul.f32 %v4978_v34, %v8002_v56 }
 0x9ce   : > { %v4980_v17 = vadd.f32 0.11098505, %v4972_v4  ;;  %v4885_v51 = vadd.f32 0.050955694, %v4877_v27  ;;  %v4862_v55 = vmul.f32 0.00022905065, %v8067_v19  ;;  %v4942_v45 = vmul.f32 %v4934_v52, %v8067_v19 }
 0x9cf   : > { %v5009_v43 = vadd.f32 1.0, %v5001_v38  ;;  %v4981_v44 = vadd.f32 0.11098505, %v4973_v29  ;;  %v4975_v35 = vmul.f32 %v4967_v62, %v8044_v61  ;;  %v4899_v3 = vadd.f32 0.18520832, %v4891_v50 }
 0x9d0   : > { %v5011_v13 = vadd.f32 1.0, %v5003_v22  ;;  %v4887_v39 = vadd.f32 0.050955694, %v4879_v10  ;;  %v8091_v36 = vmul.f32 %v8081_v41, %v8081_v41  ;;  %v4905_v7 = vmul.f32 %v4897_v42, %v7994_v48 }
 0x9d1   : > { %v4876_v32 = vmul.f32 %v4868_v25, %v8011_v58  ;;  %v4989_v46 = vmul.f32 %v4981_v44, %v8040_v2  ;;  %v4983_v49 = vadd.f32 0.11098505, %v4975_v35  ;;  %v4994_v54 = vadd.f32 0.49746925, %v4986_v14 }
 0x9d2   : > { %v4988_v8 = vmul.f32 %v4980_v17, %v8011_v58  ;;  %v4893_v24 = vmul.f32 %v4885_v51, %v8040_v2  ;;  %v4870_v23 = vadd.f32 0.003408291, %v4862_v55  ;;  %6347 = vrcp.f32 %v5009_v43 }
 0x9d3   : > { %v4997_v11 = vadd.f32 0.49746925, %v4989_v46  ;;  %v4991_v30 = vmul.f32 %v4983_v49, %v8044_v61  ;;  %v4950_v33 = vadd.f32 0.0010179626, %v4942_v45  ;;  %v4907_v37 = vmul.f32 %v4899_v3, %v7998_v31 }
 0x9d4   : > { %6349 = vrcp.f32 %v5011_v13  ;;  %v4895_v48 = vmul.f32 %v4887_v39, %v8044_v61  ;;  %v4928_v50 = vmul.f32 -1.1791603e-07, %v8091_v36  ;;  %v4864_v38 = vmul.f32 0.00022905065, %v8091_v36 }
 0x9d5   : > { %v5005_v34 = vmul.f32 %v4997_v11, %v8040_v2  ;;  %v4999_v4 = vadd.f32 0.49746925, %v4991_v30  ;;  %v4958_v27 = vmul.f32 %v4950_v33, %v8067_v19  ;;  %v5002_v59 = vmul.f32 %v4994_v54, %v8002_v56 }
 0x9d6   : > { %v4901_v28 = vadd.f32 0.18520832, %v4893_v24  ;;  %v4878_v52 = vmul.f32 %v4870_v23, %v8067_v19  ;;  %v4936_v22 = vadd.f32 2.3547966e-05, %v4928_v50  ;;  %v4996_v25 = vadd.f32 0.49746925, %v4988_v8 }
 0x9d7   : > { %v5013_v31 = vadd.f32 1.0, %v5005_v34  ;;  %v5007_v10 = vmul.f32 %v4999_v4, %v8044_v61  ;;  %v4966_v42 = vadd.f32 0.01407047, %v4958_v27  ;;  %v4913_v29 = vadd.f32 1.1283791, %v4905_v7 }
 0x9d8   : > { %v4898_v62 = vadd.f32 0.18520832, %v4890_v16  ;;  %v4903_v14 = vadd.f32 0.18520832, %v4895_v48  ;;  %v4944_v17 = vmul.f32 %v4936_v22, %v8091_v36  ;;  %v4872_v43 = vadd.f32 0.003408291, %v4864_v38 }
 0x9d9   : > { %6351 = vrcp.f32 %v5013_v31  ;;  %v5015_v51 = vadd.f32 1.0, %v5007_v10  ;;  %v4974_v55 = vmul.f32 %v4966_v42, %v8067_v19  ;;  %v4915_v44 = vadd.f32 1.1283791, %v4907_v37 }
 0x9da   : > { %v4909_v35 = vmul.f32 %v4901_v28, %v8040_v2  ;;  %v4886_v45 = vadd.f32 0.050955694, %v4878_v52  ;;  %v4952_v3 = vadd.f32 0.0010179626, %v4944_v17  ;;  %v5010_v13 = vadd.f32 1.0, %v5002_v59 }
 0x9db   : > { %v5004_v39 = vmul.f32 %v4996_v25, %v8011_v58  ;;  %6353 = vrcp.f32 %v5015_v51  ;;  %v4982_v46 = vadd.f32 0.11098505, %v4974_v55  ;;  %v4911_v16 = vmul.f32 %v4903_v14, %v8044_v61 }
 0x9dc   : > { %v4960_v7 = vmul.f32 %v4952_v3, %v8091_v36  ;;  %v6348_v49 = vpop.eup %6347  ;;  %v4906_v54 = vmul.f32 %v4898_v62, %v8002_v56  ;;  %v4884_v8 = vadd.f32 0.050955694, %v4876_v32  ;;  %v4880_v23 = vmul.f32 %v4872_v43, %v8091_v36 }
 0x9dd   : > { %v4990_v24 = vmul.f32 %v4982_v46, %v8067_v19  ;;  %v5017_v11 = vmul.f32 %v7986_v9, %v4913_v29  ;;  %v4917_v30 = vadd.f32 1.1283791, %v4909_v35  ;;  %v4894_v33 = vmul.f32 %v4886_v45, %v8067_v19 }
 0x9de   : > { %v6350_v2 = vpop.eup %6349  ;;  %v4968_v37 = vadd.f32 0.01407047, %v4960_v7  ;;  %v5019_v48 = vmul.f32 %v7988_v60, %v4915_v44  ;;  %6355 = vrcp.f32 %v5010_v13  ;;  %v5012_v61 = vadd.f32 1.0, %v5004_v39 }
 0x9df   : > { %v4998_v50 = vadd.f32 0.49746925, %v4990_v24  ;;  %v5033_v34 = vmul.f32 %v6348_v49, %v5017_v11  ;;  %v4919_v4 = vadd.f32 1.1283791, %v4911_v16  ;;  %v4892_v27 = vmul.f32 %v4884_v8, %v8011_v58 }
 0x9e0   : > { %v4976_v56 = vmul.f32 %v4968_v37, %v8091_v36  ;;  %v5035_v32 = vmul.f32 %v6350_v2, %v5019_v48  ;;  %v4888_v59 = vadd.f32 0.050955694, %v4880_v23  ;;  %v4817_v9 = vmul.f32 0.5, %v7973_v5 }
 0x9e1   : > { %v5006_v38 = vmul.f32 %v4998_v50, %v8067_v19  ;;  %v5021_v28 = vmul.f32 %v8033_v12, %v4917_v30  ;;  %v4902_v52 = vadd.f32 0.18520832, %v4894_v33  ;;  %v4914_v25 = vadd.f32 1.1283791, %v4906_v54 }
 0x9e2   : > { %v4984_v22 = vadd.f32 0.11098505, %v4976_v56  ;;  %6357 = vrcp.f32 %v5012_v61  ;;  %v4821_v31 = vmul.f32 0.5, %v8018_v0  ;;  %v5041_v42 = vadd.f32 1.0, %v5033_v34 }
 0x9e3   : > { %v6352_v60 = vpop.eup %6351  ;;  %v5014_v10 = vadd.f32 1.0, %v5006_v38  ;;  %v5023_v62 = vmul.f32 %v8035_v1, %v4919_v4  ;;  %v5043_v51 = vadd.f32 1.0, %v5035_v32  ;;  %v4900_v55 = vadd.f32 0.18520832, %v4892_v27 }
 0x9e4   : > { %v5037_v29 = vmul.f32 %v6352_v60, %v5021_v28  ;;  %v4992_v14 = vmul.f32 %v4984_v22, %v8091_v36  ;;  %v4896_v5 = vmul.f32 %v4888_v59, %v8091_v36  ;;  %v4910_v44 = vmul.f32 %v4902_v52, %v8067_v19 }
 0x9e5   : > { %v6354_v17 = vpop.eup %6353  ;;  %6359 = vrcp.f32 %v5014_v10  ;;  %v4819_v0 = vmul.f32 0.5, %v7975_v15  ;;  %v4823_v45 = vmul.f32 0.5, %v8020_v21  ;;  %v5049_v3 = vmul.f32 %v5041_v42, %v4817_v9 }
 0x9e6   : > { %v5045_v12 = vadd.f32 1.0, %v5037_v29  ;;  %v5039_v43 = vmul.f32 %v6354_v17, %v5023_v62  ;;  %v5000_v35 = vadd.f32 0.49746925, %v4992_v14  ;;  %v5018_v7 = vmul.f32 %v7990_v18, %v4914_v25 }
 0x9e7   : > { %v5051_v16 = vmul.f32 %v5043_v51, %v4819_v0  ;;  %v4908_v49 = vmul.f32 %v4900_v55, %v8011_v58  ;;  %v4904_v54 = vadd.f32 0.18520832, %v4896_v5  ;;  %v4918_v19 = vadd.f32 1.1283791, %v4910_v44 }
 0x9e8   : > { %v5053_v13 = vmul.f32 %v5045_v12, %v4821_v31  ;;  %v5047_v1 = vadd.f32 1.0, %v5039_v43  ;;  %v5008_v39 = vmul.f32 %v5000_v35, %v8091_v36  ;;  %v6356_v46 = vpop.eup %6355  ;;  %v4818_v50 = vmul.f32 0.5, %v7977_v57 }
 0x9e9   : > { %v5034_v2 = vmul.f32 %v6356_v46, %v5018_v7  ;;  %v4916_v11 = vadd.f32 1.1283791, %v4908_v49  ;;  %v4912_v30 = vmul.f32 %v4904_v54, %v8091_v36  ;;  %v5022_v33 = vmul.f32 %v8061_v20, %v4918_v19 }
 0x9ea   : > { %v5057_v8 = vpack.c.bf16 %v5053_v13, %v5049_v3  ;;  %v5055_v24 = vmul.f32 %v5047_v1, %v4823_v45  ;;  %v5016_v23 = vadd.f32 1.0, %v5008_v39  ;;  %v4822_v34 = vmul.f32 0.5, %v8031_v63 }
 0x9eb   : > { %v5042_v48 = vadd.f32 1.0, %v5034_v2  ;;  %v5020_v18 = vmul.f32 %v8004_v6, %v4916_v11  ;;  %v4920_v58 = vadd.f32 1.1283791, %v4912_v30  ;;  %v4820_v28 = vmul.f32 0.5, %v7980_v26  ;;  %v5729_v26 = vld [vmem:[%s8260_s27] ss:$0 sm:$0xff] }
 0x9ec   : > { %v5059_v15 = vpack.c.bf16 %v5055_v24, %v5051_v16  ;;  %6361 = vrcp.f32 %v5016_v23  ;;  %v6358_v21 = vpop.eup %6357  ;;  %v4824_v6 = vmul.f32 0.5, %v8053_v40  ;;  %s6541_s27 = scalar_lea.vmem %s6540_s13, 512 }
 0x9ed   : > { %v5036_v56 = vmul.f32 %v6358_v21, %v5020_v18  ;;  %v5050_v32 = vmul.f32 %v5042_v48, %v4818_v50  ;;  %v5024_v38 = vmul.f32 %v8081_v41, %v4920_v58  ;;  %p6543_p12 = scmp.lt.s32.totalorder %s6541_s27, %s6535_s11 }
 0x9ef   : > { %v6360_v37 = vpop.eup %6359  ;;  %v5044_v9 = vadd.f32 1.0, %v5036_v56  ;;  %p6544_p13 = por %p6543_p12, %p6542_p11 }
 0x9f0   : > { %v5038_v61 = vmul.f32 %v6360_v37, %v5022_v33 }
 0x9f1   : > { %v5052_v57 = vmul.f32 %v5044_v9, %v4820_v28  ;;  %p6545_p8 = pnand %p6544_p13, %p6538_p1 }
 0x9f2   : > { %v5046_v4 = vadd.f32 1.0, %v5038_v61 }
 0x9f4   : > { %v5054_v27 = vmul.f32 %v5046_v4, %v4822_v34 }
 0x9f6   : > { %v6362_v59 = vpop.eup %6361  ;;  %v5058_v36 = vpack.c.bf16 %v5054_v27, %v5050_v32 }
 0x9f7   : > { %v5040_v20 = vmul.f32 %v6362_v59, %v5024_v38 }
 0x9f8   : > { %5356 = vmatprep.mubr.bf16.mxu1 %v5058_v36 }
 0x9f9   : > { %v5048_v52 = vadd.f32 1.0, %v5040_v20  ;;  %5357 = vmatmul.mubr.bf16.vlgmr.msra.gmra.mrb[48].mxu1 %v5057_v8 }
 0x9fb   : > { %v5056_v22 = vmul.f32 %v5048_v52, %v4824_v6 }
 0x9fd   : > { %v5060_v63 = vpack.c.bf16 %v5056_v22, %v5052_v57 }
 0x9ff   : > { %5397 = vmatprep.mubr.bf16.mxu0 %v5060_v63 }
 0xa00   : > { %5398 = vmatmul.mubr.bf16.vlgmr.msra.gmra.mrb[36].mxu0 %v5059_v15 }
 0xacc   : > { %v5835_v60 = vpop.f32.mrb[48].mxu1 }
 0xacd   : > { %v5836_v25 = vpop.f32.mrb[49].mxu1 }
 0xace   : > { %v5837_v41 = vadd.f32 %v5836_v25, %v5835_v60  ;;  %v5838_v31 = vpop.f32.mrb[50].mxu1 }
 0xacf   : > { %v5839_v10 = vpop.f32.mrb[51].mxu1 }
 0xad0   : > { %v5840_v42 = vadd.f32 %v5839_v10, %v5838_v31  ;;  %v5359_v29 = vadd.f32 %v5837_v41, %v5729_v26 }
 0xad2   : > { %v5362_v51 = vadd.f32 %v5840_v42, %v5729_v26 }
 0xad3   : > { %v5857_v40 = vpop.f32.mrb[36].mxu0 }
 0xad4   : > { %v5858_v62 = vpop.f32.mrb[37].mxu0 }
 0xad5   : > { %v5859_v14 = vadd.f32 %v5858_v62, %v5857_v40  ;;  %v5860_v17 = vpop.f32.mrb[38].mxu0 }
 0xad6   : > { %v5861_v55 = vpop.f32.mrb[39].mxu0 }
 0xad7   : > { %v5400_v5 = vadd.f32 %v5859_v14, %v5359_v29  ;;  %v5862_v12 = vadd.f32 %v5861_v55, %v5860_v17 }
 0xad9   : > { %v5406_v43 = vadd.f32 %v5400_v5, %v7945_v47  ;;  %v5403_v44 = vadd.f32 %v5862_v12, %v5362_v51 }
 0xadb   : > { %5408 = vst [vmem:[%s558_s8] sm:$0xff] %v5406_v43  ;;  %v5407_v35 = vadd.f32 %v5403_v44, %v7948_v53 }
 0xadd   : > { %5409 = vst [vmem:[%s558_s8 + $0x8] sm:$0xff] %v5407_v35 }
 0xade   : > { %6548 = shalt.err (!%p6545_p8)
}
 0xadf   : > { %s6549_s23 = scalar_lea.hbm %s8155_s25, 256  ;;  %s6553_s7 = scalar_lea.hbm %s8262_s22, 512 }
 0xae0   : > { %p6550_p6 = scmp.ne.s32.totalorder %s8155_s25, %s6549_s23  ;;  %p6554_p3 = scmp.lt.u32.totalorder %s8155_s25, %s8262_s22 }
 0xae1   : > { %p6555_p0 = scmp.lt.u32.totalorder %s6553_s7, %s6549_s23  ;;  %p6557_p2 = scmp.lt.u32.totalorder %s6549_s23, %s8155_s25 }
 0xae2   : > { %p6551_p9 = pnand %p6550_p6, %p8263_p7 }
 0xae3   : > { %p6556_p5 = por %p6555_p0, %p6554_p3 }
 0xae4   : > { %p6552_p4 = pneg %p6551_p9 }
 0xae5   : > { %p6558_p10 = por %p6557_p2, %p6556_p5 }
 0xae7   : > { %p6559_p1 = pnand %p6558_p10, %p6552_p4 }
 0xae9   : > { %6562 = shalt.err (!%p6559_p1)
}
 0xaea   : > { %s6642_s11 = smov 128   ;;  %s6643_s13 = smov 8  }
 0xaeb   : > { %6021 = dma.vmem_to_hbm [thread:$0]  (%p8263_p7), %s8150_s20, 256, %s8155_s25, %s5411_s17, %s6642_s11, %s6642_s11, %s6643_s13  }
 0xaec PF: > { %s5439_s27 = sand.u32 1, %s6601_s29   ;;  %p8264_p11 = scmp.ne.s32.totalorder %s8241_s18, 0 }
 0xaed   : > { %p8265_p12 = scmp.ge.s32.totalorder %s6613_s16, 2  ;;  %s5440_s23 = scalar_lea.sflag [#allocation4], %s5439_s27 }
 0xaef   : > { %p6044_p13 = pnand %p8265_p12, %p8264_p11 }
 0xaf1   : > { %6596 = dma.done.wait (!%p6044_p13), %s5440_s23, 256  }
 0xaf2   : > { %6598 = vsyncadd (!%p6044_p13), %s5440_s23, 4294967040  ;;  %p30_p8 = scmp.ge.s32.totalorder %s6882_s21, 4   ;;  %s8266_s29 = smov %s6605_s30 }
 0xaf3   : > { %s8267_s30 = smov %s6609_s15  ;;  %s8268_s15 = smov %s6894_s28 }
 0xaf4   : > { %s8269_s16 = smov %s6882_s21  ;;  %32 = sbr.rel (!%p30_p8) target bundleno = 15 (0xf), region = 141 }
 0xafb   :  { %5445 = vsyncpa [#allocation3], 1 }
 0xafc   :  { %5447 = vsyncpa [#allocation3 + $0x1], 1 }
 0xafd   :  { %5448 = vsyncpa [#allocation6], 1 }
 0xafe   :  { %5449 = vsyncpa [#allocation9], 1 }
 0xaff   :  { %5450 = vsyncpa [#allocation12], 1 }
 0xb00   :  { %5451 = vsyncpa [#allocation4], 1 }
 0xb01   :  { %5453 = vsyncpa [#allocation4 + $0x1], 1 }

// kernel: tpu_custom_call.1
= control target key start
LH: loop header
LB: loop body
LE: loop exit
PB: predicated region body
PF: predicated region fallthrough
CT: control target
= control target key end

     0   :  { %s8200_s0 = inlined_call_operand.hbm [shape: f32[2,16,128], index: 0, kind: input, shape index: {}]   ;;  %s8201_s1 = inlined_call_operand.hbm [shape: f32[8,16,16], index: 1, kind: input, shape index: {}]   ;;  %s8202_s2 = inlined_call_operand.vmem [shape: f32[1,8,1,1], index: 2, kind: input, shape index: {}]   ;;  %s8203_s3 = inlined_call_operand.vmem [shape: f32[1,128], index: 3, kind: input, shape index: {}]   ;;  %s8204_s4 = inlined_call_operand.vmem [shape: f32[1,128], index: 4, kind: input, shape index: {}]   ;;  %s8205_s5 = inlined_call_operand.hbm [shape: bf16[128,384], index: 5, kind: input, shape index: {}]   ;;  %s8206_s6 = inlined_call_operand.hbm [shape: bf16[128,128], index: 6, kind: input, shape index: {}]   ;;  %s8207_s7 = inlined_call_operand.vmem [shape: f32[1,128], index: 7, kind: input, shape index: {}]   ;;  %s8208_s8 = inlined_call_operand.vmem [shape: f32[1,128], index: 8, kind: input, shape index: {}]   ;;  %s8209_s9 = inlined_call_operand.vmem [shape: f32[1,128], index: 9, kind: input, shape index: {}]   ;;  %s8210_s10 = inlined_call_operand.hbm [shape: bf16[128,512], index: 10, kind: input, shape index: {}]   ;;  %s8211_s11 = inlined_call_operand.vmem [shape: f32[1,512], index: 11, kind: input, shape index: {}]   ;;  %s8212_s12 = inlined_call_operand.hbm [shape: bf16[512,128], index: 12, kind: input, shape index: {}]   ;;  %s8213_s13 = inlined_call_operand.vmem [shape: f32[1,128], index: 13, kind: input, shape index: {}]   ;;  %s8214_s14 = inlined_call_operand.hbm [shape: f32[2,16,128], index: 14, kind: output, shape index: {}]  }
   0x1   :  { %8227 = sst [smem:[#allocation19_spill]] %s8207_s7 }
   0x2   :  { %8228 = sst [smem:[#allocation20_spill]] %s8208_s8 }
   0x3   :  { %8229 = sst [smem:[#allocation21_spill]] %s8209_s9 }
   0x4   :  { %8230 = sst [smem:[#allocation22_spill]] %s8211_s11 }
   0x5   :  { %8231 = sst [smem:[#allocation23_spill]] %s8213_s13 }
   0x6   :  { %8232 = sst [smem:[#allocation24_spill]] %s8214_s14 }
   0x7   :  { %19 = vsyncpa [#allocation3], 0 }
   0x8   :  { %21 = vsyncpa [#allocation3 + $0x1], 0 }
   0x9   :  { %22 = vsyncpa [#allocation6], 0 }
   0xa   :  { %23 = vsyncpa [#allocation9], 0 }
   0xb   :  { %24 = vsyncpa [#allocation12], 0 }
   0xc   :  { %25 = vsyncpa [#allocation4], 0 }
   0xd   :  { %27 = vsyncpa [#allocation4 + $0x1], 0  ;;  %s6719_s29 = smov 0   ;;  %s6721_s30 = smov 0  }
   0xe   :  { %s6723_s15 = smov 0   ;;  %s6725_s16 = smov 0  }
   0xf LB: > { %s6615_s17 = smov [#allocation5]   ;;  %s6740_s19 = sadd.s32 4294967295, %s6613_s16   ;;  %s6613_s16 = sphi %s6725_s16, %s8269_s16   ;;  %s6609_s15 = sphi %s6723_s15, %s8268_s15   ;;  %s6605_s30 = sphi %s6721_s30, %s8267_s30   ;;  %s6601_s29 = sphi %s6719_s29, %s8266_s29  }
  0x10   : > { %s375_s18 = sshll.u32 %s6615_s17, 4  ;;  %p5546_p0 = scmp.ge.s32.totalorder %s6613_s16, 1  ;;  %s6745_s18 = int_to_ptr.vmem [resolvable:$true] %s375_s18 }
  0x11   : > { %p8217_p1 = scmp.eq.s32.totalorder %s6740_s19, 0  ;;  %p363_p2 = scmp.lt.s32.totalorder %s6613_s16, 3 }
  0x12   : > { %s6616_s21 = smov [#allocation8]   ;;  %s6617_s24 = smov [#allocation7]  }
  0x13   : > { %p6747_p3 = pnand %p5546_p0, %p363_p2  ;;  %s410_s22 = sshll.u32 %s6616_s21, 4  ;;  %s6760_s22 = int_to_ptr.vmem [resolvable:$true] %s410_s22 }
  0x14   : > { %s6762_s25 = sshll.u32 %s6617_s24, 4  ;;  %s6365_s28 = scalar_lea.hbm %s8201_s1, 2048  ;;  %s398_s25 = int_to_ptr.vmem [resolvable:$true] %s6762_s25 }
  0x15   : > { %s8233_s20 = scalar_select %p6747_p3, 1, 0 }
  0x16   : > { %p6023_p5 = pneg %p6747_p3  ;;  %p6366_p7 = scmp.ne.s32.totalorder %s8201_s1, %s6365_s28 }
  0x17   : > { %p6372_p11 = scmp.lt.u32.totalorder %s6365_s28, %s8201_s1 }
  0x18   : > { %p6756_p6 = pnand %p6023_p5, %p8217_p1 }
  0x1a   : > { %p6772_p8 = pneg %p6756_p6 }
  0x1c   : > { %p6368_p9 = pnand %p6772_p8, %p6366_p7 }
  0x1e   : > { %p6369_p10 = pneg %p6368_p9 }
  0x20   : > { %p6374_p12 = pnand %p6372_p11, %p6369_p10 }
  0x22   : > { %6377 = shalt.err (!%p6374_p12)
}
  0x23   : > { %s6378_s14 = scalar_lea.vmem %s6745_s18, 2048  ;;  %p6386_p5 = scmp.lt.s32.totalorder %s6745_s18, %s6745_s18 }
  0x24   : > { %p6379_p13 = scmp.ne.s32.totalorder %s6745_s18, %s6378_s14  ;;  %p6387_p4 = scmp.lt.s32.totalorder %s6378_s14, %s6378_s14 }
  0x26   : > { %p6381_p0 = pnand %p6379_p13, %p6772_p8  ;;  %p6388_p7 = por %p6387_p4, %p6386_p5 }
  0x28   : > { %p6382_p2 = pneg %p6381_p0 }
  0x2a   : > { %p6389_p9 = pnand %p6388_p7, %p6382_p2 }
  0x2c   : > { %6392 = shalt.err (!%p6389_p9)
}
  0x2d   : > { %s8216_s26 = smov 128   ;;  %s8219_s13 = smov 8  }
  0x2e   : > { %6026 = dma.hbm_to_vmem [thread:$0]  (!%p6756_p6), %s8201_s1, 2048, %s6745_s18, [#allocation6], %s8216_s26, %s8216_s26, %s8219_s13  }
  0x2f   : > { %s6393_s14 = scalar_lea.hbm %s8206_s6, 1024 }
  0x30   : > { %p6394_p4 = scmp.ne.s32.totalorder %s8206_s6, %s6393_s14  ;;  %p6400_p12 = scmp.lt.u32.totalorder %s6393_s14, %s8206_s6 }
  0x32   : > { %p6396_p10 = pnand %p6394_p4, %p6772_p8 }
  0x34   : > { %p6397_p11 = pneg %p6396_p10 }
  0x36   : > { %p6402_p13 = pnand %p6400_p12, %p6397_p11 }
  0x38   : > { %6405 = shalt.err (!%p6402_p13)
}
  0x39   : > { %s6406_s18 = scalar_lea.vmem %s6760_s22, 1024  ;;  %p6414_p7 = scmp.lt.s32.totalorder %s6760_s22, %s6760_s22 }
  0x3a   : > { %p6407_p0 = scmp.ne.s32.totalorder %s6760_s22, %s6406_s18  ;;  %p6415_p9 = scmp.lt.s32.totalorder %s6406_s18, %s6406_s18 }
  0x3c   : > { %p6409_p2 = pnand %p6407_p0, %p6772_p8  ;;  %p6416_p4 = por %p6415_p9, %p6414_p7 }
  0x3e   : > { %p6410_p5 = pneg %p6409_p2 }
  0x40   : > { %p6417_p10 = pnand %p6416_p4, %p6410_p5 }
  0x42   : > { %6420 = shalt.err (!%p6417_p10)
}
  0x43   : > { %s8220_s9 = smov 64   ;;  %s8221_s7 = smov 4  }
  0x44   : > { %6032 = dma.hbm_to_vmem [thread:$0]  (!%p6756_p6), %s8206_s6, 1024, %s6760_s22, [#allocation9], %s8220_s9, %s8220_s9, %s8221_s7  }
  0x45   : > { %s6421_s17 = scalar_lea.hbm %s8205_s5, 3072 }
  0x46   : > { %p6422_p11 = scmp.ne.s32.totalorder %s8205_s5, %s6421_s17  ;;  %p6428_p0 = scmp.lt.u32.totalorder %s6421_s17, %s8205_s5 }
  0x48   : > { %p6424_p12 = pnand %p6422_p11, %p6772_p8 }
  0x4a   : > { %p6425_p13 = pneg %p6424_p12 }
  0x4c   : > { %p6430_p2 = pnand %p6428_p0, %p6425_p13 }
  0x4e   : > { %6433 = shalt.err (!%p6430_p2)
}
  0x4f   : > { %s6434_s8 = scalar_lea.vmem %s398_s25, 3072  ;;  %p6442_p4 = scmp.lt.s32.totalorder %s398_s25, %s398_s25 }
  0x50   : > { %p6435_p5 = scmp.ne.s32.totalorder %s398_s25, %s6434_s8  ;;  %p6443_p10 = scmp.lt.s32.totalorder %s6434_s8, %s6434_s8 }
  0x52   : > { %p6437_p7 = pnand %p6435_p5, %p6772_p8  ;;  %p6444_p1 = por %p6443_p10, %p6442_p4 }
  0x54   : > { %p6438_p9 = pneg %p6437_p7 }
  0x56   : > { %p6445_p3 = pnand %p6444_p1, %p6438_p9 }
  0x58   : > { %6448 = shalt.err (!%p6445_p3)
}
  0x59   : > { %s6622_s22 = smov 192   ;;  %s6623_s11 = smov 12  }
  0x5a   : > { %6029 = dma.hbm_to_vmem [thread:$0]  (!%p6756_p6), %s8205_s5, 3072, %s398_s25, [#allocation6], %s6622_s22, %s6622_s22, %s6623_s11  }
  0x5b   : > { %s6624_s28 = smov [#allocation10]   ;;  %s6449_s18 = scalar_lea.hbm %s8210_s10, 4096 }
  0x5c   : > { %s432_s17 = sshll.u32 %s6624_s28, 4  ;;  %p6450_p1 = scmp.ne.s32.totalorder %s8210_s10, %s6449_s18  ;;  %s433_s17 = int_to_ptr.vmem [resolvable:$true] %s432_s17 }
  0x5d   : > { %p6456_p12 = scmp.lt.u32.totalorder %s6449_s18, %s8210_s10 }
  0x5e   : > { %p6452_p3 = pnand %p6450_p1, %p6772_p8 }
  0x60   : > { %p6453_p11 = pneg %p6452_p3 }
  0x62   : > { %p6458_p13 = pnand %p6456_p12, %p6453_p11 }
  0x64   : > { %6461 = shalt.err (!%p6458_p13)
}
  0x65   : > { %s6462_s25 = scalar_lea.vmem %s433_s17, 4096  ;;  %p6470_p7 = scmp.lt.s32.totalorder %s433_s17, %s433_s17 }
  0x66   : > { %p6463_p0 = scmp.ne.s32.totalorder %s433_s17, %s6462_s25  ;;  %p6471_p9 = scmp.lt.s32.totalorder %s6462_s25, %s6462_s25 }
  0x68   : > { %p6465_p2 = pnand %p6463_p0, %p6772_p8  ;;  %p6472_p4 = por %p6471_p9, %p6470_p7 }
  0x6a   : > { %p6466_p5 = pneg %p6465_p2 }
  0x6c   : > { %p6473_p10 = pnand %p6472_p4, %p6466_p5 }
  0x6e   : > { %6476 = shalt.err (!%p6473_p10)
}
  0x6f   : > { %s6625_s13 = smov 256   ;;  %s6626_s22 = smov 16  }
  0x70   : > { %6035 = dma.hbm_to_vmem [thread:$0]  (!%p6756_p6), %s8210_s10, 4096, %s433_s17, [#allocation9], %s6625_s13, %s6625_s13, %s6626_s22  }
  0x71   : > { %s6627_s11 = smov [#allocation11]   ;;  %s6477_s24 = scalar_lea.hbm %s8212_s12, 4096 }
  0x72   : > { %s448_s26 = sshll.u32 %s6627_s11, 4  ;;  %p6478_p1 = scmp.ne.s32.totalorder %s8212_s12, %s6477_s24  ;;  %s449_s26 = int_to_ptr.vmem [resolvable:$true] %s448_s26 }
  0x73   : > { %p6484_p12 = scmp.lt.u32.totalorder %s6477_s24, %s8212_s12 }
  0x74   : > { %p6480_p3 = pnand %p6478_p1, %p6772_p8 }
  0x76   : > { %p6481_p11 = pneg %p6480_p3 }
  0x78   : > { %p6486_p13 = pnand %p6484_p12, %p6481_p11 }
  0x7a   : > { %6489 = shalt.err (!%p6486_p13)
}
  0x7b   : > { %s6490_s17 = scalar_lea.vmem %s449_s26, 4096  ;;  %p6498_p7 = scmp.lt.s32.totalorder %s449_s26, %s449_s26 }
  0x7c   : > { %p6491_p0 = scmp.ne.s32.totalorder %s449_s26, %s6490_s17  ;;  %p6499_p9 = scmp.lt.s32.totalorder %s6490_s17, %s6490_s17 }
  0x7e   : > { %p6493_p2 = pnand %p6491_p0, %p6772_p8  ;;  %p6500_p4 = por %p6499_p9, %p6498_p7 }
  0x80   : > { %p6494_p5 = pneg %p6493_p2 }
  0x82   : > { %p6501_p10 = pnand %p6500_p4, %p6494_p5 }
  0x84   : > { %6504 = shalt.err (!%p6501_p10)
}
  0x85   : > { %s8236_s13 = smov 4   ;;  %s8237_s22 = smov 64  }
  0x86   : > { %6038 = dma.hbm_to_vmem [thread:$0]  (!%p6756_p6), %s8212_s12, 4096, %s449_s26, [#allocation12], %s8237_s22, %s8237_s22, %s8236_s13  }
  0x87   : > { %s5545_s23 = sadd.s32 4294967294, %s6613_s16   ;;  %s6882_s21 = sadd.s32 1, %s6613_s16  }
  0x88   : > { %s40_s11 = sadd.s32 1, %s6609_s15  ;;  %s37_s27 = ssub.s32 %s6613_s16, %s6882_s21 }
  0x89   : > { %p47_p8 = scmp.ne.s32.totalorder %s6609_s15, %s6605_s30  ;;  %p38_p1 = scmp.eq.s32.totalorder %s37_s27, 0 }
  0x8a   : > { %p48_p3 = scmp.eq.s32.totalorder %s6613_s16, 0  ;;  %p53_p11 = scmp.ne.s32.totalorder %s6605_s30, %s6601_s29 }
  0x8b   : > { %p350_p12 = scmp.eq.s32.totalorder %s6740_s19, 1  ;;  %p8238_p0 = scmp.eq.s32.totalorder %s6740_s19, 0 }
  0x8c   : > { %s6894_s28 = scalar_select %p38_p1, %s6609_s15, %s40_s11  }
  0x8d   : > { %p49_p13 = por %p48_p3, %p47_p8  ;;  %p6898_p2 = por %p8238_p0, %p53_p11 }
  0x8e   : > { %p6902_p6 = por %p350_p12, %p47_p8  ;;  %p356_p5 = scmp.eq.s32.totalorder %s5545_s23, 1 }
  0x8f   : > { %p6052_p7 = scmp.lt.s32.totalorder %s6613_s16, 2  ;;  %s465_s14 = sand.u32 1, %s6609_s15  }
  0x90   : > { %s8240_s26 = scalar_select %p6902_p6, 1, 0 }
  0x91   : > { %p6908_p9 = por %p356_p5, %p53_p11  ;;  %s5553_s8 = sshll.u32 %s465_s14, 4 }
  0x92   : > { %s5767_s25 = sshll.u32 %s6613_s16, 8  ;;  %s469_s9 = scalar_lea.vmem [#allocation2], %s5553_s8 }
  0x93   : > { %s8241_s18 = scalar_select %p6908_p9, 1, 0 }
  0x94   : > { %s6916_s22 = scalar_lea.hbm %s8200_s0, %s5767_s25  ;;  %s476_s7 = sshll.u32 %s469_s9, 4  ;;  %s6922_s7 = int_to_ptr.vmem [resolvable:$true] %s476_s7 }
  0x95   : > { %p6918_p4 = pnand %p6052_p7, %p49_p13  ;;  %s6924_s11 = scalar_lea.sflag [#allocation3], %s465_s14 }
  0x96   : > { %s6505_s27 = scalar_lea.hbm %s6916_s22, 256  ;;  %s6510_s17 = scalar_lea.hbm %s8200_s0, 512 }
  0x97   : > { %p6506_p10 = scmp.ne.s32.totalorder %s6916_s22, %s6505_s27  ;;  %p6507_p8 = pneg %p6918_p4 }
  0x98   : > { %p6511_p11 = scmp.lt.u32.totalorder %s6916_s22, %s8200_s0  ;;  %p6512_p12 = scmp.lt.u32.totalorder %s6510_s17, %s6505_s27 }
  0x99   : > { %p6508_p1 = pnand %p6507_p8, %p6506_p10  ;;  %p6514_p0 = scmp.lt.u32.totalorder %s6505_s27, %s6916_s22 }
  0x9a   : > { %p6513_p13 = por %p6512_p12, %p6511_p11 }
  0x9b   : > { %p6509_p3 = pneg %p6508_p1 }
  0x9c   : > { %p6515_p5 = por %p6514_p0, %p6513_p13 }
  0x9e   : > { %p6516_p7 = pnand %p6515_p5, %p6509_p3 }
  0xa0   : > { %6519 = shalt.err (!%p6516_p7)
}
  0xa1   : > { %s6520_s14 = scalar_lea.vmem %s6922_s7, 256  ;;  %s6628_s8 = smov [#allocation2]  }
  0xa2   : > { %p6521_p10 = scmp.ne.s32.totalorder %s6922_s7, %s6520_s14  ;;  %s6525_s25 = sshll.u32 %s6628_s8, 4  ;;  %s6526_s25 = int_to_ptr.vmem [resolvable:$false] %s6525_s25 }
  0xa3   : > { %s6527_s13 = scalar_lea.vmem %s6526_s25, 512  ;;  %p6528_p6 = scmp.lt.s32.totalorder %s6922_s7, %s6526_s25 }
  0xa4   : > { %p6523_p1 = pnand %p6521_p10, %p6507_p8  ;;  %p6529_p11 = scmp.lt.s32.totalorder %s6527_s13, %s6520_s14 }
  0xa6   : > { %p6524_p9 = pneg %p6523_p1  ;;  %p6530_p12 = por %p6529_p11, %p6528_p6 }
  0xa8   : > { %p6531_p13 = pnand %p6530_p12, %p6524_p9 }
  0xaa   : > { %6534 = shalt.err (!%p6531_p13)
}
  0xab   : > { %s8243_s27 = smov 8   ;;  %s8244_s17 = smov 128  }
  0xac   : > { %6042 = dma.hbm_to_vmem [thread:$0]  (!%p6918_p4), %s6916_s22, 256, %s6922_s7, %s6924_s11, %s8244_s17, %s8244_s17, %s8243_s27  }
  0xad   : > { %p8245_p8 = scmp.ne.s32.totalorder %s8233_s20, 0 }
  0xae   : > { %s6958_s9 = sand.u32 (!%p8245_p8), 1, %s6605_s30  }
  0xaf   : > { %488 = sbr.rel (%p8245_p8) target bundleno = 2796 (0xaec), region = 76  ;;  %s8225_s14 = sshll.u32 (!%p8245_p8), %s6958_s9, 4 }
  0xb0   : > { %s491_s8 = scalar_lea.sflag (!%p8245_p8), [#allocation3], %s6958_s9  ;;  %s6964_s23 = scalar_lea.vmem (!%p8245_p8), [#allocation2], %s8225_s14 }
  0xb6   : > { %6580 = dma.done.wait (%p6898_p2), %s491_s8, 256  }
  0xb7   : > { %6582 = vsyncadd (%p6898_p2), %s491_s8, 4294967040  ;;  %p8246_p6 = scmp.eq.s32.totalorder %s6740_s19, 0 }
  0xb9   : > { %6584 = dma.done.wait (%p8246_p6), [#allocation6], 5120   ;;  %p8247_p9 = pmov %p8246_p6 }
  0xba   : > { %p8248_p4 = pmov %p8246_p6 }
  0xbb   : > { %6586 = vsyncadd (%p8247_p9), [#allocation6], 4294962176 }
  0xbc   : > { %6588 = dma.done.wait (%p8248_p4), [#allocation9], 5120   ;;  %p8249_p3 = pmov %p8248_p4 }
  0xbe   : > { %6590 = vsyncadd (%p8249_p3), [#allocation9], 4294962176  ;;  %p8250_p0 = pmov %p8249_p3 }
  0xc0   : > { %6592 = dma.done.wait (%p8250_p0), [#allocation12], 4096   ;;  %p8251_p5 = pmov %p8250_p0 }
  0xc1   : > { %v6629_v0 = vmov 0.0   ;;  %v6984_v1 = vld [vmem:[%s6964_s23] sm:$0xff]  ;;  %v6987_v2 = vld [vmem:[%s6964_s23 + $0x8] sm:$0xff]  ;;  %v8223_v26 = vmov 0   ;;  %vm6631_vm0 = vmmov 0   ;;  %s6632_s11 = smov 112  }
  0xc2   : > { %6594 = vsyncadd (%p8251_p5), [#allocation12], 4294963200  ;;  %5863 = vmatprep.subr.bf16.mxu1 %v6629_v0  ;;  %564 = vadd.xlane.f32.xlu0 %v6984_v1  ;;  %v571_v3 = vmul.f32 %v6984_v1, %v6984_v1  ;;  %v6155_v4 = vld [vmem:[#allocation7 + $0x4] ss:$12 sps:$4 sm:$0xff]   ;;  %v572_v5 = vmul.f32 %v6987_v2, %v6987_v2  ;;  %v6157_v6 = vld [vmem:[#allocation7] ss:$12 sps:$4 sm:$0xff]  }
  0xc3   : > { %768 = vmatprep.subr.bf16.mxu0 %v6155_v4  ;;  %v6158_v7 = vld [vmem:[#allocation7 + $0x8] ss:$12 sps:$4 sm:$0xff]   ;;  %v6161_v9 = vld [vmem:[#allocation7 + $0x18] ss:$12 sps:$4 sm:$0xff]   ;;  %v6162_v10 = vld [vmem:[#allocation7 + $0x20] ss:$12 sps:$4 sm:$0xff]   ;;  %800 = vmatprep.mubr.bf16.mxu0 %v8223_v26  ;;  %v901_v4 = vlaneseq }
  0xc4   : > { %573 = vadd.xlane.f32.xlu1 %v571_v3  ;;  %769 = vmatpush1.bf16.msra.mxu0 %v6157_v6  ;;  %v6159_v8 = vld [vmem:[#allocation7 + $0x1c] ss:$12 sps:$4 sm:$0xff]   ;;  %v6163_v11 = vld [vmem:[#allocation7 + $0x34] ss:$12 sps:$4 sm:$0xff]   ;;  %v6166_v13 = vld [vmem:[#allocation7 + $0x38] ss:$12 sps:$4 sm:$0xff]  }
  0xc5   : > { %5864 = vmatpush3.bf16.msra.mxu1 %v6158_v7  ;;  %770 = vmatprep.subr.bf16.mxu0 %v6159_v8  ;;  %v6165_v12 = vld [vmem:[#allocation7 + $0x30] ss:$12 sps:$4 sm:$0xff]   ;;  %v6167_v14 = vld [vmem:[#allocation7 + $0x4c] ss:$12 sps:$4 sm:$0xff]   ;;  %v6169_v15 = vld [vmem:[#allocation7 + $0x48] ss:$12 sps:$4 sm:$0xff]  }
  0xc6   : > { %566 = vadd.xlane.f32.xlu0 %v6987_v2  ;;  %5865 = vmatprep.subr.bf16.mxu1 %v6629_v0  ;;  %v6170_v16 = vld [vmem:[#allocation7 + $0x50] ss:$12 sps:$4 sm:$0xff]   ;;  %v6173_v18 = vld [vmem:[#allocation7 + $0x60] ss:$12 sps:$4 sm:$0xff]   ;;  %v6174_v19 = vld [vmem:[#allocation7 + $0x68] ss:$12 sps:$4 sm:$0xff]  }
  0xc7   : > { %v6171_v17 = vld [vmem:[#allocation7 + $0x64] ss:$12 sps:$4 sm:$0xff]   ;;  %v6175_v20 = vld [vmem:[#allocation7 + $0x7c] ss:$12 sps:$4 sm:$0xff]   ;;  %v6178_v22 = vld [vmem:[#allocation7 + $0x80] ss:$12 sps:$4 sm:$0xff]   ;;  %5879 = vmatprep.mubr.msk.bf16.mxu1 %vm6631_vm0, %v6629_v0  ;;  %6118 = vset.pattern.permute.xlu0 %v8223_v26 }
  0xc8   : > { %575 = vadd.xlane.f32.xlu1 %v572_v5  ;;  %771 = vmatpush1.bf16.msra.mxu0 %v6161_v9  ;;  %v6177_v21 = vld [vmem:[#allocation7 + $0x78] ss:$12 sps:$4 sm:$0xff]   ;;  %v6179_v23 = vld [vmem:[#allocation7 + $0x94] ss:$12 sps:$4 sm:$0xff]   ;;  %v6181_v24 = vld [vmem:[#allocation7 + $0x90] ss:$12 sps:$4 sm:$0xff]  }
  0xc9   : > { %5866 = vmatpush3.bf16.msra.mxu1 %v6162_v10  ;;  %772 = vmatprep.subr.bf16.mxu0 %v6163_v11  ;;  %v6182_v25 = vld [vmem:[#allocation7 + $0x98] ss:$12 sps:$4 sm:$0xff]   ;;  %v6185_v28 = vld [vmem:[#allocation7 + $0xa8] ss:$12 sps:$4 sm:$0xff]   ;;  %v6186_v29 = vld [vmem:[#allocation7 + $0xb0] ss:$12 sps:$4 sm:$0xff]  }
  0xca   : > { %5867 = vmatprep.subr.bf16.mxu1 %v6629_v0  ;;  %v6183_v27 = vld [vmem:[#allocation7 + $0xac] ss:$12 sps:$4 sm:$0xff]   ;;  %6119 = vset.pattern.permute.xlu1 %v8223_v26  ;;  %v5564_v44 = vld [vmem:[%s8203_s3] ss:$0 sm:$0xff]  ;;  %s8226_s25 = smov 96   ;;  %s6634_s13 = smov 80  }
  0xcb   : > { %v5565_v52 = vld [vmem:[%s8204_s4] ss:$0 sm:$0xff]  ;;  %s6635_s27 = smov 64   ;;  %s6636_s17 = smov 48   ;;  %v6640_v7 = vmov 1934713408  }
  0xcc   : > { %773 = vmatpush1.bf16.msra.mxu0 %v6165_v12  ;;  %s6637_s8 = smov 32   ;;  %s6638_s20 = smov 16   ;;  %v963_v8 = vunpack.c.l.s4 %v6640_v7  ;;  %v7080_v10 = vshrl.u32 %v901_v4, 7  ;;  %vm2640_vm1 = vcmask 130048   ;;  %vm4339_vm2 = vcmask 261120  }
  0xcd   : > { %5868 = vmatpush3.bf16.msra.mxu1 %v6166_v13  ;;  %774 = vmatprep.subr.bf16.mxu0 %v6167_v14  ;;  %vm4342_vm3 = vcmask 392192   ;;  %vm4345_vm4 = vcmask 523264   ;;  %vm4348_vm5 = vcmask 654336   ;;  %vm4351_vm6 = vcmask 785408   ;;  %s8258_s24 = sld [smem:[#allocation21_spill]]  ;;  %s5768_s14 = sshll.u32 %s6740_s19, 8 }
  0xce   : > { %5869 = vmatprep.subr.bf16.mxu1 %v6629_v0  ;;  %v964_v13 = vunpack.c.0.s8 %v963_v8  ;;  %vm4354_vm7 = vcmask 916480   ;;  %s8262_s22 = sld [smem:[#allocation24_spill]]  ;;  %p8263_p7 = scmp.ne.s32.totalorder %s8240_s26, 0 }
  0xcf   : > { %s6641_s19 = smov [#allocation13]  }
  0xd0   : > { %775 = vmatpush1.bf16.msra.mxu0 %v6169_v15 }
  0xd1   : > { %5870 = vmatpush3.bf16.msra.mxu1 %v6170_v16  ;;  %776 = vmatprep.subr.bf16.mxu0 %v6171_v17 }
  0xd2   : > { %5871 = vmatprep.subr.bf16.mxu1 %v6629_v0 }
  0xd4   : > { %777 = vmatpush1.bf16.msra.mxu0 %v6173_v18 }
  0xd5   : > { %5872 = vmatpush3.bf16.msra.mxu1 %v6174_v19  ;;  %778 = vmatprep.subr.bf16.mxu0 %v6175_v20 }
  0xd6   : > { %5873 = vmatprep.subr.bf16.mxu1 %v6629_v0 }
  0xd8   : > { %779 = vmatpush1.bf16.msra.mxu0 %v6177_v21  ;;  %v7088_v21 = vsub.s32 %v964_v13, %v7080_v10 }
  0xd9   : > { %5874 = vmatpush3.bf16.msra.mxu1 %v6178_v22  ;;  %780 = vmatprep.subr.bf16.mxu0 %v6179_v23 }
  0xda   : > { %5875 = vmatprep.subr.bf16.mxu1 %v6629_v0 }
  0xdc   : > { %781 = vmatpush1.bf16.msra.mxu0 %v6181_v24 }
  0xdd   : > { %5876 = vmatpush3.bf16.msra.mxu1 %v6182_v25  ;;  %782 = vmatprep.subr.bf16.mxu0 %v6183_v27 }
  0xde   : > { %5877 = vmatprep.subr.bf16.mxu1 %v6629_v0 }
  0xe0   : > { %783 = vmatpush1.bf16.msra.mxu0 %v6185_v28 }
  0xe1   : > { %5878 = vmatpush3.bf16.msra.mxu1 %v6186_v29  ;;  %5907 = vmatprep.subr.bf16.mxu0 %v6629_v0 }
  0xe2   : > { %5883 = vmatprep.subr.bf16.mxu1 %v6629_v0 }
 0x14f   : > { %v565_v30 = vpop.xlane.xlu0 %564 }
 0x150   : > { %v569_v31 = vmul.f32 0.0078125, %v565_v30 }
 0x151   : > { %v574_v32 = vpop.xlane.xlu1 %573 }
 0x152   : > { %v579_v33 = vmul.f32 %v569_v31, %v569_v31  ;;  %v577_v34 = vmul.f32 0.0078125, %v574_v32  ;;  %v587_v47 = vsub.f32 %v6984_v1, %v569_v31 }
 0x153   : > { %v567_v35 = vpop.xlane.xlu0 %566 }
 0x154   : > { %v581_v36 = vsub.f32 %v577_v34, %v579_v33  ;;  %v570_v37 = vmul.f32 0.0078125, %v567_v35 }
 0x155   : > { %v576_v38 = vpop.xlane.xlu1 %575 }
 0x156   : > { %v583_v39 = vadd.f32 1e-05, %v581_v36  ;;  %v580_v40 = vmul.f32 %v570_v37, %v570_v37  ;;  %v578_v41 = vmul.f32 0.0078125, %v576_v38  ;;  %v588_v49 = vsub.f32 %v6987_v2, %v570_v37 }
 0x157   : > { %v6639_v2 = vmov 1983009808  }
 0x158   : > { %6275 = vrsqrt.f32 %v583_v39  ;;  %v582_v42 = vsub.f32 %v578_v41, %v580_v40  ;;  %v899_v3 = vunpack.c.l.s4 %v6639_v2 }
 0x15a   : > { %v584_v43 = vadd.f32 1e-05, %v582_v42  ;;  %v900_v9 = vunpack.c.0.s8 %v899_v3 }
 0x15c   : > { %6277 = vrsqrt.f32 %v584_v43  ;;  %v7085_v14 = vsub.s32 %v900_v9, %v7080_v10 }
 0x162   : > { %v6276_v45 = vpop.eup %6275 }
 0x163   : > { %v595_v46 = vmul.f32 %v6276_v45, %v5564_v44 }
 0x165   : > { %v597_v51 = vmul.f32 %v595_v46, %v587_v47 }
 0x166   : > { %v6278_v48 = vpop.eup %6277 }
 0x167   : > { %v596_v50 = vmul.f32 %v6278_v48, %v5564_v44  ;;  %v605_v54 = vadd.f32 %v5565_v52, %v597_v51 }
 0x169   : > { %v598_v53 = vmul.f32 %v596_v50, %v588_v49 }
 0x16b   : > { %v606_v55 = vadd.f32 %v5565_v52, %v598_v53 }
 0x16d   : > { %v607_v56 = vpack.c.bf16 %v606_v55, %v605_v54 }
 0x16f   : > { %801 = vmatmul.mubr.bf16.vlgmr.msra.gmra.mrb[0].mxu0 %v607_v56  ;;  %5880 = vmatmul.mubr.bf16.vlgmr.msra.gmra.mrb[0].mxu1 %v607_v56 }
 0x170   : > { %5885 = vmatprep.mubr.msk.bf16.mxu1 %vm6631_vm0, %v6629_v0  ;;  %5909 = vmatprep.mubr.msk.bf16.mxu0 %vm6631_vm0, %v6629_v0 }
 0x242   : > { %v7021_v57 = vpop.f32.mrb[0].mxu0  ;;  %v7023_v58 = vpop.f32.mrb[0].mxu1 }
 0x243   : > { %v5881_v59 = vpop.f32.mrb[1].mxu1  ;;  %854 = vrot.lane.b32.xlu0 %v7021_v57, %s6632_s11  ;;  %v804_v60 = vpop.f32.mrb[1].mxu0 }
 0x244   : > { %v7027_v61 = vpop.f32.mrb[2].mxu1  ;;  %1456 = vrot.lane.b32.xlu1 %v804_v60, %s8226_s25  ;;  %v7030_v62 = vpop.f32.mrb[2].mxu0 }
 0x245   : > { %v7032_v63 = vpop.f32.mrb[3].mxu0  ;;  %v5882_v1 = vpop.f32.mrb[3].mxu1 }
 0x247   : > { %1450 = vrot.lane.b32.xlu0 %v804_v60, %s6632_s11 }
 0x248   : > { %856 = vrot.lane.b32.xlu1 %v7030_v62, %s6632_s11 }
 0x24b   : > { %1462 = vrot.lane.b32.xlu0 %v804_v60, %s6634_s13 }
 0x24c   : > { %1452 = vrot.lane.b32.xlu1 %v7032_v63, %s6632_s11 }
 0x24f   : > { %860 = vrot.lane.b32.xlu0 %v7021_v57, %s8226_s25 }
 0x250   : > { %1458 = vrot.lane.b32.xlu1 %v7032_v63, %s8226_s25 }
 0x253   : > { %866 = vrot.lane.b32.xlu0 %v7021_v57, %s6634_s13 }
 0x254   : > { %1464 = vrot.lane.b32.xlu1 %v7032_v63, %s6634_s13 }
 0x257   : > { %1468 = vrot.lane.b32.xlu0 %v804_v60, %s6635_s27 }
 0x258   : > { %862 = vrot.lane.b32.xlu1 %v7030_v62, %s8226_s25 }
 0x25b   : > { %1474 = vrot.lane.b32.xlu0 %v804_v60, %s6636_s17 }
 0x25c   : > { %868 = vrot.lane.b32.xlu1 %v7030_v62, %s6634_s13 }
 0x25f   : > { %1480 = vrot.lane.b32.xlu0 %v804_v60, %s6637_s8 }
 0x260   : > { %874 = vrot.lane.b32.xlu1 %v7030_v62, %s6635_s27 }
 0x263   : > { %1486 = vrot.lane.b32.xlu0 %v804_v60, %s6638_s20 }
 0x264   : > { %880 = vrot.lane.b32.xlu1 %v7030_v62, %s6636_s17 }
 0x267   : > { %872 = vrot.lane.b32.xlu0 %v7021_v57, %s6635_s27 }
 0x268   : > { %1470 = vrot.lane.b32.xlu1 %v7032_v63, %s6635_s27 }
 0x26b   : > { %878 = vrot.lane.b32.xlu0 %v7021_v57, %s6636_s17 }
 0x26c   : > { %1476 = vrot.lane.b32.xlu1 %v7032_v63, %s6636_s17 }
 0x26f   : > { %884 = vrot.lane.b32.xlu0 %v7021_v57, %s6637_s8 }
 0x270   : > { %1482 = vrot.lane.b32.xlu1 %v7032_v63, %s6637_s8 }
 0x273   : > { %890 = vrot.lane.b32.xlu0 %v7021_v57, %s6638_s20 }
 0x274   : > { %1488 = vrot.lane.b32.xlu1 %v7032_v63, %s6638_s20 }
 0x278   : > { %886 = vrot.lane.b32.xlu1 %v7030_v62, %s6637_s8 }
 0x27c   : > { %892 = vrot.lane.b32.xlu1 %v7030_v62, %s6638_s20 }
 0x2b5   : > { %v855_v5 = vpop.permute.xlu0 %854 }
 0x2b6   : > { %v1457_v6 = vpop.permute.xlu1 %1456 }
 0x2b7   : > { %v1492_v15 = vcombine.low %v804_v60, %v1457_v6  ;;  %v1493_v16 = vcombine.high %v804_v60, %v1457_v6 }
 0x2b9   : > { %v1451_v11 = vpop.permute.xlu0 %1450  ;;  %v1500_v22 = vrot.slane %v1492_v15, %v7085_v14  ;;  %v1507_v23 = vrot.slane %v1493_v16, %v7085_v14 }
 0x2ba   : > { %v7082_v12 = vpop.permute.xlu1 %856 }
 0x2bd   : > { %v1463_v17 = vpop.permute.xlu0 %1462 }
 0x2be   : > { %v1508_v18 = vcombine.low %v1451_v11, %v1463_v17  ;;  %v1509_v19 = vcombine.high %v1451_v11, %v1463_v17  ;;  %v1453_v20 = vpop.permute.xlu1 %1452 }
 0x2c0   : > { %v1516_v24 = vrot.slane %v1508_v18, %v7085_v14  ;;  %v1523_v25 = vrot.slane %v1509_v19, %v7085_v14 }
 0x2c1   : > { %v861_v27 = vpop.permute.xlu0 %860 }
 0x2c2   : > { %v1556_v28 = vcombine.low %v1500_v22, %v1516_v24  ;;  %v1557_v29 = vcombine.high %v1500_v22, %v1516_v24  ;;  %v1572_v30 = vcombine.low %v1507_v23, %v1523_v25  ;;  %v1573_v31 = vcombine.high %v1507_v23, %v1523_v25  ;;  %v1459_v32 = vpop.permute.xlu1 %1458 }
 0x2c3   : > { %v896_v33 = vcombine.low %v7021_v57, %v861_v27  ;;  %v897_v34 = vcombine.high %v7021_v57, %v861_v27  ;;  %v1628_v35 = vcombine.low %v7032_v63, %v1459_v32  ;;  %v1629_v36 = vcombine.high %v7032_v63, %v1459_v32 }
 0x2c4   : > { %v1564_v37 = vrot.slane %v1556_v28, %v7088_v21  ;;  %v1571_v38 = vrot.slane %v1557_v29, %v7088_v21  ;;  %v1580_v39 = vrot.slane %v1572_v30, %v7088_v21  ;;  %v1587_v40 = vrot.slane %v1573_v31, %v7088_v21 }
 0x2c5   : > { %v867_v41 = vpop.permute.xlu0 %866  ;;  %v904_v51 = vrot.slane %v896_v33, %v7085_v14  ;;  %v911_v52 = vrot.slane %v897_v34, %v7085_v14  ;;  %v1636_v53 = vrot.slane %v1628_v35, %v7085_v14  ;;  %v1643_v54 = vrot.slane %v1629_v36, %v7085_v14 }
 0x2c6   : > { %v5606_v42 = vcombine.low %v1564_v37, %v1571_v38  ;;  %v5608_v43 = vcombine.high %v1564_v37, %v1571_v38  ;;  %v5610_v44 = vcombine.low %v1580_v39, %v1587_v40  ;;  %v5612_v45 = vcombine.high %v1580_v39, %v1587_v40  ;;  %v1465_v46 = vpop.permute.xlu1 %1464 }
 0x2c7   : > { %v912_v47 = vcombine.low %v855_v5, %v867_v41  ;;  %v913_v48 = vcombine.high %v855_v5, %v867_v41  ;;  %v1644_v49 = vcombine.low %v1453_v20, %v1465_v46  ;;  %v1645_v50 = vcombine.high %v1453_v20, %v1465_v46 }
 0x2c8   : > { %v7113_v63 = vrot.slane %v5606_v42, %v7085_v14  ;;  %v7116_v1 = vrot.slane %v5608_v43, %v7085_v14  ;;  %v7119_v2 = vrot.slane %v5610_v44, %v7085_v14  ;;  %v7122_v3 = vrot.slane %v5612_v45, %v7085_v14 }
 0x2c9   : > { %v920_v55 = vrot.slane %v912_v47, %v7085_v14  ;;  %v927_v56 = vrot.slane %v913_v48, %v7085_v14  ;;  %v1652_v57 = vrot.slane %v1644_v49, %v7085_v14  ;;  %v1659_v59 = vrot.slane %v1645_v50, %v7085_v14  ;;  %v7110_v60 = vpop.permute.xlu0 %1468 }
 0x2ca   : > { %v863_v4 = vpop.permute.xlu1 %862  ;;  %v1828_v38 = vcombine.low %v7113_v63, %v7116_v1  ;;  %v1860_v39 = vcombine.low %v7119_v2, %v7122_v3 }
 0x2cb   : > { %v960_v5 = vcombine.low %v904_v51, %v920_v55  ;;  %v961_v6 = vcombine.high %v904_v51, %v920_v55  ;;  %v976_v7 = vcombine.low %v911_v52, %v927_v56  ;;  %v977_v8 = vcombine.high %v911_v52, %v927_v56 }
 0x2cc   : > { %v1692_v9 = vcombine.low %v1636_v53, %v1652_v57  ;;  %v1693_v11 = vcombine.high %v1636_v53, %v1652_v57  ;;  %v1708_v13 = vcombine.low %v1643_v54, %v1659_v59  ;;  %v1709_v15 = vcombine.high %v1643_v54, %v1659_v59 }
 0x2cd   : > { %v968_v16 = vrot.slane %v960_v5, %v7088_v21  ;;  %v975_v17 = vrot.slane %v961_v6, %v7088_v21  ;;  %v984_v18 = vrot.slane %v976_v7, %v7088_v21  ;;  %v991_v19 = vrot.slane %v977_v8, %v7088_v21  ;;  %v1475_v20 = vpop.permute.xlu0 %1474 }
 0x2ce   : > { %v7129_v22 = vrot.slane %v1692_v9, %v7088_v21  ;;  %v7132_v23 = vrot.slane %v1693_v11, %v7088_v21  ;;  %v7135_v24 = vrot.slane %v1708_v13, %v7088_v21  ;;  %v7138_v25 = vrot.slane %v1709_v15, %v7088_v21  ;;  %v869_v27 = vpop.permute.xlu1 %868 }
 0x2cf   : > { %v5590_v28 = vcombine.low %v968_v16, %v975_v17  ;;  %v5592_v29 = vcombine.high %v968_v16, %v975_v17  ;;  %v5594_v30 = vcombine.low %v984_v18, %v991_v19  ;;  %v5596_v31 = vcombine.high %v984_v18, %v991_v19 }
 0x2d0   : > { %v5614_v42 = vcombine.low %v7129_v22, %v7132_v23  ;;  %v5616_v43 = vcombine.high %v7129_v22, %v7132_v23  ;;  %v5618_v44 = vcombine.low %v7135_v24, %v7138_v25  ;;  %v5620_v45 = vcombine.high %v7135_v24, %v7138_v25 }
 0x2d1   : > { %v7141_v32 = vrot.slane %v5590_v28, %v7085_v14  ;;  %v7144_v33 = vrot.slane %v5592_v29, %v7085_v14  ;;  %v7147_v34 = vrot.slane %v5594_v30, %v7085_v14  ;;  %v7150_v35 = vrot.slane %v5596_v31, %v7085_v14  ;;  %v1481_v36 = vpop.permute.xlu0 %1480 }
 0x2d2   : > { %v7152_v37 = vpop.permute.xlu1 %874  ;;  %v1032_v46 = vcombine.low %v7030_v62, %v863_v4  ;;  %v1033_v47 = vcombine.high %v7030_v62, %v863_v4  ;;  %v1048_v48 = vcombine.low %v7082_v12, %v869_v27  ;;  %v1049_v49 = vcombine.high %v7082_v12, %v869_v27 }
 0x2d3   : > { %v1232_v50 = vcombine.low %v7141_v32, %v7144_v33  ;;  %v1233_v51 = vcombine.high %v7141_v32, %v7144_v33  ;;  %v1264_v52 = vcombine.low %v7147_v34, %v7150_v35  ;;  %v1265_v53 = vcombine.high %v7147_v34, %v7150_v35 }
 0x2d4   : > { %v1040_v55 = vrot.slane %v1032_v46, %v7085_v14  ;;  %v1047_v62 = vrot.slane %v1033_v47, %v7085_v14  ;;  %v1056_v56 = vrot.slane %v1048_v48, %v7085_v14  ;;  %v1063_v12 = vrot.slane %v1049_v49, %v7085_v14 }
 0x2d5   : > { %v1487_v54 = vpop.permute.xlu0 %1486  ;;  %v1524_v59 = vcombine.low %v7110_v60, %v1481_v36  ;;  %v1525_v4 = vcombine.high %v7110_v60, %v1481_v36 }
 0x2d6   : > { %v7186_v57 = vpop.permute.xlu1 %880  ;;  %v1540_v5 = vcombine.low %v1475_v20, %v1487_v54  ;;  %v1541_v6 = vcombine.high %v1475_v20, %v1487_v54  ;;  %v1096_v7 = vcombine.low %v1040_v55, %v1056_v56  ;;  %v1097_v8 = vcombine.high %v1040_v55, %v1056_v56 }
 0x2d7   : > { %v1112_v9 = vcombine.low %v1047_v62, %v1063_v12  ;;  %v1113_v11 = vcombine.high %v1047_v62, %v1063_v12  ;;  %v1532_v13 = vrot.slane %v1524_v59, %v7085_v14  ;;  %v1539_v15 = vrot.slane %v1525_v4, %v7085_v14 }
 0x2d8   : > { %v1548_v16 = vrot.slane %v1540_v5, %v7085_v14  ;;  %v1555_v17 = vrot.slane %v1541_v6, %v7085_v14  ;;  %v1104_v19 = vrot.slane %v1096_v7, %v7088_v21  ;;  %v1111_v60 = vrot.slane %v1097_v8, %v7088_v21 }
 0x2d9   : > { %v7194_v18 = vpop.permute.xlu0 %872  ;;  %v1120_v20 = vrot.slane %v1112_v9, %v7088_v21  ;;  %v1127_v22 = vrot.slane %v1113_v11, %v7088_v21  ;;  %v7227_v62 = vrot.slane %v5614_v42, %v7085_v14  ;;  %v7230_v56 = vrot.slane %v5616_v43, %v7085_v14 }
 0x2da   : > { %v7200_v23 = vpop.permute.xlu1 %1470  ;;  %v1588_v24 = vcombine.low %v1532_v13, %v1548_v16  ;;  %v1589_v25 = vcombine.high %v1532_v13, %v1548_v16  ;;  %v1604_v27 = vcombine.low %v1539_v15, %v1555_v17  ;;  %v1605_v28 = vcombine.high %v1539_v15, %v1555_v17 }
 0x2db   : > { %v5598_v29 = vcombine.low %v1104_v19, %v1111_v60  ;;  %v5600_v30 = vcombine.high %v1104_v19, %v1111_v60  ;;  %v5602_v31 = vcombine.low %v1120_v20, %v1127_v22  ;;  %v5604_v32 = vcombine.high %v1120_v20, %v1127_v22 }
 0x2dc   : > { %v7203_v33 = vrot.slane %v1588_v24, %v7088_v21  ;;  %v7206_v34 = vrot.slane %v1589_v25, %v7088_v21  ;;  %v7209_v35 = vrot.slane %v1604_v27, %v7088_v21  ;;  %v7212_v36 = vrot.slane %v1605_v28, %v7088_v21 }
 0x2dd   : > { %v879_v46 = vpop.permute.xlu0 %878  ;;  %v7215_v47 = vrot.slane %v5598_v29, %v7085_v14  ;;  %v7218_v48 = vrot.slane %v5600_v30, %v7085_v14  ;;  %v7221_v49 = vrot.slane %v5602_v31, %v7085_v14  ;;  %v7224_v54 = vrot.slane %v5604_v32, %v7085_v14 }
 0x2de   : > { %v1477_v55 = vpop.permute.xlu1 %1476  ;;  %v7233_v12 = vrot.slane %v5618_v44, %v7085_v14  ;;  %v7236_v59 = vrot.slane %v5620_v45, %v7085_v14  ;;  %v7239_v4 = vrot.slane %v1232_v50, %v7088_v21  ;;  %v5607_v42 = vcombine.low %v7203_v33, %v7206_v34 }
 0x2df   : > { %v1368_v5 = vcombine.low %v7215_v47, %v7218_v48  ;;  %v1400_v6 = vcombine.low %v7221_v49, %v7224_v54  ;;  %v7248_v43 = vrot.slane %v1233_v51, %v7088_v21  ;;  %v7251_v44 = vrot.slane %v1264_v52, %v7088_v21 }
 0x2e0   : > { %v7254_v45 = vrot.slane %v1265_v53, %v7088_v21  ;;  %v5609_v50 = vcombine.high %v7203_v33, %v7206_v34  ;;  %v5611_v51 = vcombine.low %v7209_v35, %v7212_v36  ;;  %v5613_v52 = vcombine.high %v7209_v35, %v7212_v36 }
 0x2e1   : > { %v885_v7 = vpop.permute.xlu0 %884  ;;  %v7259_v8 = vrot.slane %v1368_v5, %v7088_v21  ;;  %v7262_v9 = vrot.slane %v1400_v6, %v7088_v21  ;;  %v1836_v53 = vrot.slane %v1828_v38, %v7088_v21  ;;  %v1868_v13 = vrot.slane %v1860_v39, %v7088_v21 }
 0x2e2   : > { %v1483_v11 = vpop.permute.xlu1 %1482  ;;  %v1964_v15 = vcombine.low %v7227_v62, %v7230_v56  ;;  %v1996_v16 = vcombine.low %v7233_v12, %v7236_v59  ;;  %v1369_v17 = vcombine.high %v7215_v47, %v7218_v48  ;;  %v1401_v19 = vcombine.high %v7221_v49, %v7224_v54 }
 0x2e3   : > { %v7285_v60 = vrot.slane %v5607_v42, %v7085_v14  ;;  %v928_v38 = vcombine.low %v7194_v18, %v885_v7  ;;  %v929_v22 = vcombine.high %v7194_v18, %v885_v7  ;;  %v1660_v24 = vcombine.low %v7200_v23, %v1483_v11 }
 0x2e4   : > { %v1972_v20 = vrot.slane %v1964_v15, %v7088_v21  ;;  %v2004_v39 = vrot.slane %v1996_v16, %v7088_v21  ;;  %v1892_v27 = vcombine.low %v1836_v53, %v1868_v13  ;;  %v1661_v29 = vcombine.high %v7200_v23, %v1483_v11 }
 0x2e5   : > { %v891_v25 = vpop.permute.xlu0 %890  ;;  %v936_v28 = vrot.slane %v928_v38, %v7085_v14  ;;  %v1296_v30 = vcombine.low %v7239_v4, %v7251_v44  ;;  %v1432_v33 = vcombine.low %v7259_v8, %v7262_v9  ;;  %v1893_v34 = vcombine.high %v1836_v53, %v1868_v13 }
 0x2e6   : > { %v1489_v31 = vpop.permute.xlu1 %1488  ;;  %v2028_v32 = vcombine.low %v1972_v20, %v2004_v39  ;;  %v2029_v5 = vcombine.high %v1972_v20, %v2004_v39  ;;  %v944_v6 = vcombine.low %v879_v46, %v891_v25  ;;  %v945_v18 = vcombine.high %v879_v46, %v891_v25 }
 0x2e7   : > { %v1676_v42 = vcombine.low %v1477_v55, %v1489_v31  ;;  %v1677_v7 = vcombine.high %v1477_v55, %v1489_v31  ;;  %v943_v16 = vrot.slane %v929_v22, %v7085_v14  ;;  %v1440_v38 = vpack.c.bf16 %v1432_v33, %v1296_v30 }
 0x2e8   : > { %v2036_v15 = vpack.c.bf16 %v2028_v32, %v1892_v27  ;;  %v2037_v26 = vpack.c.bf16 %v2029_v5, %v1893_v34  ;;  %v952_v23 = vrot.slane %v944_v6, %v7085_v14  ;;  %v959_v11 = vrot.slane %v945_v18, %v7085_v14 }
 0x2e9   : > { %v1684_v41 = vrot.slane %v1676_v42, %v7085_v14  ;;  %v1691_v40 = vrot.slane %v1677_v7, %v7085_v14  ;;  %v7304_v53 = vrot.slane %v5609_v50, %v7085_v14  ;;  %v1668_v55 = vrot.slane %v1660_v24, %v7085_v14 }
 0x2ea   : > { %v2645_v46 = vsel %vm2640_vm1, %v2036_v15, 0  ;;  %v1675_v13 = vrot.slane %v1661_v29, %v7085_v14  ;;  %v992_v20 = vcombine.low %v936_v28, %v952_v23  ;;  %v993_v39 = vcombine.high %v936_v28, %v952_v23  ;;  %v887_v18 = vpop.permute.xlu1 %886 }
 0x2eb   : > { %5884 = vmatpush3.bf16.xpose.msra.mxu1 %v2645_v46  ;;  %v1008_v22 = vcombine.low %v943_v16, %v959_v11  ;;  %v1009_v25 = vcombine.high %v943_v16, %v959_v11  ;;  %v1724_v27 = vcombine.low %v1668_v55, %v1684_v41  ;;  %v1725_v30 = vcombine.high %v1668_v55, %v1684_v41 }
 0x2ec   : > { %5889 = vmatprep.subr.bf16.mxu1 %v6629_v0  ;;  %v1740_v31 = vcombine.low %v1675_v13, %v1691_v40  ;;  %v1741_v32 = vcombine.high %v1675_v13, %v1691_v40  ;;  %v1000_v50 = vrot.slane %v992_v20, %v7088_v21  ;;  %v1007_v33 = vrot.slane %v993_v39, %v7088_v21 }
 0x2ed   : > { %v1016_v34 = vrot.slane %v1008_v22, %v7088_v21  ;;  %v1023_v24 = vrot.slane %v1009_v25, %v7088_v21  ;;  %v1732_v29 = vrot.slane %v1724_v27, %v7088_v21  ;;  %v1739_v28 = vrot.slane %v1725_v30, %v7088_v21 }
 0x2ee   : > { %v1748_v5 = vrot.slane %v1740_v31, %v7088_v21  ;;  %v1755_v6 = vrot.slane %v1741_v32, %v7088_v21  ;;  %v5591_v41 = vcombine.low %v1000_v50, %v1007_v33  ;;  %v5593_v42 = vcombine.high %v1000_v50, %v1007_v33 }
 0x2ef   : > { %v5595_v40 = vcombine.low %v1016_v34, %v1023_v24  ;;  %v5597_v7 = vcombine.high %v1016_v34, %v1023_v24  ;;  %v7322_v15 = vrot.slane %v5611_v51, %v7085_v14  ;;  %v7328_v16 = vrot.slane %v5613_v52, %v7085_v14 }
 0x2f0   : > { %v5615_v23 = vcombine.low %v1732_v29, %v1739_v28  ;;  %v5617_v11 = vcombine.high %v1732_v29, %v1739_v28  ;;  %v5619_v46 = vcombine.low %v1748_v5, %v1755_v6  ;;  %v5621_v55 = vcombine.high %v1748_v5, %v1755_v6 }
 0x2f1   : > { %v1064_v13 = vcombine.low %v7152_v37, %v887_v18  ;;  %v1065_v20 = vcombine.high %v7152_v37, %v887_v18  ;;  %v1383_v51 = vrot.slane %v1369_v17, %v7088_v21  ;;  %v1415_v35 = vrot.slane %v1401_v19, %v7088_v21 }
 0x2f2   : > { %5886 = vmatmul.mubr.msk.bf16.vlgmr.msra.gmra.mrb[4].mxu1 %vm2640_vm1, %v1440_v38  ;;  %v2692_v36 = vsel %vm2640_vm1, %v2037_v26, 0  ;;  %v1297_v52 = vcombine.high %v7239_v4, %v7251_v44  ;;  %v7345_v37 = vrot.slane %v5591_v41, %v7085_v14  ;;  %v7348_v39 = vrot.slane %v5593_v42, %v7085_v14  ;;  %v893_v4 = vpop.permute.xlu1 %892 }
 0x2f3   : > { %5890 = vmatpush3.bf16.xpose.msra.mxu1 %v2692_v36  ;;  %v7351_v47 = vrot.slane %v5595_v40, %v7085_v14  ;;  %v7354_v48 = vrot.slane %v5597_v7, %v7085_v14  ;;  %v7357_v49 = vrot.slane %v5615_v23, %v7085_v14  ;;  %v7360_v26 = vrot.slane %v5617_v11, %v7085_v14 }
 0x2f4   : > { %5891 = vmatprep.mubr.msk.bf16.mxu1 %vm6631_vm0, %v6629_v0  ;;  %v1433_v54 = vcombine.high %v7259_v8, %v7262_v9  ;;  %5895 = vmatprep.subr.bf16.mxu1 %v6629_v0  ;;  %v7368_v44 = vrot.slane %v5619_v46, %v7085_v14  ;;  %v7371_v17 = vrot.slane %v5621_v55, %v7085_v14 }
 0x2f5   : > { %v1072_v19 = vrot.slane %v1064_v13, %v7085_v14  ;;  %v1079_v38 = vrot.slane %v1065_v20, %v7085_v14  ;;  %v8252_v25 = vcombine.high %v7113_v63, %v7116_v1  ;;  %v8253_v8 = vcombine.high %v7119_v2, %v7122_v3 }
 0x2f6   : > { %v1441_v22 = vpack.c.bf16 %v1433_v54, %v1297_v52  ;;  %v1965_v30 = vcombine.high %v7227_v62, %v7230_v56  ;;  %v1997_v31 = vcombine.high %v7233_v12, %v7236_v59  ;;  %v1080_v32 = vcombine.low %v7186_v57, %v893_v4 }
 0x2f7   : > { %v1843_v27 = vrot.slane %v8252_v25, %v7088_v21  ;;  %v1875_v9 = vrot.slane %v8253_v8, %v7088_v21  ;;  %v1081_v50 = vcombine.high %v7186_v57, %v893_v4  ;;  %v1298_v33 = vcombine.low %v7248_v43, %v7254_v45 }
 0x2f8   : > { %v1979_v1 = vrot.slane %v1965_v30, %v7088_v21  ;;  %v1434_v34 = vcombine.low %v1383_v51, %v1415_v35  ;;  %v2011_v2 = vrot.slane %v1997_v31, %v7088_v21  ;;  %v1088_v3 = vrot.slane %v1080_v32, %v7085_v14 }
 0x2f9   : > { %v1894_v63 = vcombine.low %v1843_v27, %v1875_v9  ;;  %v1895_v24 = vcombine.high %v1843_v27, %v1875_v9  ;;  %v1095_v62 = vrot.slane %v1081_v50, %v7085_v14  ;;  %v1299_v56 = vcombine.high %v7248_v43, %v7254_v45 }
 0x2fa   : > { %5892 = vmatmul.mubr.msk.bf16.vlgmr.msra.gmra.mrb[8].mxu1 %vm2640_vm1, %v1441_v22  ;;  %v1442_v57 = vpack.c.bf16 %v1434_v34, %v1298_v33  ;;  %v1435_v12 = vcombine.high %v1383_v51, %v1415_v35  ;;  %v1844_v59 = vcombine.low %v7285_v60, %v7304_v53  ;;  %v1876_v29 = vcombine.low %v7322_v15, %v7328_v16 }
 0x2fb   : > { %v2030_v28 = vcombine.low %v1979_v1, %v2011_v2  ;;  %v1128_v5 = vcombine.low %v1072_v19, %v1088_v3  ;;  %v1129_v6 = vcombine.high %v1072_v19, %v1088_v3  ;;  %v1144_v18 = vcombine.low %v1079_v38, %v1095_v62  ;;  %5897 = vmatprep.mubr.msk.bf16.mxu1 %vm6631_vm0, %v6629_v0 }
 0x2fc   : > { %v1145_v41 = vcombine.high %v1079_v38, %v1095_v62  ;;  %v2031_v42 = vcombine.high %v1979_v1, %v2011_v2  ;;  %v7404_v43 = vpack.c.bf16 %v1435_v12, %v1299_v56  ;;  %v1852_v45 = vrot.slane %v1844_v59, %v7088_v21 }
 0x2fd   : > { %v2038_v40 = vpack.c.bf16 %v2030_v28, %v1894_v63  ;;  %v1136_v7 = vrot.slane %v1128_v5, %v7088_v21  ;;  %v1143_v23 = vrot.slane %v1129_v6, %v7088_v21  ;;  %v1152_v11 = vrot.slane %v1144_v18, %v7088_v21 }
 0x2fe   : > { %v1159_v46 = vrot.slane %v1145_v41, %v7088_v21  ;;  %v2039_v55 = vpack.c.bf16 %v2031_v42, %v1895_v24  ;;  %v1884_v13 = vrot.slane %v1876_v29, %v7088_v21  ;;  %v1980_v20 = vcombine.low %v7357_v49, %v7360_v26 }
 0x2ff   : > { %v2739_v51 = vsel %vm2640_vm1, %v2038_v40, 0  ;;  %v5599_v35 = vcombine.low %v1136_v7, %v1143_v23  ;;  %v5601_v36 = vcombine.high %v1136_v7, %v1143_v23  ;;  %v2012_v52 = vcombine.low %v7368_v44, %v7371_v17 }
 0x300   : > { %v1248_v54 = vcombine.low %v7345_v37, %v7348_v39  ;;  %v1280_v4 = vcombine.low %v7351_v47, %v7354_v48  ;;  %5896 = vmatpush3.bf16.xpose.msra.mxu1 %v2739_v51  ;;  %v5603_v19 = vcombine.low %v1152_v11, %v1159_v46  ;;  %v5605_v38 = vcombine.high %v1152_v11, %v1159_v46 }
 0x301   : > { %v1319_v22 = vrot.slane %v5599_v35, %v7085_v14  ;;  %v1335_v25 = vrot.slane %v5601_v36, %v7085_v14  ;;  %5901 = vmatprep.subr.bf16.mxu1 %v6629_v0  ;;  %v1988_v27 = vrot.slane %v1980_v20, %v7088_v21  ;;  %v2020_v8 = vrot.slane %v2012_v52, %v7088_v21 }
 0x302   : > { %v1351_v9 = vrot.slane %v5603_v19, %v7085_v14  ;;  %v1367_v30 = vrot.slane %v5605_v38, %v7085_v14  ;;  %v1896_v32 = vcombine.low %v1852_v45, %v1884_v13  ;;  %v1845_v1 = vcombine.high %v7285_v60, %v7304_v53 }
 0x303   : > { %v1384_v31 = vcombine.low %v1319_v22, %v1335_v25  ;;  %v2032_v50 = vcombine.low %v1988_v27, %v2020_v8  ;;  %v2033_v63 = vcombine.high %v1988_v27, %v2020_v8  ;;  %v1256_v34 = vrot.slane %v1248_v54, %v7088_v21 }
 0x304   : > { %v1416_v33 = vcombine.low %v1351_v9, %v1367_v30  ;;  %v1288_v24 = vrot.slane %v1280_v4, %v7088_v21  ;;  %v2786_v56 = vsel %vm2640_vm1, %v2039_v55, 0  ;;  %v1897_v12 = vcombine.high %v1852_v45, %v1884_v13 }
 0x305   : > { %v1392_v2 = vrot.slane %v1384_v31, %v7088_v21  ;;  %v2040_v3 = vpack.c.bf16 %v2032_v50, %v1896_v32  ;;  %v1877_v59 = vcombine.high %v7322_v15, %v7328_v16  ;;  %v1859_v60 = vrot.slane %v1845_v1, %v7088_v21 }
 0x306   : > { %v1424_v62 = vrot.slane %v1416_v33, %v7088_v21  ;;  %v1981_v53 = vcombine.high %v7357_v49, %v7360_v26  ;;  %v2013_v28 = vcombine.high %v7368_v44, %v7371_v17  ;;  %v2041_v5 = vpack.c.bf16 %v2033_v63, %v1897_v12 }
 0x307   : > { %5898 = vmatmul.mubr.msk.bf16.vlgmr.msra.gmra.mrb[12].mxu1 %vm2640_vm1, %v1442_v57  ;;  %v2833_v29 = vsel %vm2640_vm1, %v2040_v3, 0  ;;  %v1891_v6 = vrot.slane %v1877_v59, %v7088_v21  ;;  %v1300_v18 = vcombine.low %v1256_v34, %v1288_v24  ;;  %v1385_v49 = vcombine.high %v1319_v22, %v1335_v25 }
 0x308   : > { %5902 = vmatpush3.bf16.xpose.msra.mxu1 %v2786_v56  ;;  %5903 = vmatprep.mubr.msk.bf16.mxu1 %vm6631_vm0, %v6629_v0  ;;  %v1436_v15 = vcombine.low %v1392_v2, %v1424_v62  ;;  %v1995_v16 = vrot.slane %v1981_v53, %v7088_v21  ;;  %v2027_v57 = vrot.slane %v2013_v28, %v7088_v21  ;;  %v2880_v45 = vsel %vm2640_vm1, %v2041_v5, 0 }
 0x309   : > { %5913 = vmatprep.subr.bf16.mxu1 %v6629_v0  ;;  %5908 = vmatpush3.bf16.xpose.msra.mxu0 %v2833_v29  ;;  %v1417_v26 = vcombine.high %v1351_v9, %v1367_v30  ;;  %v1898_v44 = vcombine.low %v1859_v60, %v1891_v6  ;;  %v1249_v41 = vcombine.high %v7345_v37, %v7348_v39 }
 0x30a   : > { %5919 = vmatprep.subr.bf16.mxu0 %v6629_v0  ;;  %v2034_v17 = vcombine.low %v1995_v16, %v2027_v57  ;;  %v1281_v42 = vcombine.high %v7351_v47, %v7354_v48  ;;  %v1444_v40 = vpack.c.bf16 %v1436_v15, %v1300_v18  ;;  %v1399_v23 = vrot.slane %v1385_v49, %v7088_v21 }
 0x30b   : > { %v1431_v11 = vrot.slane %v1417_v26, %v7088_v21  ;;  %v1437_v46 = vcombine.high %v1392_v2, %v1424_v62  ;;  %v2035_v55 = vcombine.high %v1995_v16, %v2027_v57  ;;  %v1263_v13 = vrot.slane %v1249_v41, %v7088_v21 }
 0x30c   : > { %v2042_v7 = vpack.c.bf16 %v2034_v17, %v1898_v44  ;;  %v1295_v37 = vrot.slane %v1281_v42, %v7088_v21  ;;  %v1301_v39 = vcombine.high %v1256_v34, %v1288_v24  ;;  %v1899_v48 = vcombine.high %v1859_v60, %v1891_v6 }
 0x30d   : > { %v1438_v51 = vcombine.low %v1399_v23, %v1431_v11  ;;  %v1439_v54 = vcombine.high %v1399_v23, %v1431_v11 }
 0x30e   : > { %v2927_v47 = vsel %vm2640_vm1, %v2042_v7, 0  ;;  %v2043_v20 = vpack.c.bf16 %v2035_v55, %v1899_v48  ;;  %v1302_v35 = vcombine.low %v1263_v13, %v1295_v37  ;;  %v1303_v4 = vcombine.high %v1263_v13, %v1295_v37 }
 0x30f   : > { %5904 = vmatmul.mubr.msk.bf16.vlgmr.msra.gmra.mrb[16].mxu1 %vm2640_vm1, %v7404_v43  ;;  %v1445_v43 = vpack.c.bf16 %v1437_v46, %v1301_v39 }
 0x310   : > { %5914 = vmatpush3.bf16.xpose.msra.mxu1 %v2880_v45  ;;  %5915 = vmatprep.mubr.msk.bf16.mxu1 %vm6631_vm0, %v6629_v0  ;;  %v2974_v36 = vsel %vm2640_vm1, %v2043_v20, 0  ;;  %v1446_v52 = vpack.c.bf16 %v1438_v51, %v1302_v35  ;;  %v1447_v19 = vpack.c.bf16 %v1439_v54, %v1303_v4 }
 0x311   : > { %5910 = vmatmul.mubr.msk.bf16.vlgmr.msra.gmra.mrb[4].mxu0 %vm2640_vm1, %v1444_v40  ;;  %5925 = vmatprep.subr.bf16.mxu1 %v6629_v0 }
 0x312   : > { %5920 = vmatpush3.bf16.xpose.msra.mxu0 %v2927_v47  ;;  %5921 = vmatprep.mubr.msk.bf16.mxu0 %vm6631_vm0, %v6629_v0 }
 0x313   : > { %5931 = vmatprep.subr.bf16.mxu0 %v6629_v0 }
 0x317   : > { %5916 = vmatmul.mubr.msk.bf16.vlgmr.msra.gmra.mrb[20].mxu1 %vm2640_vm1, %v1445_v43 }
 0x318   : > { %5926 = vmatpush3.bf16.xpose.msra.mxu1 %v2974_v36  ;;  %5927 = vmatprep.mubr.msk.bf16.mxu1 %vm6631_vm0, %v6629_v0 }
 0x319   : > { %5922 = vmatmul.mubr.msk.bf16.vlgmr.msra.gmra.mrb[8].mxu0 %vm2640_vm1, %v1446_v52  ;;  %5937 = vmatprep.subr.bf16.mxu1 %v6629_v0 }
 0x31a   : > { %5933 = vmatprep.mubr.msk.bf16.mxu0 %vm6631_vm0, %v6629_v0 }
 0x31f   : > { %5928 = vmatmul.mubr.msk.bf16.vlgmr.msra.gmra.mrb[24].mxu1 %vm2640_vm1, %v1447_v19 }
 0x320   : > { %5939 = vmatprep.mubr.msk.bf16.mxu1 %vm6631_vm0, %v6629_v0 }
 0x3c5   : > { %v7481_v38 = vpop.f32.mrb[4].mxu1 }
 0x3c6   : > { %v5887_v22 = vpop.f32.mrb[5].mxu1  ;;  %v3017_v25 = vsel %vm2640_vm1, %v7481_v38, -inf }
 0x3c7   : > { %3018 = vmax.xlane.f32.xlu0 %v3017_v25  ;;  %v7485_v27 = vpop.f32.mrb[6].mxu1 }
 0x3c8   : > { %v5888_v8 = vpop.f32.mrb[7].mxu1  ;;  %v3020_v9 = vsel %vm2640_vm1, %v7485_v27, -inf }
 0x3c9   : > { %3021 = vmax.xlane.f32.xlu1 %v3020_v9 }
 0x3cd   : > { %v7489_v30 = vpop.f32.mrb[8].mxu1 }
 0x3ce   : > { %v5893_v31 = vpop.f32.mrb[9].mxu1  ;;  %v3023_v32 = vsel %vm2640_vm1, %v7489_v30, -inf }
 0x3cf   : > { %3024 = vmax.xlane.f32.xlu0 %v3023_v32  ;;  %v7493_v50 = vpop.f32.mrb[10].mxu1 }
 0x3d0   : > { %v5894_v33 = vpop.f32.mrb[11].mxu1  ;;  %v3026_v63 = vsel %vm2640_vm1, %v7493_v50, -inf }
 0x3d3   : > { %3027 = vmax.xlane.f32.xlu0 %v3026_v63 }
 0x3da   : > { %v7497_v1 = vpop.f32.mrb[12].mxu1 }
 0x3db   : > { %v5899_v34 = vpop.f32.mrb[13].mxu1  ;;  %v3029_v24 = vsel %vm2640_vm1, %v7497_v1, -inf }
 0x3dc   : > { %3030 = vmax.xlane.f32.xlu0 %v3029_v24  ;;  %v7501_v2 = vpop.f32.mrb[14].mxu1 }
 0x3dd   : > { %v5900_v3 = vpop.f32.mrb[15].mxu1  ;;  %v3032_v62 = vsel %vm2640_vm1, %v7501_v2, -inf }
 0x3de   : > { %3033 = vmax.xlane.f32.xlu1 %v3032_v62 }
 0x3e2   : > { %v7505_v56 = vpop.f32.mrb[16].mxu1 }
 0x3e3   : > { %v5905_v12 = vpop.f32.mrb[17].mxu1  ;;  %v3035_v59 = vsel %vm2640_vm1, %v7505_v56, -inf }
 0x3e4   : > { %3036 = vmax.xlane.f32.xlu0 %v3035_v59  ;;  %v7509_v29 = vpop.f32.mrb[18].mxu1  ;;  %v7511_v60 = vpop.f32.mrb[4].mxu0 }
 0x3e5   : > { %v5906_v53 = vpop.f32.mrb[19].mxu1  ;;  %v3038_v28 = vsel %vm2640_vm1, %v7509_v29, -inf  ;;  %v5911_v5 = vpop.f32.mrb[5].mxu0  ;;  %v3041_v6 = vsel %vm2640_vm1, %v7511_v60, -inf }
 0x3e6   : > { %3039 = vmax.xlane.f32.xlu1 %v3038_v28  ;;  %v7517_v15 = vpop.f32.mrb[6].mxu0 }
 0x3e7   : > { %v5912_v16 = vpop.f32.mrb[7].mxu0  ;;  %v3044_v57 = vsel %vm2640_vm1, %v7517_v15, -inf }
 0x3e8   : > { %3042 = vmax.xlane.f32.xlu0 %v3041_v6 }
 0x3ea   : > { %v7521_v18 = vpop.f32.mrb[20].mxu1  ;;  %3045 = vmax.xlane.f32.xlu1 %v3044_v57 }
 0x3eb   : > { %v5917_v49 = vpop.f32.mrb[21].mxu1  ;;  %v3047_v26 = vsel %vm2640_vm1, %v7521_v18, -inf }
 0x3ec   : > { %v7525_v44 = vpop.f32.mrb[22].mxu1  ;;  %3048 = vmax.xlane.f32.xlu0 %v3047_v26  ;;  %v7527_v17 = vpop.f32.mrb[8].mxu0 }
 0x3ed   : > { %v5918_v41 = vpop.f32.mrb[23].mxu1  ;;  %v3050_v42 = vsel %vm2640_vm1, %v7525_v44, -inf  ;;  %v5923_v45 = vpop.f32.mrb[9].mxu0  ;;  %v3053_v40 = vsel %vm2640_vm1, %v7527_v17, -inf }
 0x3ee   : > { %3051 = vmax.xlane.f32.xlu1 %v3050_v42  ;;  %v7533_v7 = vpop.f32.mrb[10].mxu0 }
 0x3ef   : > { %v5924_v23 = vpop.f32.mrb[11].mxu0  ;;  %v3056_v11 = vsel %vm2640_vm1, %v7533_v7, -inf }
 0x3f0   : > { %3054 = vmax.xlane.f32.xlu0 %v3053_v40 }
 0x3f2   : > { %v7537_v46 = vpop.f32.mrb[24].mxu1  ;;  %3057 = vmax.xlane.f32.xlu1 %v3056_v11 }
 0x3f3   : > { %v5929_v55 = vpop.f32.mrb[25].mxu1  ;;  %v3059_v13 = vsel %vm2640_vm1, %v7537_v46, -inf }
 0x3f4   : > { %v7541_v37 = vpop.f32.mrb[26].mxu1  ;;  %3060 = vmax.xlane.f32.xlu0 %v3059_v13 }
 0x3f5   : > { %v5930_v39 = vpop.f32.mrb[27].mxu1  ;;  %v3062_v47 = vsel %vm2640_vm1, %v7541_v37, -inf }
 0x3f6   : > { %3063 = vmax.xlane.f32.xlu1 %v3062_v47 }
 0x454   : > { %v3019_v48 = vpop.xlane.xlu0 %3018 }
 0x455   : > { %v3065_v43 = vsub.f32 %v7481_v38, %v3019_v48 }
 0x456   : > { %v3022_v20 = vpop.xlane.xlu1 %3021 }
 0x457   : > { %v3081_v51 = vmul.f32 1.442695, %v3065_v43  ;;  %v3066_v35 = vsub.f32 %v7485_v27, %v3022_v20 }
 0x459   : > { %6279 = vpow2.f32 %v3081_v51  ;;  %v3083_v36 = vmul.f32 1.442695, %v3066_v35 }
 0x45b   : > { %6281 = vpow2.f32 %v3083_v36 }
 0x45c   : > { %v3025_v52 = vpop.xlane.xlu0 %3024 }
 0x45d   : > { %v3067_v54 = vsub.f32 %v7489_v30, %v3025_v52 }
 0x45f   : > { %v3085_v4 = vmul.f32 1.442695, %v3067_v54 }
 0x460   : > { %v3028_v19 = vpop.xlane.xlu0 %3027 }
 0x461   : > { %6283 = vpow2.f32 %v3085_v4  ;;  %v3068_v22 = vsub.f32 %v7493_v50, %v3028_v19 }
 0x463   : > { %v7549_v25 = vpop.eup %6279  ;;  %v3087_v8 = vmul.f32 1.442695, %v3068_v22 }
 0x464   : > { %v3113_v38 = vsel %vm2640_vm1, %v7549_v25, 0.0 }
 0x465   : > { %v7553_v9 = vpop.eup %6281  ;;  %6285 = vpow2.f32 %v3087_v8  ;;  %3114 = vadd.xlane.f32.xlu0 %v3113_v38 }
 0x466   : > { %v3116_v27 = vsel %vm2640_vm1, %v7553_v9, 0.0 }
 0x467   : > { %3117 = vadd.xlane.f32.xlu1 %v3116_v27 }
 0x469   : > { %v3031_v30 = vpop.xlane.xlu0 %3030 }
 0x46a   : > { %v3069_v31 = vsub.f32 %v7497_v1, %v3031_v30 }
 0x46b   : > { %v7558_v32 = vpop.eup %6283  ;;  %v3034_v50 = vpop.xlane.xlu1 %3033 }
 0x46c   : > { %v3089_v33 = vmul.f32 1.442695, %v3069_v31  ;;  %v3070_v63 = vsub.f32 %v7501_v2, %v3034_v50  ;;  %v3119_v34 = vsel %vm2640_vm1, %v7558_v32, 0.0 }
 0x46d   : > { %3120 = vadd.xlane.f32.xlu0 %v3119_v34 }
 0x46e   : > { %6287 = vpow2.f32 %v3089_v33  ;;  %v3091_v24 = vmul.f32 1.442695, %v3070_v63 }
 0x46f   : > { %v7563_v3 = vpop.eup %6285 }
 0x470   : > { %6289 = vpow2.f32 %v3091_v24  ;;  %v3122_v62 = vsel %vm2640_vm1, %v7563_v3, 0.0 }
 0x471   : > { %v3037_v12 = vpop.xlane.xlu0 %3036  ;;  %3123 = vadd.xlane.f32.xlu1 %v3122_v62 }
 0x472   : > { %v3071_v1 = vsub.f32 %v7505_v56, %v3037_v12 }
 0x473   : > { %v3040_v59 = vpop.xlane.xlu1 %3039 }
 0x474   : > { %v3093_v53 = vmul.f32 1.442695, %v3071_v1  ;;  %v3072_v2 = vsub.f32 %v7509_v29, %v3040_v59 }
 0x475   : > { %v3043_v28 = vpop.xlane.xlu0 %3042 }
 0x476   : > { %6291 = vpow2.f32 %v3093_v53  ;;  %v3073_v5 = vsub.f32 %v7511_v60, %v3043_v28  ;;  %v3095_v26 = vmul.f32 1.442695, %v3072_v2  ;;  %v5646_v53 = vld [vmem:[%s8202_s2] ss:$0 sm:$0xff] }
 0x477   : > { %v3046_v6 = vpop.xlane.xlu1 %3045 }
 0x478   : > { %v7570_v16 = vpop.eup %6287  ;;  %v3097_v57 = vmul.f32 1.442695, %v3073_v5  ;;  %v3074_v49 = vsub.f32 %v7517_v15, %v3046_v6 }
 0x479   : > { %v3125_v41 = vsel %vm2640_vm1, %v7570_v16, 0.0  ;;  %v3049_v42 = vpop.xlane.xlu0 %3048 }
 0x47a   : > { %v7575_v56 = vpop.eup %6289  ;;  %6293 = vpow2.f32 %v3097_v57  ;;  %3126 = vadd.xlane.f32.xlu0 %v3125_v41  ;;  %v3099_v29 = vmul.f32 1.442695, %v3074_v49  ;;  %v3075_v45 = vsub.f32 %v7521_v18, %v3049_v42  ;;  %v5647_v49 = vld [vmem:[%s8202_s2 + $0x1] ss:$0 sm:$0xff] }
 0x47b   : > { %v3128_v60 = vsel %vm2640_vm1, %v7575_v56, 0.0  ;;  %v3052_v40 = vpop.xlane.xlu1 %3051 }
 0x47c   : > { %6295 = vpow2.f32 %v3099_v29  ;;  %3129 = vadd.xlane.f32.xlu1 %v3128_v60  ;;  %v3101_v23 = vmul.f32 1.442695, %v3075_v45  ;;  %v3076_v15 = vsub.f32 %v7525_v44, %v3052_v40 }
 0x47d   : > { %6297 = vpow2.f32 %v3095_v26  ;;  %v3055_v11 = vpop.xlane.xlu0 %3054 }
 0x47e   : > { %6299 = vpow2.f32 %v3101_v23  ;;  %v3077_v55 = vsub.f32 %v7527_v17, %v3055_v11  ;;  %v3103_v48 = vmul.f32 1.442695, %v3076_v15  ;;  %v5648_v23 = vld [vmem:[%s8202_s2 + $0x2] ss:$0 sm:$0xff] }
 0x47f   : > { %v3058_v13 = vpop.xlane.xlu1 %3057 }
 0x480   : > { %v7582_v39 = vpop.eup %6291  ;;  %v3105_v47 = vmul.f32 1.442695, %v3077_v55  ;;  %v3078_v18 = vsub.f32 %v7533_v7, %v3058_v13 }
 0x481   : > { %v3131_v43 = vsel %vm2640_vm1, %v7582_v39, 0.0  ;;  %v3061_v20 = vpop.xlane.xlu0 %3060 }
 0x482   : > { %6301 = vpow2.f32 %v3105_v47  ;;  %3132 = vadd.xlane.f32.xlu0 %v3131_v43  ;;  %v3107_v51 = vmul.f32 1.442695, %v3078_v18  ;;  %v3079_v44 = vsub.f32 %v7537_v46, %v3061_v20  ;;  %v5649_v43 = vld [vmem:[%s8202_s2 + $0x3] ss:$0 sm:$0xff] }
 0x483   : > { %v3064_v63 = vpop.xlane.xlu1 %3063 }
 0x484   : > { %v7588_v35 = vpop.eup %6293  ;;  %6303 = vpow2.f32 %v3107_v51  ;;  %v3109_v17 = vmul.f32 1.442695, %v3079_v44  ;;  %v3080_v34 = vsub.f32 %v7541_v37, %v3064_v63 }
 0x485   : > { %6305 = vpow2.f32 %v3103_v48  ;;  %v3137_v36 = vsel %vm2640_vm1, %v7588_v35, 0.0 }
 0x486   : > { %v7592_v52 = vpop.eup %6295  ;;  %6307 = vpow2.f32 %v3109_v17  ;;  %3138 = vadd.xlane.f32.xlu0 %v3137_v36  ;;  %v3111_v24 = vmul.f32 1.442695, %v3080_v34  ;;  %v5650_v36 = vld [vmem:[%s8202_s2 + $0x4] ss:$0 sm:$0xff] }
 0x487   : > { %v7594_v7 = vpop.eup %6297  ;;  %v3140_v54 = vsel %vm2640_vm1, %v7592_v52, 0.0 }
 0x488   : > { %v7598_v4 = vpop.eup %6299  ;;  %3141 = vadd.xlane.f32.xlu1 %v3140_v54  ;;  %v3134_v19 = vsel %vm2640_vm1, %v7594_v7, 0.0  ;;  %6309 = vpow2.f32 %v3111_v24  ;;  %v5652_v24 = vld [vmem:[%s8202_s2 + $0x6] ss:$0 sm:$0xff] }
 0x489   : > { %v3143_v46 = vsel %vm2640_vm1, %v7598_v4, 0.0 }
 0x48a   : > { %3144 = vadd.xlane.f32.xlu0 %v3143_v46 }
 0x48c   : > { %v7604_v22 = vpop.eup %6301  ;;  %3135 = vadd.xlane.f32.xlu1 %v3134_v19 }
 0x48d   : > { %v3149_v8 = vsel %vm2640_vm1, %v7604_v22, 0.0 }
 0x48e   : > { %v7608_v38 = vpop.eup %6303  ;;  %3150 = vadd.xlane.f32.xlu0 %v3149_v8 }
 0x48f   : > { %v7610_v27 = vpop.eup %6305  ;;  %v3152_v30 = vsel %vm2640_vm1, %v7608_v38, 0.0 }
 0x490   : > { %v7614_v31 = vpop.eup %6307  ;;  %3153 = vadd.xlane.f32.xlu1 %v3152_v30  ;;  %v3146_v33 = vsel %vm2640_vm1, %v7610_v27, 0.0  ;;  %v5651_v30 = vld [vmem:[%s8202_s2 + $0x5] ss:$0 sm:$0xff] }
 0x491   : > { %v3155_v50 = vsel %vm2640_vm1, %v7614_v31, 0.0 }
 0x492   : > { %3156 = vadd.xlane.f32.xlu0 %v3155_v50  ;;  %v7637_v62 = vpop.eup %6309 }
 0x493   : > { %v3158_v12 = vsel %vm2640_vm1, %v7637_v62, 0.0 }
 0x494   : > { %3147 = vadd.xlane.f32.xlu1 %v3146_v33 }
 0x4a5   : > { %2048 = vrot.lane.b32.xlu1 %v7027_v61, %s6632_s11 }
 0x4a8   : > { %2046 = vrot.lane.b32.xlu0 %v7023_v58, %s6632_s11 }
 0x4a9   : > { %2052 = vrot.lane.b32.xlu1 %v7023_v58, %s8226_s25 }
 0x4ac   : > { %2058 = vrot.lane.b32.xlu0 %v7023_v58, %s6634_s13 }
 0x4b0   : > { %2066 = vrot.lane.b32.xlu0 %v7027_v61, %s6635_s27 }
 0x4b4   : > { %2072 = vrot.lane.b32.xlu0 %v7027_v61, %s6636_s17 }
 0x4b8   : > { %2078 = vrot.lane.b32.xlu0 %v7027_v61, %s6637_s8 }
 0x4bc   : > { %2084 = vrot.lane.b32.xlu0 %v7027_v61, %s6638_s20 }
 0x4cd   : > { %3159 = vadd.xlane.f32.xlu1 %v3158_v12 }
 0x4de   : > { %2054 = vrot.lane.b32.xlu1 %v7027_v61, %s8226_s25  ;;  %s8155_s25 = scalar_lea.hbm %s8262_s22, %s5768_s14 }
 0x4e2   : > { %2060 = vrot.lane.b32.xlu1 %v7027_v61, %s6634_s13 }
 0x4e6   : > { %2064 = vrot.lane.b32.xlu1 %v7023_v58, %s6635_s27 }
 0x4ea   : > { %2070 = vrot.lane.b32.xlu1 %v7023_v58, %s6636_s17 }
 0x4ee   : > { %2076 = vrot.lane.b32.xlu1 %v7023_v58, %s6637_s8 }
 0x4f2   : > { %2082 = vrot.lane.b32.xlu1 %v7023_v58, %s6638_s20  ;;  %v3115_v37 = vpop.xlane.xlu0 %3114 }
 0x4f3   : > { %6311 = vrcp.f32 %v3115_v37 }
 0x4f4   : > { %v3118_v1 = vpop.xlane.xlu1 %3117 }
 0x4f5   : > { %6313 = vrcp.f32 %v3118_v1 }
 0x4fa   : > { %v3121_v59 = vpop.xlane.xlu0 %3120 }
 0x4fb   : > { %6315 = vrcp.f32 %v3121_v59 }
 0x4fd   : > { %v6312_v2 = vpop.eup %6311 }
 0x4fe   : > { %v3124_v28 = vpop.xlane.xlu1 %3123  ;;  %v3233_v5 = vmul.f32 %v6312_v2, %v5646_v53 }
 0x4ff   : > { %v6314_v6 = vpop.eup %6313  ;;  %6317 = vrcp.f32 %v3124_v28 }
 0x500   : > { %3251 = vperm.xlu0 %6118, %v3233_v5   ;;  %v3234_v57 = vmul.f32 %v6314_v6, %v5646_v53  ;;  %v5653_v53 = vld [vmem:[%s8202_s2 + $0x7] ss:$0 sm:$0xff] }
 0x502   : > { %3256 = vperm.xlu1 %6119, %v3234_v57  }
 0x505   : > { %v6316_v26 = vpop.eup %6315 }
 0x506   : > { %v3235_v41 = vmul.f32 %v6316_v26, %v5647_v49 }
 0x507   : > { %v3127_v42 = vpop.xlane.xlu0 %3126 }
 0x508   : > { %6319 = vrcp.f32 %v3127_v42  ;;  %3261 = vperm.xlu1 %6119, %v3235_v41  }
 0x509   : > { %v6318_v29 = vpop.eup %6317  ;;  %v3130_v45 = vpop.xlane.xlu1 %3129 }
 0x50a   : > { %6321 = vrcp.f32 %v3130_v45  ;;  %v3236_v60 = vmul.f32 %v6318_v29, %v5647_v49 }
 0x50c   : > { %3266 = vperm.xlu0 %6118, %v3236_v60  }
 0x50f   : > { %v3133_v40 = vpop.xlane.xlu0 %3132 }
 0x510   : > { %6323 = vrcp.f32 %v3133_v40 }
 0x512   : > { %v6320_v15 = vpop.eup %6319 }
 0x513   : > { %v3237_v11 = vmul.f32 %v6320_v15, %v5648_v23  ;;  %v3139_v55 = vpop.xlane.xlu0 %3138 }
 0x514   : > { %v6322_v13 = vpop.eup %6321  ;;  %6325 = vrcp.f32 %v3139_v55 }
 0x515   : > { %3271 = vperm.xlu1 %6119, %v3237_v11   ;;  %v3238_v47 = vmul.f32 %v6322_v13, %v5648_v23  ;;  %v3142_v18 = vpop.xlane.xlu1 %3141 }
 0x517   : > { %3276 = vperm.xlu0 %6118, %v3238_v47   ;;  %v3145_v48 = vpop.xlane.xlu0 %3144 }
 0x518   : > { %6327 = vrcp.f32 %v3145_v48 }
 0x519   : > { %v3136_v20 = vpop.xlane.xlu1 %3135 }
 0x51a   : > { %v6324_v51 = vpop.eup %6323  ;;  %6329 = vrcp.f32 %v3136_v20 }
 0x51b   : > { %6331 = vrcp.f32 %v3142_v18  ;;  %v3239_v44 = vmul.f32 %v6324_v51, %v5649_v43  ;;  %v3151_v17 = vpop.xlane.xlu0 %3150 }
 0x51c   : > { %6333 = vrcp.f32 %v3151_v17 }
 0x51d   : > { %3281 = vperm.xlu1 %6119, %v3239_v44   ;;  %v3154_v54 = vpop.xlane.xlu1 %3153 }
 0x51e   : > { %v6326_v46 = vpop.eup %6325 }
 0x51f   : > { %v3157_v19 = vpop.xlane.xlu0 %3156  ;;  %v3241_v8 = vmul.f32 %v6326_v46, %v5650_v36 }
 0x520   : > { %6335 = vrcp.f32 %v3157_v19 }
 0x521   : > { %3291 = vperm.xlu1 %6119, %v3241_v8   ;;  %v3148_v50 = vpop.xlane.xlu1 %3147 }
 0x522   : > { %v6328_v33 = vpop.eup %6327  ;;  %6337 = vrcp.f32 %v3148_v50 }
 0x523   : > { %v3243_v63 = vmul.f32 %v6328_v33, %v5651_v30  ;;  %6339 = vrcp.f32 %v3154_v54  ;;  %v2047_v42 = vpop.permute.xlu0 %2046 }
 0x524   : > { %v6330_v34 = vpop.eup %6329 }
 0x525   : > { %v6332_v12 = vpop.eup %6331  ;;  %3301 = vperm.xlu1 %6119, %v3243_v63   ;;  %v3240_v37 = vmul.f32 %v6330_v34, %v5649_v43  ;;  %v2049_v41 = vpop.permute.xlu1 %2048 }
 0x526   : > { %v6334_v1 = vpop.eup %6333  ;;  %v3242_v2 = vmul.f32 %v6332_v12, %v5650_v36 }
 0x527   : > { %3286 = vperm.xlu0 %6118, %v3240_v37   ;;  %v3245_v59 = vmul.f32 %v6334_v1, %v5652_v24  ;;  %v2059_v45 = vpop.permute.xlu0 %2058 }
 0x528   : > { %v2104_v40 = vcombine.low %v2047_v42, %v2059_v45  ;;  %v2105_v15 = vcombine.high %v2047_v42, %v2059_v45 }
 0x529   : > { %3311 = vperm.xlu1 %6119, %v3245_v59   ;;  %v2053_v29 = vpop.permute.xlu1 %2052 }
 0x52a   : > { %v6336_v28 = vpop.eup %6335  ;;  %v2088_v60 = vcombine.low %v7023_v58, %v2053_v29  ;;  %v2089_v23 = vcombine.high %v7023_v58, %v2053_v29  ;;  %v2112_v55 = vrot.slane %v2104_v40, %v7085_v14  ;;  %v2119_v47 = vrot.slane %v2105_v15, %v7085_v14 }
 0x52b   : > { %3296 = vperm.xlu0 %6118, %v3242_v2   ;;  %v3247_v5 = vmul.f32 %v6336_v28, %v5653_v53  ;;  %v7690_v37 = vpop.permute.xlu0 %2066 }
 0x52c   : > { %v6338_v6 = vpop.eup %6337  ;;  %v2096_v11 = vrot.slane %v2088_v60, %v7085_v14  ;;  %v2103_v13 = vrot.slane %v2089_v23, %v7085_v14 }
 0x52d   : > { %3321 = vperm.xlu1 %6119, %v3247_v5   ;;  %v3244_v57 = vmul.f32 %v6338_v6, %v5651_v30  ;;  %v6340_v49 = vpop.eup %6339 }
 0x52e   : > { %v3246_v26 = vmul.f32 %v6340_v49, %v5652_v24  ;;  %v2152_v18 = vcombine.low %v2096_v11, %v2112_v55  ;;  %v2153_v48 = vcombine.high %v2096_v11, %v2112_v55  ;;  %v2168_v43 = vcombine.low %v2103_v13, %v2119_v47 }
 0x52f   : > { %3306 = vperm.xlu0 %6118, %v3244_v57   ;;  %v2169_v20 = vcombine.high %v2103_v13, %v2119_v47  ;;  %v2073_v11 = vpop.permute.xlu0 %2072 }
 0x530   : > { %v2160_v44 = vrot.slane %v2152_v18, %v7088_v21  ;;  %v2167_v17 = vrot.slane %v2153_v48, %v7088_v21  ;;  %v2176_v58 = vrot.slane %v2168_v43, %v7088_v21 }
 0x531   : > { %v2183_v36 = vrot.slane %v2169_v20, %v7088_v21 }
 0x532   : > { %v5622_v46 = vcombine.low %v2160_v44, %v2167_v17  ;;  %v5624_v30 = vcombine.high %v2160_v44, %v2167_v17 }
 0x533   : > { %3316 = vperm.xlu0 %6118, %v3246_v26   ;;  %v5626_v50 = vcombine.low %v2176_v58, %v2183_v36  ;;  %v5628_v33 = vcombine.high %v2176_v58, %v2183_v36 }
 0x534   : > { %v2368_v12 = vrot.slane %v5622_v46, %v7085_v14 }
 0x535   : > { %v2400_v6 = vrot.slane %v5626_v50, %v7085_v14  ;;  %v2416_v57 = vrot.slane %v5628_v33, %v7085_v14  ;;  %v2079_v50 = vpop.permute.xlu0 %2078 }
 0x537   : > { %v2456_v47 = vcombine.low %v2400_v6, %v2416_v57 }
 0x55a   : > { %v3160_v51 = vpop.xlane.xlu1 %3159 }
 0x55b   : > { %6341 = vrcp.f32 %v3160_v51  ;;  %v2457_v51 = vcombine.high %v2400_v6, %v2416_v57 }
 0x55e   : > { %v2055_v54 = vpop.permute.xlu1 %2054 }
 0x55f   : > { %v2224_v19 = vcombine.low %v7027_v61, %v2055_v54  ;;  %v2225_v8 = vcombine.high %v7027_v61, %v2055_v54  ;;  %v2384_v61 = vrot.slane %v5624_v30, %v7085_v14 }
 0x561   : > { %v2232_v59 = vrot.slane %v2224_v19, %v7085_v14  ;;  %v2239_v2 = vrot.slane %v2225_v8, %v7085_v14  ;;  %v2424_v13 = vcombine.low %v2368_v12, %v2384_v61  ;;  %v2425_v20 = vcombine.high %v2368_v12, %v2384_v61 }
 0x562   : > { %v2061_v63 = vpop.permute.xlu1 %2060  ;;  %v2464_v19 = vrot.slane %v2456_v47, %v7088_v21 }
 0x563   : > { %v2240_v34 = vcombine.low %v2049_v41, %v2061_v63  ;;  %v2241_v24 = vcombine.high %v2049_v41, %v2061_v63  ;;  %v2432_v46 = vrot.slane %v2424_v13, %v7088_v21  ;;  %v2439_v33 = vrot.slane %v2425_v20, %v7088_v21 }
 0x564   : > { %v2471_v63 = vrot.slane %v2457_v51, %v7088_v21  ;;  %v2256_v20 = vcombine.low %v7690_v37, %v2079_v50 }
 0x565   : > { %v6342_v1 = vpop.eup %6341  ;;  %v2248_v28 = vrot.slane %v2240_v34, %v7085_v14  ;;  %v2255_v5 = vrot.slane %v2241_v24, %v7085_v14  ;;  %v2489_v61 = vcombine.high %v2432_v46, %v2464_v19 }
 0x566   : > { %v7699_v49 = vpop.permute.xlu1 %2064  ;;  %v3248_v26 = vmul.f32 %v6342_v1, %v5653_v53 }
 0x567   : > { %v2288_v41 = vcombine.low %v2232_v59, %v2248_v28  ;;  %v2289_v42 = vcombine.high %v2232_v59, %v2248_v28  ;;  %v2304_v29 = vcombine.low %v2239_v2, %v2255_v5  ;;  %v2305_v45 = vcombine.high %v2239_v2, %v2255_v5 }
 0x568   : > { %3326 = vperm.xlu0 %6118, %v3248_v26   ;;  %v2488_v28 = vcombine.low %v2432_v46, %v2464_v19  ;;  %v2490_v26 = vcombine.low %v2439_v33, %v2471_v63 }
 0x569   : > { %v2296_v60 = vrot.slane %v2288_v41, %v7088_v21  ;;  %v2303_v40 = vrot.slane %v2289_v42, %v7088_v21  ;;  %v2312_v23 = vrot.slane %v2304_v29, %v7088_v21  ;;  %v2319_v15 = vrot.slane %v2305_v45, %v7088_v21 }
 0x56a   : > { %v2071_v55 = vpop.permute.xlu1 %2070  ;;  %v2491_v42 = vcombine.high %v2439_v33, %v2471_v63 }
 0x56b   : > { %v5630_v18 = vcombine.low %v2296_v60, %v2303_v40  ;;  %v5632_v48 = vcombine.high %v2296_v60, %v2303_v40  ;;  %v5634_v53 = vcombine.low %v2312_v23, %v2319_v15  ;;  %v5636_v43 = vcombine.high %v2312_v23, %v2319_v15  ;;  %v2085_v40 = vpop.permute.xlu0 %2084 }
 0x56d   : > { %v2504_v44 = vrot.slane %v5630_v18, %v7085_v14  ;;  %v2520_v17 = vrot.slane %v5632_v48, %v7085_v14  ;;  %v2536_v58 = vrot.slane %v5634_v53, %v7085_v14  ;;  %v2552_v36 = vrot.slane %v5636_v43, %v7085_v14 }
 0x56e   : > { %v2077_v54 = vpop.permute.xlu1 %2076  ;;  %v2272_v18 = vcombine.low %v2073_v11, %v2085_v40  ;;  %v2273_v53 = vcombine.high %v2073_v11, %v2085_v40  ;;  %v2264_v11 = vrot.slane %v2256_v20, %v7085_v14 }
 0x56f   : > { %v2560_v8 = vcombine.low %v2504_v44, %v2520_v17  ;;  %v2592_v30 = vcombine.low %v2536_v58, %v2552_v36  ;;  %v2561_v34 = vcombine.high %v2504_v44, %v2520_v17  ;;  %v2593_v24 = vcombine.high %v2536_v58, %v2552_v36 }
 0x570   : > { %v2120_v48 = vcombine.low %v7699_v49, %v2077_v54  ;;  %v2121_v43 = vcombine.high %v7699_v49, %v2077_v54  ;;  %v2257_v44 = vcombine.high %v7690_v37, %v2079_v50  ;;  %v2287_v36 = vrot.slane %v2273_v53, %v7085_v14 }
 0x571   : > { %v2568_v12 = vrot.slane %v2560_v8, %v7088_v21  ;;  %v2600_v1 = vrot.slane %v2592_v30, %v7088_v21  ;;  %v2575_v59 = vrot.slane %v2561_v34, %v7088_v21  ;;  %v2607_v2 = vrot.slane %v2593_v24, %v7088_v21  ;;  %v3345_v34 = vld [vmem:[#allocation5] sm:$0xff]  ;;  %v3346_v24 = vld [vmem:[#allocation5 + $0x8] sm:$0xff] }
 0x572   : > { %v2083_v57 = vpop.permute.xlu1 %2082  ;;  %v2128_v58 = vrot.slane %v2120_v48, %v7085_v14  ;;  %v2135_v46 = vrot.slane %v2121_v43, %v7085_v14  ;;  %v2271_v8 = vrot.slane %v2257_v44, %v7085_v14  ;;  %v3347_v44 = vld [vmem:[#allocation5 + $0x10] sm:$0xff] }
 0x573   : > { %v2624_v5 = vcombine.low %v2568_v12, %v2600_v1  ;;  %v2625_v6 = vcombine.high %v2568_v12, %v2600_v1  ;;  %v2626_v41 = vcombine.low %v2575_v59, %v2607_v2  ;;  %v2627_v29 = vcombine.high %v2575_v59, %v2607_v2 }
 0x574   : > { %v2136_v13 = vcombine.low %v2071_v55, %v2083_v57  ;;  %v2137_v47 = vcombine.high %v2071_v55, %v2083_v57  ;;  %v2280_v55 = vrot.slane %v2272_v18, %v7085_v14  ;;  %v2336_v1 = vcombine.low %v2271_v8, %v2287_v36 }
 0x575   : > { %v2632_v45 = vpack.c.bf16 %v2624_v5, %v2488_v28  ;;  %v2633_v60 = vpack.c.bf16 %v2625_v6, %v2489_v61  ;;  %v2634_v23 = vpack.c.bf16 %v2626_v41, %v2490_v26  ;;  %v7717_v15 = vpack.c.bf16 %v2627_v29, %v2491_v42 }
 0x576   : > { %v2144_v51 = vrot.slane %v2136_v13, %v7085_v14  ;;  %v2151_v17 = vrot.slane %v2137_v47, %v7085_v14  ;;  %v2320_v50 = vcombine.low %v2264_v11, %v2280_v55  ;;  %v2321_v63 = vcombine.high %v2264_v11, %v2280_v55 }
 0x577   : > { %5932 = vmatpush3.bf16.msra.mxu0 %v2632_v45  ;;  %5938 = vmatpush3.bf16.msra.mxu1 %v2633_v60  ;;  %v2337_v59 = vcombine.high %v2271_v8, %v2287_v36  ;;  %v2344_v42 = vrot.slane %v2336_v1, %v7088_v21  ;;  %v3349_v1 = vld [vmem:[#allocation5 + $0x20] sm:$0xff] }
 0x578   : > { %5943 = vmatprep.subr.bf16.mxu0 %v6629_v0  ;;  %5949 = vmatprep.subr.bf16.mxu1 %v6629_v0  ;;  %v2184_v19 = vcombine.low %v2128_v58, %v2144_v51  ;;  %v2185_v49 = vcombine.high %v2128_v58, %v2144_v51  ;;  %v2200_v30 = vcombine.low %v2135_v46, %v2151_v17 }
 0x579   : > { %v2201_v33 = vcombine.high %v2135_v46, %v2151_v17  ;;  %v2335_v41 = vrot.slane %v2321_v63, %v7088_v21  ;;  %v2351_v29 = vrot.slane %v2337_v59, %v7088_v21  ;;  %v3348_v17 = vld [vmem:[#allocation5 + $0x18] sm:$0xff]  ;;  %v3350_v59 = vld [vmem:[#allocation5 + $0x28] sm:$0xff] }
 0x57a   : > { %v2192_v28 = vrot.slane %v2184_v19, %v7088_v21  ;;  %v2199_v5 = vrot.slane %v2185_v49, %v7088_v21  ;;  %v2208_v61 = vrot.slane %v2200_v30, %v7088_v21 }
 0x57b   : > { %v2215_v6 = vrot.slane %v2201_v33, %v7088_v21  ;;  %v5635_v53 = vcombine.low %v2344_v42, %v2351_v29  ;;  %v5637_v43 = vcombine.high %v2344_v42, %v2351_v29 }
 0x57c   : > { %v5625_v40 = vcombine.high %v2192_v28, %v2199_v5 }
 0x57d   : > { %v5627_v13 = vcombine.low %v2208_v61, %v2215_v6  ;;  %v5629_v47 = vcombine.high %v2208_v61, %v2215_v6  ;;  %v2559_v49 = vrot.slane %v5637_v43, %v7085_v14 }
 0x57e   : > { %v2391_v58 = vrot.slane %v5625_v40, %v7085_v14 }
 0x57f   : > { %v3252_v54 = vpop.permute.xlu0 %3251  ;;  %v2407_v36 = vrot.slane %v5627_v13, %v7085_v14 }
 0x580   : > { %v3329_v37 = vmul.f32 %v7549_v25, %v3252_v54  ;;  %v2328_v25 = vrot.slane %v2320_v50, %v7088_v21 }
 0x581   : > { %v3257_v12 = vpop.permute.xlu1 %3256 }
 0x582   : > { %v3330_v2 = vmul.f32 %v7553_v9, %v3257_v12  ;;  %v3361_v57 = vadd.f32 %v3345_v34, %v3329_v37  ;;  %v5623_v9 = vcombine.low %v2192_v28, %v2199_v5  ;;  %v5631_v18 = vcombine.low %v2328_v25, %v2335_v41 }
 0x583   : > { %v5633_v48 = vcombine.high %v2328_v25, %v2335_v41 }
 0x584   : > { %v3362_v26 = vadd.f32 %v3346_v24, %v3330_v2  ;;  %v2375_v51 = vrot.slane %v5623_v9, %v7085_v14  ;;  %v2511_v11 = vrot.slane %v5631_v18, %v7085_v14  ;;  %v3351_v9 = vld [vmem:[#allocation5 + $0x30] sm:$0xff] }
 0x585   : > { %v2527_v19 = vrot.slane %v5633_v48, %v7085_v14 }
 0x586   : > { %v3377_v45 = vpack.c.bf16 %v3362_v26, %v3361_v57  ;;  %v2440_v33 = vcombine.low %v2375_v51, %v2391_v58  ;;  %v2441_v29 = vcombine.high %v2375_v51, %v2391_v58  ;;  %v3354_v58 = vld [vmem:[#allocation5 + $0x48] sm:$0xff] }
 0x587   : > { %v3262_v60 = vpop.permute.xlu1 %3261  ;;  %v2576_v50 = vcombine.low %v2511_v11, %v2527_v19  ;;  %v2577_v13 = vcombine.high %v2511_v11, %v2527_v19 }
 0x588   : > { %5934 = vmatmul.mubr.msk.bf16.vlgmr.msra.gmra.mrb[12].mxu0 %vm2640_vm1, %v3377_v45  ;;  %v3331_v20 = vmul.f32 %v7558_v32, %v3262_v60  ;;  %v2543_v32 = vrot.slane %v5635_v53, %v7085_v14  ;;  %v2448_v34 = vrot.slane %v2440_v33, %v7088_v21  ;;  %v3352_v60 = vld [vmem:[#allocation5 + $0x38] sm:$0xff]  ;;  %v2455_v43 = vrot.slane %v2441_v29, %v7088_v21 }
 0x589   : > { %5944 = vmatpush3.bf16.msra.mxu0 %v2634_v23  ;;  %5945 = vmatprep.mubr.msk.bf16.mxu0 %vm6631_vm0, %v6629_v0  ;;  %v2423_v23 = vrot.slane %v5629_v47, %v7085_v14  ;;  %v2584_v28 = vrot.slane %v2576_v50, %v7088_v21  ;;  %v3356_v33 = vld [vmem:[#allocation5 + $0x58] sm:$0xff] }
 0x58a   : > { %5955 = vmatprep.subr.bf16.mxu0 %v6629_v0  ;;  %v3363_v54 = vadd.f32 %v3347_v44, %v3331_v20  ;;  %v2608_v63 = vcombine.low %v2543_v32, %v2559_v49  ;;  %v2609_v47 = vcombine.high %v2543_v32, %v2559_v49 }
 0x58b   : > { %v3267_v55 = vpop.permute.xlu0 %3266  ;;  %v2472_v37 = vcombine.low %v2407_v36, %v2423_v23  ;;  %v2473_v45 = vcombine.high %v2407_v36, %v2423_v23  ;;  %v2591_v23 = vrot.slane %v2577_v13, %v7088_v21 }
 0x58c   : > { %v3332_v46 = vmul.f32 %v7563_v3, %v3267_v55  ;;  %v2616_v5 = vrot.slane %v2608_v63, %v7088_v21  ;;  %v3353_v55 = vld [vmem:[#allocation5 + $0x40] sm:$0xff] }
 0x58d   : > { %v2480_v24 = vrot.slane %v2472_v37, %v7088_v21  ;;  %v2487_v20 = vrot.slane %v2473_v45, %v7088_v21 }
 0x58e   : > { %v3364_v8 = vadd.f32 %v3348_v17, %v3332_v46  ;;  %v2628_v26 = vcombine.low %v2584_v28, %v2616_v5  ;;  %v2629_v36 = vcombine.high %v2584_v28, %v2616_v5  ;;  %v2623_v46 = vrot.slane %v2609_v47, %v7088_v21 }
 0x58f   : > { %v2492_v61 = vcombine.low %v2448_v34, %v2480_v24  ;;  %v2493_v53 = vcombine.high %v2448_v34, %v2480_v24  ;;  %v2494_v32 = vcombine.low %v2455_v43, %v2487_v20  ;;  %v2495_v34 = vcombine.high %v2455_v43, %v2487_v20 }
 0x590   : > { %v3378_v30 = vpack.c.bf16 %v3364_v8, %v3363_v54  ;;  %v2630_v50 = vcombine.low %v2591_v23, %v2623_v46  ;;  %v2631_v28 = vcombine.high %v2591_v23, %v2623_v46 }
 0x591   : > { %v2636_v41 = vpack.c.bf16 %v2628_v26, %v2492_v61  ;;  %v2637_v19 = vpack.c.bf16 %v2629_v36, %v2493_v53  ;;  %v3359_v26 = vld [vmem:[#allocation5 + $0x70] sm:$0xff] }
 0x592   : > { %5940 = vmatmul.mubr.msk.bf16.vlgmr.msra.gmra.mrb[28].mxu1 %vm2640_vm1, %v3378_v30 }
 0x593   : > { %5950 = vmatpush3.bf16.msra.mxu1 %v7717_v15  ;;  %5951 = vmatprep.mubr.msk.bf16.mxu1 %vm6631_vm0, %v6629_v0 }
 0x594   : > { %v3272_v3 = vpop.permute.xlu1 %3271  ;;  %5961 = vmatprep.subr.bf16.mxu1 %v6629_v0 }
 0x595   : > { %v3333_v12 = vmul.f32 %v7570_v16, %v3272_v3  ;;  %v2638_v3 = vpack.c.bf16 %v2630_v50, %v2494_v32 }
 0x596   : > { %v3277_v2 = vpop.permute.xlu0 %3276 }
 0x597   : > { %v3334_v15 = vmul.f32 %v7575_v56, %v3277_v2  ;;  %v3365_v6 = vadd.f32 %v3349_v1, %v3333_v12  ;;  %v3357_v1 = vld [vmem:[#allocation5 + $0x60] sm:$0xff] }
 0x599   : > { %v3366_v57 = vadd.f32 %v3350_v59, %v3334_v15  ;;  %v3358_v59 = vld [vmem:[#allocation5 + $0x68] sm:$0xff]  ;;  %v2639_v15 = vpack.c.bf16 %v2631_v28, %v2495_v34 }
 0x59b   : > { %v3379_v25 = vpack.c.bf16 %v3366_v57, %v3365_v6 }
 0x59c   : > { %v3282_v42 = vpop.permute.xlu1 %3281 }
 0x59d   : > { %5946 = vmatmul.mubr.msk.bf16.vlgmr.msra.gmra.mrb[16].mxu0 %vm2640_vm1, %v3379_v25  ;;  %v3335_v56 = vmul.f32 %v7582_v39, %v3282_v42  ;;  %v3360_v25 = vld [vmem:[#allocation5 + $0x78] sm:$0xff] }
 0x59e   : > { %5956 = vmatpush3.bf16.msra.mxu0 %v2636_v41  ;;  %5957 = vmatprep.mubr.msk.bf16.mxu0 %vm6631_vm0, %v6629_v0 }
 0x59f   : > { %5967 = vmatprep.subr.bf16.mxu0 %v6629_v0  ;;  %v3367_v44 = vadd.f32 %v3351_v9, %v3335_v56  ;;  %v8254_v56 = vmov 0  }
 0x5a0   : > { %v3292_v16 = vpop.permute.xlu1 %3291 }
 0x5a1   : > { %v3337_v17 = vmul.f32 %v7588_v35, %v3292_v16  ;;  %v3355_v35 = vld [vmem:[#allocation5 + $0x50] sm:$0xff] }
 0x5a3   : > { %v3369_v49 = vadd.f32 %v3353_v55, %v3337_v17 }
 0x5a4   : > { %v3302_v48 = vpop.permute.xlu1 %3301 }
 0x5a5   : > { %v3339_v54 = vmul.f32 %v7598_v4, %v3302_v48 }
 0x5a6   : > { %v3287_v40 = vpop.permute.xlu0 %3286 }
 0x5a7   : > { %v3336_v18 = vmul.f32 %v7594_v7, %v3287_v40  ;;  %v3371_v4 = vadd.f32 %v3355_v35, %v3339_v54 }
 0x5a8   : > { %v3312_v30 = vpop.permute.xlu1 %3311 }
 0x5a9   : > { %v3368_v51 = vadd.f32 %v3352_v60, %v3336_v18  ;;  %v3341_v24 = vmul.f32 %v7604_v22, %v3312_v30 }
 0x5aa   : > { %v3297_v39 = vpop.permute.xlu0 %3296 }
 0x5ab   : > { %v3380_v11 = vpack.c.bf16 %v3368_v51, %v3367_v44  ;;  %v3338_v7 = vmul.f32 %v7592_v52, %v3297_v39  ;;  %v3373_v61 = vadd.f32 %v3357_v1, %v3341_v24 }
 0x5ac   : > { %v3322_v57 = vpop.permute.xlu1 %3321 }
 0x5ad   : > { %v3370_v8 = vadd.f32 %v3354_v58, %v3338_v7  ;;  %5952 = vmatmul.mubr.msk.bf16.vlgmr.msra.gmra.mrb[32].mxu1 %vm2640_vm1, %v3380_v11 }
 0x5ae   : > { %5962 = vmatpush3.bf16.msra.mxu1 %v2637_v19  ;;  %v3307_v37 = vpop.permute.xlu0 %3306  ;;  %5963 = vmatprep.mubr.msk.bf16.mxu1 %vm6631_vm0, %v6629_v0 }
 0x5af   : > { %v3381_v63 = vpack.c.bf16 %v3370_v8, %v3369_v49  ;;  %v3340_v52 = vmul.f32 %v7610_v27, %v3307_v37  ;;  %5973 = vmatprep.subr.bf16.mxu1 %v6629_v0 }
 0x5b1   : > { %v3372_v12 = vadd.f32 %v3356_v33, %v3340_v52  ;;  %5958 = vmatmul.mubr.msk.bf16.vlgmr.msra.gmra.mrb[20].mxu0 %vm2640_vm1, %v3381_v63 }
 0x5b2   : > { %5968 = vmatpush3.bf16.msra.mxu0 %v2638_v3  ;;  %v3317_v2 = vpop.permute.xlu0 %3316  ;;  %5969 = vmatprep.mubr.msk.bf16.mxu0 %vm6631_vm0, %v6629_v0 }
 0x5b3   : > { %v3382_v5 = vpack.c.bf16 %v3372_v12, %v3371_v4  ;;  %v3342_v27 = vmul.f32 %v7608_v38, %v3317_v2  ;;  %5979 = vmatprep.subr.bf16.mxu0 %v6629_v0  ;;  %v3343_v38 = vmul.f32 %v7614_v31, %v3322_v57 }
 0x5b5   : > { %v3374_v6 = vadd.f32 %v3358_v59, %v3342_v27  ;;  %5964 = vmatmul.mubr.msk.bf16.vlgmr.msra.gmra.mrb[36].mxu1 %vm2640_vm1, %v3382_v5  ;;  %v3375_v16 = vadd.f32 %v3359_v26, %v3343_v38 }
 0x5b6   : > { %5974 = vmatpush3.bf16.msra.mxu1 %v2639_v15  ;;  %5975 = vmatprep.mubr.msk.bf16.mxu1 %vm6631_vm0, %v6629_v0 }
 0x5b7   : > { %v3383_v22 = vpack.c.bf16 %v3374_v6, %v3373_v61 }
 0x5b9   : > { %5970 = vmatmul.mubr.msk.bf16.vlgmr.msra.gmra.mrb[24].mxu0 %vm2640_vm1, %v3383_v22 }
 0x5ba   : > { %5995 = vmatprep.mubr.msk.bf16.mxu0 %vm6631_vm0, %v6629_v0 }
 0x5e7   : > { %v3327_v41 = vpop.permute.xlu0 %3326 }
 0x5e8   : > { %v3344_v42 = vmul.f32 %v7637_v62, %v3327_v41 }
 0x5ea   : > { %v3376_v29 = vadd.f32 %v3360_v25, %v3344_v42 }
 0x5ec   : > { %v3384_v45 = vpack.c.bf16 %v3376_v29, %v3375_v16 }
 0x5ee   : > { %5976 = vmatmul.mubr.msk.bf16.vlgmr.msra.gmra.mrb[40].mxu1 %vm2640_vm1, %v3384_v45 }
 0x5ef   : > { %4763 = vmatprep.mubr.bf16.mxu1 %v8254_v56 }
 0x65b   : > { %v3422_v9 = vpop.f32.mrb[12].mxu0 }
 0x65c   : > { %v5935_v60 = vpop.f32.mrb[13].mxu0 }
 0x65d   : > { %v3425_v40 = vpop.f32.mrb[14].mxu0 }
 0x65e   : > { %v5936_v13 = vpop.f32.mrb[15].mxu0 }
 0x665   : > { %v3466_v47 = vpop.f32.mrb[28].mxu1 }
 0x666   : > { %v5941_v18 = vpop.f32.mrb[29].mxu1 }
 0x667   : > { %v3469_v48 = vpop.f32.mrb[30].mxu1 }
 0x668   : > { %v5942_v31 = vpop.f32.mrb[31].mxu1 }
 0x670   : > { %v3510_v53 = vpop.f32.mrb[16].mxu0 }
 0x671   : > { %v3737_v43 = vcombine.low %v3422_v9, %v3510_v53  ;;  %v3738_v20 = vcombine.high %v3422_v9, %v3510_v53  ;;  %v5947_v44 = vpop.f32.mrb[17].mxu0 }
 0x672   : > { %v3513_v62 = vpop.f32.mrb[18].mxu0 }
 0x673   : > { %v3873_v17 = vcombine.low %v3425_v40, %v3513_v62  ;;  %v3874_v51 = vcombine.high %v3425_v40, %v3513_v62  ;;  %v5948_v55 = vpop.f32.mrb[19].mxu0  ;;  %v3745_v46 = vrot.slane %v3737_v43, %v7085_v14  ;;  %v3752_v11 = vrot.slane %v3738_v20, %v7085_v14 }
 0x675   : > { %v3881_v52 = vrot.slane %v3873_v17, %v7085_v14  ;;  %v3888_v3 = vrot.slane %v3874_v51, %v7085_v14 }
 0x680   : > { %v3554_v58 = vpop.f32.mrb[32].mxu1 }
 0x681   : > { %v3753_v39 = vcombine.low %v3466_v47, %v3554_v58  ;;  %v3754_v36 = vcombine.high %v3466_v47, %v3554_v58  ;;  %v5953_v23 = vpop.f32.mrb[33].mxu1 }
 0x682   : > { %v3557_v7 = vpop.f32.mrb[34].mxu1 }
 0x683   : > { %v3761_v19 = vrot.slane %v3753_v39, %v7085_v14  ;;  %v3768_v32 = vrot.slane %v3754_v36, %v7085_v14  ;;  %v3889_v49 = vcombine.low %v3469_v48, %v3557_v7  ;;  %v3890_v54 = vcombine.high %v3469_v48, %v3557_v7  ;;  %v5954_v8 = vpop.f32.mrb[35].mxu1 }
 0x684   : > { %v7806_v35 = vpop.f32.mrb[20].mxu0 }
 0x685   : > { %v3801_v30 = vcombine.low %v3745_v46, %v3761_v19  ;;  %v3802_v33 = vcombine.high %v3745_v46, %v3761_v19  ;;  %v3817_v37 = vcombine.low %v3752_v11, %v3768_v32  ;;  %v3818_v50 = vcombine.high %v3752_v11, %v3768_v32  ;;  %v5959_v63 = vpop.f32.mrb[21].mxu0 }
 0x686   : > { %v3897_v34 = vrot.slane %v3889_v49, %v7085_v14  ;;  %v3904_v4 = vrot.slane %v3890_v54, %v7085_v14  ;;  %v7812_v24 = vpop.f32.mrb[22].mxu0 }
 0x687   : > { %v3809_v12 = vrot.slane %v3801_v30, %v7088_v21  ;;  %v3816_v1 = vrot.slane %v3802_v33, %v7088_v21  ;;  %v3825_v59 = vrot.slane %v3817_v37, %v7088_v21  ;;  %v3832_v2 = vrot.slane %v3818_v50, %v7088_v21  ;;  %v5960_v28 = vpop.f32.mrb[23].mxu0 }
 0x688   : > { %v3937_v5 = vcombine.low %v3881_v52, %v3897_v34  ;;  %v3938_v27 = vcombine.high %v3881_v52, %v3897_v34  ;;  %v3953_v15 = vcombine.low %v3888_v3, %v3904_v4  ;;  %v3954_v61 = vcombine.high %v3888_v3, %v3904_v4  ;;  %v7818_v6 = vpop.f32.mrb[36].mxu1 }
 0x689   : > { %v5662_v22 = vcombine.low %v3809_v12, %v3816_v1  ;;  %v5664_v57 = vcombine.high %v3809_v12, %v3816_v1  ;;  %v5666_v38 = vcombine.low %v3825_v59, %v3832_v2  ;;  %v5668_v26 = vcombine.high %v3825_v59, %v3832_v2  ;;  %v5965_v25 = vpop.f32.mrb[37].mxu1  ;;  %v6187_v2 = vld [vmem:[#allocation8] sm:$0xff]  }
 0x68a   : > { %v3945_v41 = vrot.slane %v3937_v5, %v7088_v21  ;;  %v3952_v42 = vrot.slane %v3938_v27, %v7088_v21  ;;  %v3961_v16 = vrot.slane %v3953_v15, %v7088_v21  ;;  %v3968_v29 = vrot.slane %v3954_v61, %v7088_v21  ;;  %v7824_v45 = vpop.f32.mrb[38].mxu1  ;;  %5980 = vmatpush3.bf16.msra.mxu0 %v6187_v2  ;;  %v6189_v25 = vld [vmem:[#allocation8 + $0x10] sm:$0xff]  }
 0x68b   : > { %v4017_v9 = vrot.slane %v5662_v22, %v7085_v14  ;;  %v4033_v60 = vrot.slane %v5664_v57, %v7085_v14  ;;  %v4049_v40 = vrot.slane %v5666_v38, %v7085_v14  ;;  %v4065_v13 = vrot.slane %v5668_v26, %v7085_v14  ;;  %v5966_v47 = vpop.f32.mrb[39].mxu1  ;;  %v6188_v22 = vld [vmem:[#allocation8 + $0x8] sm:$0xff]   ;;  %5981 = vmatprep.subr.bf16.mxu0 %v6629_v0 }
 0x68c   : > { %v5670_v18 = vcombine.low %v3945_v41, %v3952_v42  ;;  %v5672_v48 = vcombine.high %v3945_v41, %v3952_v42  ;;  %v5674_v31 = vcombine.low %v3961_v16, %v3968_v29  ;;  %v5676_v53 = vcombine.high %v3961_v16, %v3968_v29  ;;  %v7830_v43 = vpop.f32.mrb[24].mxu0  ;;  %v6190_v41 = vld [vmem:[#allocation8 + $0x18] sm:$0xff]   ;;  %v6191_v42 = vld [vmem:[#allocation8 + $0x20] sm:$0xff]   ;;  %v6192_v16 = vld [vmem:[#allocation8 + $0x28] sm:$0xff]  }
 0x68d   : > { %v3769_v20 = vcombine.low %v7806_v35, %v7830_v43  ;;  %v3770_v44 = vcombine.high %v7806_v35, %v7830_v43  ;;  %v5971_v62 = vpop.f32.mrb[25].mxu0  ;;  %v4074_v17 = vcombine.high %v4017_v9, %v4033_v60  ;;  %v4106_v51 = vcombine.high %v4049_v40, %v4065_v13 }
 0x68e   : > { %v4153_v55 = vrot.slane %v5670_v18, %v7085_v14  ;;  %v4169_v58 = vrot.slane %v5672_v48, %v7085_v14  ;;  %v4185_v39 = vrot.slane %v5674_v31, %v7085_v14  ;;  %v4201_v36 = vrot.slane %v5676_v53, %v7085_v14  ;;  %v7840_v23 = vpop.f32.mrb[26].mxu0  ;;  %5982 = vmatpush3.bf16.msra.mxu0 %v6188_v22 }
 0x68f   : > { %v3905_v46 = vcombine.low %v7812_v24, %v7840_v23  ;;  %v3906_v11 = vcombine.high %v7812_v24, %v7840_v23  ;;  %v5972_v7 = vpop.f32.mrb[27].mxu0  ;;  %v4088_v19 = vrot.slane %v4074_v17, %v7088_v21  ;;  %v4120_v32 = vrot.slane %v4106_v51, %v7088_v21  ;;  %5983 = vmatprep.subr.bf16.mxu0 %v6629_v0 }
 0x690   : > { %v4210_v49 = vcombine.high %v4153_v55, %v4169_v58  ;;  %v4242_v54 = vcombine.high %v4185_v39, %v4201_v36  ;;  %v4073_v8 = vcombine.low %v4017_v9, %v4033_v60  ;;  %v4105_v30 = vcombine.low %v4049_v40, %v4065_v13 }
 0x691   : > { %v4139_v33 = vcombine.low %v4088_v19, %v4120_v32  ;;  %v4209_v63 = vcombine.low %v4153_v55, %v4169_v58  ;;  %v4241_v34 = vcombine.low %v4185_v39, %v4201_v36  ;;  %v4140_v4 = vcombine.high %v4088_v19, %v4120_v32 }
 0x692   : > { %v4224_v37 = vrot.slane %v4210_v49, %v7088_v21  ;;  %v4256_v50 = vrot.slane %v4242_v54, %v7088_v21  ;;  %v7851_v52 = vrot.slane %v4073_v8, %v7088_v21  ;;  %v7854_v3 = vrot.slane %v4105_v30, %v7088_v21  ;;  %5984 = vmatpush3.bf16.msra.mxu0 %v6189_v25 }
 0x693   : > { %v7857_v1 = vrot.slane %v4209_v63, %v7088_v21  ;;  %v7864_v27 = vrot.slane %v4241_v34, %v7088_v21  ;;  %5985 = vmatprep.subr.bf16.mxu0 %v6629_v0  ;;  %v3777_v13 = vrot.slane %v3769_v20, %v7085_v14  ;;  %v3784_v47 = vrot.slane %v3770_v44, %v7085_v14 }
 0x694   : > { %v4275_v12 = vcombine.low %v4224_v37, %v4256_v50  ;;  %v4276_v59 = vcombine.high %v4224_v37, %v4256_v50  ;;  %v4137_v28 = vcombine.low %v7851_v52, %v7854_v3  ;;  %v4138_v5 = vcombine.high %v7851_v52, %v7854_v3 }
 0x695   : > { %v4274_v57 = vcombine.high %v7857_v1, %v7864_v27  ;;  %v4273_v38 = vcombine.low %v7857_v1, %v7864_v27  ;;  %v3913_v35 = vrot.slane %v3905_v46, %v7085_v14  ;;  %v3920_v43 = vrot.slane %v3906_v11, %v7085_v14 }
 0x696   : > { %v6125_v15 = vpack.i.bf16 %v4275_v12, %v4139_v33  ;;  %v6130_v61 = vpack.i.bf16 %v4276_v59, %v4140_v4  ;;  %5986 = vmatpush3.bf16.msra.mxu0 %v6190_v41 }
 0x697   : > { %v6120_v26 = vpack.i.bf16 %v4274_v57, %v4138_v5  ;;  %5987 = vmatprep.subr.bf16.mxu0 %v6629_v0 }
 0x698   : > { %6126 = vrot.lane.b32.xlu0 %v6125_v15, %s6637_s8 }
 0x699   : > { %6121 = vrot.lane.b32.xlu1 %v6120_v26, %s6638_s20  ;;  %s8257_s20 = sld [smem:[#allocation20_spill]] }
 0x69a   : > { %5988 = vmatpush3.bf16.msra.mxu0 %v6191_v42 }
 0x69b   : > { %5989 = vmatprep.subr.bf16.mxu0 %v6629_v0 }
 0x69d   : > { %6131 = vrot.lane.b32.xlu1 %v6130_v61, %s6636_s17  ;;  %s8255_s17 = smov 96  }
 0x69e   : > { %5990 = vmatpush3.bf16.msra.mxu0 %v6192_v16  ;;  %v6193_v16 = vld [vmem:[#allocation8 + $0x30] sm:$0xff]  }
 0x69f   : > { %5991 = vmatprep.subr.bf16.mxu0 %v6629_v0 }
 0x6a2   : > { %5992 = vmatpush3.bf16.msra.mxu0 %v6193_v16 }
 0x6a3   : > { %5993 = vmatprep.subr.bf16.mxu0 %v6629_v0 }
 0x6c1   : > { %v3730_v29 = vpop.f32.mrb[40].mxu1 }
 0x6c2   : > { %v3785_v9 = vcombine.low %v7818_v6, %v3730_v29  ;;  %v3786_v60 = vcombine.high %v7818_v6, %v3730_v29  ;;  %v5977_v40 = vpop.f32.mrb[41].mxu1 }
 0x6c3   : > { %v3733_v18 = vpop.f32.mrb[42].mxu1 }
 0x6c4   : > { %v3793_v48 = vrot.slane %v3785_v9, %v7085_v14  ;;  %v3800_v31 = vrot.slane %v3786_v60, %v7085_v14  ;;  %v3921_v53 = vcombine.low %v7824_v45, %v3733_v18  ;;  %v3922_v6 = vcombine.high %v7824_v45, %v3733_v18  ;;  %v5978_v62 = vpop.f32.mrb[43].mxu1 }
 0x6c6   : > { %v3833_v17 = vcombine.low %v3777_v13, %v3793_v48  ;;  %v3834_v51 = vcombine.high %v3777_v13, %v3793_v48  ;;  %v3849_v55 = vcombine.low %v3784_v47, %v3800_v31  ;;  %v3850_v58 = vcombine.high %v3784_v47, %v3800_v31 }
 0x6c7   : > { %v3929_v20 = vrot.slane %v3921_v53, %v7085_v14  ;;  %v3936_v44 = vrot.slane %v3922_v6, %v7085_v14 }
 0x6c8   : > { %v3841_v45 = vrot.slane %v3833_v17, %v7088_v21  ;;  %v3848_v39 = vrot.slane %v3834_v51, %v7088_v21  ;;  %v3857_v36 = vrot.slane %v3849_v55, %v7088_v21  ;;  %v3864_v7 = vrot.slane %v3850_v58, %v7088_v21  ;;  %v6194_v58 = vld [vmem:[#allocation8 + $0x38] sm:$0xff]  }
 0x6c9   : > { %v3969_v19 = vcombine.low %v3913_v35, %v3929_v20  ;;  %v3970_v32 = vcombine.high %v3913_v35, %v3929_v20  ;;  %v3985_v46 = vcombine.low %v3920_v43, %v3936_v44  ;;  %v3986_v49 = vcombine.high %v3920_v43, %v3936_v44  ;;  %5994 = vmatpush3.bf16.msra.mxu0 %v6194_v58  ;;  %v6203_v58 = vld [vmem:[#allocation10 + $0x24] ss:$16 sps:$4 sm:$0xff]  }
 0x6ca   : > { %v5663_v54 = vcombine.low %v3841_v45, %v3848_v39  ;;  %v5665_v8 = vcombine.high %v3841_v45, %v3848_v39  ;;  %v5667_v24 = vcombine.low %v3857_v36, %v3864_v7  ;;  %v5669_v23 = vcombine.high %v3857_v36, %v3864_v7 }
 0x6cb   : > { %v3977_v11 = vrot.slane %v3969_v19, %v7088_v21  ;;  %v3984_v30 = vrot.slane %v3970_v32, %v7088_v21  ;;  %v3993_v33 = vrot.slane %v3985_v46, %v7088_v21  ;;  %v4000_v37 = vrot.slane %v3986_v49, %v7088_v21 }
 0x6cc   : > { %v4024_v50 = vrot.slane %v5663_v54, %v7085_v14  ;;  %v4040_v63 = vrot.slane %v5665_v8, %v7085_v14  ;;  %v4056_v34 = vrot.slane %v5667_v24, %v7085_v14  ;;  %v4072_v4 = vrot.slane %v5669_v23, %v7085_v14 }
 0x6cd   : > { %v5671_v12 = vcombine.low %v3977_v11, %v3984_v30  ;;  %v5673_v59 = vcombine.high %v3977_v11, %v3984_v30  ;;  %v5675_v2 = vcombine.low %v3993_v33, %v4000_v37  ;;  %v5677_v5 = vcombine.high %v3993_v33, %v4000_v37 }
 0x6ce   : > { %v4089_v15 = vcombine.low %v4024_v50, %v4040_v63  ;;  %v4121_v61 = vcombine.low %v4056_v34, %v4072_v4  ;;  %v4090_v22 = vcombine.high %v4024_v50, %v4040_v63  ;;  %v4122_v57 = vcombine.high %v4056_v34, %v4072_v4 }
 0x6cf   : > { %v4160_v26 = vrot.slane %v5671_v12, %v7085_v14  ;;  %v4176_v25 = vrot.slane %v5673_v59, %v7085_v14  ;;  %v4192_v41 = vrot.slane %v5675_v2, %v7085_v14  ;;  %v4208_v42 = vrot.slane %v5677_v5, %v7085_v14 }
 0x6d0   : > { %v4097_v29 = vrot.slane %v4089_v15, %v7088_v21  ;;  %v4129_v9 = vrot.slane %v4121_v61, %v7088_v21  ;;  %v4104_v60 = vrot.slane %v4090_v22, %v7088_v21  ;;  %v4136_v40 = vrot.slane %v4122_v57, %v7088_v21 }
 0x6d1   : > { %v4225_v13 = vcombine.low %v4160_v26, %v4176_v25  ;;  %v4257_v47 = vcombine.low %v4192_v41, %v4208_v42  ;;  %v4226_v18 = vcombine.high %v4160_v26, %v4176_v25  ;;  %v4258_v48 = vcombine.high %v4192_v41, %v4208_v42 }
 0x6d2   : > { %v4142_v31 = vcombine.high %v4097_v29, %v4129_v9  ;;  %v4141_v53 = vcombine.low %v4097_v29, %v4129_v9  ;;  %v4144_v6 = vcombine.high %v4104_v60, %v4136_v40  ;;  %v4143_v62 = vcombine.low %v4104_v60, %v4136_v40 }
 0x6d3   : > { %v4233_v14 = vrot.slane %v4225_v13, %v7088_v21  ;;  %v4265_v17 = vrot.slane %v4257_v47, %v7088_v21  ;;  %v4240_v51 = vrot.slane %v4226_v18, %v7088_v21  ;;  %v4272_v55 = vrot.slane %v4258_v48, %v7088_v21  ;;  %v6363_v13 = vld [vmem:[%s6964_s23] sm:$0xff] }
 0x6d5   : > { %v4278_v35 = vcombine.high %v4233_v14, %v4265_v17  ;;  %v4277_v43 = vcombine.low %v4233_v14, %v4265_v17  ;;  %v4280_v20 = vcombine.high %v4240_v51, %v4272_v55  ;;  %v4279_v44 = vcombine.low %v4240_v51, %v4272_v55  ;;  %v6197_v14 = vld [vmem:[#allocation10 + $0x4] ss:$16 sps:$4 sm:$0xff]   ;;  %v6198_v17 = vld [vmem:[#allocation10 + $0x8] ss:$16 sps:$4 sm:$0xff]   ;;  %v6200_v51 = vld [vmem:[#allocation10 + $0xc] ss:$16 sps:$4 sm:$0xff]  }
 0x6d6   : > { %4731 = vmatprep.subr.bf16.mxu1 %v6197_v14  ;;  %4774 = vmatprep.subr.bf16.mxu0 %v6200_v51  ;;  %v6201_v55 = vld [vmem:[#allocation10 + $0x20] ss:$16 sps:$4 sm:$0xff]   ;;  %v6248_v51 = vld [vmem:[#allocation11 + $0xc8] sm:$0xff]  }
 0x6d7   : > { %v6140_v45 = vpack.i.bf16 %v4278_v35, %v4142_v31  ;;  %v6135_v39 = vpack.i.bf16 %v4277_v43, %v4141_v53  ;;  %v6150_v36 = vpack.i.bf16 %v4280_v20, %v4144_v6  ;;  %v6145_v7 = vpack.i.bf16 %v4279_v44, %v4143_v62  ;;  %v6364_v31 = vld [vmem:[%s6964_s23 + $0x8] sm:$0xff]  ;;  %v6195_v62 = vld [vmem:[#allocation10] ss:$16 sps:$4 sm:$0xff]   ;;  %v6209_v44 = vld [vmem:[#allocation10 + $0x44] ss:$16 sps:$4 sm:$0xff]   ;;  %s8261_s23 = sshll.u32 %s6958_s9, 4 }
 0x6d8   : > { %4732 = vmatpush1.bf16.msra.mxu1 %v6195_v62  ;;  %v6204_v35 = vld [vmem:[#allocation10 + $0x28] ss:$16 sps:$4 sm:$0xff]   ;;  %v6206_v43 = vld [vmem:[#allocation10 + $0x2c] ss:$16 sps:$4 sm:$0xff]   ;;  %v6207_v20 = vld [vmem:[#allocation10 + $0x40] ss:$16 sps:$4 sm:$0xff]  }
 0x6d9   : > { %6141 = vrot.lane.b32.xlu1 %v6140_v45, %s6634_s13  ;;  %6136 = vrot.lane.b32.xlu0 %v6135_v39, %s6635_s27  ;;  %s8256_s27 = sld [smem:[#allocation19_spill]]  ;;  %v6210_v45 = vld [vmem:[#allocation10 + $0x48] ss:$16 sps:$4 sm:$0xff]   ;;  %v6212_v39 = vld [vmem:[#allocation10 + $0x4c] ss:$16 sps:$4 sm:$0xff]   ;;  %v6245_v62 = vld [vmem:[#allocation11] sm:$0xff]  }
 0x6da   : > { %4733 = vmatprep.subr.bf16.mxu1 %v6203_v58  ;;  %v6246_v14 = vld [vmem:[#allocation11 + $0x80] sm:$0xff]   ;;  %v6250_v58 = vld [vmem:[#allocation11 + $0x88] sm:$0xff]   ;;  %s558_s8 = scalar_lea.vmem [#allocation13], %s8261_s23  ;;  %s6539_s13 = sshll.u32 %s6641_s19, 4  ;;  %s6540_s13 = int_to_ptr.vmem [resolvable:$false] %s6539_s13 }
 0x6dc   : > { %4734 = vmatpush1.bf16.msra.mxu1 %v6201_v55  ;;  %v6249_v55 = vld [vmem:[#allocation11 + $0x8] sm:$0xff]  }
 0x6dd   : > { %6151 = vrot.lane.b32.xlu1 %v6150_v36, %s6632_s11  ;;  %6146 = vrot.lane.b32.xlu0 %v6145_v7, %s8255_s17  ;;  %v6215_v36 = vld [vmem:[#allocation10 + $0x64] ss:$16 sps:$4 sm:$0xff]   ;;  %v6218_v7 = vld [vmem:[#allocation10 + $0x6c] ss:$16 sps:$4 sm:$0xff]   ;;  %s8259_s17 = sld [smem:[#allocation22_spill]] }
 0x6de   : > { %4735 = vmatprep.subr.bf16.mxu1 %v6209_v44  ;;  %v6254_v44 = vld [vmem:[#allocation11 + $0x90] sm:$0xff]  }
 0x6df   : > { %v5678_v16 = vld [vmem:[%s8256_s27] ss:$0 sm:$0xff]  ;;  %s8260_s27 = sld [smem:[#allocation23_spill]] }
 0x6e0   : > { %4736 = vmatpush1.bf16.msra.mxu1 %v6207_v20  ;;  %v6253_v20 = vld [vmem:[#allocation11 + $0x10] sm:$0xff]  }
 0x6e1   : > { %4737 = vmatprep.subr.bf16.mxu1 %v6215_v36  ;;  %v6257_v36 = vld [vmem:[#allocation11 + $0x18] sm:$0xff]  }
 0x70a   : > { %v6127_v21 = vpop.permute.xlu0 %6126 }
 0x70b   : > { %v6122_v0 = vpop.permute.xlu1 %6121  ;;  %v6129_v49 = vunpack.i.h.bf16 %v6127_v21  ;;  %v6128_v54 = vunpack.i.l.bf16 %v6127_v21  ;;  %v6216_v21 = vld [vmem:[#allocation10 + $0x68] ss:$16 sps:$4 sm:$0xff]  }
 0x70c   : > { %v6124_v19 = vunpack.i.h.bf16 %v6122_v0  ;;  %v6123_v32 = vunpack.i.l.bf16 %v6122_v0  ;;  %v6213_v0 = vld [vmem:[#allocation10 + $0x60] ss:$16 sps:$4 sm:$0xff]  }
 0x70d   : > { %4738 = vmatpush1.bf16.msra.mxu1 %v6213_v0  ;;  %v6259_v0 = vld [vmem:[#allocation11 + $0x60] sm:$0xff]  }
 0x70e   : > { %v4338_v8 = vsel %vm2640_vm1, %v4273_v38, %v6124_v19  ;;  %v4337_v24 = vsel %vm2640_vm1, %v4137_v28, %v6123_v32  ;;  %v6221_v19 = vld [vmem:[#allocation10 + $0x84] ss:$16 sps:$4 sm:$0xff]   ;;  %v6224_v32 = vld [vmem:[#allocation10 + $0x8c] ss:$16 sps:$4 sm:$0xff]  }
 0x70f   : > { %v6132_v46 = vpop.permute.xlu1 %6131  ;;  %v4340_v37 = vsel %vm4339_vm2, %v4337_v24, %v6128_v54  ;;  %v4341_v50 = vsel %vm4339_vm2, %v4338_v8, %v6129_v49  ;;  %4739 = vmatprep.subr.bf16.mxu1 %v6221_v19  ;;  %v6222_v49 = vld [vmem:[#allocation10 + $0x88] ss:$16 sps:$4 sm:$0xff]   ;;  %v6227_v54 = vld [vmem:[#allocation10 + $0xa4] ss:$16 sps:$4 sm:$0xff]   ;;  %v6230_v8 = vld [vmem:[#allocation10 + $0xac] ss:$16 sps:$4 sm:$0xff]  }
 0x710   : > { %v6134_v23 = vunpack.i.h.bf16 %v6132_v46  ;;  %v6133_v11 = vunpack.i.l.bf16 %v6132_v46  ;;  %v6219_v46 = vld [vmem:[#allocation10 + $0x80] ss:$16 sps:$4 sm:$0xff]  }
 0x711   : > { %4740 = vmatpush1.bf16.msra.mxu1 %v6219_v46  ;;  %v6225_v24 = vld [vmem:[#allocation10 + $0xa0] ss:$16 sps:$4 sm:$0xff]   ;;  %v6263_v46 = vld [vmem:[#allocation11 + $0x68] sm:$0xff]  }
 0x712   : > { %v4343_v4 = vsel %vm4342_vm3, %v4340_v37, %v6133_v11  ;;  %v4344_v12 = vsel %vm4342_vm3, %v4341_v50, %v6134_v23  ;;  %4741 = vmatprep.subr.bf16.mxu1 %v6227_v54  ;;  %v6228_v23 = vld [vmem:[#allocation10 + $0xa8] ss:$16 sps:$4 sm:$0xff]   ;;  %v6233_v11 = vld [vmem:[#allocation10 + $0xc4] ss:$16 sps:$4 sm:$0xff]  }
 0x713   : > { %v6234_v37 = vld [vmem:[#allocation10 + $0xc8] ss:$16 sps:$4 sm:$0xff]   ;;  %v6239_v50 = vld [vmem:[#allocation10 + $0xe4] ss:$16 sps:$4 sm:$0xff]  }
 0x714   : > { %v6261_v19 = vld [vmem:[#allocation11 + $0x20] sm:$0xff]   ;;  %v6265_v54 = vld [vmem:[#allocation11 + $0x28] sm:$0xff]  }
 0x715   : > { %4742 = vmatpush1.bf16.msra.mxu1 %v6225_v24  ;;  %v6267_v24 = vld [vmem:[#allocation11 + $0x70] sm:$0xff]  }
 0x716   : > { %4743 = vmatprep.subr.bf16.mxu1 %v6233_v11  ;;  %v6269_v11 = vld [vmem:[#allocation11 + $0x30] sm:$0xff]  }
 0x74b   : > { %v6137_v30 = vpop.permute.xlu0 %6136  ;;  %v6142_v33 = vpop.permute.xlu1 %6141 }
 0x74c   : > { %v6139_v63 = vunpack.i.h.bf16 %v6137_v30  ;;  %v6138_v34 = vunpack.i.l.bf16 %v6137_v30  ;;  %v6144_v1 = vunpack.i.h.bf16 %v6142_v33  ;;  %v6143_v27 = vunpack.i.l.bf16 %v6142_v33  ;;  %v6236_v30 = vld [vmem:[#allocation10 + $0xcc] ss:$16 sps:$4 sm:$0xff]   ;;  %v6231_v33 = vld [vmem:[#allocation10 + $0xc0] ss:$16 sps:$4 sm:$0xff]  }
 0x74d   : > { %4744 = vmatpush1.bf16.msra.mxu1 %v6231_v33  ;;  %v6271_v33 = vld [vmem:[#allocation11 + $0x78] sm:$0xff]  }
 0x74e   : > { %v4346_v38 = vsel %vm4345_vm4, %v4343_v4, %v6138_v34  ;;  %v4347_v59 = vsel %vm4345_vm4, %v4344_v12, %v6139_v63  ;;  %v6242_v63 = vld [vmem:[#allocation10 + $0xec] ss:$16 sps:$4 sm:$0xff]   ;;  %v6237_v34 = vld [vmem:[#allocation10 + $0xe0] ss:$16 sps:$4 sm:$0xff]   ;;  %4745 = vmatprep.subr.bf16.mxu1 %v6239_v50  ;;  %v6240_v4 = vld [vmem:[#allocation10 + $0xe8] ss:$16 sps:$4 sm:$0xff]  }
 0x74f   : > { %v6147_v52 = vpop.permute.xlu0 %6146  ;;  %v6152_v3 = vpop.permute.xlu1 %6151  ;;  %v4349_v61 = vsel %vm4348_vm5, %v4346_v38, %v6143_v27  ;;  %v4350_v22 = vsel %vm4348_vm5, %v4347_v59, %v6144_v1  ;;  %v6273_v50 = vld [vmem:[#allocation11 + $0x38] sm:$0xff]  }
 0x750   : > { %v6149_v28 = vunpack.i.h.bf16 %v6147_v52  ;;  %v6148_v2 = vunpack.i.l.bf16 %v6147_v52  ;;  %v6154_v5 = vunpack.i.h.bf16 %v6152_v3  ;;  %v6153_v15 = vunpack.i.l.bf16 %v6152_v3 }
 0x751   : > { %4746 = vmatpush1.bf16.msra.mxu1 %v6237_v34  ;;  %v4553_v34 = vsub.s32 0, %v7080_v10 }
 0x752   : > { %v4352_v57 = vsel %vm4351_vm6, %v4349_v61, %v6148_v2  ;;  %v4353_v26 = vsel %vm4351_vm6, %v4350_v22, %v6149_v28 }
 0x753   : > { %v4355_v25 = vsel %vm4354_vm7, %v4352_v57, %v6153_v15  ;;  %v4356_v41 = vsel %vm4354_vm7, %v4353_v26, %v6154_v5  ;;  %v5687_v26 = vld [vmem:[%s8257_s20] ss:$0 sm:$0xff]  ;;  %s5424_s20 = sshll.u32 %s558_s8, 4  ;;  %s8150_s20 = int_to_ptr.vmem [resolvable:$true] %s5424_s20 }
 0x754   : > { %v4357_v42 = vpack.c.bf16 %v4356_v41, %v4355_v25  ;;  %s6535_s11 = scalar_lea.vmem %s8150_s20, 256  ;;  %p6542_p11 = scmp.lt.s32.totalorder %s8150_s20, %s6540_s13 }
 0x755   : > { %p6536_p2 = scmp.ne.s32.totalorder %s8150_s20, %s6535_s11 }
 0x756   : > { %5996 = vmatmul.mubr.bf16.vlgmr.msra.gmra.mrb[28].mxu0 %v4357_v42 }
 0x757   : > { %4806 = vmatprep.mubr.bf16.mxu0 %v8254_v56  ;;  %4775 = vmatpush1.bf16.msra.mxu0 %v6198_v17  ;;  %v6247_v17 = vld [vmem:[#allocation11 + $0x48] sm:$0xff]   ;;  %p6537_p10 = pnand %p6536_p2, %p8263_p7 }
 0x758   : > { %4776 = vmatprep.subr.bf16.mxu0 %v6206_v43  ;;  %v6252_v43 = vld [vmem:[#allocation11 + $0xd0] sm:$0xff]  }
 0x759   : > { %p6538_p1 = pneg %p6537_p10 }
 0x75b   : > { %4777 = vmatpush1.bf16.msra.mxu0 %v6204_v35  ;;  %v6251_v35 = vld [vmem:[#allocation11 + $0x50] sm:$0xff]  }
 0x75c   : > { %4778 = vmatprep.subr.bf16.mxu0 %v6212_v39  ;;  %v6256_v39 = vld [vmem:[#allocation11 + $0xd8] sm:$0xff]  }
 0x75f   : > { %4779 = vmatpush1.bf16.msra.mxu0 %v6210_v45  ;;  %v6255_v45 = vld [vmem:[#allocation11 + $0x58] sm:$0xff]  }
 0x760   : > { %4780 = vmatprep.subr.bf16.mxu0 %v6218_v7  ;;  %v6258_v7 = vld [vmem:[#allocation11 + $0x98] sm:$0xff]  }
 0x763   : > { %4781 = vmatpush1.bf16.msra.mxu0 %v6216_v21  ;;  %v6260_v21 = vld [vmem:[#allocation11 + $0xe0] sm:$0xff]  }
 0x764   : > { %4782 = vmatprep.subr.bf16.mxu0 %v6224_v32  ;;  %v6262_v32 = vld [vmem:[#allocation11 + $0xa0] sm:$0xff]  }
 0x767   : > { %4783 = vmatpush1.bf16.msra.mxu0 %v6222_v49  ;;  %v6264_v49 = vld [vmem:[#allocation11 + $0xe8] sm:$0xff]  }
 0x768   : > { %4784 = vmatprep.subr.bf16.mxu0 %v6230_v8  ;;  %v6266_v8 = vld [vmem:[#allocation11 + $0xa8] sm:$0xff]  }
 0x76b   : > { %4785 = vmatpush1.bf16.msra.mxu0 %v6228_v23  ;;  %v6268_v23 = vld [vmem:[#allocation11 + $0xf0] sm:$0xff]  }
 0x76c   : > { %4786 = vmatprep.subr.bf16.mxu0 %v6236_v30  ;;  %v6270_v30 = vld [vmem:[#allocation11 + $0xb0] sm:$0xff]  }
 0x76f   : > { %4787 = vmatpush1.bf16.msra.mxu0 %v6234_v37  ;;  %v6272_v37 = vld [vmem:[#allocation11 + $0xf8] sm:$0xff]  }
 0x770   : > { %4788 = vmatprep.subr.bf16.mxu0 %v6242_v63  ;;  %v6274_v63 = vld [vmem:[#allocation11 + $0xb8] sm:$0xff]  }
 0x773   : > { %4789 = vmatpush1.bf16.msra.mxu0 %v6240_v4  ;;  %v4561_v4 = vsub.s32 2, %v7080_v10 }
 0x829   : > { %v4463_v29 = vpop.f32.mrb[28].mxu0 }
 0x82a   : > { %v4464_v9 = vadd.f32 %v5678_v16, %v4463_v29  ;;  %v5997_v60 = vpop.f32.mrb[29].mxu0 }
 0x82b   : > { %v4466_v40 = vpop.f32.mrb[30].mxu0 }
 0x82c   : > { %v7945_v47 = vadd.f32 %v6363_v13, %v4464_v9  ;;  %v4467_v18 = vadd.f32 %v5678_v16, %v4466_v40  ;;  %v5998_v48 = vpop.f32.mrb[31].mxu0  ;;  %v5688_v40 = vld [vmem:[%s8258_s24] ss:$0 sm:$0xff] }
 0x82e   : > { %v7948_v53 = vadd.f32 %v6364_v31, %v4467_v18  ;;  %4474 = vadd.xlane.f32.xlu0 %v7945_v47  ;;  %v4480_v56 = vmul.f32 %v7945_v47, %v7945_v47 }
 0x830   : > { %4476 = vadd.xlane.f32.xlu1 %v7948_v53  ;;  %v4481_v6 = vmul.f32 %v7948_v53, %v7948_v53 }
 0x832   : > { %4482 = vadd.xlane.f32.xlu0 %v4480_v56  ;;  %v6243_v56 = vld [vmem:[#allocation11 + $0x40] sm:$0xff]  }
 0x833   : > { %5819 = vmatprep.subr.bf16.mxu1 %v6243_v56 }
 0x836   : > { %4484 = vadd.xlane.f32.xlu0 %v4481_v6  ;;  %v6244_v6 = vld [vmem:[#allocation11 + $0xc0] sm:$0xff]  }
 0x837   : > { %5841 = vmatprep.subr.bf16.mxu0 %v6244_v6 }
 0x8bb   : > { %v4475_v12 = vpop.xlane.xlu0 %4474 }
 0x8bc   : > { %v4478_v1 = vmul.f32 0.0078125, %v4475_v12  ;;  %v4549_v12 = vld [vmem:[%s8259_s17] sm:$0xf]  ;;  %s5411_s17 = scalar_lea.sflag [#allocation4], %s6958_s9 }
 0x8bd   : > { %v4477_v27 = vpop.xlane.xlu1 %4476 }
 0x8be   : > { %v4488_v59 = vmul.f32 %v4478_v1, %v4478_v1  ;;  %v4479_v52 = vmul.f32 0.0078125, %v4477_v27  ;;  %v4496_v42 = vsub.f32 %v7945_v47, %v4478_v1  ;;  %v4557_v1 = vsub.s32 1, %v7080_v10 }
 0x8bf   : > { %v4483_v38 = vpop.xlane.xlu0 %4482  ;;  %v4565_v27 = vsub.s32 3, %v7080_v10 }
 0x8c0   : > { %v4486_v3 = vmul.f32 0.0078125, %v4483_v38  ;;  %v4489_v5 = vmul.f32 %v4479_v52, %v4479_v52  ;;  %v4497_v29 = vsub.f32 %v7948_v53, %v4479_v52  ;;  %v4554_v38 = vrot.slane %v4549_v12, %v4553_v34 }
 0x8c1   : > { %v4558_v52 = vrot.slane %v4549_v12, %v4557_v1 }
 0x8c2   : > { %v4490_v28 = vsub.f32 %v4486_v3, %v4488_v59  ;;  %v4562_v59 = vrot.slane %v4549_v12, %v4561_v4  ;;  %v7971_v3 = vrot.slane %v4549_v12, %v4565_v27 }
 0x8c3   : > { %v4485_v2 = vpop.xlane.xlu0 %4484 }
 0x8c4   : > { %v4492_v15 = vadd.f32 1e-05, %v4490_v28  ;;  %v4487_v61 = vmul.f32 0.0078125, %v4485_v2 }
 0x8c6   : > { %6343 = vrsqrt.f32 %v4492_v15  ;;  %v4491_v22 = vsub.f32 %v4487_v61, %v4489_v5 }
 0x8c8   : > { %v4493_v57 = vadd.f32 1e-05, %v4491_v22 }
 0x8ca   : > { %6345 = vrsqrt.f32 %v4493_v57 }
 0x8d0   : > { %v6344_v25 = vpop.eup %6343 }
 0x8d1   : > { %v4504_v41 = vmul.f32 %v6344_v25, %v5687_v26 }
 0x8d3   : > { %v4506_v60 = vmul.f32 %v4504_v41, %v4496_v42 }
 0x8d4   : > { %v6346_v16 = vpop.eup %6345 }
 0x8d5   : > { %v4505_v9 = vmul.f32 %v6346_v16, %v5687_v26  ;;  %v4514_v18 = vadd.f32 %v5688_v40, %v4506_v60 }
 0x8d7   : > { %v4507_v13 = vmul.f32 %v4505_v9, %v4497_v29 }
 0x8d9   : > { %v4515_v48 = vadd.f32 %v5688_v40, %v4507_v13 }
 0x8db   : > { %v4516_v31 = vpack.c.bf16 %v4515_v48, %v4514_v18 }
 0x8dd   : > { %4764 = vmatmul.mubr.bf16.vlgmr.msra.gmra.mrb[44].mxu1 %v4516_v31  ;;  %4807 = vmatmul.mubr.bf16.vlgmr.msra.gmra.mrb[32].mxu0 %v4516_v31 }
 0x8de   : > { %5820 = vmatpush3.bf16.msra.mxu1 %v6245_v62  ;;  %5842 = vmatpush3.bf16.msra.mxu0 %v6246_v14 }
 0x8df   : > { %5821 = vmatprep.subr.bf16.mxu1 %v6247_v17  ;;  %5843 = vmatprep.subr.bf16.mxu0 %v6248_v51 }
 0x8e2   : > { %5822 = vmatpush3.bf16.msra.mxu1 %v6249_v55  ;;  %5844 = vmatpush3.bf16.msra.mxu0 %v6250_v58 }
 0x8e3   : > { %5823 = vmatprep.subr.bf16.mxu1 %v6251_v35  ;;  %5845 = vmatprep.subr.bf16.mxu0 %v6252_v43 }
 0x8e6   : > { %5824 = vmatpush3.bf16.msra.mxu1 %v6253_v20  ;;  %5846 = vmatpush3.bf16.msra.mxu0 %v6254_v44 }
 0x8e7   : > { %5825 = vmatprep.subr.bf16.mxu1 %v6255_v45  ;;  %5847 = vmatprep.subr.bf16.mxu0 %v6256_v39 }
 0x8ea   : > { %5826 = vmatpush3.bf16.msra.mxu1 %v6257_v36  ;;  %5848 = vmatpush3.bf16.msra.mxu0 %v6258_v7 }
 0x8eb   : > { %5827 = vmatprep.subr.bf16.mxu1 %v6259_v0  ;;  %5849 = vmatprep.subr.bf16.mxu0 %v6260_v21 }
 0x8ee   : > { %5828 = vmatpush3.bf16.msra.mxu1 %v6261_v19  ;;  %5850 = vmatpush3.bf16.msra.mxu0 %v6262_v32 }
 0x8ef   : > { %5829 = vmatprep.subr.bf16.mxu1 %v6263_v46  ;;  %5851 = vmatprep.subr.bf16.mxu0 %v6264_v49 }
 0x8f2   : > { %5830 = vmatpush3.bf16.msra.mxu1 %v6265_v54  ;;  %5852 = vmatpush3.bf16.msra.mxu0 %v6266_v8 }
 0x8f3   : > { %5831 = vmatprep.subr.bf16.mxu1 %v6267_v24  ;;  %5853 = vmatprep.subr.bf16.mxu0 %v6268_v23 }
 0x8f6   : > { %5832 = vmatpush3.bf16.msra.mxu1 %v6269_v11  ;;  %5854 = vmatpush3.bf16.msra.mxu0 %v6270_v30 }
 0x8f7   : > { %5833 = vmatprep.subr.bf16.mxu1 %v6271_v33  ;;  %5855 = vmatprep.subr.bf16.mxu0 %v6272_v37 }
 0x8fa   : > { %5834 = vmatpush3.bf16.msra.mxu1 %v6273_v50  ;;  %5856 = vmatpush3.bf16.msra.mxu0 %v6274_v63 }
 0x9b0   : > { %v4765_v28 = vpop.f32.mrb[44].mxu1  ;;  %v4808_v2 = vpop.f32.mrb[32].mxu0 }
 0x9b1   : > { %v7973_v5 = vadd.f32 %v4765_v28, %v4554_v38  ;;  %v7975_v15 = vadd.f32 %v4808_v2, %v4562_v59  ;;  %v4767_v61 = vpop.f32.mrb[45].mxu1  ;;  %v4810_v22 = vpop.f32.mrb[33].mxu0 }
 0x9b2   : > { %v7977_v57 = vadd.f32 %v4767_v61, %v4558_v52  ;;  %v7980_v26 = vadd.f32 %v4810_v22, %v7971_v3  ;;  %v4769_v25 = vpop.f32.mrb[46].mxu1  ;;  %v4812_v10 = vpop.f32.mrb[34].mxu0 }
 0x9b3   : > { %v4825_v41 = vmul.f32 0.70710677, %v7973_v5  ;;  %v4827_v42 = vmul.f32 0.70710677, %v7975_v15  ;;  %v4771_v40 = vpop.f32.mrb[47].mxu1  ;;  %v4814_v13 = vpop.f32.mrb[35].mxu0  ;;  %v8018_v0 = vadd.f32 %v4769_v25, %v4554_v38  ;;  %v8020_v21 = vadd.f32 %v4812_v10, %v4562_v59 }
 0x9b4   : > { %v4826_v16 = vmul.f32 0.70710677, %v7977_v57  ;;  %v4828_v29 = vmul.f32 0.70710677, %v7980_v26  ;;  %v8031_v63 = vadd.f32 %v4771_v40, %v4558_v52  ;;  %v8053_v40 = vadd.f32 %v4814_v13, %v7971_v3 }
 0x9b5   : > { %v7986_v9 = vclamps-f32 %v4825_v41, 4.0  ;;  %v7988_v60 = vclamps-f32 %v4827_v42, 4.0  ;;  %v4829_v54 = vmul.f32 0.70710677, %v8018_v0  ;;  %v4831_v23 = vmul.f32 0.70710677, %v8020_v21 }
 0x9b6   : > { %v7990_v18 = vclamps-f32 %v4826_v16, 4.0  ;;  %v8004_v6 = vclamps-f32 %v4828_v29, 4.0  ;;  %v4830_v22 = vmul.f32 0.70710677, %v8031_v63 }
 0x9b7   : > { %v7994_v48 = vmul.f32 %v7986_v9, %v7986_v9  ;;  %v7998_v31 = vmul.f32 %v7988_v60, %v7988_v60  ;;  %v8033_v12 = vclamps-f32 %v4829_v54, 4.0  ;;  %v8035_v1 = vclamps-f32 %v4831_v23, 4.0 }
 0x9b8   : > { %v8002_v56 = vmul.f32 %v7990_v18, %v7990_v18  ;;  %v8011_v58 = vmul.f32 %v8004_v6, %v8004_v6  ;;  %v4832_v23 = vmul.f32 0.70710677, %v8053_v40 }
 0x9b9   : > { %v4921_v62 = vmul.f32 -1.1791603e-07, %v7994_v48  ;;  %v4923_v14 = vmul.f32 -1.1791603e-07, %v7998_v31  ;;  %v4857_v8 = vmul.f32 0.00022905065, %v7994_v48  ;;  %v8040_v2 = vmul.f32 %v8033_v12, %v8033_v12 }
 0x9ba   : > { %v4922_v55 = vmul.f32 -1.1791603e-07, %v8002_v56  ;;  %v4924_v39 = vmul.f32 -1.1791603e-07, %v8011_v58  ;;  %v4859_v24 = vmul.f32 0.00022905065, %v7998_v31  ;;  %v8044_v61 = vmul.f32 %v8035_v1, %v8035_v1 }
 0x9bb   : > { %v4929_v17 = vadd.f32 2.3547966e-05, %v4921_v62  ;;  %v4931_v51 = vadd.f32 2.3547966e-05, %v4923_v14  ;;  %v4858_v37 = vmul.f32 0.00022905065, %v8002_v56 }
 0x9bc   : > { %v4930_v45 = vadd.f32 2.3547966e-05, %v4922_v55  ;;  %v4932_v32 = vadd.f32 2.3547966e-05, %v4924_v39  ;;  %v4865_v34 = vadd.f32 0.003408291, %v4857_v8 }
 0x9bd   : > { %v4937_v35 = vmul.f32 %v4929_v17, %v7994_v48  ;;  %v4939_v43 = vmul.f32 %v4931_v51, %v7998_v31  ;;  %v4867_v4 = vadd.f32 0.003408291, %v4859_v24  ;;  %v4866_v28 = vadd.f32 0.003408291, %v4858_v37 }
 0x9be   : > { %v4938_v19 = vmul.f32 %v4930_v45, %v8002_v56  ;;  %v4940_v30 = vmul.f32 %v4932_v32, %v8011_v58  ;;  %v4873_v25 = vmul.f32 %v4865_v34, %v7994_v48  ;;  %v4925_v41 = vmul.f32 -1.1791603e-07, %v8040_v2 }
 0x9bf   : > { %v4945_v20 = vadd.f32 0.0010179626, %v4937_v35  ;;  %v4947_v44 = vadd.f32 0.0010179626, %v4939_v43  ;;  %v4875_v10 = vmul.f32 %v4867_v4, %v7998_v31  ;;  %v4861_v29 = vmul.f32 0.00022905065, %v8040_v2 }
 0x9c0   : > { %v4946_v11 = vadd.f32 0.0010179626, %v4938_v19  ;;  %v4948_v38 = vadd.f32 0.0010179626, %v4940_v30  ;;  %v4874_v14 = vmul.f32 %v4866_v28, %v8002_v56  ;;  %v4933_v17 = vadd.f32 2.3547966e-05, %v4925_v41 }
 0x9c1   : > { %v4953_v36 = vmul.f32 %v4945_v20, %v7994_v48  ;;  %v4955_v7 = vmul.f32 %v4947_v44, %v7998_v31  ;;  %v4927_v51 = vmul.f32 -1.1791603e-07, %v8044_v61  ;;  %v4860_v35 = vmul.f32 0.00022905065, %v8011_v58 }
 0x9c2   : > { %v4954_v27 = vmul.f32 %v4946_v11, %v8002_v56  ;;  %v4956_v16 = vmul.f32 %v4948_v38, %v8011_v58  ;;  %v4863_v43 = vmul.f32 0.00022905065, %v8044_v61  ;;  %v8061_v20 = vclamps-f32 %v4830_v22, 4.0 }
 0x9c3   : > { %v4961_v46 = vadd.f32 0.01407047, %v4953_v36  ;;  %v4963_v49 = vadd.f32 0.01407047, %v4955_v7  ;;  %v4881_v44 = vadd.f32 0.050955694, %v4873_v25  ;;  %v4941_v3 = vmul.f32 %v4933_v17, %v8040_v2 }
 0x9c4   : > { %v4962_v42 = vadd.f32 0.01407047, %v4954_v27  ;;  %v4883_v45 = vadd.f32 0.050955694, %v4875_v10  ;;  %v4935_v13 = vadd.f32 2.3547966e-05, %v4927_v51  ;;  %v8067_v19 = vmul.f32 %v8061_v20, %v8061_v20 }
 0x9c5   : > { %v4969_v33 = vmul.f32 %v4961_v46, %v7994_v48  ;;  %v4971_v50 = vmul.f32 %v4963_v49, %v7998_v31  ;;  %v4964_v36 = vadd.f32 0.01407047, %v4956_v16  ;;  %v4869_v7 = vadd.f32 0.003408291, %v4861_v29 }
 0x9c6   : > { %v4970_v39 = vmul.f32 %v4962_v42, %v8002_v56  ;;  %v4882_v46 = vadd.f32 0.050955694, %v4874_v14  ;;  %v4949_v49 = vadd.f32 0.0010179626, %v4941_v3  ;;  %v4943_v54 = vmul.f32 %v4935_v13, %v8044_v61 }
 0x9c7   : > { %v4977_v59 = vadd.f32 0.11098505, %v4969_v33  ;;  %v4979_v52 = vadd.f32 0.11098505, %v4971_v50  ;;  %v4871_v24 = vadd.f32 0.003408291, %v4863_v43  ;;  %v4889_v11 = vmul.f32 %v4881_v44, %v7994_v48 }
 0x9c8   : > { %v4957_v30 = vmul.f32 %v4949_v49, %v8040_v2  ;;  %v4951_v33 = vadd.f32 0.0010179626, %v4943_v54  ;;  %v4926_v37 = vmul.f32 -1.1791603e-07, %v8067_v19  ;;  %v4891_v50 = vmul.f32 %v4883_v45, %v7998_v31 }
 0x9c9   : > { %v4985_v62 = vmul.f32 %v4977_v59, %v7994_v48  ;;  %v4987_v55 = vmul.f32 %v4979_v52, %v7998_v31  ;;  %v4978_v34 = vadd.f32 0.11098505, %v4970_v39  ;;  %v4972_v4 = vmul.f32 %v4964_v36, %v8011_v58 }
 0x9ca   : > { %v4877_v27 = vmul.f32 %v4869_v7, %v8040_v2  ;;  %v4965_v59 = vadd.f32 0.01407047, %v4957_v30  ;;  %v4959_v28 = vmul.f32 %v4951_v33, %v8044_v61  ;;  %v4934_v52 = vadd.f32 2.3547966e-05, %v4926_v37 }
 0x9cb   : > { %v4993_v32 = vadd.f32 0.49746925, %v4985_v62  ;;  %v4995_v8 = vadd.f32 0.49746925, %v4987_v55  ;;  %v4868_v25 = vadd.f32 0.003408291, %v4860_v35  ;;  %v4879_v10 = vmul.f32 %v4871_v24, %v8044_v61 }
 0x9cc   : > { %v8081_v41 = vclamps-f32 %v4832_v23, 4.0  ;;  %v4897_v42 = vadd.f32 0.18520832, %v4889_v11  ;;  %v4890_v16 = vmul.f32 %v4882_v46, %v8002_v56  ;;  %v4973_v29 = vmul.f32 %v4965_v59, %v8040_v2 }
 0x9cd   : > { %v5001_v38 = vmul.f32 %v4993_v32, %v7994_v48  ;;  %v5003_v22 = vmul.f32 %v4995_v8, %v7998_v31  ;;  %v4967_v62 = vadd.f32 0.01407047, %v4959_v28  ;;  %v4986_v14 = vmul.f32 %v4978_v34, %v8002_v56 }
 0x9ce   : > { %v4980_v17 = vadd.f32 0.11098505, %v4972_v4  ;;  %v4885_v51 = vadd.f32 0.050955694, %v4877_v27  ;;  %v4862_v55 = vmul.f32 0.00022905065, %v8067_v19  ;;  %v4942_v45 = vmul.f32 %v4934_v52, %v8067_v19 }
 0x9cf   : > { %v5009_v43 = vadd.f32 1.0, %v5001_v38  ;;  %v4981_v44 = vadd.f32 0.11098505, %v4973_v29  ;;  %v4975_v35 = vmul.f32 %v4967_v62, %v8044_v61  ;;  %v4899_v3 = vadd.f32 0.18520832, %v4891_v50 }
 0x9d0   : > { %v5011_v13 = vadd.f32 1.0, %v5003_v22  ;;  %v4887_v39 = vadd.f32 0.050955694, %v4879_v10  ;;  %v8091_v36 = vmul.f32 %v8081_v41, %v8081_v41  ;;  %v4905_v7 = vmul.f32 %v4897_v42, %v7994_v48 }
 0x9d1   : > { %v4876_v32 = vmul.f32 %v4868_v25, %v8011_v58  ;;  %v4989_v46 = vmul.f32 %v4981_v44, %v8040_v2  ;;  %v4983_v49 = vadd.f32 0.11098505, %v4975_v35  ;;  %v4994_v54 = vadd.f32 0.49746925, %v4986_v14 }
 0x9d2   : > { %v4988_v8 = vmul.f32 %v4980_v17, %v8011_v58  ;;  %v4893_v24 = vmul.f32 %v4885_v51, %v8040_v2  ;;  %v4870_v23 = vadd.f32 0.003408291, %v4862_v55  ;;  %6347 = vrcp.f32 %v5009_v43 }
 0x9d3   : > { %v4997_v11 = vadd.f32 0.49746925, %v4989_v46  ;;  %v4991_v30 = vmul.f32 %v4983_v49, %v8044_v61  ;;  %v4950_v33 = vadd.f32 0.0010179626, %v4942_v45  ;;  %v4907_v37 = vmul.f32 %v4899_v3, %v7998_v31 }
 0x9d4   : > { %6349 = vrcp.f32 %v5011_v13  ;;  %v4895_v48 = vmul.f32 %v4887_v39, %v8044_v61  ;;  %v4928_v50 = vmul.f32 -1.1791603e-07, %v8091_v36  ;;  %v4864_v38 = vmul.f32 0.00022905065, %v8091_v36 }
 0x9d5   : > { %v5005_v34 = vmul.f32 %v4997_v11, %v8040_v2  ;;  %v4999_v4 = vadd.f32 0.49746925, %v4991_v30  ;;  %v4958_v27 = vmul.f32 %v4950_v33, %v8067_v19  ;;  %v5002_v59 = vmul.f32 %v4994_v54, %v8002_v56 }
 0x9d6   : > { %v4901_v28 = vadd.f32 0.18520832, %v4893_v24  ;;  %v4878_v52 = vmul.f32 %v4870_v23, %v8067_v19  ;;  %v4936_v22 = vadd.f32 2.3547966e-05, %v4928_v50  ;;  %v4996_v25 = vadd.f32 0.49746925, %v4988_v8 }
 0x9d7   : > { %v5013_v31 = vadd.f32 1.0, %v5005_v34  ;;  %v5007_v10 = vmul.f32 %v4999_v4, %v8044_v61  ;;  %v4966_v42 = vadd.f32 0.01407047, %v4958_v27  ;;  %v4913_v29 = vadd.f32 1.1283791, %v4905_v7 }
 0x9d8   : > { %v4898_v62 = vadd.f32 0.18520832, %v4890_v16  ;;  %v4903_v14 = vadd.f32 0.18520832, %v4895_v48  ;;  %v4944_v17 = vmul.f32 %v4936_v22, %v8091_v36  ;;  %v4872_v43 = vadd.f32 0.003408291, %v4864_v38 }
 0x9d9   : > { %6351 = vrcp.f32 %v5013_v31  ;;  %v5015_v51 = vadd.f32 1.0, %v5007_v10  ;;  %v4974_v55 = vmul.f32 %v4966_v42, %v8067_v19  ;;  %v4915_v44 = vadd.f32 1.1283791, %v4907_v37 }
 0x9da   : > { %v4909_v35 = vmul.f32 %v4901_v28, %v8040_v2  ;;  %v4886_v45 = vadd.f32 0.050955694, %v4878_v52  ;;  %v4952_v3 = vadd.f32 0.0010179626, %v4944_v17  ;;  %v5010_v13 = vadd.f32 1.0, %v5002_v59 }
 0x9db   : > { %v5004_v39 = vmul.f32 %v4996_v25, %v8011_v58  ;;  %6353 = vrcp.f32 %v5015_v51  ;;  %v4982_v46 = vadd.f32 0.11098505, %v4974_v55  ;;  %v4911_v16 = vmul.f32 %v4903_v14, %v8044_v61 }
 0x9dc   : > { %v4960_v7 = vmul.f32 %v4952_v3, %v8091_v36  ;;  %v6348_v49 = vpop.eup %6347  ;;  %v4906_v54 = vmul.f32 %v4898_v62, %v8002_v56  ;;  %v4884_v8 = vadd.f32 0.050955694, %v4876_v32  ;;  %v4880_v23 = vmul.f32 %v4872_v43, %v8091_v36 }
 0x9dd   : > { %v4990_v24 = vmul.f32 %v4982_v46, %v8067_v19  ;;  %v5017_v11 = vmul.f32 %v7986_v9, %v4913_v29  ;;  %v4917_v30 = vadd.f32 1.1283791, %v4909_v35  ;;  %v4894_v33 = vmul.f32 %v4886_v45, %v8067_v19 }
 0x9de   : > { %v6350_v2 = vpop.eup %6349  ;;  %v4968_v37 = vadd.f32 0.01407047, %v4960_v7  ;;  %v5019_v48 = vmul.f32 %v7988_v60, %v4915_v44  ;;  %6355 = vrcp.f32 %v5010_v13  ;;  %v5012_v61 = vadd.f32 1.0, %v5004_v39 }
 0x9df   : > { %v4998_v50 = vadd.f32 0.49746925, %v4990_v24  ;;  %v5033_v34 = vmul.f32 %v6348_v49, %v5017_v11  ;;  %v4919_v4 = vadd.f32 1.1283791, %v4911_v16  ;;  %v4892_v27 = vmul.f32 %v4884_v8, %v8011_v58 }
 0x9e0   : > { %v4976_v56 = vmul.f32 %v4968_v37, %v8091_v36  ;;  %v5035_v32 = vmul.f32 %v6350_v2, %v5019_v48  ;;  %v4888_v59 = vadd.f32 0.050955694, %v4880_v23  ;;  %v4817_v9 = vmul.f32 0.5, %v7973_v5 }
 0x9e1   : > { %v5006_v38 = vmul.f32 %v4998_v50, %v8067_v19  ;;  %v5021_v28 = vmul.f32 %v8033_v12, %v4917_v30  ;;  %v4902_v52 = vadd.f32 0.18520832, %v4894_v33  ;;  %v4914_v25 = vadd.f32 1.1283791, %v4906_v54 }
 0x9e2   : > { %v4984_v22 = vadd.f32 0.11098505, %v4976_v56  ;;  %6357 = vrcp.f32 %v5012_v61  ;;  %v4821_v31 = vmul.f32 0.5, %v8018_v0  ;;  %v5041_v42 = vadd.f32 1.0, %v5033_v34 }
 0x9e3   : > { %v6352_v60 = vpop.eup %6351  ;;  %v5014_v10 = vadd.f32 1.0, %v5006_v38  ;;  %v5023_v62 = vmul.f32 %v8035_v1, %v4919_v4  ;;  %v5043_v51 = vadd.f32 1.0, %v5035_v32  ;;  %v4900_v55 = vadd.f32 0.18520832, %v4892_v27 }
 0x9e4   : > { %v5037_v29 = vmul.f32 %v6352_v60, %v5021_v28  ;;  %v4992_v14 = vmul.f32 %v4984_v22, %v8091_v36  ;;  %v4896_v5 = vmul.f32 %v4888_v59, %v8091_v36  ;;  %v4910_v44 = vmul.f32 %v4902_v52, %v8067_v19 }
 0x9e5   : > { %v6354_v17 = vpop.eup %6353  ;;  %6359 = vrcp.f32 %v5014_v10  ;;  %v4819_v0 = vmul.f32 0.5, %v7975_v15  ;;  %v4823_v45 = vmul.f32 0.5, %v8020_v21  ;;  %v5049_v3 = vmul.f32 %v5041_v42, %v4817_v9 }
 0x9e6   : > { %v5045_v12 = vadd.f32 1.0, %v5037_v29  ;;  %v5039_v43 = vmul.f32 %v6354_v17, %v5023_v62  ;;  %v5000_v35 = vadd.f32 0.49746925, %v4992_v14  ;;  %v5018_v7 = vmul.f32 %v7990_v18, %v4914_v25 }
 0x9e7   : > { %v5051_v16 = vmul.f32 %v5043_v51, %v4819_v0  ;;  %v4908_v49 = vmul.f32 %v4900_v55, %v8011_v58  ;;  %v4904_v54 = vadd.f32 0.18520832, %v4896_v5  ;;  %v4918_v19 = vadd.f32 1.1283791, %v4910_v44 }
 0x9e8   : > { %v5053_v13 = vmul.f32 %v5045_v12, %v4821_v31  ;;  %v5047_v1 = vadd.f32 1.0, %v5039_v43  ;;  %v5008_v39 = vmul.f32 %v5000_v35, %v8091_v36  ;;  %v6356_v46 = vpop.eup %6355  ;;  %v4818_v50 = vmul.f32 0.5, %v7977_v57 }
 0x9e9   : > { %v5034_v2 = vmul.f32 %v6356_v46, %v5018_v7  ;;  %v4916_v11 = vadd.f32 1.1283791, %v4908_v49  ;;  %v4912_v30 = vmul.f32 %v4904_v54, %v8091_v36  ;;  %v5022_v33 = vmul.f32 %v8061_v20, %v4918_v19 }
 0x9ea   : > { %v5057_v8 = vpack.c.bf16 %v5053_v13, %v5049_v3  ;;  %v5055_v24 = vmul.f32 %v5047_v1, %v4823_v45  ;;  %v5016_v23 = vadd.f32 1.0, %v5008_v39  ;;  %v4822_v34 = vmul.f32 0.5, %v8031_v63 }
 0x9eb   : > { %v5042_v48 = vadd.f32 1.0, %v5034_v2  ;;  %v5020_v18 = vmul.f32 %v8004_v6, %v4916_v11  ;;  %v4920_v58 = vadd.f32 1.1283791, %v4912_v30  ;;  %v4820_v28 = vmul.f32 0.5, %v7980_v26  ;;  %v5729_v26 = vld [vmem:[%s8260_s27] ss:$0 sm:$0xff] }
 0x9ec   : > { %v5059_v15 = vpack.c.bf16 %v5055_v24, %v5051_v16  ;;  %6361 = vrcp.f32 %v5016_v23  ;;  %v6358_v21 = vpop.eup %6357  ;;  %v4824_v6 = vmul.f32 0.5, %v8053_v40  ;;  %s6541_s27 = scalar_lea.vmem %s6540_s13, 512 }
 0x9ed   : > { %v5036_v56 = vmul.f32 %v6358_v21, %v5020_v18  ;;  %v5050_v32 = vmul.f32 %v5042_v48, %v4818_v50  ;;  %v5024_v38 = vmul.f32 %v8081_v41, %v4920_v58  ;;  %p6543_p12 = scmp.lt.s32.totalorder %s6541_s27, %s6535_s11 }
 0x9ef   : > { %v6360_v37 = vpop.eup %6359  ;;  %v5044_v9 = vadd.f32 1.0, %v5036_v56  ;;  %p6544_p13 = por %p6543_p12, %p6542_p11 }
 0x9f0   : > { %v5038_v61 = vmul.f32 %v6360_v37, %v5022_v33 }
 0x9f1   : > { %v5052_v57 = vmul.f32 %v5044_v9, %v4820_v28  ;;  %p6545_p8 = pnand %p6544_p13, %p6538_p1 }
 0x9f2   : > { %v5046_v4 = vadd.f32 1.0, %v5038_v61 }
 0x9f4   : > { %v5054_v27 = vmul.f32 %v5046_v4, %v4822_v34 }
 0x9f6   : > { %v6362_v59 = vpop.eup %6361  ;;  %v5058_v36 = vpack.c.bf16 %v5054_v27, %v5050_v32 }
 0x9f7   : > { %v5040_v20 = vmul.f32 %v6362_v59, %v5024_v38 }
 0x9f8   : > { %5356 = vmatprep.mubr.bf16.mxu1 %v5058_v36 }
 0x9f9   : > { %v5048_v52 = vadd.f32 1.0, %v5040_v20  ;;  %5357 = vmatmul.mubr.bf16.vlgmr.msra.gmra.mrb[48].mxu1 %v5057_v8 }
 0x9fb   : > { %v5056_v22 = vmul.f32 %v5048_v52, %v4824_v6 }
 0x9fd   : > { %v5060_v63 = vpack.c.bf16 %v5056_v22, %v5052_v57 }
 0x9ff   : > { %5397 = vmatprep.mubr.bf16.mxu0 %v5060_v63 }
 0xa00   : > { %5398 = vmatmul.mubr.bf16.vlgmr.msra.gmra.mrb[36].mxu0 %v5059_v15 }
 0xacc   : > { %v5835_v60 = vpop.f32.mrb[48].mxu1 }
 0xacd   : > { %v5836_v25 = vpop.f32.mrb[49].mxu1 }
 0xace   : > { %v5837_v41 = vadd.f32 %v5836_v25, %v5835_v60  ;;  %v5838_v31 = vpop.f32.mrb[50].mxu1 }
 0xacf   : > { %v5839_v10 = vpop.f32.mrb[51].mxu1 }
 0xad0   : > { %v5840_v42 = vadd.f32 %v5839_v10, %v5838_v31  ;;  %v5359_v29 = vadd.f32 %v5837_v41, %v5729_v26 }
 0xad2   : > { %v5362_v51 = vadd.f32 %v5840_v42, %v5729_v26 }
 0xad3   : > { %v5857_v40 = vpop.f32.mrb[36].mxu0 }
 0xad4   : > { %v5858_v62 = vpop.f32.mrb[37].mxu0 }
 0xad5   : > { %v5859_v14 = vadd.f32 %v5858_v62, %v5857_v40  ;;  %v5860_v17 = vpop.f32.mrb[38].mxu0 }
 0xad6   : > { %v5861_v55 = vpop.f32.mrb[39].mxu0 }
 0xad7   : > { %v5400_v5 = vadd.f32 %v5859_v14, %v5359_v29  ;;  %v5862_v12 = vadd.f32 %v5861_v55, %v5860_v17 }
 0xad9   : > { %v5406_v43 = vadd.f32 %v5400_v5, %v7945_v47  ;;  %v5403_v44 = vadd.f32 %v5862_v12, %v5362_v51 }
 0xadb   : > { %5408 = vst [vmem:[%s558_s8] sm:$0xff] %v5406_v43  ;;  %v5407_v35 = vadd.f32 %v5403_v44, %v7948_v53 }
 0xadd   : > { %5409 = vst [vmem:[%s558_s8 + $0x8] sm:$0xff] %v5407_v35 }
 0xade   : > { %6548 = shalt.err (!%p6545_p8)
}
 0xadf   : > { %s6549_s23 = scalar_lea.hbm %s8155_s25, 256  ;;  %s6553_s7 = scalar_lea.hbm %s8262_s22, 512 }
 0xae0   : > { %p6550_p6 = scmp.ne.s32.totalorder %s8155_s25, %s6549_s23  ;;  %p6554_p3 = scmp.lt.u32.totalorder %s8155_s25, %s8262_s22 }
 0xae1   : > { %p6555_p0 = scmp.lt.u32.totalorder %s6553_s7, %s6549_s23  ;;  %p6557_p2 = scmp.lt.u32.totalorder %s6549_s23, %s8155_s25 }
 0xae2   : > { %p6551_p9 = pnand %p6550_p6, %p8263_p7 }
 0xae3   : > { %p6556_p5 = por %p6555_p0, %p6554_p3 }
 0xae4   : > { %p6552_p4 = pneg %p6551_p9 }
 0xae5   : > { %p6558_p10 = por %p6557_p2, %p6556_p5 }
 0xae7   : > { %p6559_p1 = pnand %p6558_p10, %p6552_p4 }
 0xae9   : > { %6562 = shalt.err (!%p6559_p1)
}
 0xaea   : > { %s6642_s11 = smov 128   ;;  %s6643_s13 = smov 8  }
 0xaeb   : > { %6021 = dma.vmem_to_hbm [thread:$0]  (%p8263_p7), %s8150_s20, 256, %s8155_s25, %s5411_s17, %s6642_s11, %s6642_s11, %s6643_s13  }
 0xaec PF: > { %s5439_s27 = sand.u32 1, %s6601_s29   ;;  %p8264_p11 = scmp.ne.s32.totalorder %s8241_s18, 0 }
 0xaed   : > { %p8265_p12 = scmp.ge.s32.totalorder %s6613_s16, 2  ;;  %s5440_s23 = scalar_lea.sflag [#allocation4], %s5439_s27 }
 0xaef   : > { %p6044_p13 = pnand %p8265_p12, %p8264_p11 }
 0xaf1   : > { %6596 = dma.done.wait (!%p6044_p13), %s5440_s23, 256  }
 0xaf2   : > { %6598 = vsyncadd (!%p6044_p13), %s5440_s23, 4294967040  ;;  %p30_p8 = scmp.ge.s32.totalorder %s6882_s21, 4   ;;  %s8266_s29 = smov %s6605_s30 }
 0xaf3   : > { %s8267_s30 = smov %s6609_s15  ;;  %s8268_s15 = smov %s6894_s28 }
 0xaf4   : > { %s8269_s16 = smov %s6882_s21  ;;  %32 = sbr.rel (!%p30_p8) target bundleno = 15 (0xf), region = 141 }
 0xafb   :  { %5445 = vsyncpa [#allocation3], 1 }
 0xafc   :  { %5447 = vsyncpa [#allocation3 + $0x1], 1 }
 0xafd   :  { %5448 = vsyncpa [#allocation6], 1 }
 0xafe   :  { %5449 = vsyncpa [#allocation9], 1 }
 0xaff   :  { %5450 = vsyncpa [#allocation12], 1 }
 0xb00   :  { %5451 = vsyncpa [#allocation4], 1 }
 0xb01   :  { %5453 = vsyncpa [#allocation4 + $0x1], 1 }

</bundles_post_ra>
